<compile_context>
chip_gen: v7x
topology: tpu7x:2x2x1
jax: 0.10.0
libtpu: 0.0.40
codegen_flags: <defaults>
</compile_context>

<pallas_src>
import functools

import numpy as np
import jax
import jax.numpy as jnp
from jax.experimental import pallas as pl
from jax.experimental.pallas import tpu as pltpu


def _round_up(x, m):
    return ((x + m - 1) // m) * m


# ----------------------------------------------------------------------------
# Kernel 1: batched-branch conv GEMM (both f / fc branches in one pallas_call)
#   a: (2, Mp, K) bf16, w: (2, K, N) bf16, b: (2, 1, N) f32  ->  (2, Mp, N) bf16
# ----------------------------------------------------------------------------
def _conv_gemm_kernel(a_ref, w_ref, b_ref, o_ref):
    acc = jnp.dot(a_ref[...], w_ref[...], preferred_element_type=jnp.float32)
    acc = acc + b_ref[...]
    acc = jnp.where(acc > 0, acc, 0.01 * acc)          # LeakyReLU(0.01) in f32
    o_ref[...] = acc.astype(o_ref.dtype)


def conv_pair_gemm(patches, w, b):
    G, Mp, K = patches.shape
    N = w.shape[-1]
    return pl.pallas_call(
        _conv_gemm_kernel,
        out_shape=jax.ShapeDtypeStruct((G, Mp, N), jnp.bfloat16),
        grid_spec=pltpu.PrefetchScalarGridSpec(
            num_scalar_prefetch=0,
            grid=(G,),
            in_specs=[
                pl.BlockSpec((None, Mp, K), lambda g: (g, 0, 0)),
                pl.BlockSpec((None, K, N), lambda g: (g, 0, 0)),
                pl.BlockSpec((None, 1, N), lambda g: (g, 0, 0)),
            ],
            out_specs=pl.BlockSpec((None, Mp, N), lambda g: (g, 0, 0)),
        ),
        compiler_params=pltpu.CompilerParams(
            dimension_semantics=("parallel",)),
    )(patches, w, b)


# ----------------------------------------------------------------------------
# Kernel 2a: lin1  (h @ w1 + b1 -> LeakyReLU), column-split + K-tiled
#   grid = (n_split, Kp // tk); the n axis is "parallel" (v7x: one 512-column
#   half of w1 per TensorCore), the k axis is the reduction ("arbitrary").
# ----------------------------------------------------------------------------
def _lin1_kernel(h_ref, w1_ref, b1_ref, o_ref, acc_ref):
    k = pl.program_id(1)

    @pl.when(k == 0)
    def _():
        acc_ref[...] = jnp.broadcast_to(b1_ref[...], acc_ref.shape)  # bias fold

    acc_ref[...] += jnp.dot(h_ref[...], w1_ref[...],
                            preferred_element_type=jnp.float32)

    @pl.when(k == pl.num_programs(1) - 1)
    def _():
        a = acc_ref[...]
        o_ref[...] = jnp.where(a > 0, a, 0.01 * a).astype(o_ref.dtype)


def _pick_tk(Kp):
    # Largest lane-aligned (multiple-of-128) tile that divides Kp.  3200 keeps
    # the 6400-deep lin1 reduction at 2 grid steps per column half while the
    # (tk, 512) bf16 block stays ~3.3 MB (double-buffered ~6.6 MB), safely
    # inside every chip's default scoped-VMEM limit.  Kp is padded to a
    # multiple of 128 at init, so the loop always terminates at 128 and the
    # "full-K" double-buffer trap can never trigger.
    for tk in (3200, 2560, 2048, 1280, 1024, 896, 768, 640, 512, 384, 256, 128):
        if Kp % tk == 0:
            return tk
    return 128


def lin1_forward(h, w1, b1):
    Mp, Kp = h.shape
    N1 = w1.shape[1]
    n_split = 2 if N1 % 256 == 0 else 1
    Nh = N1 // n_split
    tk = _pick_tk(Kp)
    return pl.pallas_call(
        _lin1_kernel,
        out_shape=jax.ShapeDtypeStruct((Mp, N1), jnp.bfloat16),
        grid_spec=pltpu.PrefetchScalarGridSpec(
            num_scalar_prefetch=0,
            grid=(n_split, Kp // tk),
            in_specs=[
                pl.BlockSpec((Mp, tk), lambda n, k: (0, k)),
                pl.BlockSpec((tk, Nh), lambda n, k: (k, n)),
                pl.BlockSpec((1, Nh), lambda n, k: (0, n)),
            ],
            out_specs=pl.BlockSpec((Mp, Nh), lambda n, k: (0, n)),
            scratch_shapes=[pltpu.VMEM((Mp, Nh), jnp.float32)],
        ),
        compiler_params=pltpu.CompilerParams(
            dimension_semantics=("parallel", "arbitrary")),
    )(h, w1, b1)


# ----------------------------------------------------------------------------
# Kernel 2b: head tail  leaky(h1) was applied in 2a; here:
#   h1 -> noisy1 -> leaky -> noisy2(padded to 128 lanes) -> per-action softmax
#   No grid: every operand lives whole in VMEM (~1.2 MB total), the final
#   matmul is a single dot and the output is one lane-dense (Mp, 128) store.
# ----------------------------------------------------------------------------
def _head_tail_kernel(h1_ref, w2_ref, b2_ref, w3_ref, b3_ref, o_ref,
                      *, n_actions, n_atoms, log):
    h1 = h1_ref[...]                                                  # bf16
    h2 = jnp.dot(h1, w2_ref[...],
                 preferred_element_type=jnp.float32) + b2_ref[...]
    h2 = jnp.where(h2 > 0, h2, 0.01 * h2).astype(jnp.bfloat16)        # LeakyReLU
    z = jnp.dot(h2, w3_ref[...],
                preferred_element_type=jnp.float32) + b3_ref[...]     # (Mp, 128)
    parts = []
    for a in range(n_actions):                # static value slices, no ref ops
        za = z[:, a * n_atoms:(a + 1) * n_atoms]
        m = jnp.max(za, axis=-1, keepdims=True)
        zs = za - m
        e = jnp.exp(zs)
        s = jnp.sum(e, axis=-1, keepdims=True)
        parts.append(zs - jnp.log(s) if log else e / s)
    pad = z.shape[-1] - n_actions * n_atoms
    if pad:
        parts.append(jnp.zeros((z.shape[0], pad), jnp.float32))
    o_ref[...] = jnp.concatenate(parts, axis=-1)          # single unmasked vst


def head_tail(h1, w2, b2, w3, b3, *, n_actions, n_atoms, log):
    Mp = h1.shape[0]
    N3p = w3.shape[1]
    kern = functools.partial(_head_tail_kernel, n_actions=n_actions,
                             n_atoms=n_atoms, log=log)
    return pl.pallas_call(
        kern,
        out_shape=jax.ShapeDtypeStruct((Mp, N3p), jnp.float32),
    )(h1, w2, b2, w3, b3)


# ----------------------------------------------------------------------------
# Channels-last im2col glue + conv trunk
# ----------------------------------------------------------------------------
_CONV_KS = (7, 5, 3)
_CONV_STRIDES = (3, 2, 1)


def _im2col_nhwc(x, k, stride):
    """x: (N, H, W, C) channels-last -> (N, Ho*Wo, k*k*C); C stays on lanes."""
    N, H, W, C = x.shape
    Ho = (H - k) // stride + 1
    Wo = (W - k) // stride + 1
    cols = [x[:, i:i + stride * Ho:stride, j:j + stride * Wo:stride, :]
            for i in range(k) for j in range(k)]
    patches = jnp.stack(cols, axis=3)                      # (N, Ho, Wo, k*k, C)
    return patches.reshape(N, Ho * Wo, k * k * C), Ho, Wo


def conv_branches(f_nhwc, fc_nhwc, conv_params):
    x = jnp.stack([f_nhwc, fc_nhwc], axis=0)               # (2, B, H, W, C) bf16
    for (wp, bp), k, s in zip(conv_params, _CONV_KS, _CONV_STRIDES):
        G, B, H, W, C = x.shape
        patches, Ho, Wo = _im2col_nhwc(x.reshape(G * B, H, W, C), k, s)
        M = B * Ho * Wo
        patches = patches.reshape(G, M, k * k * C)
        Mp = _round_up(M, 16)
        Kp = wp.shape[1]                                   # K pre-padded at init
        patches = jnp.pad(patches, ((0, 0), (0, Mp - M),
                                    (0, Kp - patches.shape[2])))
        out = conv_pair_gemm(patches, wp, bp)              # (2, Mp, O) bf16
        x = out[:, :M, :].reshape(G, B, Ho, Wo, -1)
    return x                                               # (2, B, 5, 5, 128)


# ----------------------------------------------------------------------------
# Parameter init (mimics PyTorch init distributions) + weight pre-packing
# ----------------------------------------------------------------------------
def _uniform(key, shape, bound):
    return jax.random.uniform(key, shape, jnp.float32, -bound, bound)


def _init_conv(key, out_c, in_c, k):
    k1, k2 = jax.random.split(key)
    bound = 1.0 / np.sqrt(in_c * k * k)
    return _uniform(k1, (out_c, in_c, k, k), bound), _uniform(k2, (out_c,), bound)


def _init_linear(key, in_f, out_f):
    k1, k2 = jax.random.split(key)
    bound = 1.0 / np.sqrt(in_f)
    return _uniform(k1, (out_f, in_f), bound), _uniform(k2, (out_f,), bound)


def _init_noisy(key, in_f, out_f, std_init=0.5):
    # training mode -> effective W = W_mu + W_sigma * eps (same for bias)
    k1, k2, k3, k4 = jax.random.split(key, 4)
    mu = 1.0 / np.sqrt(in_f)
    w = (_uniform(k1, (out_f, in_f), mu)
         + (std_init / np.sqrt(in_f)) * jax.random.normal(k2, (out_f, in_f)))
    b = (_uniform(k3, (out_f,), mu)
         + (std_init / np.sqrt(out_f)) * jax.random.normal(k4, (out_f,)))
    return w, b


def _pack_conv_pair(layer_f, layer_fc):
    def pack_w(w):
        O, C, kh, kw = w.shape
        wm = w.transpose(2, 3, 1, 0).reshape(kh * kw * C, O)   # NHWC patch order
        Kp = _round_up(wm.shape[0], 128)
        wm = jnp.pad(wm, ((0, Kp - wm.shape[0]), (0, 0)))
        return wm.astype(jnp.bfloat16)
    (wf, bf), (wfc, bfc) = layer_f, layer_fc
    wp = jnp.stack([pack_w(wf), pack_w(wfc)], axis=0)          # (2, Kp, O) bf16
    bp = jnp.stack([bf.reshape(1, -1), bfc.reshape(1, -1)], axis=0)  # (2,1,O) f32
    return wp, bp


def init_network(key, n_frames, n_actions, n_atoms, final_spatial=5):
    ks = jax.random.split(key, 9)
    conv_defs = [(64, n_frames, 7), (128, 64, 5), (128, 128, 3)]
    conv_f = [_init_conv(ks[i], *d) for i, d in enumerate(conv_defs)]
    conv_fc = [_init_conv(ks[3 + i], *d) for i, d in enumerate(conv_defs)]
    conv = [_pack_conv_pair(lf, lfc) for lf, lfc in zip(conv_f, conv_fc)]

    feat = final_spatial * final_spatial * 128                 # 3200
    w1, b1 = _init_linear(ks[6], 2 * feat, 1024)
    w2, b2 = _init_noisy(ks[7], 1024, 512)
    w3, b3 = _init_noisy(ks[8], 512, n_actions * n_atoms)

    # lin1 columns follow PyTorch's NCHW flatten; our conv path stays NHWC, so
    # permute the columns once here (one-time pre-pack, not a per-call op).
    hh, ww, cc = np.meshgrid(np.arange(final_spatial), np.arange(final_spatial),
                             np.arange(128), indexing="ij")
    perm_half = (cc * final_spatial * final_spatial
                 + hh * final_spatial + ww).reshape(-1)
    perm = np.concatenate([perm_half, perm_half + feat])
    w1p = w1[:, perm].T                                        # (6400, 1024)
    Kp = _round_up(w1p.shape[0], 128)
    w1p = jnp.pad(w1p, ((0, Kp - w1p.shape[0]), (0, 0)))
    assert Kp % 128 == 0

    # pad the final layer to a full 128-lane output so the head's store is a
    # single unmasked lane-dense vst (padding is sliced off in the wrapper).
    N3 = n_actions * n_atoms
    N3p = _round_up(N3, 128)
    w3p = jnp.pad(w3.T, ((0, 0), (0, N3p - N3))).astype(jnp.bfloat16)
    b3p = jnp.pad(b3.reshape(1, -1), ((0, 0), (0, N3p - N3)))

    head = (w1p.astype(jnp.bfloat16), b1.reshape(1, -1),
            w2.T.astype(jnp.bfloat16), b2.reshape(1, -1),
            w3p, b3p)
    return {"conv": conv, "head": head}


# ----------------------------------------------------------------------------
# Network forward
# ----------------------------------------------------------------------------
def network_forward(params, f, fc, n_actions, n_atoms, log=False):
    """f, fc: (B, n_frames, H, W) float32 NCHW, as in the PyTorch module."""
    B = f.shape[0]
    f = jnp.transpose(f, (0, 2, 3, 1)).astype(jnp.bfloat16)    # NHWC, bf16
    fc = jnp.transpose(fc, (0, 2, 3, 1)).astype(jnp.bfloat16)
    feat = conv_branches(f, fc, params["conv"])                # (2, B, 5, 5, 128)
    feat = feat.reshape(2, B, -1)
    h = jnp.concatenate([feat[0], feat[1]], axis=1)            # (B, 6400) bf16

    w1, b1, w2, b2, w3, b3 = params["head"]
    Mp = _round_up(B, 16)
    Kp = w1.shape[0]
    h = jnp.pad(h, ((0, Mp - B), (0, Kp - h.shape[1])))
    h1 = lin1_forward(h, w1, b1)                               # (Mp, 1024) bf16
    probs = head_tail(h1, w2, b2, w3, b3, n_actions=n_actions,
                      n_atoms=n_atoms, log=log)                # (Mp, 128) f32
    return probs[:B, :n_actions * n_atoms].reshape(B, n_actions, n_atoms)


# ----------------------------------------------------------------------------
if __name__ == "__main__":
    # the hard-coded 5*5*128 flatten in the module implies a 55x55 input
    batch, n_frames, spatial = 2, 4, 55
    n_actions, n_atoms = 4, 8

    key = jax.random.PRNGKey(0)
    kp, kf, kfc = jax.random.split(key, 3)
    params = init_network(kp, n_frames, n_actions, n_atoms)
    f = jax.random.normal(kf, (batch, n_frames, spatial, spatial), jnp.float32)
    fc = jax.random.normal(kfc, (batch, n_frames, spatial, spatial), jnp.float32)

    fwd = jax.jit(network_forward, static_argnums=(3, 4, 5))
    out = jax.block_until_ready(fwd(params, f, fc, n_actions, n_atoms, False))
    assert out.shape == (batch, n_actions, n_atoms)
    # probabilities along the atom axis should sum to 1
    assert np.allclose(np.asarray(out, dtype=np.float64).sum(-1), 1.0, atol=1e-4)

    # also exercise the log_softmax path
    out_log = jax.block_until_ready(fwd(params, f, fc, n_actions, n_atoms, True))
    assert np.allclose(np.exp(np.asarray(out_log, dtype=np.float64)).sum(-1),
                       1.0, atol=1e-4)
    print("KERNEL_OK")
</pallas_src>

<mosaic_0001>
module attributes {stable_mosaic.version = 11 : i64} {
  func.func @_conv_gemm_kernel(%arg0: i32, %arg1: memref<1x592x256xbf16, #tpu.memory_space<vmem>>, %arg2: memref<1x256x64xbf16, #tpu.memory_space<vmem>>, %arg3: memref<1x1x64xf32, #tpu.memory_space<vmem>>, %arg4: memref<1x592x64xbf16, #tpu.memory_space<vmem>>) attributes {dimension_semantics = [#tpu.dimension_semantics<parallel>], iteration_bounds = array<i64: 2>, scalar_prefetch = 0 : i64, scratch_operands = 0 : i64, tpu.core_type = #tpu.core_type<tc>, window_params = [{transform_indices = @transform_0, window_bounds = array<i64: 1, 592, 256>}, {transform_indices = @transform_1, window_bounds = array<i64: 1, 256, 64>}, {transform_indices = @transform_2, window_bounds = array<i64: 1, 1, 64>}, {transform_indices = @transform_3, window_bounds = array<i64: 1, 592, 64>}]} {
    %c0 = arith.constant 0 : index
    %c0_0 = arith.constant 0 : index
    %c0_1 = arith.constant 0 : index
    %0 = vector.load %arg1[%c0, %c0_0, %c0_1] : memref<1x592x256xbf16, #tpu.memory_space<vmem>>, vector<1x592x256xbf16>
    %1 = vector.shape_cast %0 : vector<1x592x256xbf16> to vector<592x256xbf16>
    %c0_2 = arith.constant 0 : index
    %c0_3 = arith.constant 0 : index
    %c0_4 = arith.constant 0 : index
    %2 = vector.load %arg2[%c0_2, %c0_3, %c0_4] : memref<1x256x64xbf16, #tpu.memory_space<vmem>>, vector<1x256x64xbf16>
    %3 = vector.shape_cast %2 : vector<1x256x64xbf16> to vector<256x64xbf16>
    %cst = arith.constant dense<0.000000e+00> : vector<592x64xf32>
    %4 = tpu.matmul %1, %3, %cst {dimension_numbers = #tpu.dot_dimension_numbers<[1], [0], [0], [1], [0, 0, 1, 1], [], []>} : vector<592x256xbf16>, vector<256x64xbf16>, vector<592x64xf32> -> vector<592x64xf32>
    %c0_5 = arith.constant 0 : index
    %c0_6 = arith.constant 0 : index
    %c0_7 = arith.constant 0 : index
    %5 = vector.load %arg3[%c0_5, %c0_6, %c0_7] : memref<1x1x64xf32, #tpu.memory_space<vmem>>, vector<1x1x64xf32>
    %6 = vector.shape_cast %5 : vector<1x1x64xf32> to vector<1x64xf32>
    %7 = vector.broadcast %6 : vector<1x64xf32> to vector<592x64xf32>
    %8 = arith.addf %4, %7 : vector<592x64xf32>
    %cst_8 = arith.constant 0.000000e+00 : f32
    %9 = vector.broadcast %cst_8 : f32 to vector<592x64xf32>
    %10 = arith.cmpf ogt, %8, %9 : vector<592x64xf32>
    %cst_9 = arith.constant 0.00999999977 : f32
    %11 = vector.broadcast %cst_9 : f32 to vector<592x64xf32>
    %12 = arith.mulf %11, %8 : vector<592x64xf32>
    %13 = arith.select %10, %8, %12 : vector<592x64xi1>, vector<592x64xf32>
    %14 = arith.truncf %13 : vector<592x64xf32> to vector<592x64xbf16>
    %c0_10 = arith.constant 0 : index
    %c0_11 = arith.constant 0 : index
    %c0_12 = arith.constant 0 : index
    %15 = vector.load %arg4[%c0_10, %c0_11, %c0_12] : memref<1x592x64xbf16, #tpu.memory_space<vmem>>, vector<1x592x64xbf16>
    %16 = vector.shape_cast %15 : vector<1x592x64xbf16> to vector<592x64xbf16>
    %17 = vector.shape_cast %14 : vector<592x64xbf16> to vector<1x592x64xbf16>
    tpu.vector_store %arg4[%c0_10, %c0_11, %c0_12], %17 {strides = array<i32>} : memref<1x592x64xbf16, #tpu.memory_space<vmem>>, vector<1x592x64xbf16>,
    return
  }
  func.func @transform_0(%arg0: i32) -> (i32, i32, i32) {
    %c0_i32 = arith.constant 0 : i32
    %c0_i32_0 = arith.constant 0 : i32
    %c0_i32_1 = arith.constant 0 : i32
    return %arg0, %c0_i32, %c0_i32_0 : i32, i32, i32
  }
  func.func @transform_1(%arg0: i32) -> (i32, i32, i32) {
    %c0_i32 = arith.constant 0 : i32
    %c0_i32_0 = arith.constant 0 : i32
    %c0_i32_1 = arith.constant 0 : i32
    return %arg0, %c0_i32, %c0_i32_0 : i32, i32, i32
  }
  func.func @transform_2(%arg0: i32) -> (i32, i32, i32) {
    %c0_i32 = arith.constant 0 : i32
    %c0_i32_0 = arith.constant 0 : i32
    %c0_i32_1 = arith.constant 0 : i32
    return %arg0, %c0_i32, %c0_i32_0 : i32, i32, i32
  }
  func.func @transform_3(%arg0: i32) -> (i32, i32, i32) {
    %c0_i32 = arith.constant 0 : i32
    %c0_i32_0 = arith.constant 0 : i32
    %c0_i32_1 = arith.constant 0 : i32
    return %arg0, %c0_i32, %c0_i32_0 : i32, i32, i32
  }
}

module attributes {stable_mosaic.version = 11 : i64} {
  func.func @_conv_gemm_kernel(%arg0: i32, %arg1: memref<1x112x1664xbf16, #tpu.memory_space<vmem>>, %arg2: memref<1x1664x128xbf16, #tpu.memory_space<vmem>>, %arg3: memref<1x1x128xf32, #tpu.memory_space<vmem>>, %arg4: memref<1x112x128xbf16, #tpu.memory_space<vmem>>) attributes {dimension_semantics = [#tpu.dimension_semantics<parallel>], iteration_bounds = array<i64: 2>, scalar_prefetch = 0 : i64, scratch_operands = 0 : i64, tpu.core_type = #tpu.core_type<tc>, window_params = [{transform_indices = @transform_0, window_bounds = array<i64: 1, 112, 1664>}, {transform_indices = @transform_1, window_bounds = array<i64: 1, 1664, 128>}, {transform_indices = @transform_2, window_bounds = array<i64: 1, 1, 128>}, {transform_indices = @transform_3, window_bounds = array<i64: 1, 112, 128>}]} {
    %c0 = arith.constant 0 : index
    %c0_0 = arith.constant 0 : index
    %c0_1 = arith.constant 0 : index
    %0 = vector.load %arg1[%c0, %c0_0, %c0_1] : memref<1x112x1664xbf16, #tpu.memory_space<vmem>>, vector<1x112x1664xbf16>
    %1 = vector.shape_cast %0 : vector<1x112x1664xbf16> to vector<112x1664xbf16>
    %c0_2 = arith.constant 0 : index
    %c0_3 = arith.constant 0 : index
    %c0_4 = arith.constant 0 : index
    %2 = vector.load %arg2[%c0_2, %c0_3, %c0_4] : memref<1x1664x128xbf16, #tpu.memory_space<vmem>>, vector<1x1664x128xbf16>
    %3 = vector.shape_cast %2 : vector<1x1664x128xbf16> to vector<1664x128xbf16>
    %cst = arith.constant dense<0.000000e+00> : vector<112x128xf32>
    %4 = tpu.matmul %1, %3, %cst {dimension_numbers = #tpu.dot_dimension_numbers<[1], [0], [0], [1], [0, 0, 1, 1], [], []>} : vector<112x1664xbf16>, vector<1664x128xbf16>, vector<112x128xf32> -> vector<112x128xf32>
    %c0_5 = arith.constant 0 : index
    %c0_6 = arith.constant 0 : index
    %c0_7 = arith.constant 0 : index
    %5 = vector.load %arg3[%c0_5, %c0_6, %c0_7] : memref<1x1x128xf32, #tpu.memory_space<vmem>>, vector<1x1x128xf32>
    %6 = vector.shape_cast %5 : vector<1x1x128xf32> to vector<1x128xf32>
    %7 = vector.broadcast %6 : vector<1x128xf32> to vector<112x128xf32>
    %8 = arith.addf %4, %7 : vector<112x128xf32>
    %cst_8 = arith.constant 0.000000e+00 : f32
    %9 = vector.broadcast %cst_8 : f32 to vector<112x128xf32>
    %10 = arith.cmpf ogt, %8, %9 : vector<112x128xf32>
    %cst_9 = arith.constant 0.00999999977 : f32
    %11 = vector.broadcast %cst_9 : f32 to vector<112x128xf32>
    %12 = arith.mulf %11, %8 : vector<112x128xf32>
    %13 = arith.select %10, %8, %12 : vector<112x128xi1>, vector<112x128xf32>
    %14 = arith.truncf %13 : vector<112x128xf32> to vector<112x128xbf16>
    %c0_10 = arith.constant 0 : index
    %c0_11 = arith.constant 0 : index
    %c0_12 = arith.constant 0 : index
    %15 = vector.load %arg4[%c0_10, %c0_11, %c0_12] : memref<1x112x128xbf16, #tpu.memory_space<vmem>>, vector<1x112x128xbf16>
    %16 = vector.shape_cast %15 : vector<1x112x128xbf16> to vector<112x128xbf16>
    %17 = vector.shape_cast %14 : vector<112x128xbf16> to vector<1x112x128xbf16>
    tpu.vector_store %arg4[%c0_10, %c0_11, %c0_12], %17 {strides = array<i32>} : memref<1x112x128xbf16, #tpu.memory_space<vmem>>, vector<1x112x128xbf16>,
    return
  }
  func.func @transform_0(%arg0: i32) -> (i32, i32, i32) {
    %c0_i32 = arith.constant 0 : i32
    %c0_i32_0 = arith.constant 0 : i32
    %c0_i32_1 = arith.constant 0 : i32
    return %arg0, %c0_i32, %c0_i32_0 : i32, i32, i32
  }
  func.func @transform_1(%arg0: i32) -> (i32, i32, i32) {
    %c0_i32 = arith.constant 0 : i32
    %c0_i32_0 = arith.constant 0 : i32
    %c0_i32_1 = arith.constant 0 : i32
    return %arg0, %c0_i32, %c0_i32_0 : i32, i32, i32
  }
  func.func @transform_2(%arg0: i32) -> (i32, i32, i32) {
    %c0_i32 = arith.constant 0 : i32
    %c0_i32_0 = arith.constant 0 : i32
    %c0_i32_1 = arith.constant 0 : i32
    return %arg0, %c0_i32, %c0_i32_0 : i32, i32, i32
  }
  func.func @transform_3(%arg0: i32) -> (i32, i32, i32) {
    %c0_i32 = arith.constant 0 : i32
    %c0_i32_0 = arith.constant 0 : i32
    %c0_i32_1 = arith.constant 0 : i32
    return %arg0, %c0_i32, %c0_i32_0 : i32, i32, i32
  }
}

module attributes {stable_mosaic.version = 11 : i64} {
  func.func @_conv_gemm_kernel(%arg0: i32, %arg1: memref<1x64x1152xbf16, #tpu.memory_space<vmem>>, %arg2: memref<1x1152x128xbf16, #tpu.memory_space<vmem>>, %arg3: memref<1x1x128xf32, #tpu.memory_space<vmem>>, %arg4: memref<1x64x128xbf16, #tpu.memory_space<vmem>>) attributes {dimension_semantics = [#tpu.dimension_semantics<parallel>], iteration_bounds = array<i64: 2>, scalar_prefetch = 0 : i64, scratch_operands = 0 : i64, tpu.core_type = #tpu.core_type<tc>, window_params = [{transform_indices = @transform_0, window_bounds = array<i64: 1, 64, 1152>}, {transform_indices = @transform_1, window_bounds = array<i64: 1, 1152, 128>}, {transform_indices = @transform_2, window_bounds = array<i64: 1, 1, 128>}, {transform_indices = @transform_3, window_bounds = array<i64: 1, 64, 128>}]} {
    %c0 = arith.constant 0 : index
    %c0_0 = arith.constant 0 : index
    %c0_1 = arith.constant 0 : index
    %0 = vector.load %arg1[%c0, %c0_0, %c0_1] : memref<1x64x1152xbf16, #tpu.memory_space<vmem>>, vector<1x64x1152xbf16>
    %1 = vector.shape_cast %0 : vector<1x64x1152xbf16> to vector<64x1152xbf16>
    %c0_2 = arith.constant 0 : index
    %c0_3 = arith.constant 0 : index
    %c0_4 = arith.constant 0 : index
    %2 = vector.load %arg2[%c0_2, %c0_3, %c0_4] : memref<1x1152x128xbf16, #tpu.memory_space<vmem>>, vector<1x1152x128xbf16>
    %3 = vector.shape_cast %2 : vector<1x1152x128xbf16> to vector<1152x128xbf16>
    %cst = arith.constant dense<0.000000e+00> : vector<64x128xf32>
    %4 = tpu.matmul %1, %3, %cst {dimension_numbers = #tpu.dot_dimension_numbers<[1], [0], [0], [1], [0, 0, 1, 1], [], []>} : vector<64x1152xbf16>, vector<1152x128xbf16>, vector<64x128xf32> -> vector<64x128xf32>
    %c0_5 = arith.constant 0 : index
    %c0_6 = arith.constant 0 : index
    %c0_7 = arith.constant 0 : index
    %5 = vector.load %arg3[%c0_5, %c0_6, %c0_7] : memref<1x1x128xf32, #tpu.memory_space<vmem>>, vector<1x1x128xf32>
    %6 = vector.shape_cast %5 : vector<1x1x128xf32> to vector<1x128xf32>
    %7 = vector.broadcast %6 : vector<1x128xf32> to vector<64x128xf32>
    %8 = arith.addf %4, %7 : vector<64x128xf32>
    %cst_8 = arith.constant 0.000000e+00 : f32
    %9 = vector.broadcast %cst_8 : f32 to vector<64x128xf32>
    %10 = arith.cmpf ogt, %8, %9 : vector<64x128xf32>
    %cst_9 = arith.constant 0.00999999977 : f32
    %11 = vector.broadcast %cst_9 : f32 to vector<64x128xf32>
    %12 = arith.mulf %11, %8 : vector<64x128xf32>
    %13 = arith.select %10, %8, %12 : vector<64x128xi1>, vector<64x128xf32>
    %14 = arith.truncf %13 : vector<64x128xf32> to vector<64x128xbf16>
    %c0_10 = arith.constant 0 : index
    %c0_11 = arith.constant 0 : index
    %c0_12 = arith.constant 0 : index
    %15 = vector.load %arg4[%c0_10, %c0_11, %c0_12] : memref<1x64x128xbf16, #tpu.memory_space<vmem>>, vector<1x64x128xbf16>
    %16 = vector.shape_cast %15 : vector<1x64x128xbf16> to vector<64x128xbf16>
    %17 = vector.shape_cast %14 : vector<64x128xbf16> to vector<1x64x128xbf16>
    tpu.vector_store %arg4[%c0_10, %c0_11, %c0_12], %17 {strides = array<i32>} : memref<1x64x128xbf16, #tpu.memory_space<vmem>>, vector<1x64x128xbf16>,
    return
  }
  func.func @transform_0(%arg0: i32) -> (i32, i32, i32) {
    %c0_i32 = arith.constant 0 : i32
    %c0_i32_0 = arith.constant 0 : i32
    %c0_i32_1 = arith.constant 0 : i32
    return %arg0, %c0_i32, %c0_i32_0 : i32, i32, i32
  }
  func.func @transform_1(%arg0: i32) -> (i32, i32, i32) {
    %c0_i32 = arith.constant 0 : i32
    %c0_i32_0 = arith.constant 0 : i32
    %c0_i32_1 = arith.constant 0 : i32
    return %arg0, %c0_i32, %c0_i32_0 : i32, i32, i32
  }
  func.func @transform_2(%arg0: i32) -> (i32, i32, i32) {
    %c0_i32 = arith.constant 0 : i32
    %c0_i32_0 = arith.constant 0 : i32
    %c0_i32_1 = arith.constant 0 : i32
    return %arg0, %c0_i32, %c0_i32_0 : i32, i32, i32
  }
  func.func @transform_3(%arg0: i32) -> (i32, i32, i32) {
    %c0_i32 = arith.constant 0 : i32
    %c0_i32_0 = arith.constant 0 : i32
    %c0_i32_1 = arith.constant 0 : i32
    return %arg0, %c0_i32, %c0_i32_0 : i32, i32, i32
  }
}

module attributes {stable_mosaic.version = 11 : i64} {
  func.func @_lin1_kernel(%arg0: i32, %arg1: i32, %arg2: memref<16x3200xbf16, #tpu.memory_space<vmem>>, %arg3: memref<3200x512xbf16, #tpu.memory_space<vmem>>, %arg4: memref<1x512xf32, #tpu.memory_space<vmem>>, %arg5: memref<16x512xbf16, #tpu.memory_space<vmem>>, %arg6: memref<16x512xf32, #tpu.memory_space<vmem>>) attributes {dimension_semantics = [#tpu.dimension_semantics<parallel>, #tpu.dimension_semantics<arbitrary>], iteration_bounds = array<i64: 2, 2>, scalar_prefetch = 0 : i64, scratch_operands = 1 : i64, tpu.core_type = #tpu.core_type<tc>, window_params = [{transform_indices = @transform_0, window_bounds = array<i64: 16, 3200>}, {transform_indices = @transform_1, window_bounds = array<i64: 3200, 512>}, {transform_indices = @transform_2, window_bounds = array<i64: 1, 512>}, {transform_indices = @transform_3, window_bounds = array<i64: 16, 512>}]} {
    %c0_i32 = arith.constant 0 : i32
    %0 = arith.cmpi eq, %arg1, %c0_i32 : i32
    %1 = arith.extui %0 : i1 to i32
    %c0_i32_0 = arith.constant 0 : i32
    %2 = arith.cmpi ne, %1, %c0_i32_0 : i32
    scf.if %2 {
      %c0_9 = arith.constant 0 : index
      %c0_10 = arith.constant 0 : index
      %12 = vector.load %arg4[%c0_9, %c0_10] : memref<1x512xf32, #tpu.memory_space<vmem>>, vector<1x512xf32>
      %13 = vector.shape_cast %12 : vector<1x512xf32> to vector<1x512xf32>
      %14 = vector.broadcast %13 : vector<1x512xf32> to vector<16x512xf32>
      %c0_11 = arith.constant 0 : index
      %c0_12 = arith.constant 0 : index
      %15 = vector.load %arg6[%c0_11, %c0_12] : memref<16x512xf32, #tpu.memory_space<vmem>>, vector<16x512xf32>
      tpu.vector_store %arg6[%c0_11, %c0_12], %14 {strides = array<i32>} : memref<16x512xf32, #tpu.memory_space<vmem>>, vector<16x512xf32>,
    } else {
    }
    %c0 = arith.constant 0 : index
    %c0_1 = arith.constant 0 : index
    %3 = vector.load %arg6[%c0, %c0_1] : memref<16x512xf32, #tpu.memory_space<vmem>>, vector<16x512xf32>
    %c0_2 = arith.constant 0 : index
    %c0_3 = arith.constant 0 : index
    %4 = vector.load %arg2[%c0_2, %c0_3] : memref<16x3200xbf16, #tpu.memory_space<vmem>>, vector<16x3200xbf16>
    %c0_4 = arith.constant 0 : index
    %c0_5 = arith.constant 0 : index
    %5 = vector.load %arg3[%c0_4, %c0_5] : memref<3200x512xbf16, #tpu.memory_space<vmem>>, vector<3200x512xbf16>
    %cst = arith.constant dense<0.000000e+00> : vector<16x512xf32>
    %6 = tpu.matmul %4, %5, %cst {dimension_numbers = #tpu.dot_dimension_numbers<[1], [0], [0], [1], [0, 0, 1, 1], [], []>} : vector<16x3200xbf16>, vector<3200x512xbf16>, vector<16x512xf32> -> vector<16x512xf32>
    %7 = arith.addf %3, %6 : vector<16x512xf32>
    %c0_6 = arith.constant 0 : index
    %c0_7 = arith.constant 0 : index
    %8 = vector.load %arg6[%c0_6, %c0_7] : memref<16x512xf32, #tpu.memory_space<vmem>>, vector<16x512xf32>
    tpu.vector_store %arg6[%c0_6, %c0_7], %7 {strides = array<i32>} : memref<16x512xf32, #tpu.memory_space<vmem>>, vector<16x512xf32>,
    %c1_i32 = arith.constant 1 : i32
    %9 = arith.cmpi eq, %arg1, %c1_i32 : i32
    %10 = arith.extui %9 : i1 to i32
    %c0_i32_8 = arith.constant 0 : i32
    %11 = arith.cmpi ne, %10, %c0_i32_8 : i32
    scf.if %11 {
      %c0_9 = arith.constant 0 : index
      %c0_10 = arith.constant 0 : index
      %12 = vector.load %arg6[%c0_9, %c0_10] : memref<16x512xf32, #tpu.memory_space<vmem>>, vector<16x512xf32>
      %cst_11 = arith.constant 0.000000e+00 : f32
      %13 = vector.broadcast %cst_11 : f32 to vector<16x512xf32>
      %14 = arith.cmpf ogt, %12, %13 : vector<16x512xf32>
      %cst_12 = arith.constant 0.00999999977 : f32
      %15 = vector.broadcast %cst_12 : f32 to vector<16x512xf32>
      %16 = arith.mulf %15, %12 : vector<16x512xf32>
      %17 = arith.select %14, %12, %16 : vector<16x512xi1>, vector<16x512xf32>
      %18 = arith.truncf %17 : vector<16x512xf32> to vector<16x512xbf16>
      %c0_13 = arith.constant 0 : index
      %c0_14 = arith.constant 0 : index
      %19 = vector.load %arg5[%c0_13, %c0_14] : memref<16x512xbf16, #tpu.memory_space<vmem>>, vector<16x512xbf16>
      tpu.vector_store %arg5[%c0_13, %c0_14], %18 {strides = array<i32>} : memref<16x512xbf16, #tpu.memory_space<vmem>>, vector<16x512xbf16>,
    } else {
    }
    return
  }
  func.func @transform_0(%arg0: i32, %arg1: i32) -> (i32, i32) {
    %c0_i32 = arith.constant 0 : i32
    %c0_i32_0 = arith.constant 0 : i32
    return %c0_i32, %arg1 : i32, i32
  }
  func.func @transform_1(%arg0: i32, %arg1: i32) -> (i32, i32) {
    %c0_i32 = arith.constant 0 : i32
    return %arg1, %arg0 : i32, i32
  }
  func.func @transform_2(%arg0: i32, %arg1: i32) -> (i32, i32) {
    %c0_i32 = arith.constant 0 : i32
    %c0_i32_0 = arith.constant 0 : i32
    return %c0_i32, %arg0 : i32, i32
  }
  func.func @transform_3(%arg0: i32, %arg1: i32) -> (i32, i32) {
    %c0_i32 = arith.constant 0 : i32
    %c0_i32_0 = arith.constant 0 : i32
    return %c0_i32, %arg0 : i32, i32
  }
}

module attributes {stable_mosaic.version = 11 : i64} {
  func.func @_head_tail_kernel(%arg0: memref<16x1024xbf16, #tpu.memory_space<vmem>>, %arg1: memref<1024x512xbf16, #tpu.memory_space<vmem>>, %arg2: memref<1x512xf32, #tpu.memory_space<vmem>>, %arg3: memref<512x128xbf16, #tpu.memory_space<vmem>>, %arg4: memref<1x128xf32, #tpu.memory_space<vmem>>, %arg5: memref<16x128xf32, #tpu.memory_space<vmem>>) attributes {dimension_semantics = [], scalar_prefetch = 0 : i64, scratch_operands = 0 : i64, tpu.core_type = #tpu.core_type<tc>} {
    %c0 = arith.constant 0 : index
    %c0_0 = arith.constant 0 : index
    %0 = vector.load %arg0[%c0, %c0_0] : memref<16x1024xbf16, #tpu.memory_space<vmem>>, vector<16x1024xbf16>
    %c0_1 = arith.constant 0 : index
    %c0_2 = arith.constant 0 : index
    %1 = vector.load %arg1[%c0_1, %c0_2] : memref<1024x512xbf16, #tpu.memory_space<vmem>>, vector<1024x512xbf16>
    %cst = arith.constant dense<0.000000e+00> : vector<16x512xf32>
    %2 = tpu.matmul %0, %1, %cst {dimension_numbers = #tpu.dot_dimension_numbers<[1], [0], [0], [1], [0, 0, 1, 1], [], []>} : vector<16x1024xbf16>, vector<1024x512xbf16>, vector<16x512xf32> -> vector<16x512xf32>
    %c0_3 = arith.constant 0 : index
    %c0_4 = arith.constant 0 : index
    %3 = vector.load %arg2[%c0_3, %c0_4] : memref<1x512xf32, #tpu.memory_space<vmem>>, vector<1x512xf32>
    %4 = vector.broadcast %3 : vector<1x512xf32> to vector<16x512xf32>
    %5 = arith.addf %2, %4 : vector<16x512xf32>
    %cst_5 = arith.constant 0.000000e+00 : f32
    %6 = vector.broadcast %cst_5 : f32 to vector<16x512xf32>
    %7 = arith.cmpf ogt, %5, %6 : vector<16x512xf32>
    %cst_6 = arith.constant 0.00999999977 : f32
    %8 = vector.broadcast %cst_6 : f32 to vector<16x512xf32>
    %9 = arith.mulf %8, %5 : vector<16x512xf32>
    %10 = arith.select %7, %5, %9 : vector<16x512xi1>, vector<16x512xf32>
    %11 = arith.truncf %10 : vector<16x512xf32> to vector<16x512xbf16>
    %c0_7 = arith.constant 0 : index
    %c0_8 = arith.constant 0 : index
    %12 = vector.load %arg3[%c0_7, %c0_8] : memref<512x128xbf16, #tpu.memory_space<vmem>>, vector<512x128xbf16>
    %cst_9 = arith.constant dense<0.000000e+00> : vector<16x128xf32>
    %13 = tpu.matmul %11, %12, %cst_9 {dimension_numbers = #tpu.dot_dimension_numbers<[1], [0], [0], [1], [0, 0, 1, 1], [], []>} : vector<16x512xbf16>, vector<512x128xbf16>, vector<16x128xf32> -> vector<16x128xf32>
    %c0_10 = arith.constant 0 : index
    %c0_11 = arith.constant 0 : index
    %14 = vector.load %arg4[%c0_10, %c0_11] : memref<1x128xf32, #tpu.memory_space<vmem>>, vector<1x128xf32>
    %15 = vector.broadcast %14 : vector<1x128xf32> to vector<16x128xf32>
    %16 = arith.addf %13, %15 : vector<16x128xf32>
    %17 = vector.extract_strided_slice %16 {offsets = [0, 0], sizes = [16, 8], strides = [1, 1]} : vector<16x128xf32> to vector<16x8xf32>
    %cst_12 = arith.constant dense<0xFF800000> : vector<16xf32>
    %18 = vector.multi_reduction <maximumf>, %17, %cst_12 [1] : vector<16x8xf32> to vector<16xf32>
    %19 = vector.shape_cast %18 : vector<16xf32> to vector<16x1xf32>
    %20 = vector.broadcast %19 : vector<16x1xf32> to vector<16x8xf32>
    %21 = arith.subf %17, %20 : vector<16x8xf32>
    %22 = math.exp %21 : vector<16x8xf32>
    %cst_13 = arith.constant dense<0.000000e+00> : vector<16xf32>
    %23 = vector.multi_reduction <add>, %22, %cst_13 [1] : vector<16x8xf32> to vector<16xf32>
    %24 = vector.shape_cast %23 : vector<16xf32> to vector<16x1xf32>
    %25 = vector.broadcast %24 : vector<16x1xf32> to vector<16x8xf32>
    %26 = arith.divf %22, %25 : vector<16x8xf32>
    %27 = vector.extract_strided_slice %16 {offsets = [0, 8], sizes = [16, 8], strides = [1, 1]} : vector<16x128xf32> to vector<16x8xf32>
    %cst_14 = arith.constant dense<0xFF800000> : vector<16xf32>
    %28 = vector.multi_reduction <maximumf>, %27, %cst_14 [1] : vector<16x8xf32> to vector<16xf32>
    %29 = vector.shape_cast %28 : vector<16xf32> to vector<16x1xf32>
    %30 = vector.broadcast %29 : vector<16x1xf32> to vector<16x8xf32>
    %31 = arith.subf %27, %30 : vector<16x8xf32>
    %32 = math.exp %31 : vector<16x8xf32>
    %cst_15 = arith.constant dense<0.000000e+00> : vector<16xf32>
    %33 = vector.multi_reduction <add>, %32, %cst_15 [1] : vector<16x8xf32> to vector<16xf32>
    %34 = vector.shape_cast %33 : vector<16xf32> to vector<16x1xf32>
    %35 = vector.broadcast %34 : vector<16x1xf32> to vector<16x8xf32>
    %36 = arith.divf %32, %35 : vector<16x8xf32>
    %37 = vector.extract_strided_slice %16 {offsets = [0, 16], sizes = [16, 8], strides = [1, 1]} : vector<16x128xf32> to vector<16x8xf32>
    %cst_16 = arith.constant dense<0xFF800000> : vector<16xf32>
    %38 = vector.multi_reduction <maximumf>, %37, %cst_16 [1] : vector<16x8xf32> to vector<16xf32>
    %39 = vector.shape_cast %38 : vector<16xf32> to vector<16x1xf32>
    %40 = vector.broadcast %39 : vector<16x1xf32> to vector<16x8xf32>
    %41 = arith.subf %37, %40 : vector<16x8xf32>
    %42 = math.exp %41 : vector<16x8xf32>
    %cst_17 = arith.constant dense<0.000000e+00> : vector<16xf32>
    %43 = vector.multi_reduction <add>, %42, %cst_17 [1] : vector<16x8xf32> to vector<16xf32>
    %44 = vector.shape_cast %43 : vector<16xf32> to vector<16x1xf32>
    %45 = vector.broadcast %44 : vector<16x1xf32> to vector<16x8xf32>
    %46 = arith.divf %42, %45 : vector<16x8xf32>
    %47 = vector.extract_strided_slice %16 {offsets = [0, 24], sizes = [16, 8], strides = [1, 1]} : vector<16x128xf32> to vector<16x8xf32>
    %cst_18 = arith.constant dense<0xFF800000> : vector<16xf32>
    %48 = vector.multi_reduction <maximumf>, %47, %cst_18 [1] : vector<16x8xf32> to vector<16xf32>
    %49 = vector.shape_cast %48 : vector<16xf32> to vector<16x1xf32>
    %50 = vector.broadcast %49 : vector<16x1xf32> to vector<16x8xf32>
    %51 = arith.subf %47, %50 : vector<16x8xf32>
    %52 = math.exp %51 : vector<16x8xf32>
    %cst_19 = arith.constant dense<0.000000e+00> : vector<16xf32>
    %53 = vector.multi_reduction <add>, %52, %cst_19 [1] : vector<16x8xf32> to vector<16xf32>
    %54 = vector.shape_cast %53 : vector<16xf32> to vector<16x1xf32>
    %55 = vector.broadcast %54 : vector<16x1xf32> to vector<16x8xf32>
    %56 = arith.divf %52, %55 : vector<16x8xf32>
    %cst_20 = arith.constant 0.000000e+00 : f32
    %57 = vector.broadcast %cst_20 : f32 to vector<16x96xf32>
    %58 = tpu.concatenate %26, %36, %46, %56, %57 in 1 : vector<16x8xf32>, vector<16x8xf32>, vector<16x8xf32>, vector<16x8xf32>, vector<16x96xf32> -> vector<16x128xf32>
    %c0_21 = arith.constant 0 : index
    %c0_22 = arith.constant 0 : index
    %59 = vector.load %arg5[%c0_21, %c0_22] : memref<16x128xf32, #tpu.memory_space<vmem>>, vector<16x128xf32>
    tpu.vector_store %arg5[%c0_21, %c0_22], %58 {strides = array<i32>} : memref<16x128xf32, #tpu.memory_space<vmem>>, vector<16x128xf32>,
    return
  }
}

</mosaic_0001>

<bundles_post_ra>
// kernel: network_forward.5
= control target key start
LH: loop header
LB: loop body
LE: loop exit
PB: predicated region body
PF: predicated region fallthrough
CT: control target
= control target key end

     0   :  { %s2234_s12 = smov 0   ;;  %s2621_s0 = inlined_call_operand.vmem [shape: bf16[2,592,256], index: 0, kind: input, shape index: {}]   ;;  %s2622_s1 = inlined_call_operand.vmem [shape: bf16[2,256,64], index: 1, kind: input, shape index: {}]   ;;  %s2623_s2 = inlined_call_operand.vmem [shape: f32[2,1,64], index: 2, kind: input, shape index: {}]   ;;  %s2624_s3 = inlined_call_operand.vmem [shape: bf16[2,592,64], index: 3, kind: output, shape index: {}]  }
   0x1 LB: > { %s1783_s13 = sadd.s32 4294967295, %s2211_s12   ;;  %p1787_p0 = scmp.ge.s32.totalorder %s2211_s12, 1  ;;  %s2211_s12 = sphi %s2234_s12, %s13_s12  }
   0x2   : > { %p155_p1 = scmp.lt.s32.totalorder %s2211_s12, 3 }
   0x4   : > { %p156_p2 = pnand %p1787_p0, %p155_p1 }
   0x5   : > { %p187_p3 = scmp.lt.s32.totalorder (!%p156_p2), %s1783_s13, 1  ;;  %v2213_v0 = vmov (!%p156_p2), 0   ;;  %vm1632_vm2 = vcmask (!%p156_p2), 519168  }
   0x6   : > { %159 = sbr.rel (%p156_p2) target bundleno = 446 (0x1be), region = 32  ;;  %785 = vmatprep.subr.bf16.mxu0 (!%p156_p2), %v2213_v0  ;;  %2034 = vmatprep.subr.bf16.mxu1 (!%p156_p2), %v2213_v0 }
   0xd   : > { %s2626_s13 = smov (!%p187_p3, %s1783_s13), 1 }
   0xe   : > { %s1959_s14 = sshll.u32 %s2626_s13, 7  ;;  %s2066_s18 = smul.u32 592, %s2626_s13 }
   0xf   : > { %s2250_s17 = scalar_lea.vmem %s2622_s1, %s1959_s14  ;;  %s2382_s24 = scalar_lea.vmem %s2623_s2, %s2626_s13 }
  0x10   : > { %v2077_v1 = vld [vmem:[%s2250_s17] sm:$0xff]   ;;  %v2078_v2 = vld [vmem:[%s2250_s17 + $0x8] sm:$0xff]   ;;  %v2079_v3 = vld [vmem:[%s2250_s17 + $0x10] sm:$0xff]   ;;  %s2267_s21 = scalar_lea.vmem %s2621_s0, %s2066_s18  ;;  %s2067_s25 = smul.u32 296, %s2626_s13 }
  0x11   : > { %786 = vmatpush1.bf16.msra.mxu0 %v2077_v1  ;;  %2050 = vmatpush1.bf16.msra.mxu1 %v2077_v1  ;;  %v2080_v4 = vld [vmem:[%s2250_s17 + $0x18] sm:$0xff]   ;;  %v2081_v5 = vld [vmem:[%s2250_s17 + $0x20] sm:$0xff]   ;;  %v2082_v7 = vld [vmem:[%s2250_s17 + $0x28] sm:$0xff]  }
  0x12   : > { %787 = vmatprep.subr.bf16.mxu0 %v2213_v0  ;;  %2035 = vmatprep.subr.bf16.mxu1 %v2213_v0  ;;  %v2095_v6 = vld [vmem:[%s2267_s21 + $0x4] ss:$8 sps:$4 sm:$0xff]   ;;  %v2098_v8 = vld [vmem:[%s2267_s21 + $0x134] ss:$8 sps:$4 sm:$0xff]   ;;  %v2093_v19 = vld [vmem:[%s2267_s21] ss:$8 sps:$4 sm:$0xff]   ;;  %s2395_s28 = scalar_lea.vmem %s2624_s3, %s2067_s25 }
  0x13   : > { %817 = vmatprep.mubr.bf16.mxu0 %v2095_v6  ;;  %969 = vmatprep.mubr.bf16.mxu1 %v2098_v8  ;;  %v2083_v9 = vld [vmem:[%s2250_s17 + $0x30] sm:$0xff]   ;;  %v2084_v10 = vld [vmem:[%s2250_s17 + $0x38] sm:$0xff]   ;;  %v2085_v11 = vld [vmem:[%s2250_s17 + $0x40] sm:$0xff]  }
  0x14   : > { %v2086_v12 = vld [vmem:[%s2250_s17 + $0x48] sm:$0xff]   ;;  %v2087_v13 = vld [vmem:[%s2250_s17 + $0x50] sm:$0xff]   ;;  %v2088_v14 = vld [vmem:[%s2250_s17 + $0x58] sm:$0xff]  }
  0x15   : > { %788 = vmatpush1.bf16.msra.mxu0 %v2078_v2  ;;  %2051 = vmatpush1.bf16.msra.mxu1 %v2078_v2  ;;  %v2089_v15 = vld [vmem:[%s2250_s17 + $0x60] sm:$0xff]   ;;  %v2090_v16 = vld [vmem:[%s2250_s17 + $0x68] sm:$0xff]   ;;  %v2091_v17 = vld [vmem:[%s2250_s17 + $0x70] sm:$0xff]  }
  0x16   : > { %789 = vmatprep.subr.bf16.mxu0 %v2213_v0  ;;  %2036 = vmatprep.subr.bf16.mxu1 %v2213_v0  ;;  %v2092_v18 = vld [vmem:[%s2250_s17 + $0x78] sm:$0xff]   ;;  %v2102_v22 = vld [vmem:[%s2267_s21 + $0x144] ss:$8 sps:$4 sm:$0xff]   ;;  %v2104_v24 = vld [vmem:[%s2267_s21 + $0x140] ss:$8 sps:$4 sm:$0xff]  }
  0x17   : > { %v2096_v20 = vld [vmem:[%s2267_s21 + $0x130] ss:$8 sps:$4 sm:$0xff]   ;;  %v2099_v21 = vld [vmem:[%s2267_s21 + $0x14] ss:$8 sps:$4 sm:$0xff]   ;;  %v2105_v25 = vld [vmem:[%s2267_s21 + $0x24] ss:$8 sps:$4 sm:$0xff]  }
  0x18   : > { %v2101_v23 = vld [vmem:[%s2267_s21 + $0x10] ss:$8 sps:$4 sm:$0xff]   ;;  %v2108_v26 = vld [vmem:[%s2267_s21 + $0x154] ss:$8 sps:$4 sm:$0xff]   ;;  %v2107_v27 = vld [vmem:[%s2267_s21 + $0x20] ss:$8 sps:$4 sm:$0xff]  }
  0x19   : > { %790 = vmatpush1.bf16.msra.mxu0 %v2079_v3  ;;  %2052 = vmatpush1.bf16.msra.mxu1 %v2079_v3  ;;  %v2110_v28 = vld [vmem:[%s2267_s21 + $0x150] ss:$8 sps:$4 sm:$0xff]   ;;  %v2111_v29 = vld [vmem:[%s2267_s21 + $0x34] ss:$8 sps:$4 sm:$0xff]   ;;  %v2114_v30 = vld [vmem:[%s2267_s21 + $0x164] ss:$8 sps:$4 sm:$0xff]  }
  0x1a   : > { %791 = vmatprep.subr.bf16.mxu0 %v2213_v0  ;;  %2037 = vmatprep.subr.bf16.mxu1 %v2213_v0  ;;  %v2113_v31 = vld [vmem:[%s2267_s21 + $0x30] ss:$8 sps:$4 sm:$0xff]   ;;  %v2116_v32 = vld [vmem:[%s2267_s21 + $0x160] ss:$8 sps:$4 sm:$0xff]   ;;  %v2117_v33 = vld [vmem:[%s2267_s21 + $0x44] ss:$8 sps:$4 sm:$0xff]  }
  0x1b   : > { %v2120_v34 = vld [vmem:[%s2267_s21 + $0x174] ss:$8 sps:$4 sm:$0xff]   ;;  %v2119_v35 = vld [vmem:[%s2267_s21 + $0x40] ss:$8 sps:$4 sm:$0xff]   ;;  %v2122_v36 = vld [vmem:[%s2267_s21 + $0x170] ss:$8 sps:$4 sm:$0xff]  }
  0x1c   : > { %v2123_v37 = vld [vmem:[%s2267_s21 + $0x54] ss:$8 sps:$4 sm:$0xff]   ;;  %v2126_v38 = vld [vmem:[%s2267_s21 + $0x184] ss:$8 sps:$4 sm:$0xff]   ;;  %v2125_v39 = vld [vmem:[%s2267_s21 + $0x50] ss:$8 sps:$4 sm:$0xff]  }
  0x1d   : > { %792 = vmatpush1.bf16.msra.mxu0 %v2080_v4  ;;  %2053 = vmatpush1.bf16.msra.mxu1 %v2080_v4  ;;  %v2128_v40 = vld [vmem:[%s2267_s21 + $0x180] ss:$8 sps:$4 sm:$0xff]   ;;  %v2129_v41 = vld [vmem:[%s2267_s21 + $0x64] ss:$8 sps:$4 sm:$0xff]   ;;  %v2132_v42 = vld [vmem:[%s2267_s21 + $0x194] ss:$8 sps:$4 sm:$0xff]  }
  0x1e   : > { %793 = vmatprep.subr.bf16.mxu0 %v2213_v0  ;;  %2038 = vmatprep.subr.bf16.mxu1 %v2213_v0  ;;  %v2131_v43 = vld [vmem:[%s2267_s21 + $0x60] ss:$8 sps:$4 sm:$0xff]   ;;  %v2134_v44 = vld [vmem:[%s2267_s21 + $0x190] ss:$8 sps:$4 sm:$0xff]   ;;  %v2135_v45 = vld [vmem:[%s2267_s21 + $0x74] ss:$8 sps:$4 sm:$0xff]  }
  0x1f   : > { %v2138_v46 = vld [vmem:[%s2267_s21 + $0x1a4] ss:$8 sps:$4 sm:$0xff]   ;;  %v2137_v47 = vld [vmem:[%s2267_s21 + $0x70] ss:$8 sps:$4 sm:$0xff]   ;;  %v2140_v48 = vld [vmem:[%s2267_s21 + $0x1a0] ss:$8 sps:$4 sm:$0xff]  }
  0x20   : > { %v2141_v49 = vld [vmem:[%s2267_s21 + $0x84] ss:$8 sps:$4 sm:$0xff]   ;;  %v2144_v50 = vld [vmem:[%s2267_s21 + $0x1b4] ss:$8 sps:$4 sm:$0xff]   ;;  %v2143_v51 = vld [vmem:[%s2267_s21 + $0x80] ss:$8 sps:$4 sm:$0xff]  }
  0x21   : > { %794 = vmatpush1.bf16.msra.mxu0 %v2081_v5  ;;  %2054 = vmatpush1.bf16.msra.mxu1 %v2081_v5  ;;  %v2146_v52 = vld [vmem:[%s2267_s21 + $0x1b0] ss:$8 sps:$4 sm:$0xff]   ;;  %v2147_v53 = vld [vmem:[%s2267_s21 + $0x94] ss:$8 sps:$4 sm:$0xff]   ;;  %v2150_v54 = vld [vmem:[%s2267_s21 + $0x1c4] ss:$8 sps:$4 sm:$0xff]  }
  0x22   : > { %795 = vmatprep.subr.bf16.mxu0 %v2213_v0  ;;  %2039 = vmatprep.subr.bf16.mxu1 %v2213_v0  ;;  %v2149_v55 = vld [vmem:[%s2267_s21 + $0x90] ss:$8 sps:$4 sm:$0xff]   ;;  %v2152_v56 = vld [vmem:[%s2267_s21 + $0x1c0] ss:$8 sps:$4 sm:$0xff]   ;;  %v2153_v57 = vld [vmem:[%s2267_s21 + $0xa4] ss:$8 sps:$4 sm:$0xff]  }
  0x23   : > { %v2156_v58 = vld [vmem:[%s2267_s21 + $0x1d4] ss:$8 sps:$4 sm:$0xff]   ;;  %v2155_v59 = vld [vmem:[%s2267_s21 + $0xa0] ss:$8 sps:$4 sm:$0xff]   ;;  %v2158_v60 = vld [vmem:[%s2267_s21 + $0x1d0] ss:$8 sps:$4 sm:$0xff]  }
  0x24   : > { %v2159_v61 = vld [vmem:[%s2267_s21 + $0xb4] ss:$8 sps:$4 sm:$0xff]   ;;  %v2162_v62 = vld [vmem:[%s2267_s21 + $0x1e4] ss:$8 sps:$4 sm:$0xff]   ;;  %v2161_v63 = vld [vmem:[%s2267_s21 + $0xb0] ss:$8 sps:$4 sm:$0xff]  }
  0x25   : > { %796 = vmatpush1.bf16.msra.mxu0 %v2082_v7  ;;  %2055 = vmatpush1.bf16.msra.mxu1 %v2082_v7  ;;  %v2165_v1 = vld [vmem:[%s2267_s21 + $0xc4] ss:$8 sps:$4 sm:$0xff]   ;;  %v2168_v2 = vld [vmem:[%s2267_s21 + $0x1f4] ss:$8 sps:$4 sm:$0xff]   ;;  %v2167_v3 = vld [vmem:[%s2267_s21 + $0xc0] ss:$8 sps:$4 sm:$0xff]  }
  0x26   : > { %797 = vmatprep.subr.bf16.mxu0 %v2213_v0  ;;  %2040 = vmatprep.subr.bf16.mxu1 %v2213_v0  ;;  %v2170_v4 = vld [vmem:[%s2267_s21 + $0x1f0] ss:$8 sps:$4 sm:$0xff]   ;;  %v2171_v5 = vld [vmem:[%s2267_s21 + $0xd4] ss:$8 sps:$4 sm:$0xff]   ;;  %v2174_v6 = vld [vmem:[%s2267_s21 + $0x204] ss:$8 sps:$4 sm:$0xff]  }
  0x27   : > { %v2173_v7 = vld [vmem:[%s2267_s21 + $0xd0] ss:$8 sps:$4 sm:$0xff]   ;;  %v2176_v8 = vld [vmem:[%s2267_s21 + $0x200] ss:$8 sps:$4 sm:$0xff]  }
  0x29   : > { %798 = vmatpush1.bf16.msra.mxu0 %v2083_v9  ;;  %2056 = vmatpush1.bf16.msra.mxu1 %v2083_v9  ;;  %v2177_v9 = vld [vmem:[%s2267_s21 + $0xe4] ss:$8 sps:$4 sm:$0xff]  }
  0x2a   : > { %799 = vmatprep.subr.bf16.mxu0 %v2213_v0  ;;  %2041 = vmatprep.subr.bf16.mxu1 %v2213_v0 }
  0x2d   : > { %800 = vmatpush1.bf16.msra.mxu0 %v2084_v10  ;;  %2057 = vmatpush1.bf16.msra.mxu1 %v2084_v10  ;;  %v2180_v10 = vld [vmem:[%s2267_s21 + $0x214] ss:$8 sps:$4 sm:$0xff]  }
  0x2e   : > { %801 = vmatprep.subr.bf16.mxu0 %v2213_v0  ;;  %2042 = vmatprep.subr.bf16.mxu1 %v2213_v0 }
  0x31   : > { %802 = vmatpush1.bf16.msra.mxu0 %v2085_v11  ;;  %2058 = vmatpush1.bf16.msra.mxu1 %v2085_v11  ;;  %v2179_v11 = vld [vmem:[%s2267_s21 + $0xe0] ss:$8 sps:$4 sm:$0xff]  }
  0x32   : > { %803 = vmatprep.subr.bf16.mxu0 %v2213_v0  ;;  %2043 = vmatprep.subr.bf16.mxu1 %v2213_v0 }
  0x35   : > { %804 = vmatpush1.bf16.msra.mxu0 %v2086_v12  ;;  %2059 = vmatpush1.bf16.msra.mxu1 %v2086_v12  ;;  %v2182_v12 = vld [vmem:[%s2267_s21 + $0x210] ss:$8 sps:$4 sm:$0xff]  }
  0x36   : > { %805 = vmatprep.subr.bf16.mxu0 %v2213_v0  ;;  %2044 = vmatprep.subr.bf16.mxu1 %v2213_v0 }
  0x39   : > { %806 = vmatpush1.bf16.msra.mxu0 %v2087_v13  ;;  %2060 = vmatpush1.bf16.msra.mxu1 %v2087_v13  ;;  %v2183_v13 = vld [vmem:[%s2267_s21 + $0xf4] ss:$8 sps:$4 sm:$0xff]  }
  0x3a   : > { %807 = vmatprep.subr.bf16.mxu0 %v2213_v0  ;;  %2045 = vmatprep.subr.bf16.mxu1 %v2213_v0 }
  0x3d   : > { %808 = vmatpush1.bf16.msra.mxu0 %v2088_v14  ;;  %2061 = vmatpush1.bf16.msra.mxu1 %v2088_v14  ;;  %v2186_v14 = vld [vmem:[%s2267_s21 + $0x224] ss:$8 sps:$4 sm:$0xff]  }
  0x3e   : > { %809 = vmatprep.subr.bf16.mxu0 %v2213_v0  ;;  %2046 = vmatprep.subr.bf16.mxu1 %v2213_v0 }
  0x41   : > { %810 = vmatpush1.bf16.msra.mxu0 %v2089_v15  ;;  %2062 = vmatpush1.bf16.msra.mxu1 %v2089_v15  ;;  %v2185_v15 = vld [vmem:[%s2267_s21 + $0xf0] ss:$8 sps:$4 sm:$0xff]  }
  0x42   : > { %811 = vmatprep.subr.bf16.mxu0 %v2213_v0  ;;  %2047 = vmatprep.subr.bf16.mxu1 %v2213_v0 }
  0x45   : > { %812 = vmatpush1.bf16.msra.mxu0 %v2090_v16  ;;  %2063 = vmatpush1.bf16.msra.mxu1 %v2090_v16  ;;  %v2188_v16 = vld [vmem:[%s2267_s21 + $0x220] ss:$8 sps:$4 sm:$0xff]  }
  0x46   : > { %813 = vmatprep.subr.bf16.mxu0 %v2213_v0  ;;  %2048 = vmatprep.subr.bf16.mxu1 %v2213_v0 }
  0x49   : > { %814 = vmatpush1.bf16.msra.mxu0 %v2091_v17  ;;  %2064 = vmatpush1.bf16.msra.mxu1 %v2091_v17  ;;  %v2189_v17 = vld [vmem:[%s2267_s21 + $0x104] ss:$8 sps:$4 sm:$0xff]  }
  0x4a   : > { %815 = vmatprep.subr.bf16.mxu0 %v2213_v0  ;;  %2049 = vmatprep.subr.bf16.mxu1 %v2213_v0  ;;  %v2164_v0 = vld [vmem:[%s2267_s21 + $0x1e0] ss:$8 sps:$4 sm:$0xff]  }
  0x4d   : > { %816 = vmatpush1.bf16.msra.mxu0 %v2092_v18  ;;  %2065 = vmatpush1.bf16.msra.mxu1 %v2092_v18  ;;  %v2192_v18 = vld [vmem:[%s2267_s21 + $0x234] ss:$8 sps:$4 sm:$0xff]  }
  0x50   : > { %818 = vmatmul.mubr.bf16.vlgmr.msra.gmra.mrb[0].mxu0 %v2093_v19  ;;  %970 = vmatmul.mubr.bf16.vlgmr.msra.gmra.mrb[0].mxu1 %v2096_v20  ;;  %v2191_v19 = vld [vmem:[%s2267_s21 + $0x100] ss:$8 sps:$4 sm:$0xff]   ;;  %v2194_v20 = vld [vmem:[%s2267_s21 + $0x230] ss:$8 sps:$4 sm:$0xff]  }
  0x51   : > { %825 = vmatprep.mubr.bf16.mxu0 %v2099_v21  ;;  %977 = vmatprep.mubr.bf16.mxu1 %v2102_v22  ;;  %v2195_v21 = vld [vmem:[%s2267_s21 + $0x114] ss:$8 sps:$4 sm:$0xff]   ;;  %v2198_v22 = vld [vmem:[%s2267_s21 + $0x244] ss:$8 sps:$4 sm:$0xff]  }
  0x58   : > { %826 = vmatmul.mubr.bf16.gmra.mrb[4].mxu0 %v2101_v23  ;;  %978 = vmatmul.mubr.bf16.gmra.mrb[4].mxu1 %v2104_v24  ;;  %v2197_v23 = vld [vmem:[%s2267_s21 + $0x110] ss:$8 sps:$4 sm:$0xff]   ;;  %v2200_v24 = vld [vmem:[%s2267_s21 + $0x240] ss:$8 sps:$4 sm:$0xff]  }
  0x59   : > { %833 = vmatprep.mubr.bf16.mxu0 %v2105_v25  ;;  %985 = vmatprep.mubr.bf16.mxu1 %v2108_v26  ;;  %v2201_v25 = vld [vmem:[%s2267_s21 + $0x124] ss:$8 sps:$4 sm:$0xff]   ;;  %v2203_v26 = vld [vmem:[%s2267_s21 + $0x120] ss:$8 sps:$4 sm:$0xff]  }
  0x60   : > { %834 = vmatmul.mubr.bf16.gmra.mrb[8].mxu0 %v2107_v27  ;;  %986 = vmatmul.mubr.bf16.gmra.mrb[8].mxu1 %v2110_v28  ;;  %v2385_v27 = vld [vmem:[%s2382_s24] ss:$0 sm:$0xff] }
  0x61   : > { %841 = vmatprep.mubr.bf16.mxu0 %v2111_v29  ;;  %993 = vmatprep.mubr.bf16.mxu1 %v2114_v30 }
  0x68   : > { %842 = vmatmul.mubr.bf16.gmra.mrb[12].mxu0 %v2113_v31  ;;  %994 = vmatmul.mubr.bf16.gmra.mrb[12].mxu1 %v2116_v32 }
  0x69   : > { %849 = vmatprep.mubr.bf16.mxu0 %v2117_v33  ;;  %1001 = vmatprep.mubr.bf16.mxu1 %v2120_v34 }
  0x70   : > { %850 = vmatmul.mubr.bf16.gmra.mrb[16].mxu0 %v2119_v35  ;;  %1002 = vmatmul.mubr.bf16.gmra.mrb[16].mxu1 %v2122_v36 }
  0x71   : > { %857 = vmatprep.mubr.bf16.mxu0 %v2123_v37  ;;  %1009 = vmatprep.mubr.bf16.mxu1 %v2126_v38 }
  0x78   : > { %858 = vmatmul.mubr.bf16.gmra.mrb[20].mxu0 %v2125_v39  ;;  %1010 = vmatmul.mubr.bf16.gmra.mrb[20].mxu1 %v2128_v40 }
  0x79   : > { %865 = vmatprep.mubr.bf16.mxu0 %v2129_v41  ;;  %1017 = vmatprep.mubr.bf16.mxu1 %v2132_v42 }
  0x80   : > { %866 = vmatmul.mubr.bf16.gmra.mrb[24].mxu0 %v2131_v43  ;;  %1018 = vmatmul.mubr.bf16.gmra.mrb[24].mxu1 %v2134_v44 }
  0x81   : > { %873 = vmatprep.mubr.bf16.mxu0 %v2135_v45  ;;  %1025 = vmatprep.mubr.bf16.mxu1 %v2138_v46 }
  0x88   : > { %874 = vmatmul.mubr.bf16.gmra.mrb[28].mxu0 %v2137_v47  ;;  %1026 = vmatmul.mubr.bf16.gmra.mrb[28].mxu1 %v2140_v48 }
  0x89   : > { %881 = vmatprep.mubr.bf16.mxu0 %v2141_v49  ;;  %1033 = vmatprep.mubr.bf16.mxu1 %v2144_v50 }
  0x90   : > { %882 = vmatmul.mubr.bf16.gmra.mrb[32].mxu0 %v2143_v51  ;;  %1034 = vmatmul.mubr.bf16.gmra.mrb[32].mxu1 %v2146_v52 }
  0x91   : > { %889 = vmatprep.mubr.bf16.mxu0 %v2147_v53  ;;  %1041 = vmatprep.mubr.bf16.mxu1 %v2150_v54 }
  0x98   : > { %890 = vmatmul.mubr.bf16.gmra.mrb[36].mxu0 %v2149_v55  ;;  %1042 = vmatmul.mubr.bf16.gmra.mrb[36].mxu1 %v2152_v56 }
  0x99   : > { %897 = vmatprep.mubr.bf16.mxu0 %v2153_v57  ;;  %1049 = vmatprep.mubr.bf16.mxu1 %v2156_v58 }
  0xa0   : > { %898 = vmatmul.mubr.bf16.gmra.mrb[40].mxu0 %v2155_v59  ;;  %1050 = vmatmul.mubr.bf16.gmra.mrb[40].mxu1 %v2158_v60 }
  0xa1   : > { %905 = vmatprep.mubr.bf16.mxu0 %v2159_v61  ;;  %1057 = vmatprep.mubr.bf16.mxu1 %v2162_v62 }
  0xa8   : > { %906 = vmatmul.mubr.bf16.gmra.mrb[44].mxu0 %v2161_v63  ;;  %1058 = vmatmul.mubr.bf16.gmra.mrb[44].mxu1 %v2164_v0 }
  0xa9   : > { %913 = vmatprep.mubr.bf16.mxu0 %v2165_v1  ;;  %1065 = vmatprep.mubr.bf16.mxu1 %v2168_v2 }
  0xb0   : > { %914 = vmatmul.mubr.bf16.gmra.mrb[48].mxu0 %v2167_v3  ;;  %1066 = vmatmul.mubr.bf16.gmra.mrb[48].mxu1 %v2170_v4 }
  0xb1   : > { %921 = vmatprep.mubr.bf16.mxu0 %v2171_v5  ;;  %1073 = vmatprep.mubr.bf16.mxu1 %v2174_v6 }
  0xb8   : > { %922 = vmatmul.mubr.bf16.gmra.mrb[52].mxu0 %v2173_v7  ;;  %1074 = vmatmul.mubr.bf16.gmra.mrb[52].mxu1 %v2176_v8 }
  0xb9   : > { %929 = vmatprep.mubr.bf16.mxu0 %v2177_v9  ;;  %1081 = vmatprep.mubr.bf16.mxu1 %v2180_v10 }
  0xc0   : > { %930 = vmatmul.mubr.bf16.gmra.mrb[56].mxu0 %v2179_v11  ;;  %1082 = vmatmul.mubr.bf16.gmra.mrb[56].mxu1 %v2182_v12 }
  0xc1   : > { %937 = vmatprep.mubr.bf16.mxu0 %v2183_v13  ;;  %1089 = vmatprep.mubr.bf16.mxu1 %v2186_v14 }
  0xc8   : > { %938 = vmatmul.mubr.bf16.gmra.mrb[60].mxu0 %v2185_v15  ;;  %1090 = vmatmul.mubr.bf16.gmra.mrb[60].mxu1 %v2188_v16 }
  0xc9   : > { %945 = vmatprep.mubr.bf16.mxu0 %v2189_v17  ;;  %1097 = vmatprep.mubr.bf16.mxu1 %v2192_v18 }
  0xd0   : > { %946 = vmatmul.mubr.bf16.gmra.mrb[64].mxu0 %v2191_v19  ;;  %1098 = vmatmul.mubr.bf16.gmra.mrb[64].mxu1 %v2194_v20 }
  0xd1   : > { %953 = vmatprep.mubr.bf16.mxu0 %v2195_v21  ;;  %1105 = vmatprep.mubr.bf16.mxu1 %v2198_v22 }
  0xd8   : > { %954 = vmatmul.mubr.bf16.gmra.mrb[68].mxu0 %v2197_v23  ;;  %1106 = vmatmul.mubr.bf16.gmra.mrb[68].mxu1 %v2200_v24 }
  0xd9   : > { %961 = vmatprep.mubr.bf16.mxu0 %v2201_v25 }
  0xe0   : > { %962 = vmatmul.mubr.bf16.gmra.mrb[72].mxu0 %v2203_v26 }
 0x123   : > { %v819_v28 = vpop.f32.mrb[0].mxu0  ;;  %v971_v29 = vpop.f32.mrb[0].mxu1 }
 0x124   : > { %v820_v30 = vadd.f32 %v2385_v27, %v819_v28  ;;  %v821_v31 = vpop.f32.mrb[1].mxu0  ;;  %v972_v32 = vadd.f32 %v2385_v27, %v971_v29  ;;  %v973_v33 = vpop.f32.mrb[1].mxu1 }
 0x125   : > { %v822_v34 = vpop.f32.mrb[2].mxu0  ;;  %v974_v35 = vpop.f32.mrb[2].mxu1 }
 0x126   : > { %vm1114_vm0 = vcmp.gt.f32.partialorder %v820_v30, 0.0  ;;  %v1188_v36 = vmul.f32 0.01, %v820_v30  ;;  %v823_v37 = vadd.f32 %v2385_v27, %v822_v34  ;;  %v824_v38 = vpop.f32.mrb[3].mxu0  ;;  %vm1152_vm1 = vcmp.gt.f32.partialorder %v972_v32, 0.0  ;;  %v976_v39 = vpop.f32.mrb[3].mxu1 }
 0x127   : > { %v1226_v40 = vmul.f32 0.01, %v972_v32  ;;  %v975_v41 = vadd.f32 %v2385_v27, %v974_v35 }
 0x128   : > { %v1262_v42 = vsel %vm1114_vm0, %v820_v30, %v1188_v36  ;;  %vm1115_vm3 = vcmp.gt.f32.partialorder %v823_v37, 0.0  ;;  %v1189_v43 = vmul.f32 0.01, %v823_v37 }
 0x129   : > { %v1960_v44 = vpack.c.bf16 %v1262_v42, %v1262_v42  ;;  %v1300_v45 = vsel %vm1152_vm1, %v972_v32, %v1226_v40  ;;  %vm1153_vm4 = vcmp.gt.f32.partialorder %v975_v41, 0.0  ;;  %v1227_v46 = vmul.f32 0.01, %v975_v41 }
 0x12a   : > { %v1263_v47 = vsel %vm1115_vm3, %v823_v37, %v1189_v43  ;;  %v1998_v48 = vpack.c.bf16 %v1300_v45, %v1300_v45 }
 0x12b   : > { %1633 = vst.msk [vmem:[%s2395_s28] sm:$0xf] %vm1632_vm2, %v1960_v44  ;;  %v1961_v49 = vpack.c.bf16 %v1263_v47, %v1263_v47  ;;  %v1301_v50 = vsel %vm1153_vm4, %v975_v41, %v1227_v46  ;;  %v827_v51 = vpop.f32.mrb[4].mxu0  ;;  %v979_v52 = vpop.f32.mrb[4].mxu1 }
 0x12c   : > { %1671 = vst.msk [vmem:[%s2395_s28 + $0x98] sm:$0xf] %vm1632_vm2, %v1998_v48  ;;  %v1999_v53 = vpack.c.bf16 %v1301_v50, %v1301_v50  ;;  %v828_v54 = vadd.f32 %v2385_v27, %v827_v51  ;;  %v829_v55 = vpop.f32.mrb[5].mxu0  ;;  %v980_v56 = vadd.f32 %v2385_v27, %v979_v52  ;;  %v981_v57 = vpop.f32.mrb[5].mxu1 }
 0x12d   : > { %1634 = vst.msk [vmem:[%s2395_s28 + $0x4] sm:$0xf] %vm1632_vm2, %v1961_v49  ;;  %v830_v58 = vpop.f32.mrb[6].mxu0  ;;  %v982_v59 = vpop.f32.mrb[6].mxu1 }
 0x12e   : > { %1672 = vst.msk [vmem:[%s2395_s28 + $0x9c] sm:$0xf] %vm1632_vm2, %v1999_v53  ;;  %vm1116_vm5 = vcmp.gt.f32.partialorder %v828_v54, 0.0  ;;  %v1190_v60 = vmul.f32 0.01, %v828_v54  ;;  %v831_v61 = vadd.f32 %v2385_v27, %v830_v58  ;;  %v832_v62 = vpop.f32.mrb[7].mxu0  ;;  %v983_v1 = vadd.f32 %v2385_v27, %v982_v59 }
 0x12f   : > { %vm1154_vm6 = vcmp.gt.f32.partialorder %v980_v56, 0.0  ;;  %v984_v63 = vpop.f32.mrb[7].mxu1  ;;  %v1228_v0 = vmul.f32 0.01, %v980_v56 }
 0x130   : > { %v1264_v2 = vsel %vm1116_vm5, %v828_v54, %v1190_v60  ;;  %vm1117_vm7 = vcmp.gt.f32.partialorder %v831_v61, 0.0  ;;  %v1191_v3 = vmul.f32 0.01, %v831_v61  ;;  %vm1155_vm8 = vcmp.gt.f32.partialorder %v983_v1, 0.0 }
 0x131   : > { %v1962_v4 = vpack.c.bf16 %v1264_v2, %v1264_v2  ;;  %v1302_v5 = vsel %vm1154_vm6, %v980_v56, %v1228_v0  ;;  %v1229_v6 = vmul.f32 0.01, %v983_v1 }
 0x132   : > { %v1265_v7 = vsel %vm1117_vm7, %v831_v61, %v1191_v3  ;;  %v2000_v8 = vpack.c.bf16 %v1302_v5, %v1302_v5 }
 0x133   : > { %1635 = vst.msk [vmem:[%s2395_s28 + $0x8] sm:$0xf] %vm1632_vm2, %v1962_v4  ;;  %v1963_v9 = vpack.c.bf16 %v1265_v7, %v1265_v7  ;;  %v1303_v10 = vsel %vm1155_vm8, %v983_v1, %v1229_v6  ;;  %v835_v11 = vpop.f32.mrb[8].mxu0  ;;  %v987_v12 = vpop.f32.mrb[8].mxu1 }
 0x134   : > { %1673 = vst.msk [vmem:[%s2395_s28 + $0xa0] sm:$0xf] %vm1632_vm2, %v2000_v8  ;;  %v2001_v13 = vpack.c.bf16 %v1303_v10, %v1303_v10  ;;  %v836_v14 = vadd.f32 %v2385_v27, %v835_v11  ;;  %v837_v15 = vpop.f32.mrb[9].mxu0  ;;  %v988_v16 = vadd.f32 %v2385_v27, %v987_v12  ;;  %v989_v17 = vpop.f32.mrb[9].mxu1 }
 0x135   : > { %1636 = vst.msk [vmem:[%s2395_s28 + $0xc] sm:$0xf] %vm1632_vm2, %v1963_v9  ;;  %v838_v18 = vpop.f32.mrb[10].mxu0  ;;  %v990_v19 = vpop.f32.mrb[10].mxu1 }
 0x136   : > { %1674 = vst.msk [vmem:[%s2395_s28 + $0xa4] sm:$0xf] %vm1632_vm2, %v2001_v13  ;;  %vm1118_vm9 = vcmp.gt.f32.partialorder %v836_v14, 0.0  ;;  %v1192_v20 = vmul.f32 0.01, %v836_v14  ;;  %v839_v21 = vadd.f32 %v2385_v27, %v838_v18  ;;  %v840_v22 = vpop.f32.mrb[11].mxu0  ;;  %v991_v25 = vadd.f32 %v2385_v27, %v990_v19 }
 0x137   : > { %vm1156_vm10 = vcmp.gt.f32.partialorder %v988_v16, 0.0  ;;  %v992_v23 = vpop.f32.mrb[11].mxu1  ;;  %v1230_v24 = vmul.f32 0.01, %v988_v16 }
 0x138   : > { %v1266_v26 = vsel %vm1118_vm9, %v836_v14, %v1192_v20  ;;  %vm1119_vm11 = vcmp.gt.f32.partialorder %v839_v21, 0.0  ;;  %v1193_v28 = vmul.f32 0.01, %v839_v21  ;;  %vm1157_vm12 = vcmp.gt.f32.partialorder %v991_v25, 0.0 }
 0x139   : > { %v1964_v29 = vpack.c.bf16 %v1266_v26, %v1266_v26  ;;  %v1304_v30 = vsel %vm1156_vm10, %v988_v16, %v1230_v24  ;;  %v1231_v31 = vmul.f32 0.01, %v991_v25 }
 0x13a   : > { %v1267_v32 = vsel %vm1119_vm11, %v839_v21, %v1193_v28  ;;  %v2002_v33 = vpack.c.bf16 %v1304_v30, %v1304_v30 }
 0x13b   : > { %1637 = vst.msk [vmem:[%s2395_s28 + $0x10] sm:$0xf] %vm1632_vm2, %v1964_v29  ;;  %v1965_v34 = vpack.c.bf16 %v1267_v32, %v1267_v32  ;;  %v1305_v35 = vsel %vm1157_vm12, %v991_v25, %v1231_v31  ;;  %v843_v36 = vpop.f32.mrb[12].mxu0  ;;  %v995_v37 = vpop.f32.mrb[12].mxu1 }
 0x13c   : > { %1675 = vst.msk [vmem:[%s2395_s28 + $0xa8] sm:$0xf] %vm1632_vm2, %v2002_v33  ;;  %v2003_v38 = vpack.c.bf16 %v1305_v35, %v1305_v35  ;;  %v844_v39 = vadd.f32 %v2385_v27, %v843_v36  ;;  %v845_v40 = vpop.f32.mrb[13].mxu0  ;;  %v996_v41 = vadd.f32 %v2385_v27, %v995_v37  ;;  %v997_v42 = vpop.f32.mrb[13].mxu1 }
 0x13d   : > { %1638 = vst.msk [vmem:[%s2395_s28 + $0x14] sm:$0xf] %vm1632_vm2, %v1965_v34  ;;  %v846_v43 = vpop.f32.mrb[14].mxu0  ;;  %v998_v44 = vpop.f32.mrb[14].mxu1 }
 0x13e   : > { %1676 = vst.msk [vmem:[%s2395_s28 + $0xac] sm:$0xf] %vm1632_vm2, %v2003_v38  ;;  %vm1120_vm13 = vcmp.gt.f32.partialorder %v844_v39, 0.0  ;;  %v1194_v45 = vmul.f32 0.01, %v844_v39  ;;  %v847_v46 = vadd.f32 %v2385_v27, %v846_v43  ;;  %v848_v47 = vpop.f32.mrb[15].mxu0  ;;  %v999_v50 = vadd.f32 %v2385_v27, %v998_v44 }
 0x13f   : > { %vm1158_vm14 = vcmp.gt.f32.partialorder %v996_v41, 0.0  ;;  %v1000_v48 = vpop.f32.mrb[15].mxu1  ;;  %v1232_v49 = vmul.f32 0.01, %v996_v41 }
 0x140   : > { %v1268_v51 = vsel %vm1120_vm13, %v844_v39, %v1194_v45  ;;  %vm1121_vm15 = vcmp.gt.f32.partialorder %v847_v46, 0.0  ;;  %v1195_v52 = vmul.f32 0.01, %v847_v46  ;;  %vm1159_vm0 = vcmp.gt.f32.partialorder %v999_v50, 0.0 }
 0x141   : > { %v1966_v53 = vpack.c.bf16 %v1268_v51, %v1268_v51  ;;  %v1306_v54 = vsel %vm1158_vm14, %v996_v41, %v1232_v49  ;;  %v1233_v55 = vmul.f32 0.01, %v999_v50 }
 0x142   : > { %v1269_v56 = vsel %vm1121_vm15, %v847_v46, %v1195_v52  ;;  %v2004_v57 = vpack.c.bf16 %v1306_v54, %v1306_v54 }
 0x143   : > { %1639 = vst.msk [vmem:[%s2395_s28 + $0x18] sm:$0xf] %vm1632_vm2, %v1966_v53  ;;  %v1967_v58 = vpack.c.bf16 %v1269_v56, %v1269_v56  ;;  %v1307_v59 = vsel %vm1159_vm0, %v999_v50, %v1233_v55  ;;  %v851_v60 = vpop.f32.mrb[16].mxu0  ;;  %v1003_v61 = vpop.f32.mrb[16].mxu1 }
 0x144   : > { %1677 = vst.msk [vmem:[%s2395_s28 + $0xb0] sm:$0xf] %vm1632_vm2, %v2004_v57  ;;  %v2005_v62 = vpack.c.bf16 %v1307_v59, %v1307_v59  ;;  %v852_v63 = vadd.f32 %v2385_v27, %v851_v60  ;;  %v853_v0 = vpop.f32.mrb[17].mxu0  ;;  %v1004_v1 = vadd.f32 %v2385_v27, %v1003_v61  ;;  %v1005_v2 = vpop.f32.mrb[17].mxu1 }
 0x145   : > { %1640 = vst.msk [vmem:[%s2395_s28 + $0x1c] sm:$0xf] %vm1632_vm2, %v1967_v58  ;;  %v854_v3 = vpop.f32.mrb[18].mxu0  ;;  %v1006_v4 = vpop.f32.mrb[18].mxu1 }
 0x146   : > { %1678 = vst.msk [vmem:[%s2395_s28 + $0xb4] sm:$0xf] %vm1632_vm2, %v2005_v62  ;;  %vm1122_vm1 = vcmp.gt.f32.partialorder %v852_v63, 0.0  ;;  %v1196_v5 = vmul.f32 0.01, %v852_v63  ;;  %v855_v6 = vadd.f32 %v2385_v27, %v854_v3  ;;  %v856_v7 = vpop.f32.mrb[19].mxu0  ;;  %v1007_v10 = vadd.f32 %v2385_v27, %v1006_v4 }
 0x147   : > { %vm1160_vm3 = vcmp.gt.f32.partialorder %v1004_v1, 0.0  ;;  %v1008_v8 = vpop.f32.mrb[19].mxu1  ;;  %v1234_v9 = vmul.f32 0.01, %v1004_v1 }
 0x148   : > { %v1270_v11 = vsel %vm1122_vm1, %v852_v63, %v1196_v5  ;;  %vm1123_vm4 = vcmp.gt.f32.partialorder %v855_v6, 0.0  ;;  %v1197_v12 = vmul.f32 0.01, %v855_v6  ;;  %vm1161_vm5 = vcmp.gt.f32.partialorder %v1007_v10, 0.0 }
 0x149   : > { %v1968_v13 = vpack.c.bf16 %v1270_v11, %v1270_v11  ;;  %v1308_v14 = vsel %vm1160_vm3, %v1004_v1, %v1234_v9  ;;  %v1235_v15 = vmul.f32 0.01, %v1007_v10 }
 0x14a   : > { %v1271_v16 = vsel %vm1123_vm4, %v855_v6, %v1197_v12  ;;  %v2006_v17 = vpack.c.bf16 %v1308_v14, %v1308_v14 }
 0x14b   : > { %1641 = vst.msk [vmem:[%s2395_s28 + $0x20] sm:$0xf] %vm1632_vm2, %v1968_v13  ;;  %v1969_v18 = vpack.c.bf16 %v1271_v16, %v1271_v16  ;;  %v1309_v19 = vsel %vm1161_vm5, %v1007_v10, %v1235_v15  ;;  %v859_v20 = vpop.f32.mrb[20].mxu0  ;;  %v1011_v21 = vpop.f32.mrb[20].mxu1 }
 0x14c   : > { %1679 = vst.msk [vmem:[%s2395_s28 + $0xb8] sm:$0xf] %vm1632_vm2, %v2006_v17  ;;  %v2007_v22 = vpack.c.bf16 %v1309_v19, %v1309_v19  ;;  %v860_v23 = vadd.f32 %v2385_v27, %v859_v20  ;;  %v861_v24 = vpop.f32.mrb[21].mxu0  ;;  %v1012_v25 = vadd.f32 %v2385_v27, %v1011_v21  ;;  %v1013_v26 = vpop.f32.mrb[21].mxu1 }
 0x14d   : > { %1642 = vst.msk [vmem:[%s2395_s28 + $0x24] sm:$0xf] %vm1632_vm2, %v1969_v18  ;;  %v862_v28 = vpop.f32.mrb[22].mxu0  ;;  %v1014_v29 = vpop.f32.mrb[22].mxu1 }
 0x14e   : > { %1680 = vst.msk [vmem:[%s2395_s28 + $0xbc] sm:$0xf] %vm1632_vm2, %v2007_v22  ;;  %vm1124_vm6 = vcmp.gt.f32.partialorder %v860_v23, 0.0  ;;  %v1198_v30 = vmul.f32 0.01, %v860_v23  ;;  %v863_v31 = vadd.f32 %v2385_v27, %v862_v28  ;;  %v864_v32 = vpop.f32.mrb[23].mxu0  ;;  %v1015_v35 = vadd.f32 %v2385_v27, %v1014_v29 }
 0x14f   : > { %vm1162_vm7 = vcmp.gt.f32.partialorder %v1012_v25, 0.0  ;;  %v1016_v33 = vpop.f32.mrb[23].mxu1  ;;  %v1236_v34 = vmul.f32 0.01, %v1012_v25 }
 0x150   : > { %v1272_v36 = vsel %vm1124_vm6, %v860_v23, %v1198_v30  ;;  %vm1125_vm8 = vcmp.gt.f32.partialorder %v863_v31, 0.0  ;;  %v1199_v37 = vmul.f32 0.01, %v863_v31  ;;  %vm1163_vm9 = vcmp.gt.f32.partialorder %v1015_v35, 0.0 }
 0x151   : > { %v1970_v38 = vpack.c.bf16 %v1272_v36, %v1272_v36  ;;  %v1310_v39 = vsel %vm1162_vm7, %v1012_v25, %v1236_v34  ;;  %v1237_v40 = vmul.f32 0.01, %v1015_v35 }
 0x152   : > { %v1273_v41 = vsel %vm1125_vm8, %v863_v31, %v1199_v37  ;;  %v2008_v42 = vpack.c.bf16 %v1310_v39, %v1310_v39 }
 0x153   : > { %1643 = vst.msk [vmem:[%s2395_s28 + $0x28] sm:$0xf] %vm1632_vm2, %v1970_v38  ;;  %v1971_v43 = vpack.c.bf16 %v1273_v41, %v1273_v41  ;;  %v1311_v44 = vsel %vm1163_vm9, %v1015_v35, %v1237_v40  ;;  %v867_v45 = vpop.f32.mrb[24].mxu0  ;;  %v1019_v46 = vpop.f32.mrb[24].mxu1 }
 0x154   : > { %1681 = vst.msk [vmem:[%s2395_s28 + $0xc0] sm:$0xf] %vm1632_vm2, %v2008_v42  ;;  %v2009_v47 = vpack.c.bf16 %v1311_v44, %v1311_v44  ;;  %v868_v48 = vadd.f32 %v2385_v27, %v867_v45  ;;  %v869_v49 = vpop.f32.mrb[25].mxu0  ;;  %v1020_v50 = vadd.f32 %v2385_v27, %v1019_v46  ;;  %v1021_v51 = vpop.f32.mrb[25].mxu1 }
 0x155   : > { %1644 = vst.msk [vmem:[%s2395_s28 + $0x2c] sm:$0xf] %vm1632_vm2, %v1971_v43  ;;  %v870_v52 = vpop.f32.mrb[26].mxu0  ;;  %v1022_v53 = vpop.f32.mrb[26].mxu1 }
 0x156   : > { %1682 = vst.msk [vmem:[%s2395_s28 + $0xc4] sm:$0xf] %vm1632_vm2, %v2009_v47  ;;  %vm1126_vm10 = vcmp.gt.f32.partialorder %v868_v48, 0.0  ;;  %v1200_v54 = vmul.f32 0.01, %v868_v48  ;;  %v871_v55 = vadd.f32 %v2385_v27, %v870_v52  ;;  %v872_v56 = vpop.f32.mrb[27].mxu0  ;;  %v1023_v59 = vadd.f32 %v2385_v27, %v1022_v53 }
 0x157   : > { %vm1164_vm11 = vcmp.gt.f32.partialorder %v1020_v50, 0.0  ;;  %v1024_v57 = vpop.f32.mrb[27].mxu1  ;;  %v1238_v58 = vmul.f32 0.01, %v1020_v50 }
 0x158   : > { %v1274_v60 = vsel %vm1126_vm10, %v868_v48, %v1200_v54  ;;  %vm1127_vm12 = vcmp.gt.f32.partialorder %v871_v55, 0.0  ;;  %v1201_v61 = vmul.f32 0.01, %v871_v55  ;;  %vm1165_vm13 = vcmp.gt.f32.partialorder %v1023_v59, 0.0 }
 0x159   : > { %v1972_v62 = vpack.c.bf16 %v1274_v60, %v1274_v60  ;;  %v1312_v63 = vsel %vm1164_vm11, %v1020_v50, %v1238_v58  ;;  %v1239_v0 = vmul.f32 0.01, %v1023_v59 }
 0x15a   : > { %v1275_v1 = vsel %vm1127_vm12, %v871_v55, %v1201_v61  ;;  %v2010_v2 = vpack.c.bf16 %v1312_v63, %v1312_v63 }
 0x15b   : > { %1645 = vst.msk [vmem:[%s2395_s28 + $0x30] sm:$0xf] %vm1632_vm2, %v1972_v62  ;;  %v1973_v3 = vpack.c.bf16 %v1275_v1, %v1275_v1  ;;  %v1313_v4 = vsel %vm1165_vm13, %v1023_v59, %v1239_v0  ;;  %v875_v5 = vpop.f32.mrb[28].mxu0  ;;  %v1027_v6 = vpop.f32.mrb[28].mxu1 }
 0x15c   : > { %1683 = vst.msk [vmem:[%s2395_s28 + $0xc8] sm:$0xf] %vm1632_vm2, %v2010_v2  ;;  %v2011_v7 = vpack.c.bf16 %v1313_v4, %v1313_v4  ;;  %v876_v8 = vadd.f32 %v2385_v27, %v875_v5  ;;  %v877_v9 = vpop.f32.mrb[29].mxu0  ;;  %v1028_v10 = vadd.f32 %v2385_v27, %v1027_v6  ;;  %v1029_v11 = vpop.f32.mrb[29].mxu1 }
 0x15d   : > { %1646 = vst.msk [vmem:[%s2395_s28 + $0x34] sm:$0xf] %vm1632_vm2, %v1973_v3  ;;  %v878_v12 = vpop.f32.mrb[30].mxu0  ;;  %v1030_v13 = vpop.f32.mrb[30].mxu1 }
 0x15e   : > { %1684 = vst.msk [vmem:[%s2395_s28 + $0xcc] sm:$0xf] %vm1632_vm2, %v2011_v7  ;;  %vm1128_vm14 = vcmp.gt.f32.partialorder %v876_v8, 0.0  ;;  %v1202_v14 = vmul.f32 0.01, %v876_v8  ;;  %v879_v15 = vadd.f32 %v2385_v27, %v878_v12  ;;  %v880_v16 = vpop.f32.mrb[31].mxu0  ;;  %v1031_v19 = vadd.f32 %v2385_v27, %v1030_v13 }
 0x15f   : > { %vm1166_vm15 = vcmp.gt.f32.partialorder %v1028_v10, 0.0  ;;  %v1032_v17 = vpop.f32.mrb[31].mxu1  ;;  %v1240_v18 = vmul.f32 0.01, %v1028_v10 }
 0x160   : > { %v1276_v20 = vsel %vm1128_vm14, %v876_v8, %v1202_v14  ;;  %vm1129_vm0 = vcmp.gt.f32.partialorder %v879_v15, 0.0  ;;  %v1203_v21 = vmul.f32 0.01, %v879_v15  ;;  %vm1167_vm1 = vcmp.gt.f32.partialorder %v1031_v19, 0.0 }
 0x161   : > { %v1974_v22 = vpack.c.bf16 %v1276_v20, %v1276_v20  ;;  %v1314_v23 = vsel %vm1166_vm15, %v1028_v10, %v1240_v18  ;;  %v1241_v24 = vmul.f32 0.01, %v1031_v19 }
 0x162   : > { %v1277_v25 = vsel %vm1129_vm0, %v879_v15, %v1203_v21  ;;  %v2012_v26 = vpack.c.bf16 %v1314_v23, %v1314_v23 }
 0x163   : > { %1647 = vst.msk [vmem:[%s2395_s28 + $0x38] sm:$0xf] %vm1632_vm2, %v1974_v22  ;;  %v1975_v28 = vpack.c.bf16 %v1277_v25, %v1277_v25  ;;  %v1315_v29 = vsel %vm1167_vm1, %v1031_v19, %v1241_v24  ;;  %v883_v30 = vpop.f32.mrb[32].mxu0  ;;  %v1035_v31 = vpop.f32.mrb[32].mxu1 }
 0x164   : > { %1685 = vst.msk [vmem:[%s2395_s28 + $0xd0] sm:$0xf] %vm1632_vm2, %v2012_v26  ;;  %v2013_v32 = vpack.c.bf16 %v1315_v29, %v1315_v29  ;;  %v884_v33 = vadd.f32 %v2385_v27, %v883_v30  ;;  %v885_v34 = vpop.f32.mrb[33].mxu0  ;;  %v1036_v35 = vadd.f32 %v2385_v27, %v1035_v31  ;;  %v1037_v36 = vpop.f32.mrb[33].mxu1 }
 0x165   : > { %1648 = vst.msk [vmem:[%s2395_s28 + $0x3c] sm:$0xf] %vm1632_vm2, %v1975_v28  ;;  %v886_v37 = vpop.f32.mrb[34].mxu0  ;;  %v1038_v38 = vpop.f32.mrb[34].mxu1 }
 0x166   : > { %1686 = vst.msk [vmem:[%s2395_s28 + $0xd4] sm:$0xf] %vm1632_vm2, %v2013_v32  ;;  %vm1130_vm3 = vcmp.gt.f32.partialorder %v884_v33, 0.0  ;;  %v1204_v39 = vmul.f32 0.01, %v884_v33  ;;  %v887_v40 = vadd.f32 %v2385_v27, %v886_v37  ;;  %v888_v41 = vpop.f32.mrb[35].mxu0  ;;  %v1039_v44 = vadd.f32 %v2385_v27, %v1038_v38 }
 0x167   : > { %vm1168_vm4 = vcmp.gt.f32.partialorder %v1036_v35, 0.0  ;;  %v1040_v42 = vpop.f32.mrb[35].mxu1  ;;  %v1242_v43 = vmul.f32 0.01, %v1036_v35 }
 0x168   : > { %v1278_v45 = vsel %vm1130_vm3, %v884_v33, %v1204_v39  ;;  %vm1131_vm5 = vcmp.gt.f32.partialorder %v887_v40, 0.0  ;;  %v1205_v46 = vmul.f32 0.01, %v887_v40  ;;  %vm1169_vm6 = vcmp.gt.f32.partialorder %v1039_v44, 0.0 }
 0x169   : > { %v1976_v47 = vpack.c.bf16 %v1278_v45, %v1278_v45  ;;  %v1316_v48 = vsel %vm1168_vm4, %v1036_v35, %v1242_v43  ;;  %v1243_v49 = vmul.f32 0.01, %v1039_v44 }
 0x16a   : > { %v1279_v50 = vsel %vm1131_vm5, %v887_v40, %v1205_v46  ;;  %v2014_v51 = vpack.c.bf16 %v1316_v48, %v1316_v48 }
 0x16b   : > { %1649 = vst.msk [vmem:[%s2395_s28 + $0x40] sm:$0xf] %vm1632_vm2, %v1976_v47  ;;  %v1977_v52 = vpack.c.bf16 %v1279_v50, %v1279_v50  ;;  %v1317_v53 = vsel %vm1169_vm6, %v1039_v44, %v1243_v49  ;;  %v891_v54 = vpop.f32.mrb[36].mxu0  ;;  %v1043_v55 = vpop.f32.mrb[36].mxu1 }
 0x16c   : > { %1687 = vst.msk [vmem:[%s2395_s28 + $0xd8] sm:$0xf] %vm1632_vm2, %v2014_v51  ;;  %v2015_v56 = vpack.c.bf16 %v1317_v53, %v1317_v53  ;;  %v892_v57 = vadd.f32 %v2385_v27, %v891_v54  ;;  %v893_v58 = vpop.f32.mrb[37].mxu0  ;;  %v1044_v59 = vadd.f32 %v2385_v27, %v1043_v55  ;;  %v1045_v60 = vpop.f32.mrb[37].mxu1 }
 0x16d   : > { %1650 = vst.msk [vmem:[%s2395_s28 + $0x44] sm:$0xf] %vm1632_vm2, %v1977_v52  ;;  %v894_v61 = vpop.f32.mrb[38].mxu0  ;;  %v1046_v62 = vpop.f32.mrb[38].mxu1 }
 0x16e   : > { %1688 = vst.msk [vmem:[%s2395_s28 + $0xdc] sm:$0xf] %vm1632_vm2, %v2015_v56  ;;  %vm1132_vm7 = vcmp.gt.f32.partialorder %v892_v57, 0.0  ;;  %v1206_v63 = vmul.f32 0.01, %v892_v57  ;;  %v895_v0 = vadd.f32 %v2385_v27, %v894_v61  ;;  %v896_v1 = vpop.f32.mrb[39].mxu0  ;;  %v1047_v4 = vadd.f32 %v2385_v27, %v1046_v62 }
 0x16f   : > { %vm1170_vm8 = vcmp.gt.f32.partialorder %v1044_v59, 0.0  ;;  %v1048_v2 = vpop.f32.mrb[39].mxu1  ;;  %v1244_v3 = vmul.f32 0.01, %v1044_v59 }
 0x170   : > { %v1280_v5 = vsel %vm1132_vm7, %v892_v57, %v1206_v63  ;;  %vm1133_vm9 = vcmp.gt.f32.partialorder %v895_v0, 0.0  ;;  %v1207_v6 = vmul.f32 0.01, %v895_v0  ;;  %vm1171_vm10 = vcmp.gt.f32.partialorder %v1047_v4, 0.0 }
 0x171   : > { %v1978_v7 = vpack.c.bf16 %v1280_v5, %v1280_v5  ;;  %v1318_v8 = vsel %vm1170_vm8, %v1044_v59, %v1244_v3  ;;  %v1245_v9 = vmul.f32 0.01, %v1047_v4 }
 0x172   : > { %v1281_v10 = vsel %vm1133_vm9, %v895_v0, %v1207_v6  ;;  %v2016_v11 = vpack.c.bf16 %v1318_v8, %v1318_v8 }
 0x173   : > { %1651 = vst.msk [vmem:[%s2395_s28 + $0x48] sm:$0xf] %vm1632_vm2, %v1978_v7  ;;  %v1979_v12 = vpack.c.bf16 %v1281_v10, %v1281_v10  ;;  %v1319_v13 = vsel %vm1171_vm10, %v1047_v4, %v1245_v9  ;;  %v899_v14 = vpop.f32.mrb[40].mxu0  ;;  %v1051_v15 = vpop.f32.mrb[40].mxu1 }
 0x174   : > { %1689 = vst.msk [vmem:[%s2395_s28 + $0xe0] sm:$0xf] %vm1632_vm2, %v2016_v11  ;;  %v2017_v16 = vpack.c.bf16 %v1319_v13, %v1319_v13  ;;  %v900_v17 = vadd.f32 %v2385_v27, %v899_v14  ;;  %v901_v18 = vpop.f32.mrb[41].mxu0  ;;  %v1052_v19 = vadd.f32 %v2385_v27, %v1051_v15  ;;  %v1053_v20 = vpop.f32.mrb[41].mxu1 }
 0x175   : > { %1652 = vst.msk [vmem:[%s2395_s28 + $0x4c] sm:$0xf] %vm1632_vm2, %v1979_v12  ;;  %v902_v21 = vpop.f32.mrb[42].mxu0  ;;  %v1054_v22 = vpop.f32.mrb[42].mxu1 }
 0x176   : > { %1690 = vst.msk [vmem:[%s2395_s28 + $0xe4] sm:$0xf] %vm1632_vm2, %v2017_v16  ;;  %vm1134_vm11 = vcmp.gt.f32.partialorder %v900_v17, 0.0  ;;  %v1208_v23 = vmul.f32 0.01, %v900_v17  ;;  %v903_v24 = vadd.f32 %v2385_v27, %v902_v21  ;;  %v904_v25 = vpop.f32.mrb[43].mxu0  ;;  %v1055_v29 = vadd.f32 %v2385_v27, %v1054_v22 }
 0x177   : > { %vm1172_vm12 = vcmp.gt.f32.partialorder %v1052_v19, 0.0  ;;  %v1056_v26 = vpop.f32.mrb[43].mxu1  ;;  %v1246_v28 = vmul.f32 0.01, %v1052_v19 }
 0x178   : > { %v1282_v30 = vsel %vm1134_vm11, %v900_v17, %v1208_v23  ;;  %vm1135_vm13 = vcmp.gt.f32.partialorder %v903_v24, 0.0  ;;  %v1209_v31 = vmul.f32 0.01, %v903_v24  ;;  %vm1173_vm14 = vcmp.gt.f32.partialorder %v1055_v29, 0.0 }
 0x179   : > { %v1980_v32 = vpack.c.bf16 %v1282_v30, %v1282_v30  ;;  %v1320_v33 = vsel %vm1172_vm12, %v1052_v19, %v1246_v28  ;;  %v1247_v34 = vmul.f32 0.01, %v1055_v29 }
 0x17a   : > { %v1283_v35 = vsel %vm1135_vm13, %v903_v24, %v1209_v31  ;;  %v2018_v36 = vpack.c.bf16 %v1320_v33, %v1320_v33 }
 0x17b   : > { %1653 = vst.msk [vmem:[%s2395_s28 + $0x50] sm:$0xf] %vm1632_vm2, %v1980_v32  ;;  %v1981_v37 = vpack.c.bf16 %v1283_v35, %v1283_v35  ;;  %v1321_v38 = vsel %vm1173_vm14, %v1055_v29, %v1247_v34  ;;  %v907_v39 = vpop.f32.mrb[44].mxu0  ;;  %v1059_v40 = vpop.f32.mrb[44].mxu1 }
 0x17c   : > { %1691 = vst.msk [vmem:[%s2395_s28 + $0xe8] sm:$0xf] %vm1632_vm2, %v2018_v36  ;;  %v2019_v41 = vpack.c.bf16 %v1321_v38, %v1321_v38  ;;  %v908_v42 = vadd.f32 %v2385_v27, %v907_v39  ;;  %v909_v43 = vpop.f32.mrb[45].mxu0  ;;  %v1060_v44 = vadd.f32 %v2385_v27, %v1059_v40  ;;  %v1061_v45 = vpop.f32.mrb[45].mxu1 }
 0x17d   : > { %1654 = vst.msk [vmem:[%s2395_s28 + $0x54] sm:$0xf] %vm1632_vm2, %v1981_v37  ;;  %v910_v46 = vpop.f32.mrb[46].mxu0  ;;  %v1062_v47 = vpop.f32.mrb[46].mxu1 }
 0x17e   : > { %1692 = vst.msk [vmem:[%s2395_s28 + $0xec] sm:$0xf] %vm1632_vm2, %v2019_v41  ;;  %vm1136_vm15 = vcmp.gt.f32.partialorder %v908_v42, 0.0  ;;  %v1210_v48 = vmul.f32 0.01, %v908_v42  ;;  %v911_v49 = vadd.f32 %v2385_v27, %v910_v46  ;;  %v912_v50 = vpop.f32.mrb[47].mxu0  ;;  %v1063_v53 = vadd.f32 %v2385_v27, %v1062_v47 }
 0x17f   : > { %vm1174_vm0 = vcmp.gt.f32.partialorder %v1060_v44, 0.0  ;;  %v1064_v51 = vpop.f32.mrb[47].mxu1  ;;  %v1248_v52 = vmul.f32 0.01, %v1060_v44 }
 0x180   : > { %v1284_v54 = vsel %vm1136_vm15, %v908_v42, %v1210_v48  ;;  %vm1137_vm1 = vcmp.gt.f32.partialorder %v911_v49, 0.0  ;;  %v1211_v55 = vmul.f32 0.01, %v911_v49  ;;  %vm1175_vm3 = vcmp.gt.f32.partialorder %v1063_v53, 0.0 }
 0x181   : > { %v1982_v56 = vpack.c.bf16 %v1284_v54, %v1284_v54  ;;  %v1322_v57 = vsel %vm1174_vm0, %v1060_v44, %v1248_v52  ;;  %v1249_v58 = vmul.f32 0.01, %v1063_v53 }
 0x182   : > { %v1285_v59 = vsel %vm1137_vm1, %v911_v49, %v1211_v55  ;;  %v2020_v60 = vpack.c.bf16 %v1322_v57, %v1322_v57 }
 0x183   : > { %1655 = vst.msk [vmem:[%s2395_s28 + $0x58] sm:$0xf] %vm1632_vm2, %v1982_v56  ;;  %v1983_v61 = vpack.c.bf16 %v1285_v59, %v1285_v59  ;;  %v1323_v62 = vsel %vm1175_vm3, %v1063_v53, %v1249_v58  ;;  %v915_v63 = vpop.f32.mrb[48].mxu0  ;;  %v1067_v0 = vpop.f32.mrb[48].mxu1 }
 0x184   : > { %1693 = vst.msk [vmem:[%s2395_s28 + $0xf0] sm:$0xf] %vm1632_vm2, %v2020_v60  ;;  %v2021_v1 = vpack.c.bf16 %v1323_v62, %v1323_v62  ;;  %v916_v2 = vadd.f32 %v2385_v27, %v915_v63  ;;  %v917_v3 = vpop.f32.mrb[49].mxu0  ;;  %v1068_v4 = vadd.f32 %v2385_v27, %v1067_v0  ;;  %v1069_v5 = vpop.f32.mrb[49].mxu1 }
 0x185   : > { %1656 = vst.msk [vmem:[%s2395_s28 + $0x5c] sm:$0xf] %vm1632_vm2, %v1983_v61  ;;  %v918_v6 = vpop.f32.mrb[50].mxu0  ;;  %v1070_v7 = vpop.f32.mrb[50].mxu1 }
 0x186   : > { %1694 = vst.msk [vmem:[%s2395_s28 + $0xf4] sm:$0xf] %vm1632_vm2, %v2021_v1  ;;  %vm1138_vm4 = vcmp.gt.f32.partialorder %v916_v2, 0.0  ;;  %v1212_v8 = vmul.f32 0.01, %v916_v2  ;;  %v919_v9 = vadd.f32 %v2385_v27, %v918_v6  ;;  %v920_v10 = vpop.f32.mrb[51].mxu0  ;;  %v1071_v13 = vadd.f32 %v2385_v27, %v1070_v7 }
 0x187   : > { %vm1176_vm5 = vcmp.gt.f32.partialorder %v1068_v4, 0.0  ;;  %v1072_v11 = vpop.f32.mrb[51].mxu1  ;;  %v1250_v12 = vmul.f32 0.01, %v1068_v4 }
 0x188   : > { %v1286_v14 = vsel %vm1138_vm4, %v916_v2, %v1212_v8  ;;  %vm1139_vm6 = vcmp.gt.f32.partialorder %v919_v9, 0.0  ;;  %v1213_v15 = vmul.f32 0.01, %v919_v9  ;;  %vm1177_vm7 = vcmp.gt.f32.partialorder %v1071_v13, 0.0 }
 0x189   : > { %v1984_v16 = vpack.c.bf16 %v1286_v14, %v1286_v14  ;;  %v1324_v17 = vsel %vm1176_vm5, %v1068_v4, %v1250_v12  ;;  %v1251_v18 = vmul.f32 0.01, %v1071_v13 }
 0x18a   : > { %v1287_v19 = vsel %vm1139_vm6, %v919_v9, %v1213_v15  ;;  %v2022_v20 = vpack.c.bf16 %v1324_v17, %v1324_v17 }
 0x18b   : > { %1657 = vst.msk [vmem:[%s2395_s28 + $0x60] sm:$0xf] %vm1632_vm2, %v1984_v16  ;;  %v1985_v21 = vpack.c.bf16 %v1287_v19, %v1287_v19  ;;  %v1325_v22 = vsel %vm1177_vm7, %v1071_v13, %v1251_v18  ;;  %v923_v23 = vpop.f32.mrb[52].mxu0  ;;  %v1075_v24 = vpop.f32.mrb[52].mxu1 }
 0x18c   : > { %1695 = vst.msk [vmem:[%s2395_s28 + $0xf8] sm:$0xf] %vm1632_vm2, %v2022_v20  ;;  %v2023_v25 = vpack.c.bf16 %v1325_v22, %v1325_v22  ;;  %v924_v26 = vadd.f32 %v2385_v27, %v923_v23  ;;  %v925_v28 = vpop.f32.mrb[53].mxu0  ;;  %v1076_v29 = vadd.f32 %v2385_v27, %v1075_v24  ;;  %v1077_v30 = vpop.f32.mrb[53].mxu1 }
 0x18d   : > { %1658 = vst.msk [vmem:[%s2395_s28 + $0x64] sm:$0xf] %vm1632_vm2, %v1985_v21  ;;  %v926_v31 = vpop.f32.mrb[54].mxu0  ;;  %v1078_v32 = vpop.f32.mrb[54].mxu1 }
 0x18e   : > { %1696 = vst.msk [vmem:[%s2395_s28 + $0xfc] sm:$0xf] %vm1632_vm2, %v2023_v25  ;;  %vm1140_vm8 = vcmp.gt.f32.partialorder %v924_v26, 0.0  ;;  %v1214_v33 = vmul.f32 0.01, %v924_v26  ;;  %v927_v34 = vadd.f32 %v2385_v27, %v926_v31  ;;  %v928_v35 = vpop.f32.mrb[55].mxu0  ;;  %v1079_v38 = vadd.f32 %v2385_v27, %v1078_v32 }
 0x18f   : > { %vm1178_vm9 = vcmp.gt.f32.partialorder %v1076_v29, 0.0  ;;  %v1080_v36 = vpop.f32.mrb[55].mxu1  ;;  %v1252_v37 = vmul.f32 0.01, %v1076_v29  ;;  %v2582_v35 = vld [vmem:[%s2382_s24] ss:$0 sm:$0xff] }
 0x190   : > { %v1288_v39 = vsel %vm1140_vm8, %v924_v26, %v1214_v33  ;;  %vm1141_vm10 = vcmp.gt.f32.partialorder %v927_v34, 0.0  ;;  %v1215_v40 = vmul.f32 0.01, %v927_v34  ;;  %vm1179_vm11 = vcmp.gt.f32.partialorder %v1079_v38, 0.0 }
 0x191   : > { %v1986_v41 = vpack.c.bf16 %v1288_v39, %v1288_v39  ;;  %v1326_v42 = vsel %vm1178_vm9, %v1076_v29, %v1252_v37  ;;  %v1253_v43 = vmul.f32 0.01, %v1079_v38 }
 0x192   : > { %v1289_v44 = vsel %vm1141_vm10, %v927_v34, %v1215_v40  ;;  %v2024_v45 = vpack.c.bf16 %v1326_v42, %v1326_v42 }
 0x193   : > { %1659 = vst.msk [vmem:[%s2395_s28 + $0x68] sm:$0xf] %vm1632_vm2, %v1986_v41  ;;  %v1987_v46 = vpack.c.bf16 %v1289_v44, %v1289_v44  ;;  %v1327_v47 = vsel %vm1179_vm11, %v1079_v38, %v1253_v43  ;;  %v931_v48 = vpop.f32.mrb[56].mxu0  ;;  %v1083_v49 = vpop.f32.mrb[56].mxu1 }
 0x194   : > { %1697 = vst.msk [vmem:[%s2395_s28 + $0x100] sm:$0xf] %vm1632_vm2, %v2024_v45  ;;  %v2025_v50 = vpack.c.bf16 %v1327_v47, %v1327_v47  ;;  %v932_v51 = vadd.f32 %v2385_v27, %v931_v48  ;;  %v933_v52 = vpop.f32.mrb[57].mxu0  ;;  %v1084_v53 = vadd.f32 %v2385_v27, %v1083_v49  ;;  %v1085_v54 = vpop.f32.mrb[57].mxu1 }
 0x195   : > { %1660 = vst.msk [vmem:[%s2395_s28 + $0x6c] sm:$0xf] %vm1632_vm2, %v1987_v46  ;;  %v934_v55 = vpop.f32.mrb[58].mxu0  ;;  %v1086_v56 = vpop.f32.mrb[58].mxu1 }
 0x196   : > { %1698 = vst.msk [vmem:[%s2395_s28 + $0x104] sm:$0xf] %vm1632_vm2, %v2025_v50  ;;  %vm1142_vm12 = vcmp.gt.f32.partialorder %v932_v51, 0.0  ;;  %v1216_v57 = vmul.f32 0.01, %v932_v51  ;;  %v935_v58 = vadd.f32 %v2385_v27, %v934_v55  ;;  %v936_v59 = vpop.f32.mrb[59].mxu0  ;;  %v1087_v62 = vadd.f32 %v2385_v27, %v1086_v56 }
 0x197   : > { %vm1180_vm13 = vcmp.gt.f32.partialorder %v1084_v53, 0.0  ;;  %v1088_v60 = vpop.f32.mrb[59].mxu1  ;;  %v1254_v61 = vmul.f32 0.01, %v1084_v53 }
 0x198   : > { %v1290_v63 = vsel %vm1142_vm12, %v932_v51, %v1216_v57  ;;  %vm1143_vm14 = vcmp.gt.f32.partialorder %v935_v58, 0.0  ;;  %v1217_v0 = vmul.f32 0.01, %v935_v58  ;;  %vm1181_vm15 = vcmp.gt.f32.partialorder %v1087_v62, 0.0 }
 0x199   : > { %v1988_v1 = vpack.c.bf16 %v1290_v63, %v1290_v63  ;;  %v1328_v2 = vsel %vm1180_vm13, %v1084_v53, %v1254_v61  ;;  %v1255_v3 = vmul.f32 0.01, %v1087_v62 }
 0x19a   : > { %v1291_v4 = vsel %vm1143_vm14, %v935_v58, %v1217_v0  ;;  %v2026_v5 = vpack.c.bf16 %v1328_v2, %v1328_v2 }
 0x19b   : > { %1661 = vst.msk [vmem:[%s2395_s28 + $0x70] sm:$0xf] %vm1632_vm2, %v1988_v1  ;;  %v1989_v6 = vpack.c.bf16 %v1291_v4, %v1291_v4  ;;  %v1329_v7 = vsel %vm1181_vm15, %v1087_v62, %v1255_v3  ;;  %v939_v8 = vpop.f32.mrb[60].mxu0  ;;  %v1091_v9 = vpop.f32.mrb[60].mxu1 }
 0x19c   : > { %1699 = vst.msk [vmem:[%s2395_s28 + $0x108] sm:$0xf] %vm1632_vm2, %v2026_v5  ;;  %v2027_v10 = vpack.c.bf16 %v1329_v7, %v1329_v7  ;;  %v940_v11 = vadd.f32 %v2385_v27, %v939_v8  ;;  %v941_v12 = vpop.f32.mrb[61].mxu0  ;;  %v1092_v13 = vadd.f32 %v2385_v27, %v1091_v9  ;;  %v1093_v14 = vpop.f32.mrb[61].mxu1 }
 0x19d   : > { %1662 = vst.msk [vmem:[%s2395_s28 + $0x74] sm:$0xf] %vm1632_vm2, %v1989_v6  ;;  %v942_v15 = vpop.f32.mrb[62].mxu0  ;;  %v1094_v16 = vpop.f32.mrb[62].mxu1 }
 0x19e   : > { %1700 = vst.msk [vmem:[%s2395_s28 + $0x10c] sm:$0xf] %vm1632_vm2, %v2027_v10  ;;  %vm1144_vm0 = vcmp.gt.f32.partialorder %v940_v11, 0.0  ;;  %v1218_v17 = vmul.f32 0.01, %v940_v11  ;;  %v943_v18 = vadd.f32 %v2385_v27, %v942_v15  ;;  %v944_v19 = vpop.f32.mrb[63].mxu0  ;;  %v1095_v22 = vadd.f32 %v2385_v27, %v1094_v16 }
 0x19f   : > { %vm1182_vm1 = vcmp.gt.f32.partialorder %v1092_v13, 0.0  ;;  %v1096_v20 = vpop.f32.mrb[63].mxu1  ;;  %v1256_v21 = vmul.f32 0.01, %v1092_v13 }
 0x1a0   : > { %v1292_v23 = vsel %vm1144_vm0, %v940_v11, %v1218_v17  ;;  %vm1145_vm3 = vcmp.gt.f32.partialorder %v943_v18, 0.0  ;;  %v1219_v24 = vmul.f32 0.01, %v943_v18  ;;  %vm1183_vm4 = vcmp.gt.f32.partialorder %v1095_v22, 0.0 }
 0x1a1   : > { %v1990_v25 = vpack.c.bf16 %v1292_v23, %v1292_v23  ;;  %v1330_v26 = vsel %vm1182_vm1, %v1092_v13, %v1256_v21  ;;  %v1257_v28 = vmul.f32 0.01, %v1095_v22 }
 0x1a2   : > { %v1293_v29 = vsel %vm1145_vm3, %v943_v18, %v1219_v24  ;;  %v2028_v30 = vpack.c.bf16 %v1330_v26, %v1330_v26 }
 0x1a3   : > { %1663 = vst.msk [vmem:[%s2395_s28 + $0x78] sm:$0xf] %vm1632_vm2, %v1990_v25  ;;  %v1991_v31 = vpack.c.bf16 %v1293_v29, %v1293_v29  ;;  %v1331_v32 = vsel %vm1183_vm4, %v1095_v22, %v1257_v28  ;;  %v947_v33 = vpop.f32.mrb[64].mxu0  ;;  %v1099_v34 = vpop.f32.mrb[64].mxu1 }
 0x1a4   : > { %1701 = vst.msk [vmem:[%s2395_s28 + $0x110] sm:$0xf] %vm1632_vm2, %v2028_v30  ;;  %v2029_v27 = vpack.c.bf16 %v1331_v32, %v1331_v32  ;;  %v948_v36 = vadd.f32 %v2582_v35, %v947_v33  ;;  %v949_v37 = vpop.f32.mrb[65].mxu0  ;;  %v1100_v38 = vadd.f32 %v2582_v35, %v1099_v34  ;;  %v1101_v39 = vpop.f32.mrb[65].mxu1 }
 0x1a5   : > { %1664 = vst.msk [vmem:[%s2395_s28 + $0x7c] sm:$0xf] %vm1632_vm2, %v1991_v31  ;;  %v950_v40 = vpop.f32.mrb[66].mxu0  ;;  %v1102_v41 = vpop.f32.mrb[66].mxu1 }
 0x1a6   : > { %1702 = vst.msk [vmem:[%s2395_s28 + $0x114] sm:$0xf] %vm1632_vm2, %v2029_v27  ;;  %vm1146_vm5 = vcmp.gt.f32.partialorder %v948_v36, 0.0  ;;  %v1220_v42 = vmul.f32 0.01, %v948_v36  ;;  %v951_v43 = vadd.f32 %v2582_v35, %v950_v40  ;;  %v952_v44 = vpop.f32.mrb[67].mxu0  ;;  %v1103_v47 = vadd.f32 %v2582_v35, %v1102_v41 }
 0x1a7   : > { %vm1184_vm6 = vcmp.gt.f32.partialorder %v1100_v38, 0.0  ;;  %v1104_v45 = vpop.f32.mrb[67].mxu1  ;;  %v1258_v46 = vmul.f32 0.01, %v1100_v38 }
 0x1a8   : > { %v1294_v48 = vsel %vm1146_vm5, %v948_v36, %v1220_v42  ;;  %vm1147_vm7 = vcmp.gt.f32.partialorder %v951_v43, 0.0  ;;  %v1221_v49 = vmul.f32 0.01, %v951_v43  ;;  %vm1185_vm8 = vcmp.gt.f32.partialorder %v1103_v47, 0.0 }
 0x1a9   : > { %v1992_v50 = vpack.c.bf16 %v1294_v48, %v1294_v48  ;;  %v1332_v51 = vsel %vm1184_vm6, %v1100_v38, %v1258_v46  ;;  %v1259_v52 = vmul.f32 0.01, %v1103_v47 }
 0x1aa   : > { %v1295_v53 = vsel %vm1147_vm7, %v951_v43, %v1221_v49  ;;  %v2030_v54 = vpack.c.bf16 %v1332_v51, %v1332_v51 }
 0x1ab   : > { %1665 = vst.msk [vmem:[%s2395_s28 + $0x80] sm:$0xf] %vm1632_vm2, %v1992_v50  ;;  %v1993_v55 = vpack.c.bf16 %v1295_v53, %v1295_v53  ;;  %v1333_v56 = vsel %vm1185_vm8, %v1103_v47, %v1259_v52  ;;  %v955_v57 = vpop.f32.mrb[68].mxu0  ;;  %v1107_v58 = vpop.f32.mrb[68].mxu1 }
 0x1ac   : > { %1703 = vst.msk [vmem:[%s2395_s28 + $0x118] sm:$0xf] %vm1632_vm2, %v2030_v54  ;;  %v2031_v59 = vpack.c.bf16 %v1333_v56, %v1333_v56  ;;  %v956_v60 = vadd.f32 %v2582_v35, %v955_v57  ;;  %v957_v61 = vpop.f32.mrb[69].mxu0  ;;  %v1108_v62 = vadd.f32 %v2582_v35, %v1107_v58  ;;  %v1109_v63 = vpop.f32.mrb[69].mxu1 }
 0x1ad   : > { %1666 = vst.msk [vmem:[%s2395_s28 + $0x84] sm:$0xf] %vm1632_vm2, %v1993_v55  ;;  %v958_v0 = vpop.f32.mrb[70].mxu0  ;;  %v1110_v1 = vpop.f32.mrb[70].mxu1 }
 0x1ae   : > { %1704 = vst.msk [vmem:[%s2395_s28 + $0x11c] sm:$0xf] %vm1632_vm2, %v2031_v59  ;;  %vm1148_vm9 = vcmp.gt.f32.partialorder %v956_v60, 0.0  ;;  %v1222_v2 = vmul.f32 0.01, %v956_v60  ;;  %v959_v3 = vadd.f32 %v2582_v35, %v958_v0  ;;  %v960_v4 = vpop.f32.mrb[71].mxu0  ;;  %v1111_v7 = vadd.f32 %v2582_v35, %v1110_v1 }
 0x1af   : > { %vm1186_vm10 = vcmp.gt.f32.partialorder %v1108_v62, 0.0  ;;  %v1112_v5 = vpop.f32.mrb[71].mxu1  ;;  %v1260_v6 = vmul.f32 0.01, %v1108_v62 }
 0x1b0   : > { %v1296_v8 = vsel %vm1148_vm9, %v956_v60, %v1222_v2  ;;  %vm1149_vm11 = vcmp.gt.f32.partialorder %v959_v3, 0.0  ;;  %v1223_v9 = vmul.f32 0.01, %v959_v3  ;;  %vm1187_vm12 = vcmp.gt.f32.partialorder %v1111_v7, 0.0 }
 0x1b1   : > { %v1994_v10 = vpack.c.bf16 %v1296_v8, %v1296_v8  ;;  %v1334_v11 = vsel %vm1186_vm10, %v1108_v62, %v1260_v6  ;;  %v1261_v12 = vmul.f32 0.01, %v1111_v7 }
 0x1b2   : > { %v1297_v13 = vsel %vm1149_vm11, %v959_v3, %v1223_v9  ;;  %v2032_v14 = vpack.c.bf16 %v1334_v11, %v1334_v11 }
 0x1b3   : > { %1667 = vst.msk [vmem:[%s2395_s28 + $0x88] sm:$0xf] %vm1632_vm2, %v1994_v10  ;;  %v1995_v15 = vpack.c.bf16 %v1297_v13, %v1297_v13  ;;  %v1335_v16 = vsel %vm1187_vm12, %v1111_v7, %v1261_v12  ;;  %v963_v17 = vpop.f32.mrb[72].mxu0 }
 0x1b4   : > { %1705 = vst.msk [vmem:[%s2395_s28 + $0x120] sm:$0xf] %vm1632_vm2, %v2032_v14  ;;  %v2033_v18 = vpack.c.bf16 %v1335_v16, %v1335_v16  ;;  %v964_v19 = vadd.f32 %v2582_v35, %v963_v17  ;;  %v965_v20 = vpop.f32.mrb[73].mxu0 }
 0x1b5   : > { %1668 = vst.msk [vmem:[%s2395_s28 + $0x8c] sm:$0xf] %vm1632_vm2, %v1995_v15  ;;  %v966_v21 = vpop.f32.mrb[74].mxu0 }
 0x1b6   : > { %1706 = vst.msk [vmem:[%s2395_s28 + $0x124] sm:$0xf] %vm1632_vm2, %v2033_v18  ;;  %vm1150_vm13 = vcmp.gt.f32.partialorder %v964_v19, 0.0  ;;  %v1224_v22 = vmul.f32 0.01, %v964_v19  ;;  %v967_v23 = vadd.f32 %v2582_v35, %v966_v21  ;;  %v968_v24 = vpop.f32.mrb[75].mxu0 }
 0x1b8   : > { %v1298_v25 = vsel %vm1150_vm13, %v964_v19, %v1224_v22  ;;  %vm1151_vm14 = vcmp.gt.f32.partialorder %v967_v23, 0.0  ;;  %v1225_v26 = vmul.f32 0.01, %v967_v23 }
 0x1b9   : > { %v1996_v28 = vpack.c.bf16 %v1298_v25, %v1298_v25 }
 0x1ba   : > { %v1299_v29 = vsel %vm1151_vm14, %v967_v23, %v1225_v26 }
 0x1bb   : > { %1669 = vst.msk [vmem:[%s2395_s28 + $0x90] sm:$0xf] %vm1632_vm2, %v1996_v28  ;;  %v1997_v30 = vpack.c.bf16 %v1299_v29, %v1299_v29 }
 0x1bd   : > { %1670 = vst.msk [vmem:[%s2395_s28 + $0x94] sm:$0xf] %vm1632_vm2, %v1997_v30 }
 0x1be PF: > { %s13_s12 = sadd.s32 1, %s2211_s12  }
 0x1bf   : > { %p10_p4 = scmp.ge.s32.totalorder %s13_s12, 4  }
 0x1c1   :  { %12 = sbr.rel (!%p10_p4) target bundleno = 1 (0x1), region = 68 }

// kernel: network_forward.6
= control target key start
LH: loop header
LB: loop body
LE: loop exit
PB: predicated region body
PF: predicated region fallthrough
CT: control target
= control target key end

     0   :  { %s3394_s12 = smov 0   ;;  %s3777_s0 = inlined_call_operand.vmem [shape: bf16[2,112,1664], index: 0, kind: input, shape index: {}]   ;;  %s3778_s1 = inlined_call_operand.vmem [shape: bf16[2,1664,128], index: 1, kind: input, shape index: {}]   ;;  %s3779_s2 = inlined_call_operand.vmem [shape: f32[2,1,128], index: 2, kind: input, shape index: {}]   ;;  %s3780_s3 = inlined_call_operand.vmem [shape: bf16[2,112,128], index: 3, kind: output, shape index: {}]  }
   0x1 LB: > { %s2416_s13 = sadd.s32 4294967295, %s3370_s12   ;;  %p2420_p0 = scmp.ge.s32.totalorder %s3370_s12, 1  ;;  %s3370_s12 = sphi %s3394_s12, %s13_s12  }
   0x2   : > { %p155_p1 = scmp.lt.s32.totalorder %s3370_s12, 3 }
   0x4   : > { %p156_p2 = pnand %p2420_p0, %p155_p1 }
   0x5   : > { %p187_p3 = scmp.lt.s32.totalorder (!%p156_p2), %s2416_s13, 1  ;;  %vm3373_vm0 = vmmov (!%p156_p2), 0  }
   0x6   : > { %159 = sbr.rel (%p156_p2) target bundleno = 469 (0x1d5), region = 32 }
   0xd   : > { %s3782_s13 = smov (!%p187_p3, %s2416_s13), 1 }
   0xe   : > { %s3115_s14 = smul.u32 832, %s3782_s13  ;;  %s199_s24 = scalar_lea.vmem %s3779_s2, %s3782_s13 }
   0xf   : > { %s3114_s18 = smul.u32 728, %s3782_s13 }
  0x10   : > { %s3408_s17 = scalar_lea.vmem %s3778_s1, %s3115_s14  ;;  %s3116_s25 = smul.u32 56, %s3782_s13 }
  0x11   : > { %v3127_v0 = vld [vmem:[%s3408_s17 + $0x40] sm:$0xff]   ;;  %v3129_v2 = vld [vmem:[%s3408_s17 + $0x48] sm:$0xff]   ;;  %v3131_v4 = vld [vmem:[%s3408_s17 + $0x50] sm:$0xff]   ;;  %s3423_s21 = scalar_lea.vmem %s3777_s0, %s3114_s18 }
  0x12   : > { %v3128_v1 = vld [vmem:[%s3408_s17] sm:$0xff]   ;;  %3098 = vmatprep.subr.bf16.mxu1 %v3127_v0  ;;  %2691 = vmatprep.subr.bf16.mxu0 %v3127_v0  ;;  %v3130_v3 = vld [vmem:[%s3408_s17 + $0x8] sm:$0xff]   ;;  %v3132_v5 = vld [vmem:[%s3408_s17 + $0x10] sm:$0xff]   ;;  %s3753_s28 = scalar_lea.vmem %s3780_s3, %s3116_s25 }
  0x13   : > { %3106 = vmatpush3.bf16.msra.mxu1 %v3128_v1  ;;  %2692 = vmatpush3.bf16.msra.mxu0 %v3128_v1  ;;  %v3133_v6 = vld [vmem:[%s3408_s17 + $0x58] sm:$0xff]   ;;  %v3135_v8 = vld [vmem:[%s3408_s17 + $0x60] sm:$0xff]   ;;  %v3137_v10 = vld [vmem:[%s3408_s17 + $0x68] sm:$0xff]  }
  0x14   : > { %3099 = vmatprep.subr.bf16.mxu1 %v3129_v2  ;;  %2693 = vmatprep.subr.bf16.mxu0 %v3129_v2  ;;  %v3134_v7 = vld [vmem:[%s3408_s17 + $0x18] sm:$0xff]   ;;  %v3136_v9 = vld [vmem:[%s3408_s17 + $0x20] sm:$0xff]   ;;  %v3138_v12 = vld [vmem:[%s3408_s17 + $0x28] sm:$0xff]  }
  0x15   : > { %v3145_v11 = vld [vmem:[%s3423_s21 + $0x1a4] ss:$52 sps:$4 sm:$0xff]   ;;  %v3139_v14 = vld [vmem:[%s3408_s17 + $0x70] sm:$0xff]   ;;  %v3153_v24 = vld [vmem:[%s3408_s17 + $0xc8] sm:$0xff]  }
  0x16   : > { %v3149_v13 = vld [vmem:[%s3423_s21 + $0x4] ss:$52 sps:$4 sm:$0xff]   ;;  %1669 = vmatprep.mubr.bf16.mxu1 %v3145_v11  ;;  %v3140_v15 = vld [vmem:[%s3408_s17 + $0x30] sm:$0xff]   ;;  %v3155_v25 = vld [vmem:[%s3408_s17 + $0x148] sm:$0xff]  }
  0x17   : > { %3107 = vmatpush3.bf16.msra.mxu1 %v3130_v3  ;;  %2694 = vmatpush3.bf16.msra.mxu0 %v3130_v3  ;;  %v3141_v16 = vld [vmem:[%s3408_s17 + $0x78] sm:$0xff]   ;;  %v3146_v18 = vld [vmem:[%s3408_s17 + $0xc0] sm:$0xff]   ;;  %v3154_v27 = vld [vmem:[%s3408_s17 + $0x88] sm:$0xff]  }
  0x18   : > { %3100 = vmatprep.subr.bf16.mxu1 %v3131_v4  ;;  %2695 = vmatprep.subr.bf16.mxu0 %v3131_v4  ;;  %v3142_v17 = vld [vmem:[%s3408_s17 + $0x38] sm:$0xff]   ;;  %v3143_v19 = vld [vmem:[%s3423_s21 + $0x1a0] ss:$52 sps:$4 sm:$0xff]   ;;  %v3156_v29 = vld [vmem:[%s3408_s17 + $0x108] sm:$0xff]  }
  0x19   : > { %1637 = vmatprep.mubr.bf16.mxu0 %v3149_v13  ;;  %v3147_v20 = vld [vmem:[%s3423_s21] ss:$52 sps:$4 sm:$0xff]   ;;  %v3161_v33 = vld [vmem:[%s3423_s21 + $0x68] ss:$52 sps:$4 sm:$0xff]   ;;  %v3175_v45 = vld [vmem:[%s3423_s21 + $0xd0] ss:$52 sps:$4 sm:$0xff]  }
  0x1a   : > { %v3151_v21 = vld [vmem:[%s3408_s17 + $0x140] sm:$0xff]   ;;  %v3157_v30 = vld [vmem:[%s3408_s17 + $0xd0] sm:$0xff]   ;;  %v3168_v34 = vld [vmem:[%s3423_s21 + $0x208] ss:$52 sps:$4 sm:$0xff]  }
  0x1b   : > { %3108 = vmatpush3.bf16.msra.mxu1 %v3132_v5  ;;  %2696 = vmatpush3.bf16.msra.mxu0 %v3132_v5  ;;  %v3150_v22 = vld [vmem:[%s3408_s17 + $0x80] sm:$0xff]   ;;  %v3162_v31 = vld [vmem:[%s3408_s17 + $0x150] sm:$0xff]   ;;  %v3164_v36 = vld [vmem:[%s3408_s17 + $0xd8] sm:$0xff]  }
  0x1c   : > { %3101 = vmatprep.subr.bf16.mxu1 %v3133_v6  ;;  %2697 = vmatprep.subr.bf16.mxu0 %v3133_v6  ;;  %v3152_v23 = vld [vmem:[%s3408_s17 + $0x100] sm:$0xff]   ;;  %v3160_v32 = vld [vmem:[%s3408_s17 + $0x90] sm:$0xff]   ;;  %v3169_v37 = vld [vmem:[%s3408_s17 + $0x158] sm:$0xff]  }
  0x1d   : > { %v3158_v26 = vld [vmem:[%s3423_s21 + $0x6c] ss:$52 sps:$4 sm:$0xff]   ;;  %v3163_v35 = vld [vmem:[%s3408_s17 + $0x110] sm:$0xff]   ;;  %v3167_v38 = vld [vmem:[%s3408_s17 + $0x98] sm:$0xff]  }
  0x1e   : > { %v3165_v28 = vld [vmem:[%s3423_s21 + $0x20c] ss:$52 sps:$4 sm:$0xff]   ;;  %v3170_v39 = vld [vmem:[%s3408_s17 + $0x118] sm:$0xff]   ;;  %v3172_v40 = vld [vmem:[%s3423_s21 + $0xd4] ss:$52 sps:$4 sm:$0xff]  }
  0x1f   : > { %3109 = vmatpush3.bf16.msra.mxu1 %v3134_v7  ;;  %2698 = vmatpush3.bf16.msra.mxu0 %v3134_v7  ;;  %v3171_v41 = vld [vmem:[%s3408_s17 + $0xe0] sm:$0xff]   ;;  %v3179_v43 = vld [vmem:[%s3423_s21 + $0x274] ss:$52 sps:$4 sm:$0xff]   ;;  %v3186_v51 = vld [vmem:[%s3423_s21 + $0x13c] ss:$52 sps:$4 sm:$0xff]  }
  0x20   : > { %3102 = vmatprep.subr.bf16.mxu1 %v3135_v8  ;;  %2699 = vmatprep.subr.bf16.mxu0 %v3135_v8  ;;  %v3176_v42 = vld [vmem:[%s3408_s17 + $0x160] sm:$0xff]   ;;  %v3178_v48 = vld [vmem:[%s3408_s17 + $0xe8] sm:$0xff]   ;;  %v3185_v53 = vld [vmem:[%s3408_s17 + $0xf0] sm:$0xff]  }
  0x21   : > { %v3174_v44 = vld [vmem:[%s3408_s17 + $0xa0] sm:$0xff]   ;;  %v3183_v49 = vld [vmem:[%s3408_s17 + $0x168] sm:$0xff]   ;;  %v3190_v54 = vld [vmem:[%s3408_s17 + $0x170] sm:$0xff]  }
  0x22   : > { %v3177_v46 = vld [vmem:[%s3408_s17 + $0x120] sm:$0xff]   ;;  %v3181_v50 = vld [vmem:[%s3408_s17 + $0xa8] sm:$0xff]   ;;  %v3188_v55 = vld [vmem:[%s3408_s17 + $0xb0] sm:$0xff]  }
  0x23   : > { %3110 = vmatpush3.bf16.msra.mxu1 %v3136_v9  ;;  %2700 = vmatpush3.bf16.msra.mxu0 %v3136_v9  ;;  %v3182_v47 = vld [vmem:[%s3423_s21 + $0x270] ss:$52 sps:$4 sm:$0xff]   ;;  %v3184_v52 = vld [vmem:[%s3408_s17 + $0x128] sm:$0xff]   ;;  %v3192_v58 = vld [vmem:[%s3408_s17 + $0xf8] sm:$0xff]  }
  0x24   : > { %3103 = vmatprep.subr.bf16.mxu1 %v3137_v10  ;;  %2701 = vmatprep.subr.bf16.mxu0 %v3137_v10  ;;  %v3189_v56 = vld [vmem:[%s3423_s21 + $0x138] ss:$52 sps:$4 sm:$0xff]   ;;  %v3191_v57 = vld [vmem:[%s3408_s17 + $0x130] sm:$0xff]   ;;  %v3199_v63 = vld [vmem:[%s3408_s17 + $0x1c0] sm:$0xff]  }
  0x25   : > { %v3194_v59 = vld [vmem:[%s3408_s17 + $0x178] sm:$0xff]   ;;  %v3197_v61 = vld [vmem:[%s3423_s21 + $0xc] ss:$52 sps:$4 sm:$0xff]   ;;  %v3200_v1 = vld [vmem:[%s3423_s21 + $0x10] ss:$52 sps:$4 sm:$0xff]  }
  0x26   : > { %v3193_v60 = vld [vmem:[%s3408_s17 + $0xb8] sm:$0xff]   ;;  %v3202_v2 = vld [vmem:[%s3423_s21 + $0x14] ss:$52 sps:$4 sm:$0xff]   ;;  %v3203_v3 = vld [vmem:[%s3408_s17 + $0x180] sm:$0xff]  }
  0x27   : > { %3111 = vmatpush3.bf16.msra.mxu1 %v3138_v12  ;;  %2702 = vmatpush3.bf16.msra.mxu0 %v3138_v12  ;;  %v3198_v62 = vld [vmem:[%s3408_s17 + $0x138] sm:$0xff]   ;;  %v3204_v4 = vld [vmem:[%s3408_s17 + $0x240] sm:$0xff]   ;;  %v3206_v6 = vld [vmem:[%s3423_s21 + $0x74] ss:$52 sps:$4 sm:$0xff]  }
  0x28   : > { %3104 = vmatprep.subr.bf16.mxu1 %v3139_v14  ;;  %2703 = vmatprep.subr.bf16.mxu0 %v3139_v14  ;;  %v3195_v0 = vld [vmem:[%s3423_s21 + $0x8] ss:$52 sps:$4 sm:$0xff]   ;;  %v3205_v5 = vld [vmem:[%s3408_s17 + $0x200] sm:$0xff]   ;;  %v3213_v11 = vld [vmem:[%s3423_s21 + $0x78] ss:$52 sps:$4 sm:$0xff]  }
  0x29   : > { %v3208_v7 = vld [vmem:[%s3408_s17 + $0x1c8] sm:$0xff]   ;;  %v3209_v9 = vld [vmem:[%s3423_s21 + $0x70] ss:$52 sps:$4 sm:$0xff]  }
  0x2a   : > { %v3210_v8 = vld [vmem:[%s3408_s17 + $0x188] sm:$0xff]   ;;  %v3211_v10 = vld [vmem:[%s3423_s21 + $0x7c] ss:$52 sps:$4 sm:$0xff]  }
  0x2b   : > { %3112 = vmatpush3.bf16.msra.mxu1 %v3140_v15  ;;  %2704 = vmatpush3.bf16.msra.mxu0 %v3140_v15  ;;  %v3214_v12 = vld [vmem:[%s3408_s17 + $0x248] sm:$0xff]   ;;  %v3216_v14 = vld [vmem:[%s3408_s17 + $0x1d0] sm:$0xff]  }
  0x2c   : > { %3105 = vmatprep.subr.bf16.mxu1 %v3141_v16  ;;  %2705 = vmatprep.subr.bf16.mxu0 %v3141_v16  ;;  %v3215_v13 = vld [vmem:[%s3408_s17 + $0x208] sm:$0xff]   ;;  %v3217_v15 = vld [vmem:[%s3423_s21 + $0xdc] ss:$52 sps:$4 sm:$0xff]  }
  0x2d   : > { %v3219_v16 = vld [vmem:[%s3408_s17 + $0x190] sm:$0xff]  }
  0x2f   : > { %3113 = vmatpush3.bf16.msra.mxu1 %v3142_v17  ;;  %2706 = vmatpush3.bf16.msra.mxu0 %v3142_v17  ;;  %v3221_v17 = vld [vmem:[%s3423_s21 + $0xe4] ss:$52 sps:$4 sm:$0xff]  }
  0x30   : > { %2749 = vmatprep.subr.bf16.mxu1 %v3146_v18  ;;  %2807 = vmatprep.subr.bf16.mxu0 %v3151_v21  ;;  %v3220_v18 = vld [vmem:[%s3423_s21 + $0xd8] ss:$52 sps:$4 sm:$0xff]   ;;  %v3225_v21 = vld [vmem:[%s3408_s17 + $0x210] sm:$0xff]  }
  0x32   : > { %1670 = vmatmul.mubr.bf16.vlgmr.msra.gmra.mrb[0].mxu1 %v3143_v19  ;;  %1638 = vmatmul.mubr.bf16.vlgmr.msra.gmra.mrb[0].mxu0 %v3147_v20  ;;  %v3223_v19 = vld [vmem:[%s3423_s21 + $0xe0] ss:$52 sps:$4 sm:$0xff]  }
  0x33   : > { %2750 = vmatpush3.bf16.msra.mxu1 %v3150_v22  ;;  %2808 = vmatpush3.bf16.msra.mxu0 %v3152_v23  ;;  %v3224_v20 = vld [vmem:[%s3408_s17 + $0x250] sm:$0xff]   ;;  %v3226_v22 = vld [vmem:[%s3408_s17 + $0x1d8] sm:$0xff]  }
  0x34   : > { %2751 = vmatprep.subr.bf16.mxu1 %v3153_v24  ;;  %2809 = vmatprep.subr.bf16.mxu0 %v3155_v25  ;;  %v3227_v23 = vld [vmem:[%s3408_s17 + $0x198] sm:$0xff]   ;;  %v3231_v25 = vld [vmem:[%s3423_s21 + $0x14c] ss:$52 sps:$4 sm:$0xff]  }
  0x35   : > { %1645 = vmatprep.mubr.bf16.mxu0 %v3158_v26  ;;  %1677 = vmatprep.mubr.bf16.mxu1 %v3165_v28  ;;  %v3228_v24 = vld [vmem:[%s3423_s21 + $0x144] ss:$52 sps:$4 sm:$0xff]   ;;  %v3230_v28 = vld [vmem:[%s3423_s21 + $0x140] ss:$52 sps:$4 sm:$0xff]  }
  0x36   : > { %v3234_v26 = vld [vmem:[%s3408_s17 + $0x258] sm:$0xff]  }
  0x37   : > { %2752 = vmatpush3.bf16.msra.mxu1 %v3154_v27  ;;  %2810 = vmatpush3.bf16.msra.mxu0 %v3156_v29  ;;  %v3235_v27 = vld [vmem:[%s3408_s17 + $0x218] sm:$0xff]   ;;  %v3236_v29 = vld [vmem:[%s3408_s17 + $0x1e0] sm:$0xff]  }
  0x38   : > { %2753 = vmatprep.subr.bf16.mxu1 %v3157_v30  ;;  %2811 = vmatprep.subr.bf16.mxu0 %v3162_v31  ;;  %v3237_v30 = vld [vmem:[%s3408_s17 + $0x1a0] sm:$0xff]   ;;  %v3233_v31 = vld [vmem:[%s3423_s21 + $0x148] ss:$52 sps:$4 sm:$0xff]  }
  0x3a   : > { %1646 = vmatmul.mubr.bf16.gmra.mrb[4].mxu0 %v3161_v33  ;;  %1678 = vmatmul.mubr.bf16.gmra.mrb[4].mxu1 %v3168_v34  ;;  %v3241_v33 = vld [vmem:[%s3423_s21 + $0x1b4] ss:$52 sps:$4 sm:$0xff]   ;;  %v3243_v34 = vld [vmem:[%s3408_s17 + $0x260] sm:$0xff]  }
  0x3b   : > { %2754 = vmatpush3.bf16.msra.mxu1 %v3160_v32  ;;  %2812 = vmatpush3.bf16.msra.mxu0 %v3163_v35  ;;  %v3238_v32 = vld [vmem:[%s3423_s21 + $0x1ac] ss:$52 sps:$4 sm:$0xff]  }
  0x3c   : > { %2755 = vmatprep.subr.bf16.mxu1 %v3164_v36  ;;  %2813 = vmatprep.subr.bf16.mxu0 %v3169_v37  ;;  %v3245_v35 = vld [vmem:[%s3408_s17 + $0x220] sm:$0xff]   ;;  %v3246_v36 = vld [vmem:[%s3408_s17 + $0x1e8] sm:$0xff]  }
  0x3d   : > { %1653 = vmatprep.mubr.bf16.mxu0 %v3172_v40  ;;  %1685 = vmatprep.mubr.bf16.mxu1 %v3179_v43  ;;  %v3240_v37 = vld [vmem:[%s3423_s21 + $0x1a8] ss:$52 sps:$4 sm:$0xff]  }
  0x3e   : > { %v3248_v40 = vld [vmem:[%s3423_s21 + $0x214] ss:$52 sps:$4 sm:$0xff]  }
  0x3f   : > { %2756 = vmatpush3.bf16.msra.mxu1 %v3167_v38  ;;  %2814 = vmatpush3.bf16.msra.mxu0 %v3170_v39  ;;  %v3247_v38 = vld [vmem:[%s3408_s17 + $0x1a8] sm:$0xff]   ;;  %v3244_v39 = vld [vmem:[%s3423_s21 + $0x1b0] ss:$52 sps:$4 sm:$0xff]  }
  0x40   : > { %2757 = vmatprep.subr.bf16.mxu1 %v3171_v41  ;;  %2815 = vmatprep.subr.bf16.mxu0 %v3176_v42  ;;  %v3251_v41 = vld [vmem:[%s3408_s17 + $0x268] sm:$0xff]   ;;  %v3252_v42 = vld [vmem:[%s3423_s21 + $0x21c] ss:$52 sps:$4 sm:$0xff]  }
  0x41   : > { %v3254_v43 = vld [vmem:[%s3408_s17 + $0x228] sm:$0xff]  }
  0x42   : > { %1654 = vmatmul.mubr.bf16.gmra.mrb[8].mxu0 %v3175_v45  ;;  %1686 = vmatmul.mubr.bf16.gmra.mrb[8].mxu1 %v3182_v47  ;;  %v3257_v45 = vld [vmem:[%s3408_s17 + $0x1b0] sm:$0xff]   ;;  %v3255_v47 = vld [vmem:[%s3423_s21 + $0x218] ss:$52 sps:$4 sm:$0xff]  }
  0x43   : > { %2758 = vmatpush3.bf16.msra.mxu1 %v3174_v44  ;;  %2816 = vmatpush3.bf16.msra.mxu0 %v3177_v46  ;;  %v3256_v44 = vld [vmem:[%s3408_s17 + $0x1f0] sm:$0xff]  }
  0x44   : > { %2759 = vmatprep.subr.bf16.mxu1 %v3178_v48  ;;  %2817 = vmatprep.subr.bf16.mxu0 %v3183_v49  ;;  %v3250_v46 = vld [vmem:[%s3423_s21 + $0x210] ss:$52 sps:$4 sm:$0xff]  }
  0x45   : > { %1661 = vmatprep.mubr.bf16.mxu0 %v3186_v51  ;;  %1726 = vmatprep.mubr.bf16.mxu1 %v3197_v61  ;;  %v3258_v48 = vld [vmem:[%s3423_s21 + $0x27c] ss:$52 sps:$4 sm:$0xff]   ;;  %v3263_v51 = vld [vmem:[%s3423_s21 + $0x284] ss:$52 sps:$4 sm:$0xff]   ;;  %v3372_v61 = vmov 0.0  }
  0x46   : > { %v3260_v49 = vld [vmem:[%s3408_s17 + $0x270] sm:$0xff]  }
  0x47   : > { %2760 = vmatpush3.bf16.msra.mxu1 %v3181_v50  ;;  %2818 = vmatpush3.bf16.msra.mxu0 %v3184_v52  ;;  %v3262_v50 = vld [vmem:[%s3408_s17 + $0x230] sm:$0xff]   ;;  %v3265_v52 = vld [vmem:[%s3408_s17 + $0x1f8] sm:$0xff]  }
  0x48   : > { %2761 = vmatprep.subr.bf16.mxu1 %v3185_v53  ;;  %2819 = vmatprep.subr.bf16.mxu0 %v3190_v54  ;;  %v3267_v53 = vld [vmem:[%s3408_s17 + $0x1b8] sm:$0xff]  }
  0x49   : > { %v3268_v54 = vld [vmem:[%s3408_s17 + $0x278] sm:$0xff]  }
  0x4a   : > { %1662 = vmatmul.mubr.bf16.gmra.mrb[12].mxu0 %v3189_v56  ;;  %v3266_v56 = vld [vmem:[%s3423_s21 + $0x280] ss:$52 sps:$4 sm:$0xff]  }
  0x4b   : > { %2762 = vmatpush3.bf16.msra.mxu1 %v3188_v55  ;;  %2820 = vmatpush3.bf16.msra.mxu0 %v3191_v57  ;;  %v3261_v55 = vld [vmem:[%s3423_s21 + $0x278] ss:$52 sps:$4 sm:$0xff]  }
  0x4c   : > { %2763 = vmatprep.subr.bf16.mxu1 %v3192_v58  ;;  %2821 = vmatprep.subr.bf16.mxu0 %v3194_v59  ;;  %v3272_v57 = vld [vmem:[%s3408_s17 + $0x238] sm:$0xff]   ;;  %v3273_v58 = vld [vmem:[%s3408_s17 + $0x2c0] sm:$0xff]  }
  0x4d   : > { %1815 = vmatprep.mubr.bf16.mxu0 %v3202_v2  ;;  %v3271_v59 = vld [vmem:[%s3423_s21 + $0x1c] ss:$52 sps:$4 sm:$0xff]   ;;  %v3279_v2 = vld [vmem:[%s3423_s21 + $0x84] ss:$52 sps:$4 sm:$0xff]  }
  0x4f   : > { %2764 = vmatpush3.bf16.msra.mxu1 %v3193_v60  ;;  %2822 = vmatpush3.bf16.msra.mxu0 %v3198_v62  ;;  %v3276_v60 = vld [vmem:[%s3423_s21 + $0x24] ss:$52 sps:$4 sm:$0xff]  }
  0x50   : > { %2865 = vmatprep.subr.bf16.mxu1 %v3199_v63  ;;  %2923 = vmatprep.subr.bf16.mxu0 %v3204_v4  ;;  %v3269_v62 = vld [vmem:[%s3423_s21 + $0x18] ss:$52 sps:$4 sm:$0xff]   ;;  %v3274_v63 = vld [vmem:[%s3423_s21 + $0x20] ss:$52 sps:$4 sm:$0xff]  }
  0x51   : > { %v3284_v4 = vld [vmem:[%s3423_s21 + $0x8c] ss:$52 sps:$4 sm:$0xff]  }
  0x52   : > { %1727 = vmatmul.mubr.bf16.vlgmr.msra.gmra.mrb[12].mxu1 %v3195_v0  ;;  %1816 = vmatmul.mubr.bf16.vlgmr.msra.gmra.mrb[16].mxu0 %v3200_v1  ;;  %v3277_v0 = vld [vmem:[%s3408_s17 + $0x280] sm:$0xff]  }
  0x53   : > { %2866 = vmatpush3.bf16.msra.mxu1 %v3203_v3  ;;  %2924 = vmatpush3.bf16.msra.mxu0 %v3205_v5  ;;  %v3278_v1 = vld [vmem:[%s3408_s17 + $0x300] sm:$0xff]   ;;  %v3281_v3 = vld [vmem:[%s3408_s17 + $0x2c8] sm:$0xff]  }
  0x54   : > { %1734 = vmatprep.mubr.bf16.mxu1 %v3206_v6  ;;  %2867 = vmatprep.subr.bf16.mxu1 %v3208_v7  ;;  %v3283_v5 = vld [vmem:[%s3408_s17 + $0x288] sm:$0xff]   ;;  %v3282_v7 = vld [vmem:[%s3423_s21 + $0x80] ss:$52 sps:$4 sm:$0xff]  }
  0x55   : > { %1823 = vmatprep.mubr.bf16.mxu0 %v3211_v10  ;;  %2925 = vmatprep.subr.bf16.mxu0 %v3214_v12  ;;  %v3287_v6 = vld [vmem:[%s3408_s17 + $0x308] sm:$0xff]  }
  0x56   : > { %v3289_v10 = vld [vmem:[%s3423_s21 + $0xec] ss:$52 sps:$4 sm:$0xff]   ;;  %v3293_v12 = vld [vmem:[%s3423_s21 + $0xf4] ss:$52 sps:$4 sm:$0xff]  }
  0x57   : > { %2868 = vmatpush3.bf16.msra.mxu1 %v3210_v8  ;;  %2926 = vmatpush3.bf16.msra.mxu0 %v3215_v13  ;;  %v3286_v8 = vld [vmem:[%s3423_s21 + $0x88] ss:$52 sps:$4 sm:$0xff]   ;;  %v3296_v13 = vld [vmem:[%s3408_s17 + $0x310] sm:$0xff]  }
  0x58   : > { %2869 = vmatprep.subr.bf16.mxu1 %v3216_v14  ;;  %2927 = vmatprep.subr.bf16.mxu0 %v3224_v20  ;;  %v3297_v14 = vld [vmem:[%s3408_s17 + $0x2d8] sm:$0xff]   ;;  %v3299_v20 = vld [vmem:[%s3423_s21 + $0x154] ss:$52 sps:$4 sm:$0xff]  }
  0x5a   : > { %1735 = vmatmul.mubr.bf16.gmra.mrb[16].mxu1 %v3209_v9  ;;  %1824 = vmatmul.mubr.bf16.gmra.mrb[20].mxu0 %v3213_v11  ;;  %v3288_v9 = vld [vmem:[%s3408_s17 + $0x2d0] sm:$0xff]  }
  0x5b   : > { %1742 = vmatprep.mubr.bf16.mxu1 %v3217_v15  ;;  %2870 = vmatpush3.bf16.msra.mxu1 %v3219_v16  ;;  %v3291_v11 = vld [vmem:[%s3408_s17 + $0x290] sm:$0xff]   ;;  %v3298_v15 = vld [vmem:[%s3408_s17 + $0x298] sm:$0xff]  }
  0x5c   : > { %1831 = vmatprep.mubr.bf16.mxu0 %v3221_v17  ;;  %2928 = vmatpush3.bf16.msra.mxu0 %v3225_v21  ;;  %v3305_v16 = vld [vmem:[%s3408_s17 + $0x318] sm:$0xff]  }
  0x5d   : > { %2871 = vmatprep.subr.bf16.mxu1 %v3226_v22  ;;  %2929 = vmatprep.subr.bf16.mxu0 %v3234_v26  ;;  %v3292_v17 = vld [vmem:[%s3423_s21 + $0xe8] ss:$52 sps:$4 sm:$0xff]   ;;  %v3307_v22 = vld [vmem:[%s3408_s17 + $0x2a0] sm:$0xff]   ;;  %v3304_v26 = vld [vmem:[%s3423_s21 + $0x158] ss:$52 sps:$4 sm:$0xff]  }
  0x5e   : > { %v3302_v21 = vld [vmem:[%s3423_s21 + $0x15c] ss:$52 sps:$4 sm:$0xff]  }
  0x5f   : > { %2872 = vmatpush3.bf16.msra.mxu1 %v3227_v23  ;;  %v3314_v23 = vld [vmem:[%s3408_s17 + $0x320] sm:$0xff]  }
  0x60   : > { %2930 = vmatpush3.bf16.msra.mxu0 %v3235_v27  ;;  %2873 = vmatprep.subr.bf16.mxu1 %v3236_v29  ;;  %v3316_v27 = vld [vmem:[%s3408_s17 + $0x2a8] sm:$0xff]  }
  0x61   : > { %2931 = vmatprep.subr.bf16.mxu0 %v3243_v34  ;;  %v3322_v29 = vld [vmem:[%s3408_s17 + $0x328] sm:$0xff]  }
  0x62   : > { %1743 = vmatmul.mubr.bf16.gmra.mrb[20].mxu1 %v3220_v18  ;;  %1832 = vmatmul.mubr.bf16.gmra.mrb[24].mxu0 %v3223_v19  ;;  %v3306_v18 = vld [vmem:[%s3408_s17 + $0x2e0] sm:$0xff]   ;;  %v3310_v34 = vld [vmem:[%s3423_s21 + $0x1b8] ss:$52 sps:$4 sm:$0xff]  }
  0x63   : > { %1750 = vmatprep.mubr.bf16.mxu1 %v3228_v24  ;;  %1839 = vmatprep.mubr.bf16.mxu0 %v3231_v25  ;;  %v3295_v19 = vld [vmem:[%s3423_s21 + $0xf0] ss:$52 sps:$4 sm:$0xff]   ;;  %v3315_v24 = vld [vmem:[%s3408_s17 + $0x2e8] sm:$0xff]  }
  0x64   : > { %2874 = vmatpush3.bf16.msra.mxu1 %v3237_v30  ;;  %2932 = vmatpush3.bf16.msra.mxu0 %v3245_v35  ;;  %v3301_v25 = vld [vmem:[%s3423_s21 + $0x150] ss:$52 sps:$4 sm:$0xff]   ;;  %v3313_v35 = vld [vmem:[%s3423_s21 + $0x1c0] ss:$52 sps:$4 sm:$0xff]  }
  0x65   : > { %2875 = vmatprep.subr.bf16.mxu1 %v3246_v36  ;;  %2933 = vmatprep.subr.bf16.mxu0 %v3251_v41  ;;  %v3324_v30 = vld [vmem:[%s3408_s17 + $0x2f0] sm:$0xff]   ;;  %v3332_v36 = vld [vmem:[%s3408_s17 + $0x2f8] sm:$0xff]  }
  0x66   : > { %v3319_v41 = vld [vmem:[%s3423_s21 + $0x220] ss:$52 sps:$4 sm:$0xff]  }
  0x68   : > { %2876 = vmatpush3.bf16.msra.mxu1 %v3247_v38  ;;  %2934 = vmatpush3.bf16.msra.mxu0 %v3254_v43  ;;  %v3317_v38 = vld [vmem:[%s3423_s21 + $0x224] ss:$52 sps:$4 sm:$0xff]   ;;  %v3326_v43 = vld [vmem:[%s3423_s21 + $0x28c] ss:$52 sps:$4 sm:$0xff]  }
  0x69   : > { %2877 = vmatprep.subr.bf16.mxu1 %v3256_v44  ;;  %2935 = vmatprep.subr.bf16.mxu0 %v3260_v49  ;;  %v3330_v44 = vld [vmem:[%s3423_s21 + $0x294] ss:$52 sps:$4 sm:$0xff]   ;;  %v3339_v49 = vld [vmem:[%s3423_s21 + $0x30] ss:$52 sps:$4 sm:$0xff]  }
  0x6a   : > { %1751 = vmatmul.mubr.bf16.gmra.mrb[24].mxu1 %v3230_v28  ;;  %1840 = vmatmul.mubr.bf16.gmra.mrb[28].mxu0 %v3233_v31  ;;  %v3308_v28 = vld [vmem:[%s3423_s21 + $0x1bc] ss:$52 sps:$4 sm:$0xff]   ;;  %v3311_v31 = vld [vmem:[%s3423_s21 + $0x1c4] ss:$52 sps:$4 sm:$0xff]  }
  0x6b   : > { %1758 = vmatprep.mubr.bf16.mxu1 %v3238_v32  ;;  %1847 = vmatprep.mubr.bf16.mxu0 %v3241_v33  ;;  %v3325_v32 = vld [vmem:[%s3408_s17 + $0x2b0] sm:$0xff]  }
  0x6c   : > { %2878 = vmatpush3.bf16.msra.mxu1 %v3257_v45  ;;  %2936 = vmatpush3.bf16.msra.mxu0 %v3262_v50  ;;  %v3329_v33 = vld [vmem:[%s3408_s17 + $0x330] sm:$0xff]   ;;  %v3328_v45 = vld [vmem:[%s3423_s21 + $0x288] ss:$52 sps:$4 sm:$0xff]  }
  0x6d   : > { %2879 = vmatprep.subr.bf16.mxu1 %v3265_v52  ;;  %2937 = vmatprep.subr.bf16.mxu0 %v3268_v54  ;;  %v3340_v50 = vld [vmem:[%s3423_s21 + $0x94] ss:$52 sps:$4 sm:$0xff]   ;;  %v3343_v52 = vld [vmem:[%s3423_s21 + $0x98] ss:$52 sps:$4 sm:$0xff]  }
  0x6e   : > { %v3346_v54 = vld [vmem:[%s3423_s21 + $0xf8] ss:$52 sps:$4 sm:$0xff]  }
  0x70   : > { %2880 = vmatpush3.bf16.msra.mxu1 %v3267_v53  ;;  %2938 = vmatpush3.bf16.msra.mxu0 %v3272_v57  ;;  %v3344_v53 = vld [vmem:[%s3423_s21 + $0xfc] ss:$52 sps:$4 sm:$0xff]   ;;  %v3350_v57 = vld [vmem:[%s3423_s21 + $0x160] ss:$52 sps:$4 sm:$0xff]  }
  0x71   : > { %2981 = vmatprep.subr.bf16.mxu1 %v3273_v58  ;;  %3054 = vmatprep.subr.bf16.mxu0 %v3372_v61  ;;  %v3351_v58 = vld [vmem:[%s3423_s21 + $0x168] ss:$52 sps:$4 sm:$0xff]  }
  0x72   : > { %1759 = vmatmul.mubr.bf16.gmra.mrb[28].mxu1 %v3240_v37  ;;  %1848 = vmatmul.mubr.bf16.gmra.mrb[32].mxu0 %v3244_v39  ;;  %v3334_v37 = vld [vmem:[%s3408_s17 + $0x2b8] sm:$0xff]   ;;  %v3320_v39 = vld [vmem:[%s3423_s21 + $0x22c] ss:$52 sps:$4 sm:$0xff]  }
  0x73   : > { %1766 = vmatprep.mubr.bf16.mxu1 %v3248_v40  ;;  %1855 = vmatprep.mubr.bf16.mxu0 %v3252_v42  ;;  %v3338_v40 = vld [vmem:[%s3408_s17 + $0x338] sm:$0xff]  }
  0x74   : > { %v3323_v42 = vld [vmem:[%s3423_s21 + $0x228] ss:$52 sps:$4 sm:$0xff]  }
  0x7a   : > { %1767 = vmatmul.mubr.bf16.gmra.mrb[32].mxu1 %v3250_v46  ;;  %1856 = vmatmul.mubr.bf16.gmra.mrb[36].mxu0 %v3255_v47  ;;  %v3333_v46 = vld [vmem:[%s3423_s21 + $0x290] ss:$52 sps:$4 sm:$0xff]   ;;  %v3337_v47 = vld [vmem:[%s3423_s21 + $0x2c] ss:$52 sps:$4 sm:$0xff]  }
  0x7b   : > { %1774 = vmatprep.mubr.bf16.mxu1 %v3258_v48  ;;  %1863 = vmatprep.mubr.bf16.mxu0 %v3263_v51  ;;  %v3335_v48 = vld [vmem:[%s3423_s21 + $0x28] ss:$52 sps:$4 sm:$0xff]   ;;  %v3342_v51 = vld [vmem:[%s3423_s21 + $0x90] ss:$52 sps:$4 sm:$0xff]  }
  0x82   : > { %1775 = vmatmul.mubr.bf16.gmra.mrb[36].mxu1 %v3261_v55  ;;  %1864 = vmatmul.mubr.bf16.gmra.mrb[40].mxu0 %v3266_v56  ;;  %v3347_v55 = vld [vmem:[%s3423_s21 + $0x100] ss:$52 sps:$4 sm:$0xff]   ;;  %v3348_v56 = vld [vmem:[%s3423_s21 + $0x164] ss:$52 sps:$4 sm:$0xff]  }
  0x83   : > { %1904 = vmatprep.mubr.bf16.mxu1 %v3271_v59  ;;  %1993 = vmatprep.mubr.bf16.mxu0 %v3276_v60  ;;  %v3352_v59 = vld [vmem:[%s3423_s21 + $0x1cc] ss:$52 sps:$4 sm:$0xff]   ;;  %v3354_v60 = vld [vmem:[%s3423_s21 + $0x1c8] ss:$52 sps:$4 sm:$0xff]  }
  0x8a   : > { %1905 = vmatmul.mubr.bf16.vlgmr.msra.gmra.mrb[40].mxu1 %v3269_v62  ;;  %1994 = vmatmul.mubr.bf16.vlgmr.msra.gmra.mrb[44].mxu0 %v3274_v63  ;;  %v3355_v62 = vld [vmem:[%s3423_s21 + $0x1d0] ss:$52 sps:$4 sm:$0xff]   ;;  %v3356_v63 = vld [vmem:[%s3423_s21 + $0x234] ss:$52 sps:$4 sm:$0xff]  }
  0x8b   : > { %2982 = vmatpush3.bf16.msra.mxu1 %v3277_v0  ;;  %3055 = vmatpush3.bf16.msra.mxu0 %v3278_v1  ;;  %v3358_v0 = vld [vmem:[%s3423_s21 + $0x230] ss:$52 sps:$4 sm:$0xff]   ;;  %v3359_v1 = vld [vmem:[%s3423_s21 + $0x238] ss:$52 sps:$4 sm:$0xff]  }
  0x8c   : > { %1912 = vmatprep.mubr.bf16.mxu1 %v3279_v2  ;;  %2983 = vmatprep.subr.bf16.mxu1 %v3281_v3  ;;  %v3360_v2 = vld [vmem:[%s3423_s21 + $0x29c] ss:$52 sps:$4 sm:$0xff]   ;;  %v3362_v3 = vld [vmem:[%s3423_s21 + $0x298] ss:$52 sps:$4 sm:$0xff]  }
  0x8d   : > { %2001 = vmatprep.mubr.bf16.mxu0 %v3284_v4  ;;  %3056 = vmatprep.subr.bf16.mxu0 %v3372_v61  ;;  %v3363_v4 = vld [vmem:[%s3423_s21 + $0x2a0] ss:$52 sps:$4 sm:$0xff]  }
  0x8f   : > { %2984 = vmatpush3.bf16.msra.mxu1 %v3283_v5  ;;  %3057 = vmatpush3.bf16.msra.mxu0 %v3287_v6 }
  0x90   : > { %2985 = vmatprep.subr.bf16.mxu1 %v3288_v9  ;;  %3058 = vmatprep.subr.bf16.mxu0 %v3372_v61 }
  0x92   : > { %1913 = vmatmul.mubr.bf16.gmra.mrb[44].mxu1 %v3282_v7  ;;  %2002 = vmatmul.mubr.bf16.gmra.mrb[48].mxu0 %v3286_v8 }
  0x93   : > { %1920 = vmatprep.mubr.bf16.mxu1 %v3289_v10  ;;  %2986 = vmatpush3.bf16.msra.mxu1 %v3291_v11 }
  0x94   : > { %2009 = vmatprep.mubr.bf16.mxu0 %v3293_v12  ;;  %3059 = vmatpush3.bf16.msra.mxu0 %v3296_v13 }
  0x95   : > { %2987 = vmatprep.subr.bf16.mxu1 %v3297_v14  ;;  %3060 = vmatprep.subr.bf16.mxu0 %v3372_v61 }
  0x97   : > { %2988 = vmatpush3.bf16.msra.mxu1 %v3298_v15 }
  0x98   : > { %3061 = vmatpush3.bf16.msra.mxu0 %v3305_v16  ;;  %2989 = vmatprep.subr.bf16.mxu1 %v3306_v18 }
  0x99   : > { %3062 = vmatprep.subr.bf16.mxu0 %v3372_v61 }
  0x9a   : > { %1921 = vmatmul.mubr.bf16.gmra.mrb[48].mxu1 %v3292_v17  ;;  %2010 = vmatmul.mubr.bf16.gmra.mrb[52].mxu0 %v3295_v19 }
  0x9b   : > { %1928 = vmatprep.mubr.bf16.mxu1 %v3299_v20  ;;  %2017 = vmatprep.mubr.bf16.mxu0 %v3302_v21 }
  0x9c   : > { %2990 = vmatpush3.bf16.msra.mxu1 %v3307_v22  ;;  %3063 = vmatpush3.bf16.msra.mxu0 %v3314_v23 }
  0x9d   : > { %2991 = vmatprep.subr.bf16.mxu1 %v3315_v24  ;;  %3064 = vmatprep.subr.bf16.mxu0 %v3372_v61 }
  0xa0   : > { %2992 = vmatpush3.bf16.msra.mxu1 %v3316_v27  ;;  %3065 = vmatpush3.bf16.msra.mxu0 %v3322_v29 }
  0xa1   : > { %2993 = vmatprep.subr.bf16.mxu1 %v3324_v30  ;;  %3066 = vmatprep.subr.bf16.mxu0 %v3372_v61 }
  0xa2   : > { %1929 = vmatmul.mubr.bf16.gmra.mrb[52].mxu1 %v3301_v25  ;;  %2018 = vmatmul.mubr.bf16.gmra.mrb[56].mxu0 %v3304_v26 }
  0xa3   : > { %1936 = vmatprep.mubr.bf16.mxu1 %v3308_v28  ;;  %2025 = vmatprep.mubr.bf16.mxu0 %v3311_v31 }
  0xa4   : > { %2994 = vmatpush3.bf16.msra.mxu1 %v3325_v32  ;;  %3067 = vmatpush3.bf16.msra.mxu0 %v3329_v33 }
  0xa5   : > { %3068 = vmatprep.subr.bf16.mxu0 %v3372_v61  ;;  %2995 = vmatprep.subr.bf16.mxu1 %v3332_v36 }
  0xa8   : > { %2996 = vmatpush3.bf16.msra.mxu1 %v3334_v37  ;;  %3069 = vmatpush3.bf16.msra.mxu0 %v3338_v40 }
  0xaa   : > { %1937 = vmatmul.mubr.bf16.gmra.mrb[56].mxu1 %v3310_v34  ;;  %2026 = vmatmul.mubr.bf16.gmra.mrb[60].mxu0 %v3313_v35 }
  0xab   : > { %1944 = vmatprep.mubr.bf16.mxu1 %v3317_v38  ;;  %2033 = vmatprep.mubr.bf16.mxu0 %v3320_v39 }
  0xb2   : > { %1945 = vmatmul.mubr.bf16.gmra.mrb[60].mxu1 %v3319_v41  ;;  %2034 = vmatmul.mubr.bf16.gmra.mrb[64].mxu0 %v3323_v42 }
  0xb3   : > { %1952 = vmatprep.mubr.bf16.mxu1 %v3326_v43  ;;  %2041 = vmatprep.mubr.bf16.mxu0 %v3330_v44 }
  0xba   : > { %1953 = vmatmul.mubr.bf16.gmra.mrb[64].mxu1 %v3328_v45  ;;  %2042 = vmatmul.mubr.bf16.gmra.mrb[68].mxu0 %v3333_v46 }
  0xbb   : > { %2082 = vmatprep.mubr.bf16.mxu1 %v3337_v47  ;;  %3070 = vmatprep.mubr.msk.bf16.mxu0 %vm3373_vm0, %v3372_v61 }
  0xc2   : > { %2083 = vmatmul.mubr.bf16.vlgmr.msra.gmra.mrb[68].mxu1 %v3335_v48  ;;  %3071 = vmatmul.mubr.bf16.vlgmr.msra.gmra.mrb[72].mxu0 %v3339_v49  ;;  %v3653_v48 = vld [vmem:[%s199_s24] ss:$0 sm:$0xff] }
  0xc3   : > { %2090 = vmatprep.mubr.bf16.mxu1 %v3340_v50  ;;  %3074 = vmatprep.mubr.msk.bf16.mxu0 %vm3373_vm0, %v3372_v61 }
  0xca   : > { %2091 = vmatmul.mubr.bf16.gmra.mrb[72].mxu1 %v3342_v51  ;;  %3075 = vmatmul.mubr.bf16.gmra.mrb[76].mxu0 %v3343_v52 }
  0xcb   : > { %2098 = vmatprep.mubr.bf16.mxu1 %v3344_v53  ;;  %3078 = vmatprep.mubr.msk.bf16.mxu0 %vm3373_vm0, %v3372_v61 }
  0xd2   : > { %2099 = vmatmul.mubr.bf16.gmra.mrb[76].mxu1 %v3346_v54  ;;  %3079 = vmatmul.mubr.bf16.gmra.mrb[80].mxu0 %v3347_v55 }
  0xd3   : > { %2106 = vmatprep.mubr.bf16.mxu1 %v3348_v56  ;;  %3082 = vmatprep.mubr.msk.bf16.mxu0 %vm3373_vm0, %v3372_v61 }
  0xda   : > { %2107 = vmatmul.mubr.bf16.gmra.mrb[80].mxu1 %v3350_v57  ;;  %3083 = vmatmul.mubr.bf16.gmra.mrb[84].mxu0 %v3351_v58 }
  0xdb   : > { %2114 = vmatprep.mubr.bf16.mxu1 %v3352_v59  ;;  %3086 = vmatprep.mubr.msk.bf16.mxu0 %vm3373_vm0, %v3372_v61 }
  0xe2   : > { %2115 = vmatmul.mubr.bf16.gmra.mrb[84].mxu1 %v3354_v60  ;;  %3087 = vmatmul.mubr.bf16.gmra.mrb[88].mxu0 %v3355_v62 }
  0xe3   : > { %2122 = vmatprep.mubr.bf16.mxu1 %v3356_v63  ;;  %3090 = vmatprep.mubr.msk.bf16.mxu0 %vm3373_vm0, %v3372_v61 }
  0xea   : > { %2123 = vmatmul.mubr.bf16.gmra.mrb[88].mxu1 %v3358_v0  ;;  %3091 = vmatmul.mubr.bf16.gmra.mrb[92].mxu0 %v3359_v1 }
  0xeb   : > { %2130 = vmatprep.mubr.bf16.mxu1 %v3360_v2  ;;  %3094 = vmatprep.mubr.msk.bf16.mxu0 %vm3373_vm0, %v3372_v61 }
  0xf2   : > { %2131 = vmatmul.mubr.bf16.gmra.mrb[92].mxu1 %v3362_v3  ;;  %3095 = vmatmul.mubr.bf16.gmra.mrb[96].mxu0 %v3363_v4 }
 0x105   : > { %v2731_v5 = vpop.f32.mrb[0].mxu1  ;;  %v2707_v6 = vpop.f32.mrb[0].mxu0 }
 0x106   : > { %v2732_v7 = vpop.f32.mrb[1].mxu1  ;;  %v2708_v8 = vpop.f32.mrb[1].mxu0 }
 0x107   : > { %v3633_v9 = vadd.f32 %v2732_v7, %v2731_v5  ;;  %v2734_v10 = vpop.f32.mrb[2].mxu1  ;;  %v2709_v11 = vadd.f32 %v2708_v8, %v2707_v6  ;;  %v2710_v12 = vpop.f32.mrb[2].mxu0 }
 0x108   : > { %v2735_v13 = vpop.f32.mrb[3].mxu1  ;;  %v2711_v14 = vpop.f32.mrb[3].mxu0 }
 0x109   : > { %v3635_v15 = vadd.f32 %v2735_v13, %v2734_v10  ;;  %v2712_v16 = vadd.f32 %v2711_v14, %v2710_v12  ;;  %v1640_v51 = vadd.f32 %v2709_v11, %v3653_v48 }
 0x10b   : > { %v1643_v58 = vadd.f32 %v2712_v16, %v3653_v48 }
 0x10d   : > { %v2713_v17 = vpop.f32.mrb[4].mxu0  ;;  %v2737_v61 = vpop.f32.mrb[4].mxu1 }
 0x10e   : > { %v2714_v18 = vpop.f32.mrb[5].mxu0  ;;  %v2738_v19 = vpop.f32.mrb[5].mxu1 }
 0x10f   : > { %v2715_v20 = vadd.f32 %v2714_v18, %v2713_v17  ;;  %v2716_v21 = vpop.f32.mrb[6].mxu0  ;;  %v3637_v22 = vadd.f32 %v2738_v19, %v2737_v61  ;;  %v2740_v23 = vpop.f32.mrb[6].mxu1 }
 0x110   : > { %v2717_v24 = vpop.f32.mrb[7].mxu0  ;;  %v2741_v25 = vpop.f32.mrb[7].mxu1 }
 0x111   : > { %v2718_v26 = vadd.f32 %v2717_v24, %v2716_v21  ;;  %v3639_v27 = vadd.f32 %v2741_v25, %v2740_v23  ;;  %v1648_v6 = vadd.f32 %v2715_v20, %v3653_v48 }
 0x113   : > { %v1651_v14 = vadd.f32 %v2718_v26, %v3653_v48 }
 0x115   : > { %v2719_v28 = vpop.f32.mrb[8].mxu0  ;;  %v2743_v29 = vpop.f32.mrb[8].mxu1 }
 0x116   : > { %v2720_v30 = vpop.f32.mrb[9].mxu0  ;;  %v2744_v31 = vpop.f32.mrb[9].mxu1 }
 0x117   : > { %v2721_v32 = vadd.f32 %v2720_v30, %v2719_v28  ;;  %v2722_v33 = vpop.f32.mrb[10].mxu0  ;;  %v3641_v34 = vadd.f32 %v2744_v31, %v2743_v29  ;;  %v2746_v35 = vpop.f32.mrb[10].mxu1 }
 0x118   : > { %v2723_v36 = vpop.f32.mrb[11].mxu0  ;;  %v2747_v37 = vpop.f32.mrb[11].mxu1 }
 0x119   : > { %v2724_v38 = vadd.f32 %v2723_v36, %v2722_v33  ;;  %v3643_v39 = vadd.f32 %v2747_v37, %v2746_v35  ;;  %v1656_v28 = vadd.f32 %v2721_v32, %v3653_v48 }
 0x11b   : > { %v1659_v36 = vadd.f32 %v2724_v38, %v3653_v48 }
 0x11d   : > { %v2725_v40 = vpop.f32.mrb[12].mxu0 }
 0x11e   : > { %v2726_v41 = vpop.f32.mrb[13].mxu0 }
 0x11f   : > { %v3645_v42 = vadd.f32 %v2726_v41, %v2725_v40  ;;  %v2728_v43 = vpop.f32.mrb[14].mxu0 }
 0x120   : > { %v2729_v44 = vpop.f32.mrb[15].mxu0 }
 0x121   : > { %v3647_v45 = vadd.f32 %v2729_v44, %v2728_v43 }
 0x125   : > { %v2765_v46 = vpop.f32.mrb[12].mxu1  ;;  %v2823_v47 = vpop.f32.mrb[16].mxu0 }
 0x126   : > { %v2766_v49 = vpop.f32.mrb[13].mxu1  ;;  %v2824_v50 = vpop.f32.mrb[17].mxu0 }
 0x127   : > { %v2767_v52 = vadd.f32 %v2766_v49, %v2765_v46  ;;  %v2768_v53 = vpop.f32.mrb[14].mxu1  ;;  %v2825_v54 = vadd.f32 %v2824_v50, %v2823_v47  ;;  %v2826_v55 = vpop.f32.mrb[18].mxu0 }
 0x128   : > { %v2769_v56 = vpop.f32.mrb[15].mxu1  ;;  %v2827_v57 = vpop.f32.mrb[19].mxu0 }
 0x129   : > { %v1729_v59 = vadd.f32 %v2767_v52, %v1640_v51  ;;  %v2770_v60 = vadd.f32 %v2769_v56, %v2768_v53  ;;  %v2828_v62 = vadd.f32 %v2827_v57, %v2826_v55  ;;  %v1664_v51 = vadd.f32 %v3645_v42, %v3653_v48 }
 0x12a   : > { %v1667_v57 = vadd.f32 %v3647_v45, %v3653_v48 }
 0x12b   : > { %v1732_v63 = vadd.f32 %v2770_v60, %v1643_v58  ;;  %v3657_v0 = vadd.f32 %v2825_v54, %v1729_v59 }
 0x12d   : > { %v3659_v1 = vadd.f32 %v2828_v62, %v1732_v63  ;;  %v2771_v2 = vpop.f32.mrb[16].mxu1  ;;  %v2829_v3 = vpop.f32.mrb[20].mxu0 }
 0x12e   : > { %v2772_v4 = vpop.f32.mrb[17].mxu1  ;;  %v2830_v5 = vpop.f32.mrb[21].mxu0 }
 0x12f   : > { %v2773_v7 = vadd.f32 %v2772_v4, %v2771_v2  ;;  %v2774_v8 = vpop.f32.mrb[18].mxu1  ;;  %v2831_v10 = vadd.f32 %v2830_v5, %v2829_v3  ;;  %v2832_v11 = vpop.f32.mrb[22].mxu0 }
 0x130   : > { %v2775_v12 = vpop.f32.mrb[19].mxu1  ;;  %v2833_v13 = vpop.f32.mrb[23].mxu0 }
 0x131   : > { %v1737_v16 = vadd.f32 %v2773_v7, %v1648_v6  ;;  %v2776_v17 = vadd.f32 %v2775_v12, %v2774_v8  ;;  %v2834_v61 = vadd.f32 %v2833_v13, %v2832_v11  ;;  %v1672_v6 = vadd.f32 %v3633_v9, %v3653_v48 }
 0x132   : > { %v1675_v13 = vadd.f32 %v3635_v15, %v3653_v48 }
 0x133   : > { %v1740_v18 = vadd.f32 %v2776_v17, %v1651_v14  ;;  %v3663_v19 = vadd.f32 %v2831_v10, %v1737_v16 }
 0x135   : > { %v3665_v21 = vadd.f32 %v2834_v61, %v1740_v18  ;;  %v2777_v23 = vpop.f32.mrb[20].mxu1  ;;  %v2835_v24 = vpop.f32.mrb[24].mxu0 }
 0x136   : > { %v2778_v25 = vpop.f32.mrb[21].mxu1  ;;  %v2836_v20 = vpop.f32.mrb[25].mxu0 }
 0x137   : > { %v2779_v29 = vadd.f32 %v2778_v25, %v2777_v23  ;;  %v2780_v30 = vpop.f32.mrb[22].mxu1  ;;  %v2837_v31 = vadd.f32 %v2836_v20, %v2835_v24  ;;  %v2838_v33 = vpop.f32.mrb[26].mxu0 }
 0x138   : > { %v2781_v35 = vpop.f32.mrb[23].mxu1  ;;  %v2839_v26 = vpop.f32.mrb[27].mxu0 }
 0x139   : > { %v1745_v37 = vadd.f32 %v2779_v29, %v1656_v28  ;;  %v2782_v40 = vadd.f32 %v2781_v35, %v2780_v30  ;;  %v2840_v41 = vadd.f32 %v2839_v26, %v2838_v33  ;;  %v1680_v28 = vadd.f32 %v3637_v22, %v3653_v48 }
 0x13a   : > { %v1683_v26 = vadd.f32 %v3639_v27, %v3653_v48 }
 0x13b   : > { %v1748_v43 = vadd.f32 %v2782_v40, %v1659_v36  ;;  %v3669_v44 = vadd.f32 %v2837_v31, %v1745_v37 }
 0x13d   : > { %v3671_v46 = vadd.f32 %v2840_v41, %v1748_v43  ;;  %v2783_v47 = vpop.f32.mrb[24].mxu1  ;;  %v2841_v49 = vpop.f32.mrb[28].mxu0 }
 0x13e   : > { %v2784_v50 = vpop.f32.mrb[25].mxu1  ;;  %v2842_v32 = vpop.f32.mrb[29].mxu0 }
 0x13f   : > { %v2785_v52 = vadd.f32 %v2784_v50, %v2783_v47  ;;  %v2786_v53 = vpop.f32.mrb[26].mxu1  ;;  %v2843_v54 = vadd.f32 %v2842_v32, %v2841_v49  ;;  %v2844_v55 = vpop.f32.mrb[30].mxu0 }
 0x140   : > { %v2787_v38 = vpop.f32.mrb[27].mxu1  ;;  %v2845_v56 = vpop.f32.mrb[31].mxu0 }
 0x141   : > { %v1753_v58 = vadd.f32 %v2785_v52, %v1664_v51  ;;  %v2788_v59 = vadd.f32 %v2787_v38, %v2786_v53  ;;  %v2846_v60 = vadd.f32 %v2845_v56, %v2844_v55  ;;  %v1688_v51 = vadd.f32 %v3641_v34, %v3653_v48 }
 0x142   : > { %v1691_v56 = vadd.f32 %v3643_v39, %v3653_v48 }
 0x143   : > { %v1756_v62 = vadd.f32 %v2788_v59, %v1667_v57  ;;  %v3677_v63 = vadd.f32 %v2843_v54, %v1753_v58 }
 0x145   : > { %v3679_v2 = vadd.f32 %v2846_v60, %v1756_v62  ;;  %v2789_v3 = vpop.f32.mrb[28].mxu1  ;;  %v2847_v4 = vpop.f32.mrb[32].mxu0 }
 0x146   : > { %v2790_v42 = vpop.f32.mrb[29].mxu1  ;;  %v2848_v5 = vpop.f32.mrb[33].mxu0 }
 0x147   : > { %v2791_v7 = vadd.f32 %v2790_v42, %v2789_v3  ;;  %v2792_v8 = vpop.f32.mrb[30].mxu1  ;;  %v2849_v10 = vadd.f32 %v2848_v5, %v2847_v4  ;;  %v2850_v11 = vpop.f32.mrb[34].mxu0 }
 0x148   : > { %v2793_v45 = vpop.f32.mrb[31].mxu1  ;;  %v2851_v12 = vpop.f32.mrb[35].mxu0 }
 0x149   : > { %v1761_v14 = vadd.f32 %v2791_v7, %v1672_v6  ;;  %v2794_v16 = vadd.f32 %v2793_v45, %v2792_v8  ;;  %v2852_v17 = vadd.f32 %v2851_v12, %v2850_v11 }
 0x14b   : > { %v1764_v61 = vadd.f32 %v2794_v16, %v1675_v13  ;;  %v3685_v18 = vadd.f32 %v2849_v10, %v1761_v14 }
 0x14d   : > { %v3687_v23 = vadd.f32 %v2852_v17, %v1764_v61  ;;  %v2795_v24 = vpop.f32.mrb[32].mxu1  ;;  %v2853_v25 = vpop.f32.mrb[36].mxu0 }
 0x14e   : > { %v2796_v9 = vpop.f32.mrb[33].mxu1  ;;  %v2854_v20 = vpop.f32.mrb[37].mxu0 }
 0x14f   : > { %v2797_v29 = vadd.f32 %v2796_v9, %v2795_v24  ;;  %v2798_v30 = vpop.f32.mrb[34].mxu1  ;;  %v2855_v31 = vadd.f32 %v2854_v20, %v2853_v25  ;;  %v2856_v33 = vpop.f32.mrb[38].mxu0 }
 0x150   : > { %v2799_v15 = vpop.f32.mrb[35].mxu1  ;;  %v2857_v35 = vpop.f32.mrb[39].mxu0 }
 0x151   : > { %v1769_v36 = vadd.f32 %v2797_v29, %v1680_v28  ;;  %v2800_v37 = vadd.f32 %v2799_v15, %v2798_v30  ;;  %v2858_v40 = vadd.f32 %v2857_v35, %v2856_v33 }
 0x153   : > { %v1772_v41 = vadd.f32 %v2800_v37, %v1683_v26  ;;  %v3693_v43 = vadd.f32 %v2855_v31, %v1769_v36 }
 0x155   : > { %v3695_v47 = vadd.f32 %v2858_v40, %v1772_v41  ;;  %v2801_v49 = vpop.f32.mrb[36].mxu1  ;;  %v2859_v50 = vpop.f32.mrb[40].mxu0 }
 0x156   : > { %v2802_v22 = vpop.f32.mrb[37].mxu1  ;;  %v2860_v32 = vpop.f32.mrb[41].mxu0 }
 0x157   : > { %v2803_v52 = vadd.f32 %v2802_v22, %v2801_v49  ;;  %v2804_v53 = vpop.f32.mrb[38].mxu1  ;;  %v2861_v54 = vadd.f32 %v2860_v32, %v2859_v50  ;;  %v2862_v55 = vpop.f32.mrb[42].mxu0 }
 0x158   : > { %v2805_v27 = vpop.f32.mrb[39].mxu1  ;;  %v2863_v38 = vpop.f32.mrb[43].mxu0 }
 0x159   : > { %v1777_v57 = vadd.f32 %v2803_v52, %v1688_v51  ;;  %v2806_v58 = vadd.f32 %v2805_v27, %v2804_v53  ;;  %v2864_v59 = vadd.f32 %v2863_v38, %v2862_v55 }
 0x15b   : > { %v1780_v60 = vadd.f32 %v2806_v58, %v1691_v56  ;;  %v3701_v62 = vadd.f32 %v2861_v54, %v1777_v57 }
 0x15d   : > { %v3703_v3 = vadd.f32 %v2864_v59, %v1780_v60  ;;  %v2881_v4 = vpop.f32.mrb[40].mxu1  ;;  %v2939_v42 = vpop.f32.mrb[44].mxu0 }
 0x15e   : > { %v2882_v34 = vpop.f32.mrb[41].mxu1  ;;  %v2940_v5 = vpop.f32.mrb[45].mxu0 }
 0x15f   : > { %v2883_v6 = vadd.f32 %v2882_v34, %v2881_v4  ;;  %v2884_v7 = vpop.f32.mrb[42].mxu1  ;;  %v2941_v8 = vadd.f32 %v2940_v5, %v2939_v42  ;;  %v2942_v10 = vpop.f32.mrb[46].mxu0 }
 0x160   : > { %v2885_v11 = vpop.f32.mrb[43].mxu1  ;;  %v2943_v45 = vpop.f32.mrb[47].mxu0 }
 0x161   : > { %v1907_v39 = vadd.f32 %v2883_v6, %v3657_v0  ;;  %v2886_v48 = vadd.f32 %v2885_v11, %v2884_v7  ;;  %v2944_v12 = vadd.f32 %v2943_v45, %v2942_v10 }
 0x163   : > { %v1910_v13 = vadd.f32 %v2886_v48, %v3659_v1  ;;  %v3707_v14 = vadd.f32 %v2941_v8, %v1907_v39 }
 0x165   : > { %v3709_v16 = vadd.f32 %v2944_v12, %v1910_v13  ;;  %v2887_v17 = vpop.f32.mrb[44].mxu1  ;;  %v2945_v61 = vpop.f32.mrb[48].mxu0 }
 0x166   : > { %v2888_v24 = vpop.f32.mrb[45].mxu1  ;;  %v2946_v25 = vpop.f32.mrb[49].mxu0 }
 0x167   : > { %v2889_v9 = vadd.f32 %v2888_v24, %v2887_v17  ;;  %v2890_v20 = vpop.f32.mrb[46].mxu1  ;;  %v2947_v28 = vadd.f32 %v2946_v25, %v2945_v61  ;;  %v2948_v29 = vpop.f32.mrb[50].mxu0 }
 0x168   : > { %v2891_v30 = vpop.f32.mrb[47].mxu1  ;;  %v2949_v31 = vpop.f32.mrb[51].mxu0 }
 0x169   : > { %v1915_v0 = vadd.f32 %v2889_v9, %v3663_v19  ;;  %v2892_v33 = vadd.f32 %v2891_v30, %v2890_v20  ;;  %v2950_v15 = vadd.f32 %v2949_v31, %v2948_v29 }
 0x16b   : > { %v1918_v1 = vadd.f32 %v2892_v33, %v3665_v21  ;;  %v3713_v35 = vadd.f32 %v2947_v28, %v1915_v0 }
 0x16d   : > { %v3715_v26 = vadd.f32 %v2950_v15, %v1918_v1  ;;  %v2893_v36 = vpop.f32.mrb[48].mxu1  ;;  %v2951_v37 = vpop.f32.mrb[52].mxu0 }
 0x16e   : > { %v2894_v40 = vpop.f32.mrb[49].mxu1  ;;  %v2952_v41 = vpop.f32.mrb[53].mxu0 }
 0x16f   : > { %v2895_v49 = vadd.f32 %v2894_v40, %v2893_v36  ;;  %v2896_v50 = vpop.f32.mrb[50].mxu1  ;;  %v2953_v22 = vadd.f32 %v2952_v41, %v2951_v37  ;;  %v2954_v32 = vpop.f32.mrb[54].mxu0 }
 0x170   : > { %v2897_v51 = vpop.f32.mrb[51].mxu1  ;;  %v2955_v52 = vpop.f32.mrb[55].mxu0 }
 0x171   : > { %v1923_v19 = vadd.f32 %v2895_v49, %v3669_v44  ;;  %v2898_v53 = vadd.f32 %v2897_v51, %v2896_v50  ;;  %v2956_v54 = vadd.f32 %v2955_v52, %v2954_v32 }
 0x173   : > { %v1926_v21 = vadd.f32 %v2898_v53, %v3671_v46  ;;  %v3719_v55 = vadd.f32 %v2953_v22, %v1923_v19 }
 0x175   : > { %v3721_v27 = vadd.f32 %v2956_v54, %v1926_v21  ;;  %v2899_v38 = vpop.f32.mrb[52].mxu1  ;;  %v2957_v56 = vpop.f32.mrb[56].mxu0 }
 0x176   : > { %v2900_v57 = vpop.f32.mrb[53].mxu1  ;;  %v2958_v58 = vpop.f32.mrb[57].mxu0 }
 0x177   : > { %v2901_v59 = vadd.f32 %v2900_v57, %v2899_v38  ;;  %v2902_v60 = vpop.f32.mrb[54].mxu1  ;;  %v2959_v4 = vadd.f32 %v2958_v58, %v2957_v56  ;;  %v2960_v42 = vpop.f32.mrb[58].mxu0 }
 0x178   : > { %v2903_v34 = vpop.f32.mrb[55].mxu1  ;;  %v2961_v5 = vpop.f32.mrb[59].mxu0 }
 0x179   : > { %v1931_v44 = vadd.f32 %v2901_v59, %v3677_v63  ;;  %v2904_v6 = vadd.f32 %v2903_v34, %v2902_v60  ;;  %v2962_v7 = vadd.f32 %v2961_v5, %v2960_v42 }
 0x17b   : > { %v1934_v46 = vadd.f32 %v2904_v6, %v3679_v2  ;;  %v3725_v8 = vadd.f32 %v2959_v4, %v1931_v44 }
 0x17d   : > { %v3727_v10 = vadd.f32 %v2962_v7, %v1934_v46  ;;  %v2905_v11 = vpop.f32.mrb[56].mxu1  ;;  %v2963_v45 = vpop.f32.mrb[60].mxu0 }
 0x17e   : > { %v2906_v39 = vpop.f32.mrb[57].mxu1  ;;  %v2964_v48 = vpop.f32.mrb[61].mxu0 }
 0x17f   : > { %v2907_v12 = vadd.f32 %v2906_v39, %v2905_v11  ;;  %v2908_v13 = vpop.f32.mrb[58].mxu1  ;;  %v2965_v17 = vadd.f32 %v2964_v48, %v2963_v45  ;;  %v2966_v61 = vpop.f32.mrb[62].mxu0 }
 0x180   : > { %v2909_v24 = vpop.f32.mrb[59].mxu1  ;;  %v2967_v25 = vpop.f32.mrb[63].mxu0 }
 0x181   : > { %v1939_v63 = vadd.f32 %v2907_v12, %v3685_v18  ;;  %v2910_v9 = vadd.f32 %v2909_v24, %v2908_v13  ;;  %v2968_v20 = vadd.f32 %v2967_v25, %v2966_v61 }
 0x183   : > { %v1942_v2 = vadd.f32 %v2910_v9, %v3687_v23  ;;  %v3731_v28 = vadd.f32 %v2965_v17, %v1939_v63 }
 0x185   : > { %v3733_v29 = vadd.f32 %v2968_v20, %v1942_v2  ;;  %v2911_v30 = vpop.f32.mrb[60].mxu1  ;;  %v2969_v31 = vpop.f32.mrb[64].mxu0 }
 0x186   : > { %v2912_v0 = vpop.f32.mrb[61].mxu1  ;;  %v2970_v33 = vpop.f32.mrb[65].mxu0 }
 0x187   : > { %v2913_v15 = vadd.f32 %v2912_v0, %v2911_v30  ;;  %v2914_v1 = vpop.f32.mrb[62].mxu1  ;;  %v2971_v36 = vadd.f32 %v2970_v33, %v2969_v31  ;;  %v2972_v37 = vpop.f32.mrb[66].mxu0 }
 0x188   : > { %v2915_v40 = vpop.f32.mrb[63].mxu1  ;;  %v2973_v41 = vpop.f32.mrb[67].mxu0 }
 0x189   : > { %v1947_v18 = vadd.f32 %v2913_v15, %v3693_v43  ;;  %v2916_v49 = vadd.f32 %v2915_v40, %v2914_v1  ;;  %v2974_v50 = vadd.f32 %v2973_v41, %v2972_v37 }
 0x18b   : > { %v1950_v23 = vadd.f32 %v2916_v49, %v3695_v47  ;;  %v3737_v22 = vadd.f32 %v2971_v36, %v1947_v18 }
 0x18d   : > { %v3739_v32 = vadd.f32 %v2974_v50, %v1950_v23  ;;  %v2917_v51 = vpop.f32.mrb[64].mxu1  ;;  %v2975_v52 = vpop.f32.mrb[68].mxu0 }
 0x18e   : > { %v2918_v19 = vpop.f32.mrb[65].mxu1  ;;  %v2976_v53 = vpop.f32.mrb[69].mxu0 }
 0x18f   : > { %v2919_v54 = vadd.f32 %v2918_v19, %v2917_v51  ;;  %v2920_v21 = vpop.f32.mrb[66].mxu1  ;;  %v2977_v38 = vadd.f32 %v2976_v53, %v2975_v52  ;;  %v2978_v56 = vpop.f32.mrb[70].mxu0 }
 0x190   : > { %v2921_v57 = vpop.f32.mrb[67].mxu1  ;;  %v2979_v58 = vpop.f32.mrb[71].mxu0 }
 0x191   : > { %v1955_v43 = vadd.f32 %v2919_v54, %v3701_v62  ;;  %v2922_v59 = vadd.f32 %v2921_v57, %v2920_v21  ;;  %v2980_v60 = vadd.f32 %v2979_v58, %v2978_v56 }
 0x193   : > { %v1958_v47 = vadd.f32 %v2922_v59, %v3703_v3  ;;  %v3743_v4 = vadd.f32 %v2977_v38, %v1955_v43 }
 0x195   : > { %v3745_v42 = vadd.f32 %v2980_v60, %v1958_v47  ;;  %v2997_v34 = vpop.f32.mrb[68].mxu1  ;;  %v2173_v5 = vpop.f32.mrb[72].mxu0 }
 0x196   : > { %v2998_v44 = vpop.f32.mrb[69].mxu1  ;;  %v3072_v6 = vpop.f32.mrb[73].mxu0 }
 0x197   : > { %v2999_v7 = vadd.f32 %v2998_v44, %v2997_v34  ;;  %v3000_v46 = vpop.f32.mrb[70].mxu1  ;;  %v2176_v11 = vpop.f32.mrb[74].mxu0 }
 0x198   : > { %v3001_v45 = vpop.f32.mrb[71].mxu1  ;;  %v3073_v39 = vpop.f32.mrb[75].mxu0 }
 0x199   : > { %v3002_v48 = vadd.f32 %v3001_v45, %v3000_v46  ;;  %v2085_v62 = vadd.f32 %v2999_v7, %v3707_v14 }
 0x19b   : > { %v2174_v12 = vadd.f32 %v2173_v5, %v2085_v62  ;;  %v2088_v3 = vadd.f32 %v3002_v48, %v3709_v16 }
 0x19d   : > { %v2242_v13 = vmul.f32 0.01, %v2174_v12  ;;  %v2177_v17 = vadd.f32 %v2176_v11, %v2088_v3  ;;  %v3003_v61 = vpop.f32.mrb[72].mxu1  ;;  %v2181_v24 = vpop.f32.mrb[76].mxu0  ;;  %vm2228_vm1 = vcmp.gt.f32.partialorder %v2174_v12, 0.0 }
 0x19e   : > { %v3004_v25 = vpop.f32.mrb[73].mxu1  ;;  %v3076_v63 = vpop.f32.mrb[77].mxu0 }
 0x19f   : > { %vm2229_vm2 = vcmp.gt.f32.partialorder %v2177_v17, 0.0  ;;  %v2243_v9 = vmul.f32 0.01, %v2177_v17  ;;  %v3005_v20 = vadd.f32 %v3004_v25, %v3003_v61  ;;  %v3006_v2 = vpop.f32.mrb[74].mxu1  ;;  %v2184_v30 = vpop.f32.mrb[78].mxu0  ;;  %v2256_v33 = vsel %vm2228_vm1, %v2174_v12, %v2242_v13 }
 0x1a0   : > { %v3007_v31 = vpop.f32.mrb[75].mxu1  ;;  %v3077_v0 = vpop.f32.mrb[79].mxu0 }
 0x1a1   : > { %v2257_v14 = vsel %vm2229_vm2, %v2177_v17, %v2243_v9  ;;  %v3008_v16 = vadd.f32 %v3007_v31, %v3006_v2  ;;  %v2093_v15 = vadd.f32 %v3005_v20, %v3713_v35 }
 0x1a2   : > { %v2653_v1 = vpack.c.bf16 %v2257_v14, %v2256_v33 }
 0x1a3   : > { %v2182_v36 = vadd.f32 %v2181_v24, %v2093_v15  ;;  %v2096_v37 = vadd.f32 %v3008_v16, %v3715_v26 }
 0x1a4   : > { %2654 = vst [vmem:[%s3753_s28] sm:$0xff] %v2653_v1  }
 0x1a5   : > { %v2244_v40 = vmul.f32 0.01, %v2182_v36  ;;  %v2185_v41 = vadd.f32 %v2184_v30, %v2096_v37  ;;  %v3009_v18 = vpop.f32.mrb[76].mxu1  ;;  %v2189_v49 = vpop.f32.mrb[80].mxu0  ;;  %vm2230_vm3 = vcmp.gt.f32.partialorder %v2182_v36, 0.0 }
 0x1a6   : > { %v3010_v50 = vpop.f32.mrb[77].mxu1  ;;  %v3080_v23 = vpop.f32.mrb[81].mxu0 }
 0x1a7   : > { %vm2231_vm4 = vcmp.gt.f32.partialorder %v2185_v41, 0.0  ;;  %v2245_v51 = vmul.f32 0.01, %v2185_v41  ;;  %v3011_v52 = vadd.f32 %v3010_v50, %v3009_v18  ;;  %v3012_v19 = vpop.f32.mrb[78].mxu1  ;;  %v2192_v53 = vpop.f32.mrb[82].mxu0  ;;  %v2258_v21 = vsel %vm2230_vm3, %v2182_v36, %v2244_v40 }
 0x1a8   : > { %v3013_v54 = vpop.f32.mrb[79].mxu1  ;;  %v3081_v35 = vpop.f32.mrb[83].mxu0 }
 0x1a9   : > { %v2259_v38 = vsel %vm2231_vm4, %v2185_v41, %v2245_v51  ;;  %v3014_v56 = vadd.f32 %v3013_v54, %v3012_v19  ;;  %v2101_v26 = vadd.f32 %v3011_v52, %v3719_v55 }
 0x1aa   : > { %v2658_v57 = vpack.c.bf16 %v2259_v38, %v2258_v21 }
 0x1ab   : > { %v2190_v58 = vadd.f32 %v2189_v49, %v2101_v26  ;;  %v2104_v43 = vadd.f32 %v3014_v56, %v3721_v27 }
 0x1ac   : > { %2685 = vst [vmem:[%s3753_s28 + $0x8] sm:$0xff] %v2658_v57  }
 0x1ad   : > { %v2246_v59 = vmul.f32 0.01, %v2190_v58  ;;  %v2193_v60 = vadd.f32 %v2192_v53, %v2104_v43  ;;  %v3015_v47 = vpop.f32.mrb[80].mxu1  ;;  %v2197_v34 = vpop.f32.mrb[84].mxu0  ;;  %vm2232_vm5 = vcmp.gt.f32.partialorder %v2190_v58, 0.0 }
 0x1ae   : > { %v3016_v5 = vpop.f32.mrb[81].mxu1  ;;  %v3084_v44 = vpop.f32.mrb[85].mxu0 }
 0x1af   : > { %vm2233_vm6 = vcmp.gt.f32.partialorder %v2193_v60, 0.0  ;;  %v2247_v6 = vmul.f32 0.01, %v2193_v60  ;;  %v3017_v7 = vadd.f32 %v3016_v5, %v3015_v47  ;;  %v3018_v46 = vpop.f32.mrb[82].mxu1  ;;  %v2200_v11 = vpop.f32.mrb[86].mxu0  ;;  %v2260_v39 = vsel %vm2232_vm5, %v2190_v58, %v2246_v59 }
 0x1b0   : > { %v3019_v45 = vpop.f32.mrb[83].mxu1  ;;  %v3085_v55 = vpop.f32.mrb[87].mxu0 }
 0x1b1   : > { %v2261_v48 = vsel %vm2233_vm6, %v2193_v60, %v2247_v6  ;;  %v3020_v62 = vadd.f32 %v3019_v45, %v3018_v46  ;;  %v2109_v27 = vadd.f32 %v3017_v7, %v3725_v8 }
 0x1b2   : > { %v2663_v12 = vpack.c.bf16 %v2261_v48, %v2260_v39 }
 0x1b3   : > { %v2198_v3 = vadd.f32 %v2197_v34, %v2109_v27  ;;  %v2112_v13 = vadd.f32 %v3020_v62, %v3727_v10 }
 0x1b4   : > { %2686 = vst [vmem:[%s3753_s28 + $0x10] sm:$0xff] %v2663_v12  }
 0x1b5   : > { %v2248_v17 = vmul.f32 0.01, %v2198_v3  ;;  %v2201_v61 = vadd.f32 %v2200_v11, %v2112_v13  ;;  %v3021_v24 = vpop.f32.mrb[84].mxu1  ;;  %v2205_v25 = vpop.f32.mrb[88].mxu0  ;;  %vm2234_vm7 = vcmp.gt.f32.partialorder %v2198_v3, 0.0 }
 0x1b6   : > { %v3022_v63 = vpop.f32.mrb[85].mxu1  ;;  %v3088_v9 = vpop.f32.mrb[89].mxu0 }
 0x1b7   : > { %vm2235_vm8 = vcmp.gt.f32.partialorder %v2201_v61, 0.0  ;;  %v2249_v20 = vmul.f32 0.01, %v2201_v61  ;;  %v3023_v2 = vadd.f32 %v3022_v63, %v3021_v24  ;;  %v3024_v30 = vpop.f32.mrb[86].mxu1  ;;  %v2208_v31 = vpop.f32.mrb[90].mxu0  ;;  %v2262_v33 = vsel %vm2234_vm7, %v2198_v3, %v2248_v17 }
 0x1b8   : > { %v3025_v0 = vpop.f32.mrb[87].mxu1  ;;  %v3089_v8 = vpop.f32.mrb[91].mxu0 }
 0x1b9   : > { %v2263_v14 = vsel %vm2235_vm8, %v2201_v61, %v2249_v20  ;;  %v3026_v16 = vadd.f32 %v3025_v0, %v3024_v30  ;;  %v2117_v10 = vadd.f32 %v3023_v2, %v3731_v28 }
 0x1ba   : > { %v2668_v15 = vpack.c.bf16 %v2263_v14, %v2262_v33 }
 0x1bb   : > { %v2206_v1 = vadd.f32 %v2205_v25, %v2117_v10  ;;  %v2120_v36 = vadd.f32 %v3026_v16, %v3733_v29 }
 0x1bc   : > { %2687 = vst [vmem:[%s3753_s28 + $0x18] sm:$0xff] %v2668_v15  }
 0x1bd   : > { %v2250_v37 = vmul.f32 0.01, %v2206_v1  ;;  %v2209_v40 = vadd.f32 %v2208_v31, %v2120_v36  ;;  %v3027_v41 = vpop.f32.mrb[88].mxu1  ;;  %v2213_v18 = vpop.f32.mrb[92].mxu0  ;;  %vm2236_vm9 = vcmp.gt.f32.partialorder %v2206_v1, 0.0 }
 0x1be   : > { %v3028_v49 = vpop.f32.mrb[89].mxu1  ;;  %v3092_v50 = vpop.f32.mrb[93].mxu0 }
 0x1bf   : > { %vm2237_vm10 = vcmp.gt.f32.partialorder %v2209_v40, 0.0  ;;  %v2251_v23 = vmul.f32 0.01, %v2209_v40  ;;  %v3029_v51 = vadd.f32 %v3028_v49, %v3027_v41  ;;  %v3030_v52 = vpop.f32.mrb[90].mxu1  ;;  %v2216_v19 = vpop.f32.mrb[94].mxu0  ;;  %v2264_v54 = vsel %vm2236_vm9, %v2206_v1, %v2250_v37 }
 0x1c0   : > { %v3031_v53 = vpop.f32.mrb[91].mxu1  ;;  %v3093_v28 = vpop.f32.mrb[95].mxu0 }
 0x1c1   : > { %v2265_v35 = vsel %vm2237_vm10, %v2209_v40, %v2251_v23  ;;  %v3032_v21 = vadd.f32 %v3031_v53, %v3030_v52  ;;  %v2125_v29 = vadd.f32 %v3029_v51, %v3737_v22 }
 0x1c2   : > { %v2673_v38 = vpack.c.bf16 %v2265_v35, %v2264_v54 }
 0x1c3   : > { %v2214_v56 = vadd.f32 %v2213_v18, %v2125_v29  ;;  %v2128_v26 = vadd.f32 %v3032_v21, %v3739_v32 }
 0x1c4   : > { %2688 = vst [vmem:[%s3753_s28 + $0x20] sm:$0xff] %v2673_v38  }
 0x1c5   : > { %v2252_v57 = vmul.f32 0.01, %v2214_v56  ;;  %v2217_v58 = vadd.f32 %v2216_v19, %v2128_v26  ;;  %v3033_v43 = vpop.f32.mrb[92].mxu1  ;;  %v2221_v59 = vpop.f32.mrb[96].mxu0  ;;  %vm2238_vm11 = vcmp.gt.f32.partialorder %v2214_v56, 0.0 }
 0x1c6   : > { %v3034_v60 = vpop.f32.mrb[93].mxu1  ;;  %v3096_v47 = vpop.f32.mrb[97].mxu0 }
 0x1c7   : > { %vm2239_vm12 = vcmp.gt.f32.partialorder %v2217_v58, 0.0  ;;  %v2253_v34 = vmul.f32 0.01, %v2217_v58  ;;  %v3035_v5 = vadd.f32 %v3034_v60, %v3033_v43  ;;  %v3036_v44 = vpop.f32.mrb[94].mxu1  ;;  %v2224_v6 = vpop.f32.mrb[98].mxu0  ;;  %v2266_v46 = vsel %vm2238_vm11, %v2214_v56, %v2252_v57 }
 0x1c8   : > { %v3037_v7 = vpop.f32.mrb[95].mxu1  ;;  %v3097_v22 = vpop.f32.mrb[99].mxu0 }
 0x1c9   : > { %v2267_v11 = vsel %vm2239_vm12, %v2217_v58, %v2253_v34  ;;  %v3038_v32 = vadd.f32 %v3037_v7, %v3036_v44  ;;  %v2133_v45 = vadd.f32 %v3035_v5, %v3743_v4 }
 0x1ca   : > { %v2678_v55 = vpack.c.bf16 %v2267_v11, %v2266_v46 }
 0x1cb   : > { %v2222_v39 = vadd.f32 %v2221_v59, %v2133_v45  ;;  %v2136_v48 = vadd.f32 %v3038_v32, %v3745_v42 }
 0x1cc   : > { %2689 = vst [vmem:[%s3753_s28 + $0x28] sm:$0xff] %v2678_v55  }
 0x1cd   : > { %v2254_v62 = vmul.f32 0.01, %v2222_v39  ;;  %v2225_v27 = vadd.f32 %v2224_v6, %v2136_v48  ;;  %vm2240_vm13 = vcmp.gt.f32.partialorder %v2222_v39, 0.0 }
 0x1cf   : > { %vm2241_vm14 = vcmp.gt.f32.partialorder %v2225_v27, 0.0  ;;  %v2255_v12 = vmul.f32 0.01, %v2225_v27  ;;  %v2268_v3 = vsel %vm2240_vm13, %v2222_v39, %v2254_v62 }
 0x1d1   : > { %v2269_v13 = vsel %vm2241_vm14, %v2225_v27, %v2255_v12 }
 0x1d2   : > { %v2683_v17 = vpack.c.bf16 %v2269_v13, %v2268_v3 }
 0x1d4   : > { %2690 = vst [vmem:[%s3753_s28 + $0x30] sm:$0xff] %v2683_v17  }
 0x1d5 PF: > { %s13_s12 = sadd.s32 1, %s3370_s12  }
 0x1d6   : > { %p10_p4 = scmp.ge.s32.totalorder %s13_s12, 4  }
 0x1d8   :  { %12 = sbr.rel (!%p10_p4) target bundleno = 1 (0x1), region = 68 }

// kernel: squeeze.2
= control target key start
LH: loop header
LB: loop body
LE: loop exit
PB: predicated region body
PF: predicated region fallthrough
CT: control target
= control target key end

     0   :  { %v400_v17 = vmov 0.0   ;;  %s523_s0 = inlined_call_operand.vmem [shape: bf16[1,50,128], index: 0, kind: input, shape index: {}]   ;;  %s524_s1 = inlined_call_operand.vmem [shape: bf16[2,3200], index: 1, kind: output, shape index: {}]  }
   0x1   :  { %v355_v0 = vld [vmem:[%s523_s0 + $0x18] sm:$0xf]  ;;  %v397_v1 = vld [vmem:[%s523_s0 + $0x10] sm:$0xff]   ;;  %v398_v2 = vld [vmem:[%s523_s0 + $0x8] sm:$0xff]  }
   0x2   :  { %v17_v3 = vunpack.c.l.bf16 %v355_v0  ;;  %v387_v4 = vunpack.c.l.bf16 %v397_v1  ;;  %v388_v5 = vunpack.c.h.bf16 %v397_v1  ;;  %v391_v6 = vunpack.c.l.bf16 %v398_v2  ;;  %v394_v7 = vld [vmem:[%s523_s0] sm:$0xff]  }
   0x3   :  { %v392_v8 = vunpack.c.h.bf16 %v398_v2  ;;  %v395_v9 = vunpack.c.l.bf16 %v394_v7  ;;  %v396_v10 = vunpack.c.h.bf16 %v394_v7 }
   0x4   :  { %20 = vst [vmem:[#allocation1 + $0x30] sm:$0xff] %v17_v3  ;;  %125 = vst [vmem:[#allocation0 + $0x80] ss:$8 sm:$0xf] %v391_v6  }
   0x5   :  { %127 = vst [vmem:[#allocation0 + $0x80] ss:$8 sm:$0xf0] %v391_v6   ;;  %139 = vst [vmem:[#allocation0 + $0x39] ss:$8 sm:$0xf] %v387_v4  }
   0x6   :  { %141 = vst [vmem:[#allocation0 + $0x39] ss:$8 sm:$0xf0] %v387_v4   ;;  %145 = vst [vmem:[#allocation0 + $0x79] ss:$8 sm:$0xf] %v388_v5  }
   0x7   :  { %147 = vst [vmem:[#allocation0 + $0x79] ss:$8 sm:$0xf0] %v388_v5   ;;  %114 = vst [vmem:[#allocation0] ss:$8 sm:$0xf] %v395_v9  }
   0x8   :  { %115 = vst [vmem:[#allocation0] ss:$8 sm:$0xf0] %v395_v9   ;;  %119 = vst [vmem:[#allocation0 + $0x40] ss:$8 sm:$0xf] %v396_v10  }
   0x9   :  { %121 = vst [vmem:[#allocation0 + $0x40] ss:$8 sm:$0xf0] %v396_v10   ;;  %131 = vst [vmem:[#allocation0 + $0xc0] ss:$-191 sm:$0x3] %v392_v8  }
   0xa   :  { %133 = vst [vmem:[#allocation0 - $0x7] ss:$8 sm:$0x3c] %v392_v8   ;;  %135 = vst [vmem:[#allocation0 - $0x7] ss:$8 sm:$0xc0] %v392_v8  }
   0xb   :  { %v149_v11 = vld [vmem:[#allocation1 + $0x30] sm:$0x3]  }
   0xc   :  { %151 = vst [vmem:[#allocation0 + $0xb9] ss:$8 sm:$0x3] %v149_v11  }
   0xd   :  { %v265_v12 = vld [vmem:[#allocation0 + $0x80] sm:$0x3]  ;;  %v272_v13 = vld [vmem:[#allocation0 + $0x88] sm:$0x3]  ;;  %v279_v48 = vld [vmem:[#allocation0 + $0x90] sm:$0x3] }
   0xe   :  { %v266_v18 = vpack.c.bf16 %v400_v17, %v265_v12  ;;  %v273_v19 = vpack.c.bf16 %v400_v17, %v272_v13  ;;  %v286_v49 = vld [vmem:[#allocation0 + $0x98] sm:$0x3]  ;;  %v280_v51 = vpack.c.bf16 %v400_v17, %v279_v48  ;;  %v293_v53 = vld [vmem:[#allocation0 + $0xa0] sm:$0x3]  ;;  %v300_v54 = vld [vmem:[#allocation0 + $0xa8] sm:$0x3] }
   0xf   :  { %v202_v30 = vld [vmem:[#allocation0 + $0x38] sm:$0x3]  ;;  %v209_v31 = vld [vmem:[#allocation0 + $0x40] sm:$0x3]  ;;  %v216_v35 = vld [vmem:[#allocation0 + $0x48] sm:$0x3]  ;;  %v287_v52 = vpack.c.bf16 %v400_v17, %v286_v49  ;;  %v294_v56 = vpack.c.bf16 %v400_v17, %v293_v53  ;;  %v301_v57 = vpack.c.bf16 %v400_v17, %v300_v54 }
  0x10   :  { %v156_v14 = vld [vmem:[#allocation0] sm:$0x3]  ;;  %376 = vst [vmem:[%s524_s1 + $0x10] sm:$0x1] %v266_v18  ;;  %377 = vst [vmem:[%s524_s1 + $0x11] sm:$0x1] %v273_v19  ;;  %v203_v33 = vpack.c.bf16 %v400_v17, %v202_v30  ;;  %v210_v34 = vpack.c.bf16 %v400_v17, %v209_v31  ;;  %v217_v38 = vpack.c.bf16 %v400_v17, %v216_v35 }
  0x11   :  { %v161_v15 = vld [vmem:[#allocation0 + $0x8] sm:$0x3]  ;;  %v167_v16 = vld [vmem:[#allocation0 + $0x10] sm:$0x3]  ;;  %v157_v20 = vpack.c.bf16 %v400_v17, %v156_v14  ;;  %v174_v23 = vld [vmem:[#allocation0 + $0x18] sm:$0x3] }
  0x12   :  { %v162_v21 = vpack.c.bf16 %v400_v17, %v161_v15  ;;  %v168_v22 = vpack.c.bf16 %v400_v17, %v167_v16  ;;  %v181_v24 = vld [vmem:[#allocation0 + $0x20] sm:$0x3]  ;;  %v188_v25 = vld [vmem:[#allocation0 + $0x28] sm:$0x3]  ;;  %v175_v26 = vpack.c.bf16 %v400_v17, %v174_v23  ;;  %v195_v29 = vld [vmem:[#allocation0 + $0x30] sm:$0x3] }
  0x13   :  { %v182_v27 = vpack.c.bf16 %v400_v17, %v181_v24  ;;  %v189_v28 = vpack.c.bf16 %v400_v17, %v188_v25  ;;  %159 = vst [vmem:[%s524_s1] sm:$0x1] %v157_v20  ;;  %v196_v32 = vpack.c.bf16 %v400_v17, %v195_v29  ;;  %v223_v36 = vld [vmem:[#allocation0 + $0x50] sm:$0x3]  ;;  %v230_v37 = vld [vmem:[#allocation0 + $0x58] sm:$0x3] }
  0x14   :  { %361 = vst [vmem:[%s524_s1 + $0x1] sm:$0x1] %v162_v21  ;;  %362 = vst [vmem:[%s524_s1 + $0x2] sm:$0x1] %v168_v22  ;;  %v224_v39 = vpack.c.bf16 %v400_v17, %v223_v36  ;;  %v231_v40 = vpack.c.bf16 %v400_v17, %v230_v37  ;;  %v237_v41 = vld [vmem:[#allocation0 + $0x60] sm:$0x3] }
  0x15   :  { %363 = vst [vmem:[%s524_s1 + $0x3] sm:$0x1] %v175_v26  ;;  %364 = vst [vmem:[%s524_s1 + $0x4] sm:$0x1] %v182_v27  ;;  %v244_v42 = vld [vmem:[#allocation0 + $0x68] sm:$0x3]  ;;  %v238_v44 = vpack.c.bf16 %v400_v17, %v237_v41 }
  0x16   :  { %365 = vst [vmem:[%s524_s1 + $0x5] sm:$0x1] %v189_v28  ;;  %v251_v43 = vld [vmem:[#allocation0 + $0x70] sm:$0x3]  ;;  %366 = vst [vmem:[%s524_s1 + $0x6] sm:$0x1] %v196_v32  ;;  %v245_v45 = vpack.c.bf16 %v400_v17, %v244_v42 }
  0x17   :  { %367 = vst [vmem:[%s524_s1 + $0x7] sm:$0x1] %v203_v33  ;;  %368 = vst [vmem:[%s524_s1 + $0x8] sm:$0x1] %v210_v34  ;;  %v252_v46 = vpack.c.bf16 %v400_v17, %v251_v43  ;;  %v258_v47 = vld [vmem:[#allocation0 + $0x78] sm:$0x3] }
  0x18   :  { %369 = vst [vmem:[%s524_s1 + $0x9] sm:$0x1] %v217_v38  ;;  %370 = vst [vmem:[%s524_s1 + $0xa] sm:$0x1] %v224_v39  ;;  %v259_v50 = vpack.c.bf16 %v400_v17, %v258_v47  ;;  %v307_v55 = vld [vmem:[#allocation0 + $0xb0] sm:$0x3] }
  0x19   :  { %371 = vst [vmem:[%s524_s1 + $0xb] sm:$0x1] %v231_v40  ;;  %372 = vst [vmem:[%s524_s1 + $0xc] sm:$0x1] %v238_v44  ;;  %v308_v58 = vpack.c.bf16 %v400_v17, %v307_v55  ;;  %v314_v59 = vld [vmem:[#allocation0 + $0xb8] sm:$0x3] }
  0x1a   :  { %373 = vst [vmem:[%s524_s1 + $0xd] sm:$0x1] %v245_v45  ;;  %374 = vst [vmem:[%s524_s1 + $0xe] sm:$0x1] %v252_v46  ;;  %v321_v60 = vld [vmem:[#allocation0 + $0xc0] sm:$0x3]  ;;  %v315_v61 = vpack.c.bf16 %v400_v17, %v314_v59 }
  0x1b   :  { %375 = vst [vmem:[%s524_s1 + $0xf] sm:$0x1] %v259_v50  ;;  %378 = vst [vmem:[%s524_s1 + $0x12] sm:$0x1] %v280_v51  ;;  %v322_v62 = vpack.c.bf16 %v400_v17, %v321_v60 }
  0x1c   :  { %379 = vst [vmem:[%s524_s1 + $0x13] sm:$0x1] %v287_v52  ;;  %380 = vst [vmem:[%s524_s1 + $0x14] sm:$0x1] %v294_v56 }
  0x1d   :  { %381 = vst [vmem:[%s524_s1 + $0x15] sm:$0x1] %v301_v57  ;;  %382 = vst [vmem:[%s524_s1 + $0x16] sm:$0x1] %v308_v58 }
  0x1e   :  { %383 = vst [vmem:[%s524_s1 + $0x17] sm:$0x1] %v315_v61  ;;  %384 = vst [vmem:[%s524_s1 + $0x18] sm:$0x1] %v322_v62 }

// kernel: network_forward.7
= control target key start
LH: loop header
LB: loop body
LE: loop exit
PB: predicated region body
PF: predicated region fallthrough
CT: control target
= control target key end

     0   :  { %s2012_s12 = smov 0   ;;  %s2159_s0 = inlined_call_operand.vmem [shape: bf16[2,64,1152], index: 0, kind: input, shape index: {}]   ;;  %s2160_s1 = inlined_call_operand.vmem [shape: bf16[2,1152,128], index: 1, kind: input, shape index: {}]   ;;  %s2161_s2 = inlined_call_operand.vmem [shape: f32[2,1,128], index: 2, kind: input, shape index: {}]   ;;  %s2162_s3 = inlined_call_operand.vmem [shape: bf16[2,64,128], index: 3, kind: output, shape index: {}]  }
   0x1 LB: > { %s1478_s13 = sadd.s32 4294967295, %s1990_s12   ;;  %p1482_p0 = scmp.ge.s32.totalorder %s1990_s12, 1  ;;  %s1990_s12 = sphi %s2012_s12, %s13_s12  }
   0x2   : > { %p155_p1 = scmp.lt.s32.totalorder %s1990_s12, 3 }
   0x4   : > { %p156_p2 = pnand %p1482_p0, %p155_p1 }
   0x5   : > { %p187_p3 = scmp.lt.s32.totalorder (!%p156_p2), %s1478_s13, 1 }
   0x6   : > { %159 = sbr.rel (%p156_p2) target bundleno = 342 (0x156), region = 32 }
   0xd   : > { %s2164_s13 = smov (!%p187_p3, %s1478_s13), 1 }
   0xe   : > { %s1851_s14 = smul.u32 576, %s2164_s13  ;;  %s199_s24 = scalar_lea.vmem %s2161_s2, %s2164_s13 }
   0xf   : > { %s1850_s18 = smul.u32 288, %s2164_s13  ;;  %s1606_s25 = sshll.u32 %s2164_s13, 5 }
  0x10   : > { %s2026_s17 = scalar_lea.vmem %s2160_s1, %s1851_s14  ;;  %s204_s28 = scalar_lea.vmem %s2162_s3, %s1606_s25 }
  0x11   : > { %v1860_v0 = vld [vmem:[%s2026_s17 + $0x40] sm:$0xff]   ;;  %v1864_v4 = vld [vmem:[%s2026_s17 + $0x48] sm:$0xff]   ;;  %v1868_v8 = vld [vmem:[%s2026_s17 + $0x50] sm:$0xff]   ;;  %s2062_s21 = scalar_lea.vmem %s2159_s0, %s1850_s18 }
  0x12   : > { %v1861_v1 = vld [vmem:[%s2026_s17 + $0xc0] sm:$0xff]   ;;  %1638 = vmatprep.subr.bf16.mxu0 %v1860_v0  ;;  %v1865_v5 = vld [vmem:[%s2026_s17 + $0xc8] sm:$0xff]   ;;  %v1869_v9 = vld [vmem:[%s2026_s17 + $0xd0] sm:$0xff]  }
  0x13   : > { %v1862_v2 = vld [vmem:[%s2026_s17] sm:$0xff]   ;;  %1678 = vmatprep.subr.bf16.mxu1 %v1861_v1  ;;  %v1866_v6 = vld [vmem:[%s2026_s17 + $0x8] sm:$0xff]   ;;  %v1870_v10 = vld [vmem:[%s2026_s17 + $0x10] sm:$0xff]  }
  0x14   : > { %v1863_v3 = vld [vmem:[%s2026_s17 + $0x80] sm:$0xff]   ;;  %1639 = vmatpush3.bf16.msra.mxu0 %v1862_v2  ;;  %v1867_v7 = vld [vmem:[%s2026_s17 + $0x88] sm:$0xff]   ;;  %v1871_v11 = vld [vmem:[%s2026_s17 + $0x90] sm:$0xff]  }
  0x15   : > { %1679 = vmatpush3.bf16.msra.mxu1 %v1863_v3  ;;  %1640 = vmatprep.subr.bf16.mxu0 %v1864_v4  ;;  %v1872_v12 = vld [vmem:[%s2026_s17 + $0x58] sm:$0xff]   ;;  %v1876_v16 = vld [vmem:[%s2026_s17 + $0x60] sm:$0xff]   ;;  %v1880_v20 = vld [vmem:[%s2026_s17 + $0x68] sm:$0xff]  }
  0x16   : > { %1680 = vmatprep.subr.bf16.mxu1 %v1865_v5  ;;  %v1873_v13 = vld [vmem:[%s2026_s17 + $0xd8] sm:$0xff]   ;;  %v1877_v17 = vld [vmem:[%s2026_s17 + $0xe0] sm:$0xff]   ;;  %v1881_v21 = vld [vmem:[%s2026_s17 + $0xe8] sm:$0xff]  }
  0x17   : > { %v1874_v14 = vld [vmem:[%s2026_s17 + $0x18] sm:$0xff]   ;;  %v1878_v18 = vld [vmem:[%s2026_s17 + $0x20] sm:$0xff]   ;;  %v1882_v22 = vld [vmem:[%s2026_s17 + $0x28] sm:$0xff]  }
  0x18   : > { %1641 = vmatpush3.bf16.msra.mxu0 %v1866_v6  ;;  %v1875_v15 = vld [vmem:[%s2026_s17 + $0x98] sm:$0xff]   ;;  %v1879_v19 = vld [vmem:[%s2026_s17 + $0xa0] sm:$0xff]   ;;  %v1883_v23 = vld [vmem:[%s2026_s17 + $0xa8] sm:$0xff]  }
  0x19   : > { %1681 = vmatpush3.bf16.msra.mxu1 %v1867_v7  ;;  %1642 = vmatprep.subr.bf16.mxu0 %v1868_v8  ;;  %v1884_v24 = vld [vmem:[%s2026_s17 + $0x70] sm:$0xff]   ;;  %v1888_v28 = vld [vmem:[%s2026_s17 + $0x78] sm:$0xff]   ;;  %v1892_v32 = vld [vmem:[%s2062_s21] ss:$36 sps:$4 sm:$0xff]  }
  0x1a   : > { %1682 = vmatprep.subr.bf16.mxu1 %v1869_v9  ;;  %v1885_v25 = vld [vmem:[%s2026_s17 + $0xf0] sm:$0xff]   ;;  %v1889_v29 = vld [vmem:[%s2026_s17 + $0xf8] sm:$0xff]   ;;  %v1894_v33 = vld [vmem:[%s2062_s21 + $0x4] ss:$36 sps:$4 sm:$0xff]  }
  0x1b   : > { %v1886_v26 = vld [vmem:[%s2026_s17 + $0x30] sm:$0xff]   ;;  %v1890_v30 = vld [vmem:[%s2026_s17 + $0x38] sm:$0xff]   ;;  %v1895_v34 = vld [vmem:[%s2062_s21 + $0x8] ss:$36 sps:$4 sm:$0xff]   ;;  %1045 = vmatprep.mubr.bf16.mxu0 %v1894_v33 }
  0x1c   : > { %1643 = vmatpush3.bf16.msra.mxu0 %v1870_v10  ;;  %v1887_v27 = vld [vmem:[%s2026_s17 + $0xb0] sm:$0xff]   ;;  %v1891_v31 = vld [vmem:[%s2026_s17 + $0xb8] sm:$0xff]   ;;  %v1898_v36 = vld [vmem:[%s2026_s17 + $0x140] sm:$0xff]  }
  0x1d   : > { %1683 = vmatpush3.bf16.msra.mxu1 %v1871_v11  ;;  %1644 = vmatprep.subr.bf16.mxu0 %v1872_v12  ;;  %v1897_v35 = vld [vmem:[%s2062_s21 + $0xc] ss:$36 sps:$4 sm:$0xff]   ;;  %v1899_v37 = vld [vmem:[%s2026_s17 + $0x1c0] sm:$0xff]   ;;  %v1908_v45 = vld [vmem:[%s2062_s21 + $0x54] ss:$36 sps:$4 sm:$0xff]  }
  0x1e   : > { %1684 = vmatprep.subr.bf16.mxu1 %v1873_v13  ;;  %1110 = vmatprep.mubr.bf16.mxu1 %v1897_v35  ;;  %v1900_v38 = vld [vmem:[%s2026_s17 + $0x100] sm:$0xff]   ;;  %v1902_v40 = vld [vmem:[%s2026_s17 + $0x148] sm:$0xff]   ;;  %v1911_v47 = vld [vmem:[%s2062_s21 + $0x50] ss:$36 sps:$4 sm:$0xff]  }
  0x1f   : > { %v1901_v39 = vld [vmem:[%s2026_s17 + $0x180] sm:$0xff]   ;;  %v1903_v41 = vld [vmem:[%s2026_s17 + $0x1c8] sm:$0xff]   ;;  %v1912_v48 = vld [vmem:[%s2026_s17 + $0x150] sm:$0xff]  }
  0x20   : > { %1645 = vmatpush3.bf16.msra.mxu0 %v1874_v14  ;;  %v1904_v42 = vld [vmem:[%s2026_s17 + $0x108] sm:$0xff]   ;;  %v1913_v49 = vld [vmem:[%s2026_s17 + $0x1d0] sm:$0xff]   ;;  %v1916_v52 = vld [vmem:[%s2026_s17 + $0x158] sm:$0xff]  }
  0x21   : > { %1685 = vmatpush3.bf16.msra.mxu1 %v1875_v15  ;;  %1646 = vmatprep.subr.bf16.mxu0 %v1876_v16  ;;  %v1905_v43 = vld [vmem:[%s2026_s17 + $0x188] sm:$0xff]   ;;  %v1914_v50 = vld [vmem:[%s2026_s17 + $0x110] sm:$0xff]   ;;  %v1917_v53 = vld [vmem:[%s2026_s17 + $0x1d8] sm:$0xff]  }
  0x22   : > { %1686 = vmatprep.subr.bf16.mxu1 %v1877_v17  ;;  %v1906_v44 = vld [vmem:[%s2062_s21 + $0x4c] ss:$36 sps:$4 sm:$0xff]   ;;  %v1918_v54 = vld [vmem:[%s2026_s17 + $0x118] sm:$0xff]   ;;  %v1926_v60 = vld [vmem:[%s2026_s17 + $0x160] sm:$0xff]  }
  0x23   : > { %v1910_v46 = vld [vmem:[%s2062_s21 + $0x48] ss:$36 sps:$4 sm:$0xff]   ;;  %v1915_v51 = vld [vmem:[%s2026_s17 + $0x190] sm:$0xff]   ;;  %v1919_v55 = vld [vmem:[%s2026_s17 + $0x198] sm:$0xff]  }
  0x24   : > { %1647 = vmatpush3.bf16.msra.mxu0 %v1878_v18  ;;  %v1920_v56 = vld [vmem:[%s2062_s21 + $0x94] ss:$36 sps:$4 sm:$0xff]   ;;  %v1922_v57 = vld [vmem:[%s2062_s21 + $0x9c] ss:$36 sps:$4 sm:$0xff]   ;;  %v1930_v0 = vld [vmem:[%s2026_s17 + $0x168] sm:$0xff]  }
  0x25   : > { %1687 = vmatpush3.bf16.msra.mxu1 %v1879_v19  ;;  %1648 = vmatprep.subr.bf16.mxu0 %v1880_v20  ;;  %v1924_v58 = vld [vmem:[%s2062_s21 + $0x90] ss:$36 sps:$4 sm:$0xff]   ;;  %v1925_v59 = vld [vmem:[%s2062_s21 + $0x98] ss:$36 sps:$4 sm:$0xff]   ;;  %v1927_v61 = vld [vmem:[%s2026_s17 + $0x1e0] sm:$0xff]  }
  0x26   : > { %1688 = vmatprep.subr.bf16.mxu1 %v1881_v21  ;;  %v1928_v62 = vld [vmem:[%s2026_s17 + $0x120] sm:$0xff]   ;;  %v1931_v1 = vld [vmem:[%s2026_s17 + $0x1e8] sm:$0xff]   ;;  %v1938_v6 = vld [vmem:[%s2062_s21 + $0xd8] ss:$36 sps:$4 sm:$0xff]  }
  0x27   : > { %v1929_v63 = vld [vmem:[%s2026_s17 + $0x1a0] sm:$0xff]   ;;  %v1932_v2 = vld [vmem:[%s2026_s17 + $0x128] sm:$0xff]   ;;  %v1940_v8 = vld [vmem:[%s2026_s17 + $0x170] sm:$0xff]  }
  0x28   : > { %1649 = vmatpush3.bf16.msra.mxu0 %v1882_v22  ;;  %v1933_v3 = vld [vmem:[%s2026_s17 + $0x1a8] sm:$0xff]   ;;  %v1934_v4 = vld [vmem:[%s2062_s21 + $0xdc] ss:$36 sps:$4 sm:$0xff]   ;;  %v1941_v9 = vld [vmem:[%s2026_s17 + $0x1f0] sm:$0xff]  }
  0x29   : > { %1689 = vmatpush3.bf16.msra.mxu1 %v1883_v23  ;;  %1650 = vmatprep.subr.bf16.mxu0 %v1884_v24  ;;  %v1936_v5 = vld [vmem:[%s2062_s21 + $0xe4] ss:$36 sps:$4 sm:$0xff]   ;;  %v1942_v10 = vld [vmem:[%s2026_s17 + $0x130] sm:$0xff]   ;;  %v1944_v12 = vld [vmem:[%s2026_s17 + $0x178] sm:$0xff]  }
  0x2a   : > { %1690 = vmatprep.subr.bf16.mxu1 %v1885_v25  ;;  %v1939_v7 = vld [vmem:[%s2062_s21 + $0xe0] ss:$36 sps:$4 sm:$0xff]   ;;  %v1943_v11 = vld [vmem:[%s2026_s17 + $0x1b0] sm:$0xff]   ;;  %v1945_v13 = vld [vmem:[%s2026_s17 + $0x1f8] sm:$0xff]  }
  0x2b   : > { %v1946_v14 = vld [vmem:[%s2026_s17 + $0x138] sm:$0xff]   ;;  %v1948_v16 = vld [vmem:[%s2062_s21 + $0x10] ss:$36 sps:$4 sm:$0xff]   ;;  %v1954_v20 = vld [vmem:[%s2026_s17 + $0x200] sm:$0xff]  }
  0x2c   : > { %1651 = vmatpush3.bf16.msra.mxu0 %v1886_v26  ;;  %v1947_v15 = vld [vmem:[%s2026_s17 + $0x1b8] sm:$0xff]   ;;  %v1955_v21 = vld [vmem:[%s2026_s17 + $0x208] sm:$0xff]   ;;  %v1961_v25 = vld [vmem:[%s2062_s21 + $0x60] ss:$36 sps:$4 sm:$0xff]  }
  0x2d   : > { %1691 = vmatpush3.bf16.msra.mxu1 %v1887_v27  ;;  %1652 = vmatprep.subr.bf16.mxu0 %v1888_v28  ;;  %v1950_v17 = vld [vmem:[%s2062_s21 + $0x14] ss:$36 sps:$4 sm:$0xff]   ;;  %v1953_v19 = vld [vmem:[%s2062_s21 + $0x1c] ss:$36 sps:$4 sm:$0xff]   ;;  %v1958_v23 = vld [vmem:[%s2062_s21 + $0x64] ss:$36 sps:$4 sm:$0xff]  }
  0x2e   : > { %1692 = vmatprep.subr.bf16.mxu1 %v1889_v29  ;;  %v1951_v18 = vld [vmem:[%s2062_s21 + $0x18] ss:$36 sps:$4 sm:$0xff]   ;;  %v1962_v26 = vld [vmem:[%s2026_s17 + $0x210] sm:$0xff]   ;;  %v1964_v27 = vld [vmem:[%s2062_s21 + $0xa4] ss:$36 sps:$4 sm:$0xff]  }
  0x2f   : > { %v1956_v22 = vld [vmem:[%s2062_s21 + $0x5c] ss:$36 sps:$4 sm:$0xff]   ;;  %v1966_v28 = vld [vmem:[%s2062_s21 + $0xac] ss:$36 sps:$4 sm:$0xff]  }
  0x30   : > { %1653 = vmatpush3.bf16.msra.mxu0 %v1890_v30  ;;  %v1960_v24 = vld [vmem:[%s2062_s21 + $0x58] ss:$36 sps:$4 sm:$0xff]   ;;  %v1968_v30 = vld [vmem:[%s2062_s21 + $0xa0] ss:$36 sps:$4 sm:$0xff]   ;;  %v1972_v33 = vld [vmem:[%s2062_s21 + $0xec] ss:$36 sps:$4 sm:$0xff]  }
  0x31   : > { %1693 = vmatpush3.bf16.msra.mxu1 %v1891_v31  ;;  %1718 = vmatprep.subr.bf16.mxu0 %v1898_v36  ;;  %v1963_v29 = vld [vmem:[%s2026_s17 + $0x218] sm:$0xff]   ;;  %v1969_v31 = vld [vmem:[%s2062_s21 + $0xa8] ss:$36 sps:$4 sm:$0xff]  }
  0x32   : > { %1758 = vmatprep.subr.bf16.mxu1 %v1899_v37  ;;  %v1971_v35 = vld [vmem:[%s2026_s17 + $0x228] sm:$0xff]   ;;  %v1978_v37 = vld [vmem:[%s2026_s17 + $0x230] sm:$0xff]  }
  0x33   : > { %1046 = vmatmul.mubr.bf16.vlgmr.msra.gmra.mrb[0].mxu0 %v1892_v32  ;;  %v1970_v32 = vld [vmem:[%s2026_s17 + $0x220] sm:$0xff]   ;;  %v1976_v36 = vld [vmem:[%s2062_s21 + $0xe8] ss:$36 sps:$4 sm:$0xff]  }
  0x34   : > { %1111 = vmatmul.mubr.bf16.vlgmr.msra.gmra.mrb[0].mxu1 %v1895_v34  ;;  %1719 = vmatpush3.bf16.msra.mxu0 %v1900_v38  ;;  %v1974_v34 = vld [vmem:[%s2062_s21 + $0xf4] ss:$36 sps:$4 sm:$0xff]  }
  0x35   : > { %1759 = vmatpush3.bf16.msra.mxu1 %v1901_v39  ;;  %1720 = vmatprep.subr.bf16.mxu0 %v1902_v40  ;;  %v1977_v38 = vld [vmem:[%s2062_s21 + $0xf0] ss:$36 sps:$4 sm:$0xff]   ;;  %v1980_v39 = vld [vmem:[%s2062_s21 + $0x20] ss:$36 sps:$4 sm:$0xff]  }
  0x36   : > { %1760 = vmatprep.subr.bf16.mxu1 %v1903_v41  ;;  %1053 = vmatprep.mubr.bf16.mxu0 %v1906_v44  ;;  %v1981_v40 = vld [vmem:[%s2062_s21 + $0xb0] ss:$36 sps:$4 sm:$0xff]   ;;  %v1979_v41 = vld [vmem:[%s2026_s17 + $0x238] sm:$0xff]  }
  0x37   : > { %1118 = vmatprep.mubr.bf16.mxu1 %v1908_v45 }
  0x38   : > { %1721 = vmatpush3.bf16.msra.mxu0 %v1904_v42  ;;  %v1982_v42 = vld [vmem:[%s2062_s21 + $0x68] ss:$36 sps:$4 sm:$0xff]  }
  0x39   : > { %1761 = vmatpush3.bf16.msra.mxu1 %v1905_v43  ;;  %1722 = vmatprep.subr.bf16.mxu0 %v1912_v48  ;;  %v1983_v43 = vld [vmem:[%s2062_s21 + $0xf8] ss:$36 sps:$4 sm:$0xff]  }
  0x3a   : > { %1762 = vmatprep.subr.bf16.mxu1 %v1913_v49 }
  0x3b   : > { %1054 = vmatmul.mubr.bf16.gmra.mrb[4].mxu0 %v1910_v46  ;;  %v1487_v46 = vld [vmem:[%s199_s24] ss:$0 sm:$0xff] }
  0x3c   : > { %1119 = vmatmul.mubr.bf16.gmra.mrb[4].mxu1 %v1911_v47  ;;  %1723 = vmatpush3.bf16.msra.mxu0 %v1914_v50 }
  0x3d   : > { %1763 = vmatpush3.bf16.msra.mxu1 %v1915_v51  ;;  %1724 = vmatprep.subr.bf16.mxu0 %v1916_v52 }
  0x3e   : > { %1764 = vmatprep.subr.bf16.mxu1 %v1917_v53  ;;  %1061 = vmatprep.mubr.bf16.mxu0 %v1920_v56 }
  0x3f   : > { %1126 = vmatprep.mubr.bf16.mxu1 %v1922_v57 }
  0x40   : > { %1725 = vmatpush3.bf16.msra.mxu0 %v1918_v54 }
  0x41   : > { %1765 = vmatpush3.bf16.msra.mxu1 %v1919_v55  ;;  %1726 = vmatprep.subr.bf16.mxu0 %v1926_v60 }
  0x42   : > { %1766 = vmatprep.subr.bf16.mxu1 %v1927_v61 }
  0x43   : > { %1062 = vmatmul.mubr.bf16.gmra.mrb[8].mxu0 %v1924_v58 }
  0x44   : > { %1127 = vmatmul.mubr.bf16.gmra.mrb[8].mxu1 %v1925_v59  ;;  %1727 = vmatpush3.bf16.msra.mxu0 %v1928_v62 }
  0x45   : > { %1767 = vmatpush3.bf16.msra.mxu1 %v1929_v63  ;;  %1728 = vmatprep.subr.bf16.mxu0 %v1930_v0 }
  0x46   : > { %1768 = vmatprep.subr.bf16.mxu1 %v1931_v1  ;;  %1069 = vmatprep.mubr.bf16.mxu0 %v1934_v4 }
  0x47   : > { %1134 = vmatprep.mubr.bf16.mxu1 %v1936_v5 }
  0x48   : > { %1729 = vmatpush3.bf16.msra.mxu0 %v1932_v2 }
  0x49   : > { %1769 = vmatpush3.bf16.msra.mxu1 %v1933_v3  ;;  %1730 = vmatprep.subr.bf16.mxu0 %v1940_v8 }
  0x4a   : > { %1770 = vmatprep.subr.bf16.mxu1 %v1941_v9 }
  0x4b   : > { %1070 = vmatmul.mubr.bf16.gmra.mrb[12].mxu0 %v1938_v6 }
  0x4c   : > { %1135 = vmatmul.mubr.bf16.gmra.mrb[12].mxu1 %v1939_v7  ;;  %1731 = vmatpush3.bf16.msra.mxu0 %v1942_v10 }
  0x4d   : > { %1771 = vmatpush3.bf16.msra.mxu1 %v1943_v11  ;;  %1732 = vmatprep.subr.bf16.mxu0 %v1944_v12 }
  0x4e   : > { %1772 = vmatprep.subr.bf16.mxu1 %v1945_v13  ;;  %1175 = vmatprep.mubr.bf16.mxu0 %v1950_v17 }
  0x4f   : > { %1240 = vmatprep.mubr.bf16.mxu1 %v1953_v19 }
  0x50   : > { %1733 = vmatpush3.bf16.msra.mxu0 %v1946_v14 }
  0x51   : > { %1773 = vmatpush3.bf16.msra.mxu1 %v1947_v15  ;;  %1810 = vmatprep.subr.bf16.mxu0 %v1954_v20 }
  0x52   : > { %1834 = vmatprep.subr.bf16.mxu1 %v1954_v20 }
  0x53   : > { %1176 = vmatmul.mubr.bf16.vlgmr.msra.gmra.mrb[16].mxu0 %v1948_v16 }
  0x54   : > { %1241 = vmatmul.mubr.bf16.vlgmr.msra.gmra.mrb[16].mxu1 %v1951_v18  ;;  %1811 = vmatpush3.bf16.msra.mxu0 %v1954_v20 }
  0x55   : > { %1842 = vmatpush3.bf16.msra.mxu1 %v1954_v20  ;;  %1812 = vmatprep.subr.bf16.mxu0 %v1955_v21 }
  0x56   : > { %1835 = vmatprep.subr.bf16.mxu1 %v1955_v21  ;;  %1183 = vmatprep.mubr.bf16.mxu0 %v1956_v22 }
  0x57   : > { %1248 = vmatprep.mubr.bf16.mxu1 %v1958_v23 }
  0x58   : > { %1813 = vmatpush3.bf16.msra.mxu0 %v1955_v21 }
  0x59   : > { %1843 = vmatpush3.bf16.msra.mxu1 %v1955_v21  ;;  %1814 = vmatprep.subr.bf16.mxu0 %v1962_v26 }
  0x5a   : > { %1836 = vmatprep.subr.bf16.mxu1 %v1962_v26 }
  0x5b   : > { %1184 = vmatmul.mubr.bf16.gmra.mrb[20].mxu0 %v1960_v24 }
  0x5c   : > { %1249 = vmatmul.mubr.bf16.gmra.mrb[20].mxu1 %v1961_v25  ;;  %1191 = vmatprep.mubr.bf16.mxu0 %v1964_v27 }
  0x5d   : > { %1815 = vmatpush3.bf16.msra.mxu0 %v1962_v26  ;;  %1256 = vmatprep.mubr.bf16.mxu1 %v1966_v28 }
  0x5e   : > { %1844 = vmatpush3.bf16.msra.mxu1 %v1962_v26  ;;  %1816 = vmatprep.subr.bf16.mxu0 %v1963_v29 }
  0x5f   : > { %1837 = vmatprep.subr.bf16.mxu1 %v1963_v29 }
  0x61   : > { %1817 = vmatpush3.bf16.msra.mxu0 %v1963_v29 }
  0x62   : > { %1845 = vmatpush3.bf16.msra.mxu1 %v1963_v29  ;;  %1818 = vmatprep.subr.bf16.mxu0 %v1970_v32 }
  0x63   : > { %1192 = vmatmul.mubr.bf16.gmra.mrb[24].mxu0 %v1968_v30  ;;  %1838 = vmatprep.subr.bf16.mxu1 %v1970_v32 }
  0x64   : > { %1257 = vmatmul.mubr.bf16.gmra.mrb[24].mxu1 %v1969_v31  ;;  %1199 = vmatprep.mubr.bf16.mxu0 %v1972_v33 }
  0x65   : > { %1819 = vmatpush3.bf16.msra.mxu0 %v1970_v32  ;;  %1264 = vmatprep.mubr.bf16.mxu1 %v1974_v34 }
  0x66   : > { %1846 = vmatpush3.bf16.msra.mxu1 %v1970_v32  ;;  %1820 = vmatprep.subr.bf16.mxu0 %v1971_v35 }
  0x67   : > { %1839 = vmatprep.subr.bf16.mxu1 %v1971_v35 }
  0x69   : > { %1821 = vmatpush3.bf16.msra.mxu0 %v1971_v35 }
  0x6a   : > { %1847 = vmatpush3.bf16.msra.mxu1 %v1971_v35  ;;  %1822 = vmatprep.subr.bf16.mxu0 %v1978_v37 }
  0x6b   : > { %1200 = vmatmul.mubr.bf16.gmra.mrb[28].mxu0 %v1976_v36  ;;  %1840 = vmatprep.subr.bf16.mxu1 %v1978_v37 }
  0x6c   : > { %1265 = vmatmul.mubr.bf16.gmra.mrb[28].mxu1 %v1977_v38  ;;  %1826 = vmatprep.mubr.bf16.mxu0 %v1980_v39 }
  0x6d   : > { %1823 = vmatpush3.bf16.msra.mxu0 %v1978_v37  ;;  %1830 = vmatprep.mubr.bf16.mxu1 %v1981_v40 }
  0x6e   : > { %1848 = vmatpush3.bf16.msra.mxu1 %v1978_v37  ;;  %1824 = vmatprep.subr.bf16.mxu0 %v1979_v41 }
  0x6f   : > { %1841 = vmatprep.subr.bf16.mxu1 %v1979_v41 }
  0x71   : > { %1825 = vmatpush3.bf16.msra.mxu0 %v1979_v41 }
  0x72   : > { %1849 = vmatpush3.bf16.msra.mxu1 %v1979_v41 }
  0x74   : > { %1827 = vmatmul.mubr.bf16.vlgmr.msra.gmra.mrb[32].mxu0 %v1982_v42 }
  0x75   : > { %1831 = vmatmul.mubr.bf16.vlgmr.msra.gmra.mrb[32].mxu1 %v1983_v43 }
 0x106   : > { %v1654_v44 = vpop.f32.mrb[0].mxu0 }
 0x107   : > { %v1694_v45 = vpop.f32.mrb[0].mxu1  ;;  %v1655_v47 = vpop.f32.mrb[1].mxu0 }
 0x108   : > { %v1656_v48 = vadd.f32 %v1655_v47, %v1654_v44  ;;  %v1695_v49 = vpop.f32.mrb[1].mxu1  ;;  %v1657_v50 = vpop.f32.mrb[2].mxu0 }
 0x109   : > { %v1696_v51 = vadd.f32 %v1695_v49, %v1694_v45  ;;  %v1697_v52 = vpop.f32.mrb[2].mxu1  ;;  %v1658_v53 = vpop.f32.mrb[3].mxu0 }
 0x10a   : > { %v1048_v54 = vadd.f32 %v1656_v48, %v1487_v46  ;;  %v1659_v55 = vadd.f32 %v1658_v53, %v1657_v50  ;;  %v1698_v56 = vpop.f32.mrb[3].mxu1 }
 0x10b   : > { %v1699_v57 = vadd.f32 %v1698_v56, %v1697_v52 }
 0x10c   : > { %v1113_v58 = vadd.f32 %v1696_v51, %v1048_v54  ;;  %v1051_v59 = vadd.f32 %v1659_v55, %v1487_v46 }
 0x10e   : > { %v1116_v60 = vadd.f32 %v1699_v57, %v1051_v59  ;;  %v1660_v61 = vpop.f32.mrb[4].mxu0 }
 0x10f   : > { %v1700_v62 = vpop.f32.mrb[4].mxu1  ;;  %v1661_v63 = vpop.f32.mrb[5].mxu0 }
 0x110   : > { %v1662_v0 = vadd.f32 %v1661_v63, %v1660_v61  ;;  %v1701_v1 = vpop.f32.mrb[5].mxu1  ;;  %v1663_v2 = vpop.f32.mrb[6].mxu0 }
 0x111   : > { %v1702_v3 = vadd.f32 %v1701_v1, %v1700_v62  ;;  %v1703_v4 = vpop.f32.mrb[6].mxu1  ;;  %v1664_v5 = vpop.f32.mrb[7].mxu0 }
 0x112   : > { %v1056_v6 = vadd.f32 %v1662_v0, %v1487_v46  ;;  %v1665_v7 = vadd.f32 %v1664_v5, %v1663_v2  ;;  %v1704_v8 = vpop.f32.mrb[7].mxu1 }
 0x113   : > { %v1705_v9 = vadd.f32 %v1704_v8, %v1703_v4 }
 0x114   : > { %v1121_v10 = vadd.f32 %v1702_v3, %v1056_v6  ;;  %v1059_v11 = vadd.f32 %v1665_v7, %v1487_v46 }
 0x116   : > { %v1124_v12 = vadd.f32 %v1705_v9, %v1059_v11  ;;  %v1666_v13 = vpop.f32.mrb[8].mxu0 }
 0x117   : > { %v1706_v14 = vpop.f32.mrb[8].mxu1  ;;  %v1667_v15 = vpop.f32.mrb[9].mxu0 }
 0x118   : > { %v1668_v16 = vadd.f32 %v1667_v15, %v1666_v13  ;;  %v1707_v17 = vpop.f32.mrb[9].mxu1  ;;  %v1669_v18 = vpop.f32.mrb[10].mxu0 }
 0x119   : > { %v1708_v19 = vadd.f32 %v1707_v17, %v1706_v14  ;;  %v1709_v20 = vpop.f32.mrb[10].mxu1  ;;  %v1670_v21 = vpop.f32.mrb[11].mxu0 }
 0x11a   : > { %v1064_v22 = vadd.f32 %v1668_v16, %v1487_v46  ;;  %v1671_v23 = vadd.f32 %v1670_v21, %v1669_v18  ;;  %v1710_v24 = vpop.f32.mrb[11].mxu1 }
 0x11b   : > { %v1711_v25 = vadd.f32 %v1710_v24, %v1709_v20 }
 0x11c   : > { %v1129_v26 = vadd.f32 %v1708_v19, %v1064_v22  ;;  %v1067_v27 = vadd.f32 %v1671_v23, %v1487_v46 }
 0x11e   : > { %v1132_v28 = vadd.f32 %v1711_v25, %v1067_v27  ;;  %v1672_v29 = vpop.f32.mrb[12].mxu0 }
 0x11f   : > { %v1712_v30 = vpop.f32.mrb[12].mxu1  ;;  %v1673_v31 = vpop.f32.mrb[13].mxu0 }
 0x120   : > { %v1713_v32 = vpop.f32.mrb[13].mxu1  ;;  %v1674_v33 = vadd.f32 %v1673_v31, %v1672_v29  ;;  %v1675_v35 = vpop.f32.mrb[14].mxu0 }
 0x121   : > { %v1714_v34 = vadd.f32 %v1713_v32, %v1712_v30  ;;  %v1715_v36 = vpop.f32.mrb[14].mxu1  ;;  %v1676_v37 = vpop.f32.mrb[15].mxu0 }
 0x122   : > { %v1716_v38 = vpop.f32.mrb[15].mxu1  ;;  %v1072_v39 = vadd.f32 %v1674_v33, %v1487_v46  ;;  %v1677_v40 = vadd.f32 %v1676_v37, %v1675_v35 }
 0x123   : > { %v1717_v41 = vadd.f32 %v1716_v38, %v1715_v36 }
 0x124   : > { %v1137_v42 = vadd.f32 %v1714_v34, %v1072_v39  ;;  %v1075_v43 = vadd.f32 %v1677_v40, %v1487_v46 }
 0x126   : > { %v1140_v44 = vadd.f32 %v1717_v41, %v1075_v43  ;;  %v1734_v45 = vpop.f32.mrb[16].mxu0 }
 0x127   : > { %v1735_v47 = vpop.f32.mrb[17].mxu0  ;;  %v1774_v48 = vpop.f32.mrb[16].mxu1 }
 0x128   : > { %v1736_v49 = vadd.f32 %v1735_v47, %v1734_v45  ;;  %v1737_v50 = vpop.f32.mrb[18].mxu0  ;;  %v1775_v51 = vpop.f32.mrb[17].mxu1 }
 0x129   : > { %v1738_v52 = vpop.f32.mrb[19].mxu0  ;;  %v1776_v54 = vadd.f32 %v1775_v51, %v1774_v48  ;;  %v1777_v55 = vpop.f32.mrb[18].mxu1 }
 0x12a   : > { %v1178_v53 = vadd.f32 %v1736_v49, %v1113_v58  ;;  %v1739_v56 = vadd.f32 %v1738_v52, %v1737_v50  ;;  %v1778_v57 = vpop.f32.mrb[19].mxu1 }
 0x12b   : > { %v1779_v61 = vadd.f32 %v1778_v57, %v1777_v55 }
 0x12c   : > { %v1181_v59 = vadd.f32 %v1739_v56, %v1116_v60  ;;  %v1243_v62 = vadd.f32 %v1776_v54, %v1178_v53 }
 0x12e   : > { %v1740_v63 = vpop.f32.mrb[20].mxu0  ;;  %v2146_v0 = vadd.f32 %v1779_v61, %v1181_v59 }
 0x12f   : > { %v1741_v46 = vpop.f32.mrb[21].mxu0  ;;  %v1780_v1 = vpop.f32.mrb[20].mxu1 }
 0x130   : > { %v1742_v2 = vadd.f32 %v1741_v46, %v1740_v63  ;;  %v1743_v3 = vpop.f32.mrb[22].mxu0  ;;  %v1781_v4 = vpop.f32.mrb[21].mxu1 }
 0x131   : > { %v1744_v5 = vpop.f32.mrb[23].mxu0  ;;  %v1782_v7 = vadd.f32 %v1781_v4, %v1780_v1  ;;  %v1783_v8 = vpop.f32.mrb[22].mxu1 }
 0x132   : > { %v1186_v6 = vadd.f32 %v1742_v2, %v1121_v10  ;;  %v1745_v58 = vadd.f32 %v1744_v5, %v1743_v3  ;;  %v1784_v9 = vpop.f32.mrb[23].mxu1 }
 0x133   : > { %v1785_v13 = vadd.f32 %v1784_v9, %v1783_v8 }
 0x134   : > { %v1189_v11 = vadd.f32 %v1745_v58, %v1124_v12  ;;  %v1251_v14 = vadd.f32 %v1782_v7, %v1186_v6 }
 0x136   : > { %v1746_v60 = vpop.f32.mrb[24].mxu0  ;;  %v1254_v15 = vadd.f32 %v1785_v13, %v1189_v11 }
 0x137   : > { %v1747_v16 = vpop.f32.mrb[25].mxu0  ;;  %v1786_v17 = vpop.f32.mrb[24].mxu1 }
 0x138   : > { %v1748_v18 = vadd.f32 %v1747_v16, %v1746_v60  ;;  %v1749_v19 = vpop.f32.mrb[26].mxu0  ;;  %v1787_v20 = vpop.f32.mrb[25].mxu1 }
 0x139   : > { %v1750_v21 = vpop.f32.mrb[27].mxu0  ;;  %v1788_v23 = vadd.f32 %v1787_v20, %v1786_v17  ;;  %v1789_v24 = vpop.f32.mrb[26].mxu1 }
 0x13a   : > { %v1194_v22 = vadd.f32 %v1748_v18, %v1129_v26  ;;  %v1751_v25 = vadd.f32 %v1750_v21, %v1749_v19  ;;  %v1790_v10 = vpop.f32.mrb[27].mxu1 }
 0x13b   : > { %v1791_v29 = vadd.f32 %v1790_v10, %v1789_v24 }
 0x13c   : > { %v1197_v27 = vadd.f32 %v1751_v25, %v1132_v28  ;;  %v1259_v30 = vadd.f32 %v1788_v23, %v1194_v22 }
 0x13e   : > { %v1752_v31 = vpop.f32.mrb[28].mxu0  ;;  %v1262_v12 = vadd.f32 %v1791_v29, %v1197_v27 }
 0x13f   : > { %v1753_v32 = vpop.f32.mrb[29].mxu0  ;;  %v1792_v33 = vpop.f32.mrb[28].mxu1 }
 0x140   : > { %v1754_v34 = vadd.f32 %v1753_v32, %v1752_v31  ;;  %v1755_v35 = vpop.f32.mrb[30].mxu0  ;;  %v1793_v36 = vpop.f32.mrb[29].mxu1 }
 0x141   : > { %v1756_v37 = vpop.f32.mrb[31].mxu0  ;;  %v1794_v39 = vadd.f32 %v1793_v36, %v1792_v33  ;;  %v1795_v40 = vpop.f32.mrb[30].mxu1 }
 0x142   : > { %v1202_v38 = vadd.f32 %v1754_v34, %v1137_v42  ;;  %v1757_v41 = vadd.f32 %v1756_v37, %v1755_v35  ;;  %v1796_v26 = vpop.f32.mrb[31].mxu1 }
 0x143   : > { %v1797_v45 = vadd.f32 %v1796_v26, %v1795_v40 }
 0x144   : > { %v1205_v43 = vadd.f32 %v1757_v41, %v1140_v44  ;;  %v1267_v47 = vadd.f32 %v1794_v39, %v1202_v38 }
 0x146   : > { %v1270_v48 = vadd.f32 %v1797_v45, %v1205_v43 }
 0x147   : > { %v1828_v28 = vpop.f32.mrb[32].mxu0 }
 0x148   : > { %v1316_v49 = vadd.f32 %v1828_v28, %v1251_v14  ;;  %v1832_v50 = vpop.f32.mrb[32].mxu1  ;;  %v1307_v51 = vpop.f32.mrb[33].mxu0 }
 0x149   : > { %v1332_v52 = vadd.f32 %v1832_v50, %v1267_v47  ;;  %v1308_v53 = vadd.f32 %v1307_v51, %v1243_v62  ;;  %v1323_v54 = vpop.f32.mrb[33].mxu1  ;;  %v1829_v55 = vpop.f32.mrb[34].mxu0 }
 0x14a   : > { %v1348_v56 = vmul.f32 0.01, %v1316_v49  ;;  %v1324_v57 = vadd.f32 %v1323_v54, %v1259_v30  ;;  %v1319_v42 = vadd.f32 %v1829_v55, %v1254_v15  ;;  %v1833_v59 = vpop.f32.mrb[34].mxu1  ;;  %v1310_v61 = vpop.f32.mrb[35].mxu0  ;;  %vm1340_vm0 = vcmp.gt.f32.partialorder %v1316_v49, 0.0 }
 0x14b   : > { %vm1344_vm1 = vcmp.gt.f32.partialorder %v1332_v52, 0.0  ;;  %v1352_v44 = vmul.f32 0.01, %v1332_v52  ;;  %v1326_v63 = vpop.f32.mrb[35].mxu1  ;;  %vm1338_vm3 = vcmp.gt.f32.partialorder %v1308_v53, 0.0  ;;  %v1335_v2 = vadd.f32 %v1833_v59, %v1270_v48 }
 0x14c   : > { %vm1341_vm2 = vcmp.gt.f32.partialorder %v1319_v42, 0.0  ;;  %v1346_v46 = vmul.f32 0.01, %v1308_v53  ;;  %v1349_v1 = vmul.f32 0.01, %v1319_v42  ;;  %v1356_v3 = vsel %vm1340_vm0, %v1316_v49, %v1348_v56 }
 0x14d   : > { %vm1342_vm4 = vcmp.gt.f32.partialorder %v1324_v57, 0.0  ;;  %v1311_v62 = vadd.f32 %v1310_v61, %v2146_v0  ;;  %v1327_v4 = vadd.f32 %v1326_v63, %v1262_v12  ;;  %v1350_v5 = vmul.f32 0.01, %v1324_v57 }
 0x14e   : > { %v1357_v6 = vsel %vm1341_vm2, %v1319_v42, %v1349_v1  ;;  %vm1345_vm5 = vcmp.gt.f32.partialorder %v1335_v2, 0.0  ;;  %v1353_v7 = vmul.f32 0.01, %v1335_v2  ;;  %v1360_v9 = vsel %vm1344_vm1, %v1332_v52, %v1352_v44 }
 0x14f   : > { %v1623_v8 = vpack.c.bf16 %v1357_v6, %v1356_v3  ;;  %vm1339_vm6 = vcmp.gt.f32.partialorder %v1311_v62, 0.0  ;;  %v1347_v58 = vmul.f32 0.01, %v1311_v62  ;;  %vm1343_vm7 = vcmp.gt.f32.partialorder %v1327_v4, 0.0 }
 0x150   : > { %v1361_v11 = vsel %vm1345_vm5, %v1335_v2, %v1353_v7  ;;  %v1351_v13 = vmul.f32 0.01, %v1327_v4  ;;  %v1354_v14 = vsel %vm1338_vm3, %v1308_v53, %v1346_v46  ;;  %v1358_v15 = vsel %vm1342_vm4, %v1324_v57, %v1350_v5 }
 0x151   : > { %1635 = vst [vmem:[%s204_s28 + $0x8] sm:$0xff] %v1623_v8   ;;  %v1633_v0 = vpack.c.bf16 %v1361_v11, %v1360_v9  ;;  %v1355_v60 = vsel %vm1339_vm6, %v1311_v62, %v1347_v58 }
 0x152   : > { %v1618_v16 = vpack.c.bf16 %v1355_v60, %v1354_v14  ;;  %v1359_v17 = vsel %vm1343_vm7, %v1327_v4, %v1351_v13 }
 0x153   : > { %1637 = vst [vmem:[%s204_s28 + $0x18] sm:$0xff] %v1633_v0   ;;  %v1628_v18 = vpack.c.bf16 %v1359_v17, %v1358_v15 }
 0x154   : > { %1619 = vst [vmem:[%s204_s28] sm:$0xff] %v1618_v16  }
 0x155   : > { %1636 = vst [vmem:[%s204_s28 + $0x10] sm:$0xff] %v1628_v18  }
 0x156 PF: > { %s13_s12 = sadd.s32 1, %s1990_s12  }
 0x157   : > { %p10_p4 = scmp.ge.s32.totalorder %s13_s12, 4  }
 0x159   :  { %12 = sbr.rel (!%p10_p4) target bundleno = 1 (0x1), region = 68 }

// kernel: network_forward.9
= control target key start
LH: loop header
LB: loop body
LE: loop exit
PB: predicated region body
PF: predicated region fallthrough
CT: control target
= control target key end

     0   :  { %vm2398_vm8 = vcmask 195712   ;;  %vm2367_vm9 = vcmask 130112   ;;  %vm2429_vm10 = vcmask 261312   ;;  %vm2344_vm11 = vcmask 64512   ;;  %s3302_s27 = smov 120   ;;  %s3303_s28 = smov 104   ;;  %s4306_s1 = inlined_call_operand.vmem [shape: bf16[1024,512], index: 1, kind: input, shape index: {}]   ;;  %s4307_s0 = inlined_call_operand.vmem [shape: bf16[16,1024], index: 0, kind: input, shape index: {}]   ;;  %s4308_s3 = inlined_call_operand.vmem [shape: bf16[512,128], index: 3, kind: input, shape index: {}]   ;;  %s4309_s2 = inlined_call_operand.vmem [shape: f32[1,512], index: 2, kind: input, shape index: {}]   ;;  %s4310_s4 = inlined_call_operand.vmem [shape: f32[1,128], index: 4, kind: input, shape index: {}]   ;;  %s4311_s5 = inlined_call_operand.vmem [shape: f32[16,128], index: 5, kind: output, shape index: {}]  }
   0x1   :  { %v2853_v0 = vld [vmem:[%s4306_s1 + $0x4] ss:$16 sps:$4 sm:$0xff]   ;;  %v2855_v1 = vld [vmem:[%s4306_s1 + $0xc] ss:$16 sps:$4 sm:$0xff]   ;;  %v2857_v2 = vld [vmem:[%s4306_s1] ss:$16 sps:$4 sm:$0xff]  }
   0x2   :  { %1627 = vmatprep.subr.bf16.mxu0 %v2853_v0  ;;  %v2858_v3 = vld [vmem:[%s4306_s1 + $0x8] ss:$16 sps:$4 sm:$0xff]   ;;  %1799 = vmatprep.subr.bf16.mxu1 %v2855_v1  ;;  %v2859_v4 = vld [vmem:[%s4306_s1 + $0x24] ss:$16 sps:$4 sm:$0xff]   ;;  %v2861_v5 = vld [vmem:[%s4306_s1 + $0x2c] ss:$16 sps:$4 sm:$0xff]  }
   0x3   :  { %1628 = vmatpush1.bf16.msra.mxu0 %v2857_v2  ;;  %1800 = vmatpush1.bf16.msra.mxu1 %v2858_v3  ;;  %v2863_v6 = vld [vmem:[%s4306_s1 + $0x20] ss:$16 sps:$4 sm:$0xff]   ;;  %v2864_v7 = vld [vmem:[%s4306_s1 + $0x28] ss:$16 sps:$4 sm:$0xff]   ;;  %v2865_v8 = vld [vmem:[%s4306_s1 + $0x44] ss:$16 sps:$4 sm:$0xff]  }
   0x4   :  { %1629 = vmatprep.subr.bf16.mxu0 %v2859_v4  ;;  %1801 = vmatprep.subr.bf16.mxu1 %v2861_v5  ;;  %v2867_v9 = vld [vmem:[%s4306_s1 + $0x4c] ss:$16 sps:$4 sm:$0xff]   ;;  %v2869_v10 = vld [vmem:[%s4306_s1 + $0x40] ss:$16 sps:$4 sm:$0xff]   ;;  %v2870_v11 = vld [vmem:[%s4306_s1 + $0x48] ss:$16 sps:$4 sm:$0xff]  }
   0x5   :  { %v2871_v12 = vld [vmem:[%s4306_s1 + $0x64] ss:$16 sps:$4 sm:$0xff]   ;;  %v2873_v13 = vld [vmem:[%s4306_s1 + $0x6c] ss:$16 sps:$4 sm:$0xff]   ;;  %v2875_v14 = vld [vmem:[%s4306_s1 + $0x60] ss:$16 sps:$4 sm:$0xff]  }
   0x6   :  { %v2876_v15 = vld [vmem:[%s4306_s1 + $0x68] ss:$16 sps:$4 sm:$0xff]   ;;  %v2877_v16 = vld [vmem:[%s4306_s1 + $0x84] ss:$16 sps:$4 sm:$0xff]   ;;  %v2879_v17 = vld [vmem:[%s4306_s1 + $0x8c] ss:$16 sps:$4 sm:$0xff]  }
   0x7   :  { %1630 = vmatpush1.bf16.msra.mxu0 %v2863_v6  ;;  %1802 = vmatpush1.bf16.msra.mxu1 %v2864_v7  ;;  %v2881_v18 = vld [vmem:[%s4306_s1 + $0x80] ss:$16 sps:$4 sm:$0xff]   ;;  %v2882_v19 = vld [vmem:[%s4306_s1 + $0x88] ss:$16 sps:$4 sm:$0xff]   ;;  %v2883_v20 = vld [vmem:[%s4306_s1 + $0xa4] ss:$16 sps:$4 sm:$0xff]  }
   0x8   :  { %1631 = vmatprep.subr.bf16.mxu0 %v2865_v8  ;;  %1803 = vmatprep.subr.bf16.mxu1 %v2867_v9  ;;  %v2885_v21 = vld [vmem:[%s4306_s1 + $0xac] ss:$16 sps:$4 sm:$0xff]   ;;  %v2887_v22 = vld [vmem:[%s4306_s1 + $0xa0] ss:$16 sps:$4 sm:$0xff]   ;;  %v2888_v23 = vld [vmem:[%s4306_s1 + $0xa8] ss:$16 sps:$4 sm:$0xff]  }
   0x9   :  { %v2889_v24 = vld [vmem:[%s4306_s1 + $0xc4] ss:$16 sps:$4 sm:$0xff]   ;;  %v2891_v25 = vld [vmem:[%s4306_s1 + $0xcc] ss:$16 sps:$4 sm:$0xff]   ;;  %v2893_v26 = vld [vmem:[%s4306_s1 + $0xc0] ss:$16 sps:$4 sm:$0xff]  }
   0xa   :  { %v2894_v27 = vld [vmem:[%s4306_s1 + $0xc8] ss:$16 sps:$4 sm:$0xff]   ;;  %v2895_v28 = vld [vmem:[%s4306_s1 + $0xe4] ss:$16 sps:$4 sm:$0xff]   ;;  %v2897_v29 = vld [vmem:[%s4306_s1 + $0xec] ss:$16 sps:$4 sm:$0xff]  }
   0xb   :  { %1632 = vmatpush1.bf16.msra.mxu0 %v2869_v10  ;;  %1804 = vmatpush1.bf16.msra.mxu1 %v2870_v11  ;;  %v2899_v30 = vld [vmem:[%s4306_s1 + $0xe0] ss:$16 sps:$4 sm:$0xff]   ;;  %v2900_v31 = vld [vmem:[%s4306_s1 + $0xe8] ss:$16 sps:$4 sm:$0xff]   ;;  %v2901_v32 = vld [vmem:[%s4306_s1 + $0x104] ss:$16 sps:$4 sm:$0xff]  }
   0xc   :  { %1633 = vmatprep.subr.bf16.mxu0 %v2871_v12  ;;  %1805 = vmatprep.subr.bf16.mxu1 %v2873_v13  ;;  %v2903_v33 = vld [vmem:[%s4306_s1 + $0x10c] ss:$16 sps:$4 sm:$0xff]   ;;  %v2905_v34 = vld [vmem:[%s4306_s1 + $0x100] ss:$16 sps:$4 sm:$0xff]   ;;  %v2906_v35 = vld [vmem:[%s4306_s1 + $0x108] ss:$16 sps:$4 sm:$0xff]  }
   0xd   :  { %v2907_v36 = vld [vmem:[%s4306_s1 + $0x124] ss:$16 sps:$4 sm:$0xff]   ;;  %v2909_v37 = vld [vmem:[%s4306_s1 + $0x12c] ss:$16 sps:$4 sm:$0xff]   ;;  %v2911_v38 = vld [vmem:[%s4306_s1 + $0x120] ss:$16 sps:$4 sm:$0xff]  }
   0xe   :  { %v2912_v39 = vld [vmem:[%s4306_s1 + $0x128] ss:$16 sps:$4 sm:$0xff]   ;;  %v2913_v40 = vld [vmem:[%s4306_s1 + $0x144] ss:$16 sps:$4 sm:$0xff]   ;;  %v2915_v41 = vld [vmem:[%s4306_s1 + $0x14c] ss:$16 sps:$4 sm:$0xff]  }
   0xf   :  { %1634 = vmatpush1.bf16.msra.mxu0 %v2875_v14  ;;  %1806 = vmatpush1.bf16.msra.mxu1 %v2876_v15  ;;  %v2917_v42 = vld [vmem:[%s4306_s1 + $0x140] ss:$16 sps:$4 sm:$0xff]   ;;  %v2918_v43 = vld [vmem:[%s4306_s1 + $0x148] ss:$16 sps:$4 sm:$0xff]   ;;  %v2919_v44 = vld [vmem:[%s4306_s1 + $0x164] ss:$16 sps:$4 sm:$0xff]  }
  0x10   :  { %1635 = vmatprep.subr.bf16.mxu0 %v2877_v16  ;;  %1807 = vmatprep.subr.bf16.mxu1 %v2879_v17  ;;  %v2921_v45 = vld [vmem:[%s4306_s1 + $0x16c] ss:$16 sps:$4 sm:$0xff]   ;;  %v21_v46 = vld [vmem:[%s4307_s0] sm:$0xff]  ;;  %v2924_v49 = vld [vmem:[%s4306_s1 + $0x168] ss:$16 sps:$4 sm:$0xff]   ;;  %vm2462_vm12 = vcmask 130048  }
  0x11   :  { %v25_v47 = vld [vmem:[%s4307_s0 + $0x20] sm:$0xff]  ;;  %v2927_v52 = vld [vmem:[%s4306_s1 + $0x18c] ss:$16 sps:$4 sm:$0xff]   ;;  %v2930_v54 = vld [vmem:[%s4306_s1 + $0x188] ss:$16 sps:$4 sm:$0xff]   ;;  %vm2465_vm13 = vcmask 195584  }
  0x12   :  { %v2923_v48 = vld [vmem:[%s4306_s1 + $0x160] ss:$16 sps:$4 sm:$0xff]   ;;  %v2478_v50 = vcombine.high %v21_v46, %v25_v47  ;;  %v2925_v51 = vld [vmem:[%s4306_s1 + $0x184] ss:$16 sps:$4 sm:$0xff]   ;;  %v2933_v56 = vld [vmem:[%s4306_s1 + $0x1ac] ss:$16 sps:$4 sm:$0xff]   ;;  %v2477_v5 = vcombine.low %v21_v46, %v25_v47 }
  0x13   :  { %1636 = vmatpush1.bf16.msra.mxu0 %v2881_v18  ;;  %1808 = vmatpush1.bf16.msra.mxu1 %v2882_v19  ;;  %v2929_v53 = vld [vmem:[%s4306_s1 + $0x180] ss:$16 sps:$4 sm:$0xff]   ;;  %v2931_v55 = vld [vmem:[%s4306_s1 + $0x1a4] ss:$16 sps:$4 sm:$0xff]   ;;  %v2936_v58 = vld [vmem:[%s4306_s1 + $0x1a8] ss:$16 sps:$4 sm:$0xff]  }
  0x14   :  { %1637 = vmatprep.subr.bf16.mxu0 %v2883_v20  ;;  %1809 = vmatprep.subr.bf16.mxu1 %v2885_v21  ;;  %v2935_v57 = vld [vmem:[%s4306_s1 + $0x1a0] ss:$16 sps:$4 sm:$0xff]   ;;  %v2937_v59 = vld [vmem:[%s4306_s1 + $0x1c4] ss:$16 sps:$4 sm:$0xff]   ;;  %v2939_v60 = vld [vmem:[%s4306_s1 + $0x1cc] ss:$16 sps:$4 sm:$0xff]  }
  0x15   :  { %1659 = vmatprep.mubr.bf16.mxu0 %v2478_v50  ;;  %1831 = vmatprep.mubr.bf16.mxu1 %v2478_v50  ;;  %v2941_v61 = vld [vmem:[%s4306_s1 + $0x1c0] ss:$16 sps:$4 sm:$0xff]   ;;  %v2942_v62 = vld [vmem:[%s4306_s1 + $0x1c8] ss:$16 sps:$4 sm:$0xff]   ;;  %v2943_v63 = vld [vmem:[%s4306_s1 + $0x1e4] ss:$16 sps:$4 sm:$0xff]  }
  0x16   :  { %v2945_v0 = vld [vmem:[%s4306_s1 + $0x1ec] ss:$16 sps:$4 sm:$0xff]   ;;  %v2947_v1 = vld [vmem:[%s4306_s1 + $0x1e0] ss:$16 sps:$4 sm:$0xff]   ;;  %v2948_v2 = vld [vmem:[%s4306_s1 + $0x1e8] ss:$16 sps:$4 sm:$0xff]  }
  0x17   :  { %1638 = vmatpush1.bf16.msra.mxu0 %v2887_v22  ;;  %1810 = vmatpush1.bf16.msra.mxu1 %v2888_v23  ;;  %v2951_v3 = vld [vmem:[%s4306_s1 + $0x204] ss:$16 sps:$4 sm:$0xff]   ;;  %v2954_v4 = vld [vmem:[%s4306_s1 + $0x20c] ss:$16 sps:$4 sm:$0xff]   ;;  %v2949_v6 = vld [vmem:[%s4306_s1 + $0x200] ss:$16 sps:$4 sm:$0xff]  }
  0x18   :  { %1639 = vmatprep.subr.bf16.mxu0 %v2889_v24  ;;  %1811 = vmatprep.subr.bf16.mxu1 %v2891_v25  ;;  %v2952_v7 = vld [vmem:[%s4306_s1 + $0x208] ss:$16 sps:$4 sm:$0xff]   ;;  %v2957_v8 = vld [vmem:[%s4306_s1 + $0x224] ss:$16 sps:$4 sm:$0xff]   ;;  %v2960_v9 = vld [vmem:[%s4306_s1 + $0x22c] ss:$16 sps:$4 sm:$0xff]  }
  0x19   :  { %v2955_v10 = vld [vmem:[%s4306_s1 + $0x220] ss:$16 sps:$4 sm:$0xff]   ;;  %v2958_v11 = vld [vmem:[%s4306_s1 + $0x228] ss:$16 sps:$4 sm:$0xff]   ;;  %v2963_v12 = vld [vmem:[%s4306_s1 + $0x244] ss:$16 sps:$4 sm:$0xff]  }
  0x1a   :  { %v2966_v13 = vld [vmem:[%s4306_s1 + $0x24c] ss:$16 sps:$4 sm:$0xff]   ;;  %v2961_v14 = vld [vmem:[%s4306_s1 + $0x240] ss:$16 sps:$4 sm:$0xff]   ;;  %v2964_v15 = vld [vmem:[%s4306_s1 + $0x248] ss:$16 sps:$4 sm:$0xff]  }
  0x1b   :  { %1640 = vmatpush1.bf16.msra.mxu0 %v2893_v26  ;;  %1812 = vmatpush1.bf16.msra.mxu1 %v2894_v27  ;;  %v2969_v16 = vld [vmem:[%s4306_s1 + $0x264] ss:$16 sps:$4 sm:$0xff]   ;;  %v2972_v17 = vld [vmem:[%s4306_s1 + $0x26c] ss:$16 sps:$4 sm:$0xff]   ;;  %v2967_v18 = vld [vmem:[%s4306_s1 + $0x260] ss:$16 sps:$4 sm:$0xff]  }
  0x1c   :  { %1641 = vmatprep.subr.bf16.mxu0 %v2895_v28  ;;  %1813 = vmatprep.subr.bf16.mxu1 %v2897_v29  ;;  %v2970_v19 = vld [vmem:[%s4306_s1 + $0x268] ss:$16 sps:$4 sm:$0xff]   ;;  %v2975_v20 = vld [vmem:[%s4306_s1 + $0x284] ss:$16 sps:$4 sm:$0xff]   ;;  %v2978_v21 = vld [vmem:[%s4306_s1 + $0x28c] ss:$16 sps:$4 sm:$0xff]  }
  0x1d   :  { %v2973_v22 = vld [vmem:[%s4306_s1 + $0x280] ss:$16 sps:$4 sm:$0xff]   ;;  %v2976_v23 = vld [vmem:[%s4306_s1 + $0x288] ss:$16 sps:$4 sm:$0xff]   ;;  %v2981_v24 = vld [vmem:[%s4306_s1 + $0x2a4] ss:$16 sps:$4 sm:$0xff]  }
  0x1e   :  { %v2984_v25 = vld [vmem:[%s4306_s1 + $0x2ac] ss:$16 sps:$4 sm:$0xff]   ;;  %v2979_v26 = vld [vmem:[%s4306_s1 + $0x2a0] ss:$16 sps:$4 sm:$0xff]   ;;  %v2982_v27 = vld [vmem:[%s4306_s1 + $0x2a8] ss:$16 sps:$4 sm:$0xff]  }
  0x1f   :  { %1642 = vmatpush1.bf16.msra.mxu0 %v2899_v30  ;;  %1814 = vmatpush1.bf16.msra.mxu1 %v2900_v31  ;;  %v2987_v28 = vld [vmem:[%s4306_s1 + $0x2c4] ss:$16 sps:$4 sm:$0xff]   ;;  %v2990_v29 = vld [vmem:[%s4306_s1 + $0x2cc] ss:$16 sps:$4 sm:$0xff]   ;;  %v3006_v46 = vld [vmem:[%s4306_s1 + $0x328] ss:$16 sps:$4 sm:$0xff]  }
  0x20   :  { %1643 = vmatprep.subr.bf16.mxu0 %v2901_v32  ;;  %1815 = vmatprep.subr.bf16.mxu1 %v2903_v33  ;;  %v3613_v30 = vld [vmem:[%s4307_s0 + $0x8] sm:$0xff]  ;;  %v2985_v32 = vld [vmem:[%s4306_s1 + $0x2c0] ss:$16 sps:$4 sm:$0xff]   ;;  %v3011_v47 = vld [vmem:[%s4306_s1 + $0x344] ss:$16 sps:$4 sm:$0xff]   ;;  %vm2468_vm14 = vcmask 261120  }
  0x21   :  { %v3618_v31 = vld [vmem:[%s4307_s0 + $0x28] sm:$0xff] }
  0x22   :  { %v2988_v33 = vld [vmem:[%s4306_s1 + $0x2c8] ss:$16 sps:$4 sm:$0xff]  }
  0x23   :  { %1644 = vmatpush1.bf16.msra.mxu0 %v2905_v34  ;;  %1816 = vmatpush1.bf16.msra.mxu1 %v2906_v35  ;;  %v2480_v34 = vcombine.high %v3613_v30, %v3618_v31  ;;  %v2993_v35 = vld [vmem:[%s4306_s1 + $0x2e4] ss:$16 sps:$4 sm:$0xff]   ;;  %v3012_v50 = vld [vmem:[%s4306_s1 + $0x348] ss:$16 sps:$4 sm:$0xff]  }
  0x24   :  { %1645 = vmatprep.subr.bf16.mxu0 %v2907_v36  ;;  %1817 = vmatprep.subr.bf16.mxu1 %v2909_v37  ;;  %v2996_v36 = vld [vmem:[%s4306_s1 + $0x2ec] ss:$16 sps:$4 sm:$0xff]   ;;  %v2991_v37 = vld [vmem:[%s4306_s1 + $0x2e0] ss:$16 sps:$4 sm:$0xff]  }
  0x27   :  { %1646 = vmatpush1.bf16.msra.mxu0 %v2911_v38  ;;  %1818 = vmatpush1.bf16.msra.mxu1 %v2912_v39  ;;  %v2994_v38 = vld [vmem:[%s4306_s1 + $0x2e8] ss:$16 sps:$4 sm:$0xff]   ;;  %v2999_v39 = vld [vmem:[%s4306_s1 + $0x304] ss:$16 sps:$4 sm:$0xff]  }
  0x28   :  { %1647 = vmatprep.subr.bf16.mxu0 %v2913_v40  ;;  %1819 = vmatprep.subr.bf16.mxu1 %v2915_v41  ;;  %v3002_v40 = vld [vmem:[%s4306_s1 + $0x30c] ss:$16 sps:$4 sm:$0xff]   ;;  %v2997_v41 = vld [vmem:[%s4306_s1 + $0x300] ss:$16 sps:$4 sm:$0xff]  }
  0x2b   :  { %1648 = vmatpush1.bf16.msra.mxu0 %v2917_v42  ;;  %1820 = vmatpush1.bf16.msra.mxu1 %v2918_v43  ;;  %v3000_v42 = vld [vmem:[%s4306_s1 + $0x308] ss:$16 sps:$4 sm:$0xff]   ;;  %v3005_v43 = vld [vmem:[%s4306_s1 + $0x324] ss:$16 sps:$4 sm:$0xff]  }
  0x2c   :  { %1649 = vmatprep.subr.bf16.mxu0 %v2919_v44  ;;  %1821 = vmatprep.subr.bf16.mxu1 %v2921_v45  ;;  %v3008_v44 = vld [vmem:[%s4306_s1 + $0x32c] ss:$16 sps:$4 sm:$0xff]   ;;  %v3003_v45 = vld [vmem:[%s4306_s1 + $0x320] ss:$16 sps:$4 sm:$0xff]  }
  0x2f   :  { %1650 = vmatpush1.bf16.msra.mxu0 %v2923_v48  ;;  %1822 = vmatpush1.bf16.msra.mxu1 %v2924_v49  ;;  %v3014_v48 = vld [vmem:[%s4306_s1 + $0x34c] ss:$16 sps:$4 sm:$0xff]   ;;  %v3009_v49 = vld [vmem:[%s4306_s1 + $0x340] ss:$16 sps:$4 sm:$0xff]  }
  0x30   :  { %1651 = vmatprep.subr.bf16.mxu0 %v2925_v51  ;;  %1823 = vmatprep.subr.bf16.mxu1 %v2927_v52  ;;  %v3017_v51 = vld [vmem:[%s4306_s1 + $0x364] ss:$16 sps:$4 sm:$0xff]   ;;  %v3020_v52 = vld [vmem:[%s4306_s1 + $0x36c] ss:$16 sps:$4 sm:$0xff]  }
  0x33   :  { %1652 = vmatpush1.bf16.msra.mxu0 %v2929_v53  ;;  %1824 = vmatpush1.bf16.msra.mxu1 %v2930_v54  ;;  %v3015_v53 = vld [vmem:[%s4306_s1 + $0x360] ss:$16 sps:$4 sm:$0xff]   ;;  %v3018_v54 = vld [vmem:[%s4306_s1 + $0x368] ss:$16 sps:$4 sm:$0xff]  }
  0x34   :  { %1653 = vmatprep.subr.bf16.mxu0 %v2931_v55  ;;  %1825 = vmatprep.subr.bf16.mxu1 %v2933_v56  ;;  %v3023_v55 = vld [vmem:[%s4306_s1 + $0x384] ss:$16 sps:$4 sm:$0xff]   ;;  %v3026_v56 = vld [vmem:[%s4306_s1 + $0x38c] ss:$16 sps:$4 sm:$0xff]  }
  0x37   :  { %1654 = vmatpush1.bf16.msra.mxu0 %v2935_v57  ;;  %1826 = vmatpush1.bf16.msra.mxu1 %v2936_v58  ;;  %v3021_v57 = vld [vmem:[%s4306_s1 + $0x380] ss:$16 sps:$4 sm:$0xff]   ;;  %v3024_v58 = vld [vmem:[%s4306_s1 + $0x388] ss:$16 sps:$4 sm:$0xff]  }
  0x38   :  { %1655 = vmatprep.subr.bf16.mxu0 %v2937_v59  ;;  %1827 = vmatprep.subr.bf16.mxu1 %v2939_v60  ;;  %v3029_v59 = vld [vmem:[%s4306_s1 + $0x3a4] ss:$16 sps:$4 sm:$0xff]   ;;  %v3032_v60 = vld [vmem:[%s4306_s1 + $0x3ac] ss:$16 sps:$4 sm:$0xff]  }
  0x3b   :  { %1656 = vmatpush1.bf16.msra.mxu0 %v2941_v61  ;;  %1828 = vmatpush1.bf16.msra.mxu1 %v2942_v62  ;;  %v3027_v61 = vld [vmem:[%s4306_s1 + $0x3a0] ss:$16 sps:$4 sm:$0xff]   ;;  %v3030_v62 = vld [vmem:[%s4306_s1 + $0x3a8] ss:$16 sps:$4 sm:$0xff]  }
  0x3c   :  { %1657 = vmatprep.subr.bf16.mxu0 %v2943_v63  ;;  %1829 = vmatprep.subr.bf16.mxu1 %v2945_v0  ;;  %v3035_v63 = vld [vmem:[%s4306_s1 + $0x3c4] ss:$16 sps:$4 sm:$0xff]   ;;  %v3038_v0 = vld [vmem:[%s4306_s1 + $0x3cc] ss:$16 sps:$4 sm:$0xff]  }
  0x3f   :  { %1658 = vmatpush1.bf16.msra.mxu0 %v2947_v1  ;;  %1830 = vmatpush1.bf16.msra.mxu1 %v2948_v2  ;;  %v3033_v1 = vld [vmem:[%s4306_s1 + $0x3c0] ss:$16 sps:$4 sm:$0xff]   ;;  %v3036_v2 = vld [vmem:[%s4306_s1 + $0x3c8] ss:$16 sps:$4 sm:$0xff]  }
  0x40   :  { %1670 = vmatprep.subr.bf16.mxu0 %v2951_v3  ;;  %1842 = vmatprep.subr.bf16.mxu1 %v2954_v4  ;;  %v3041_v3 = vld [vmem:[%s4306_s1 + $0x3e4] ss:$16 sps:$4 sm:$0xff]   ;;  %v3044_v4 = vld [vmem:[%s4306_s1 + $0x3ec] ss:$16 sps:$4 sm:$0xff]  }
  0x42   :  { %1660 = vmatmul.mubr.bf16.vlgmr.msra.gmra.mrb[0].mxu0 %v2477_v5  ;;  %1832 = vmatmul.mubr.bf16.vlgmr.msra.gmra.mrb[0].mxu1 %v2477_v5  ;;  %v3039_v5 = vld [vmem:[%s4306_s1 + $0x3e0] ss:$16 sps:$4 sm:$0xff]  }
  0x43   :  { %1671 = vmatpush1.bf16.msra.mxu0 %v2949_v6  ;;  %1843 = vmatpush1.bf16.msra.mxu1 %v2952_v7  ;;  %v3042_v6 = vld [vmem:[%s4306_s1 + $0x3e8] ss:$16 sps:$4 sm:$0xff]   ;;  %v3047_v7 = vld [vmem:[%s4306_s1 + $0x404] ss:$16 sps:$4 sm:$0xff]  }
  0x44   :  { %1672 = vmatprep.subr.bf16.mxu0 %v2957_v8  ;;  %1844 = vmatprep.subr.bf16.mxu1 %v2960_v9  ;;  %v3050_v8 = vld [vmem:[%s4306_s1 + $0x40c] ss:$16 sps:$4 sm:$0xff]   ;;  %v2479_v9 = vcombine.low %v3613_v30, %v3618_v31  ;;  %v3072_v30 = vld [vmem:[%s4306_s1 + $0x488] ss:$16 sps:$4 sm:$0xff]   ;;  %v3077_v31 = vld [vmem:[%s4306_s1 + $0x4a4] ss:$16 sps:$4 sm:$0xff]  }
  0x45   :  { %1702 = vmatprep.mubr.bf16.mxu0 %v2480_v34  ;;  %1874 = vmatprep.mubr.bf16.mxu1 %v2480_v34  ;;  %v3078_v34 = vld [vmem:[%s4306_s1 + $0x4a8] ss:$16 sps:$4 sm:$0xff]  }
  0x47   :  { %1673 = vmatpush1.bf16.msra.mxu0 %v2955_v10  ;;  %1845 = vmatpush1.bf16.msra.mxu1 %v2958_v11  ;;  %v3045_v10 = vld [vmem:[%s4306_s1 + $0x400] ss:$16 sps:$4 sm:$0xff]   ;;  %v3048_v11 = vld [vmem:[%s4306_s1 + $0x408] ss:$16 sps:$4 sm:$0xff]  }
  0x48   :  { %1674 = vmatprep.subr.bf16.mxu0 %v2963_v12  ;;  %1846 = vmatprep.subr.bf16.mxu1 %v2966_v13  ;;  %v3053_v12 = vld [vmem:[%s4306_s1 + $0x424] ss:$16 sps:$4 sm:$0xff]   ;;  %v3056_v13 = vld [vmem:[%s4306_s1 + $0x42c] ss:$16 sps:$4 sm:$0xff]  }
  0x4b   :  { %1675 = vmatpush1.bf16.msra.mxu0 %v2961_v14  ;;  %1847 = vmatpush1.bf16.msra.mxu1 %v2964_v15  ;;  %v3759_v14 = vld [vmem:[%s4307_s0 + $0x10] sm:$0xff] }
  0x4c   :  { %1676 = vmatprep.subr.bf16.mxu0 %v2969_v16  ;;  %1848 = vmatprep.subr.bf16.mxu1 %v2972_v17  ;;  %v3764_v15 = vld [vmem:[%s4307_s0 + $0x30] sm:$0xff] }
  0x4d   :  { %v2482_v16 = vcombine.high %v3759_v14, %v3764_v15  ;;  %v3051_v17 = vld [vmem:[%s4306_s1 + $0x420] ss:$16 sps:$4 sm:$0xff]  }
  0x4f   :  { %1677 = vmatpush1.bf16.msra.mxu0 %v2967_v18  ;;  %1849 = vmatpush1.bf16.msra.mxu1 %v2970_v19  ;;  %v3054_v18 = vld [vmem:[%s4306_s1 + $0x428] ss:$16 sps:$4 sm:$0xff]   ;;  %v3059_v19 = vld [vmem:[%s4306_s1 + $0x444] ss:$16 sps:$4 sm:$0xff]  }
  0x50   :  { %1678 = vmatprep.subr.bf16.mxu0 %v2975_v20  ;;  %1850 = vmatprep.subr.bf16.mxu1 %v2978_v21  ;;  %v3062_v20 = vld [vmem:[%s4306_s1 + $0x44c] ss:$16 sps:$4 sm:$0xff]   ;;  %v3057_v21 = vld [vmem:[%s4306_s1 + $0x440] ss:$16 sps:$4 sm:$0xff]  }
  0x53   :  { %1679 = vmatpush1.bf16.msra.mxu0 %v2973_v22  ;;  %1851 = vmatpush1.bf16.msra.mxu1 %v2976_v23  ;;  %v3060_v22 = vld [vmem:[%s4306_s1 + $0x448] ss:$16 sps:$4 sm:$0xff]   ;;  %v3065_v23 = vld [vmem:[%s4306_s1 + $0x464] ss:$16 sps:$4 sm:$0xff]  }
  0x54   :  { %1680 = vmatprep.subr.bf16.mxu0 %v2981_v24  ;;  %1852 = vmatprep.subr.bf16.mxu1 %v2984_v25  ;;  %v3068_v24 = vld [vmem:[%s4306_s1 + $0x46c] ss:$16 sps:$4 sm:$0xff]   ;;  %v3063_v25 = vld [vmem:[%s4306_s1 + $0x460] ss:$16 sps:$4 sm:$0xff]  }
  0x57   :  { %1681 = vmatpush1.bf16.msra.mxu0 %v2979_v26  ;;  %1853 = vmatpush1.bf16.msra.mxu1 %v2982_v27  ;;  %v3066_v26 = vld [vmem:[%s4306_s1 + $0x468] ss:$16 sps:$4 sm:$0xff]   ;;  %v3071_v27 = vld [vmem:[%s4306_s1 + $0x484] ss:$16 sps:$4 sm:$0xff]  }
  0x58   :  { %1682 = vmatprep.subr.bf16.mxu0 %v2987_v28  ;;  %1854 = vmatprep.subr.bf16.mxu1 %v2990_v29  ;;  %v3074_v28 = vld [vmem:[%s4306_s1 + $0x48c] ss:$16 sps:$4 sm:$0xff]   ;;  %v3069_v29 = vld [vmem:[%s4306_s1 + $0x480] ss:$16 sps:$4 sm:$0xff]  }
  0x5b   :  { %1683 = vmatpush1.bf16.msra.mxu0 %v2985_v32  ;;  %1855 = vmatpush1.bf16.msra.mxu1 %v2988_v33  ;;  %v3080_v32 = vld [vmem:[%s4306_s1 + $0x4ac] ss:$16 sps:$4 sm:$0xff]   ;;  %v3075_v33 = vld [vmem:[%s4306_s1 + $0x4a0] ss:$16 sps:$4 sm:$0xff]  }
  0x5c   :  { %1684 = vmatprep.subr.bf16.mxu0 %v2993_v35  ;;  %1856 = vmatprep.subr.bf16.mxu1 %v2996_v36  ;;  %v3083_v35 = vld [vmem:[%s4306_s1 + $0x4c4] ss:$16 sps:$4 sm:$0xff]   ;;  %v3086_v36 = vld [vmem:[%s4306_s1 + $0x4cc] ss:$16 sps:$4 sm:$0xff]  }
  0x5f   :  { %1685 = vmatpush1.bf16.msra.mxu0 %v2991_v37  ;;  %1857 = vmatpush1.bf16.msra.mxu1 %v2994_v38  ;;  %v3081_v37 = vld [vmem:[%s4306_s1 + $0x4c0] ss:$16 sps:$4 sm:$0xff]   ;;  %v3084_v38 = vld [vmem:[%s4306_s1 + $0x4c8] ss:$16 sps:$4 sm:$0xff]  }
  0x60   :  { %1686 = vmatprep.subr.bf16.mxu0 %v2999_v39  ;;  %1858 = vmatprep.subr.bf16.mxu1 %v3002_v40  ;;  %v3089_v39 = vld [vmem:[%s4306_s1 + $0x4e4] ss:$16 sps:$4 sm:$0xff]   ;;  %v3092_v40 = vld [vmem:[%s4306_s1 + $0x4ec] ss:$16 sps:$4 sm:$0xff]  }
  0x63   :  { %1687 = vmatpush1.bf16.msra.mxu0 %v2997_v41  ;;  %1859 = vmatpush1.bf16.msra.mxu1 %v3000_v42  ;;  %v3087_v41 = vld [vmem:[%s4306_s1 + $0x4e0] ss:$16 sps:$4 sm:$0xff]   ;;  %v3090_v42 = vld [vmem:[%s4306_s1 + $0x4e8] ss:$16 sps:$4 sm:$0xff]  }
  0x64   :  { %1688 = vmatprep.subr.bf16.mxu0 %v3005_v43  ;;  %1860 = vmatprep.subr.bf16.mxu1 %v3008_v44  ;;  %v3095_v43 = vld [vmem:[%s4306_s1 + $0x504] ss:$16 sps:$4 sm:$0xff]   ;;  %v3098_v44 = vld [vmem:[%s4306_s1 + $0x50c] ss:$16 sps:$4 sm:$0xff]  }
  0x67   :  { %1689 = vmatpush1.bf16.msra.mxu0 %v3003_v45  ;;  %1861 = vmatpush1.bf16.msra.mxu1 %v3006_v46  ;;  %v3093_v45 = vld [vmem:[%s4306_s1 + $0x500] ss:$16 sps:$4 sm:$0xff]   ;;  %v3096_v46 = vld [vmem:[%s4306_s1 + $0x508] ss:$16 sps:$4 sm:$0xff]  }
  0x68   :  { %1690 = vmatprep.subr.bf16.mxu0 %v3011_v47  ;;  %1862 = vmatprep.subr.bf16.mxu1 %v3014_v48  ;;  %v3101_v47 = vld [vmem:[%s4306_s1 + $0x524] ss:$16 sps:$4 sm:$0xff]   ;;  %v3104_v48 = vld [vmem:[%s4306_s1 + $0x52c] ss:$16 sps:$4 sm:$0xff]  }
  0x6b   :  { %1691 = vmatpush1.bf16.msra.mxu0 %v3009_v49  ;;  %1863 = vmatpush1.bf16.msra.mxu1 %v3012_v50  ;;  %v3099_v49 = vld [vmem:[%s4306_s1 + $0x520] ss:$16 sps:$4 sm:$0xff]   ;;  %v3102_v50 = vld [vmem:[%s4306_s1 + $0x528] ss:$16 sps:$4 sm:$0xff]  }
  0x6c   :  { %1692 = vmatprep.subr.bf16.mxu0 %v3017_v51  ;;  %1864 = vmatprep.subr.bf16.mxu1 %v3020_v52  ;;  %v3107_v51 = vld [vmem:[%s4306_s1 + $0x544] ss:$16 sps:$4 sm:$0xff]   ;;  %v3110_v52 = vld [vmem:[%s4306_s1 + $0x54c] ss:$16 sps:$4 sm:$0xff]  }
  0x6f   :  { %1693 = vmatpush1.bf16.msra.mxu0 %v3015_v53  ;;  %1865 = vmatpush1.bf16.msra.mxu1 %v3018_v54  ;;  %v3105_v53 = vld [vmem:[%s4306_s1 + $0x540] ss:$16 sps:$4 sm:$0xff]   ;;  %v3108_v54 = vld [vmem:[%s4306_s1 + $0x548] ss:$16 sps:$4 sm:$0xff]  }
  0x70   :  { %1694 = vmatprep.subr.bf16.mxu0 %v3023_v55  ;;  %1866 = vmatprep.subr.bf16.mxu1 %v3026_v56  ;;  %v3113_v55 = vld [vmem:[%s4306_s1 + $0x564] ss:$16 sps:$4 sm:$0xff]   ;;  %v3116_v56 = vld [vmem:[%s4306_s1 + $0x56c] ss:$16 sps:$4 sm:$0xff]  }
  0x73   :  { %1695 = vmatpush1.bf16.msra.mxu0 %v3021_v57  ;;  %1867 = vmatpush1.bf16.msra.mxu1 %v3024_v58  ;;  %v3111_v57 = vld [vmem:[%s4306_s1 + $0x560] ss:$16 sps:$4 sm:$0xff]   ;;  %v3114_v58 = vld [vmem:[%s4306_s1 + $0x568] ss:$16 sps:$4 sm:$0xff]  }
  0x74   :  { %1696 = vmatprep.subr.bf16.mxu0 %v3029_v59  ;;  %1868 = vmatprep.subr.bf16.mxu1 %v3032_v60  ;;  %v3119_v59 = vld [vmem:[%s4306_s1 + $0x584] ss:$16 sps:$4 sm:$0xff]   ;;  %v3122_v60 = vld [vmem:[%s4306_s1 + $0x58c] ss:$16 sps:$4 sm:$0xff]  }
  0x77   :  { %1697 = vmatpush1.bf16.msra.mxu0 %v3027_v61  ;;  %1869 = vmatpush1.bf16.msra.mxu1 %v3030_v62  ;;  %v3117_v61 = vld [vmem:[%s4306_s1 + $0x580] ss:$16 sps:$4 sm:$0xff]   ;;  %v3120_v62 = vld [vmem:[%s4306_s1 + $0x588] ss:$16 sps:$4 sm:$0xff]  }
  0x78   :  { %1698 = vmatprep.subr.bf16.mxu0 %v3035_v63  ;;  %1870 = vmatprep.subr.bf16.mxu1 %v3038_v0  ;;  %v3125_v63 = vld [vmem:[%s4306_s1 + $0x5a4] ss:$16 sps:$4 sm:$0xff]   ;;  %v3128_v0 = vld [vmem:[%s4306_s1 + $0x5ac] ss:$16 sps:$4 sm:$0xff]  }
  0x7b   :  { %1699 = vmatpush1.bf16.msra.mxu0 %v3033_v1  ;;  %1871 = vmatpush1.bf16.msra.mxu1 %v3036_v2  ;;  %v3123_v1 = vld [vmem:[%s4306_s1 + $0x5a0] ss:$16 sps:$4 sm:$0xff]   ;;  %v3126_v2 = vld [vmem:[%s4306_s1 + $0x5a8] ss:$16 sps:$4 sm:$0xff]  }
  0x7c   :  { %1700 = vmatprep.subr.bf16.mxu0 %v3041_v3  ;;  %1872 = vmatprep.subr.bf16.mxu1 %v3044_v4  ;;  %v3131_v3 = vld [vmem:[%s4306_s1 + $0x5c4] ss:$16 sps:$4 sm:$0xff]   ;;  %v3134_v4 = vld [vmem:[%s4306_s1 + $0x5cc] ss:$16 sps:$4 sm:$0xff]  }
  0x7f   :  { %1701 = vmatpush1.bf16.msra.mxu0 %v3039_v5  ;;  %1873 = vmatpush1.bf16.msra.mxu1 %v3042_v6  ;;  %v3129_v5 = vld [vmem:[%s4306_s1 + $0x5c0] ss:$16 sps:$4 sm:$0xff]   ;;  %v3132_v6 = vld [vmem:[%s4306_s1 + $0x5c8] ss:$16 sps:$4 sm:$0xff]  }
  0x80   :  { %1713 = vmatprep.subr.bf16.mxu0 %v3047_v7  ;;  %1885 = vmatprep.subr.bf16.mxu1 %v3050_v8  ;;  %v3137_v7 = vld [vmem:[%s4306_s1 + $0x5e4] ss:$16 sps:$4 sm:$0xff]   ;;  %v3140_v8 = vld [vmem:[%s4306_s1 + $0x5ec] ss:$16 sps:$4 sm:$0xff]  }
  0x82   :  { %1703 = vmatmul.mubr.bf16.vlgmr.msra.gmra.mrb[0].mxu0 %v2479_v9  ;;  %1875 = vmatmul.mubr.bf16.vlgmr.msra.gmra.mrb[0].mxu1 %v2479_v9  ;;  %v3135_v9 = vld [vmem:[%s4306_s1 + $0x5e0] ss:$16 sps:$4 sm:$0xff]  }
  0x83   :  { %1714 = vmatpush1.bf16.msra.mxu0 %v3045_v10  ;;  %1886 = vmatpush1.bf16.msra.mxu1 %v3048_v11  ;;  %v3138_v10 = vld [vmem:[%s4306_s1 + $0x5e8] ss:$16 sps:$4 sm:$0xff]   ;;  %v3143_v11 = vld [vmem:[%s4306_s1 + $0x604] ss:$16 sps:$4 sm:$0xff]  }
  0x84   :  { %1715 = vmatprep.subr.bf16.mxu0 %v3053_v12  ;;  %1887 = vmatprep.subr.bf16.mxu1 %v3056_v13  ;;  %v3146_v12 = vld [vmem:[%s4306_s1 + $0x60c] ss:$16 sps:$4 sm:$0xff]   ;;  %v3141_v13 = vld [vmem:[%s4306_s1 + $0x600] ss:$16 sps:$4 sm:$0xff]  }
  0x85   :  { %1745 = vmatprep.mubr.bf16.mxu0 %v2482_v16  ;;  %1917 = vmatprep.mubr.bf16.mxu1 %v2482_v16  ;;  %v3954_v16 = vld [vmem:[%s4307_s0 + $0x18] sm:$0xff] }
  0x87   :  { %1716 = vmatpush1.bf16.msra.mxu0 %v3051_v17  ;;  %1888 = vmatpush1.bf16.msra.mxu1 %v3054_v18  ;;  %v2481_v17 = vcombine.low %v3759_v14, %v3764_v15  ;;  %v3961_v18 = vld [vmem:[%s4307_s0 + $0x38] sm:$0xff]  ;;  %v3147_v15 = vld [vmem:[%s4306_s1 + $0x620] ss:$16 sps:$4 sm:$0xff]  }
  0x88   :  { %1717 = vmatprep.subr.bf16.mxu0 %v3059_v19  ;;  %1889 = vmatprep.subr.bf16.mxu1 %v3062_v20  ;;  %v3144_v19 = vld [vmem:[%s4306_s1 + $0x608] ss:$16 sps:$4 sm:$0xff]   ;;  %v3149_v20 = vld [vmem:[%s4306_s1 + $0x624] ss:$16 sps:$4 sm:$0xff]   ;;  %v3152_v14 = vld [vmem:[%s4306_s1 + $0x62c] ss:$16 sps:$4 sm:$0xff]  }
  0x8b   :  { %1718 = vmatpush1.bf16.msra.mxu0 %v3057_v21  ;;  %1890 = vmatpush1.bf16.msra.mxu1 %v3060_v22  ;;  %v3150_v21 = vld [vmem:[%s4306_s1 + $0x628] ss:$16 sps:$4 sm:$0xff]   ;;  %v2484_v22 = vcombine.high %v3954_v16, %v3961_v18 }
  0x8c   :  { %1719 = vmatprep.subr.bf16.mxu0 %v3065_v23  ;;  %1891 = vmatprep.subr.bf16.mxu1 %v3068_v24  ;;  %v3155_v23 = vld [vmem:[%s4306_s1 + $0x644] ss:$16 sps:$4 sm:$0xff]   ;;  %v3158_v24 = vld [vmem:[%s4306_s1 + $0x64c] ss:$16 sps:$4 sm:$0xff]  }
  0x8f   :  { %1720 = vmatpush1.bf16.msra.mxu0 %v3063_v25  ;;  %1892 = vmatpush1.bf16.msra.mxu1 %v3066_v26  ;;  %v3153_v25 = vld [vmem:[%s4306_s1 + $0x640] ss:$16 sps:$4 sm:$0xff]   ;;  %v3156_v26 = vld [vmem:[%s4306_s1 + $0x648] ss:$16 sps:$4 sm:$0xff]  }
  0x90   :  { %1721 = vmatprep.subr.bf16.mxu0 %v3071_v27  ;;  %1893 = vmatprep.subr.bf16.mxu1 %v3074_v28  ;;  %v3161_v27 = vld [vmem:[%s4306_s1 + $0x664] ss:$16 sps:$4 sm:$0xff]   ;;  %v3164_v28 = vld [vmem:[%s4306_s1 + $0x66c] ss:$16 sps:$4 sm:$0xff]  }
  0x93   :  { %1722 = vmatpush1.bf16.msra.mxu0 %v3069_v29  ;;  %1894 = vmatpush1.bf16.msra.mxu1 %v3072_v30  ;;  %v3159_v29 = vld [vmem:[%s4306_s1 + $0x660] ss:$16 sps:$4 sm:$0xff]   ;;  %v3162_v30 = vld [vmem:[%s4306_s1 + $0x668] ss:$16 sps:$4 sm:$0xff]  }
  0x94   :  { %1723 = vmatprep.subr.bf16.mxu0 %v3077_v31  ;;  %1895 = vmatprep.subr.bf16.mxu1 %v3080_v32  ;;  %v3167_v31 = vld [vmem:[%s4306_s1 + $0x684] ss:$16 sps:$4 sm:$0xff]   ;;  %v3170_v32 = vld [vmem:[%s4306_s1 + $0x68c] ss:$16 sps:$4 sm:$0xff]  }
  0x97   :  { %1724 = vmatpush1.bf16.msra.mxu0 %v3075_v33  ;;  %1896 = vmatpush1.bf16.msra.mxu1 %v3078_v34  ;;  %v3165_v33 = vld [vmem:[%s4306_s1 + $0x680] ss:$16 sps:$4 sm:$0xff]   ;;  %v3168_v34 = vld [vmem:[%s4306_s1 + $0x688] ss:$16 sps:$4 sm:$0xff]  }
  0x98   :  { %1725 = vmatprep.subr.bf16.mxu0 %v3083_v35  ;;  %1897 = vmatprep.subr.bf16.mxu1 %v3086_v36  ;;  %v3173_v35 = vld [vmem:[%s4306_s1 + $0x6a4] ss:$16 sps:$4 sm:$0xff]   ;;  %v3176_v36 = vld [vmem:[%s4306_s1 + $0x6ac] ss:$16 sps:$4 sm:$0xff]  }
  0x9b   :  { %1726 = vmatpush1.bf16.msra.mxu0 %v3081_v37  ;;  %1898 = vmatpush1.bf16.msra.mxu1 %v3084_v38  ;;  %v3171_v37 = vld [vmem:[%s4306_s1 + $0x6a0] ss:$16 sps:$4 sm:$0xff]   ;;  %v3174_v38 = vld [vmem:[%s4306_s1 + $0x6a8] ss:$16 sps:$4 sm:$0xff]  }
  0x9c   :  { %1727 = vmatprep.subr.bf16.mxu0 %v3089_v39  ;;  %1899 = vmatprep.subr.bf16.mxu1 %v3092_v40  ;;  %v3179_v39 = vld [vmem:[%s4306_s1 + $0x6c4] ss:$16 sps:$4 sm:$0xff]   ;;  %v3182_v40 = vld [vmem:[%s4306_s1 + $0x6cc] ss:$16 sps:$4 sm:$0xff]  }
  0x9f   :  { %1728 = vmatpush1.bf16.msra.mxu0 %v3087_v41  ;;  %1900 = vmatpush1.bf16.msra.mxu1 %v3090_v42  ;;  %v3177_v41 = vld [vmem:[%s4306_s1 + $0x6c0] ss:$16 sps:$4 sm:$0xff]   ;;  %v3180_v42 = vld [vmem:[%s4306_s1 + $0x6c8] ss:$16 sps:$4 sm:$0xff]  }
  0xa0   :  { %1729 = vmatprep.subr.bf16.mxu0 %v3095_v43  ;;  %1901 = vmatprep.subr.bf16.mxu1 %v3098_v44  ;;  %v3185_v43 = vld [vmem:[%s4306_s1 + $0x6e4] ss:$16 sps:$4 sm:$0xff]   ;;  %v3188_v44 = vld [vmem:[%s4306_s1 + $0x6ec] ss:$16 sps:$4 sm:$0xff]  }
  0xa3   :  { %1730 = vmatpush1.bf16.msra.mxu0 %v3093_v45  ;;  %1902 = vmatpush1.bf16.msra.mxu1 %v3096_v46  ;;  %v3183_v45 = vld [vmem:[%s4306_s1 + $0x6e0] ss:$16 sps:$4 sm:$0xff]   ;;  %v3186_v46 = vld [vmem:[%s4306_s1 + $0x6e8] ss:$16 sps:$4 sm:$0xff]  }
  0xa4   :  { %1731 = vmatprep.subr.bf16.mxu0 %v3101_v47  ;;  %1903 = vmatprep.subr.bf16.mxu1 %v3104_v48  ;;  %v3191_v47 = vld [vmem:[%s4306_s1 + $0x704] ss:$16 sps:$4 sm:$0xff]   ;;  %v3194_v48 = vld [vmem:[%s4306_s1 + $0x70c] ss:$16 sps:$4 sm:$0xff]  }
  0xa7   :  { %1732 = vmatpush1.bf16.msra.mxu0 %v3099_v49  ;;  %1904 = vmatpush1.bf16.msra.mxu1 %v3102_v50  ;;  %v3189_v49 = vld [vmem:[%s4306_s1 + $0x700] ss:$16 sps:$4 sm:$0xff]   ;;  %v3192_v50 = vld [vmem:[%s4306_s1 + $0x708] ss:$16 sps:$4 sm:$0xff]  }
  0xa8   :  { %1733 = vmatprep.subr.bf16.mxu0 %v3107_v51  ;;  %1905 = vmatprep.subr.bf16.mxu1 %v3110_v52  ;;  %v3197_v51 = vld [vmem:[%s4306_s1 + $0x724] ss:$16 sps:$4 sm:$0xff]   ;;  %v3200_v52 = vld [vmem:[%s4306_s1 + $0x72c] ss:$16 sps:$4 sm:$0xff]  }
  0xab   :  { %1734 = vmatpush1.bf16.msra.mxu0 %v3105_v53  ;;  %1906 = vmatpush1.bf16.msra.mxu1 %v3108_v54  ;;  %v3195_v53 = vld [vmem:[%s4306_s1 + $0x720] ss:$16 sps:$4 sm:$0xff]   ;;  %v3198_v54 = vld [vmem:[%s4306_s1 + $0x728] ss:$16 sps:$4 sm:$0xff]  }
  0xac   :  { %1735 = vmatprep.subr.bf16.mxu0 %v3113_v55  ;;  %1907 = vmatprep.subr.bf16.mxu1 %v3116_v56  ;;  %v3203_v55 = vld [vmem:[%s4306_s1 + $0x744] ss:$16 sps:$4 sm:$0xff]   ;;  %v3206_v56 = vld [vmem:[%s4306_s1 + $0x74c] ss:$16 sps:$4 sm:$0xff]  }
  0xaf   :  { %1736 = vmatpush1.bf16.msra.mxu0 %v3111_v57  ;;  %1908 = vmatpush1.bf16.msra.mxu1 %v3114_v58  ;;  %v3201_v57 = vld [vmem:[%s4306_s1 + $0x740] ss:$16 sps:$4 sm:$0xff]   ;;  %v3204_v58 = vld [vmem:[%s4306_s1 + $0x748] ss:$16 sps:$4 sm:$0xff]  }
  0xb0   :  { %1737 = vmatprep.subr.bf16.mxu0 %v3119_v59  ;;  %1909 = vmatprep.subr.bf16.mxu1 %v3122_v60  ;;  %v3209_v59 = vld [vmem:[%s4306_s1 + $0x764] ss:$16 sps:$4 sm:$0xff]   ;;  %v3212_v60 = vld [vmem:[%s4306_s1 + $0x76c] ss:$16 sps:$4 sm:$0xff]  }
  0xb3   :  { %1738 = vmatpush1.bf16.msra.mxu0 %v3117_v61  ;;  %1910 = vmatpush1.bf16.msra.mxu1 %v3120_v62  ;;  %v3207_v61 = vld [vmem:[%s4306_s1 + $0x760] ss:$16 sps:$4 sm:$0xff]   ;;  %v3210_v62 = vld [vmem:[%s4306_s1 + $0x768] ss:$16 sps:$4 sm:$0xff]  }
  0xb4   :  { %1739 = vmatprep.subr.bf16.mxu0 %v3125_v63  ;;  %1911 = vmatprep.subr.bf16.mxu1 %v3128_v0  ;;  %v3215_v63 = vld [vmem:[%s4306_s1 + $0x784] ss:$16 sps:$4 sm:$0xff]   ;;  %v3218_v0 = vld [vmem:[%s4306_s1 + $0x78c] ss:$16 sps:$4 sm:$0xff]  }
  0xb7   :  { %1740 = vmatpush1.bf16.msra.mxu0 %v3123_v1  ;;  %1912 = vmatpush1.bf16.msra.mxu1 %v3126_v2  ;;  %v3213_v1 = vld [vmem:[%s4306_s1 + $0x780] ss:$16 sps:$4 sm:$0xff]   ;;  %v3216_v2 = vld [vmem:[%s4306_s1 + $0x788] ss:$16 sps:$4 sm:$0xff]  }
  0xb8   :  { %1741 = vmatprep.subr.bf16.mxu0 %v3131_v3  ;;  %1913 = vmatprep.subr.bf16.mxu1 %v3134_v4  ;;  %v3221_v3 = vld [vmem:[%s4306_s1 + $0x7a4] ss:$16 sps:$4 sm:$0xff]   ;;  %v3224_v4 = vld [vmem:[%s4306_s1 + $0x7ac] ss:$16 sps:$4 sm:$0xff]  }
  0xbb   :  { %1742 = vmatpush1.bf16.msra.mxu0 %v3129_v5  ;;  %1914 = vmatpush1.bf16.msra.mxu1 %v3132_v6  ;;  %v3219_v5 = vld [vmem:[%s4306_s1 + $0x7a0] ss:$16 sps:$4 sm:$0xff]   ;;  %v3222_v6 = vld [vmem:[%s4306_s1 + $0x7a8] ss:$16 sps:$4 sm:$0xff]  }
  0xbc   :  { %1743 = vmatprep.subr.bf16.mxu0 %v3137_v7  ;;  %1915 = vmatprep.subr.bf16.mxu1 %v3140_v8  ;;  %v3227_v7 = vld [vmem:[%s4306_s1 + $0x7c4] ss:$16 sps:$4 sm:$0xff]   ;;  %v3230_v8 = vld [vmem:[%s4306_s1 + $0x7cc] ss:$16 sps:$4 sm:$0xff]  }
  0xbf   :  { %1744 = vmatpush1.bf16.msra.mxu0 %v3135_v9  ;;  %1916 = vmatpush1.bf16.msra.mxu1 %v3138_v10  ;;  %v3225_v9 = vld [vmem:[%s4306_s1 + $0x7c0] ss:$16 sps:$4 sm:$0xff]   ;;  %v3228_v10 = vld [vmem:[%s4306_s1 + $0x7c8] ss:$16 sps:$4 sm:$0xff]  }
  0xc0   :  { %1756 = vmatprep.subr.bf16.mxu0 %v3143_v11  ;;  %1928 = vmatprep.subr.bf16.mxu1 %v3146_v12  ;;  %v3233_v11 = vld [vmem:[%s4306_s1 + $0x7e4] ss:$16 sps:$4 sm:$0xff]   ;;  %v3236_v12 = vld [vmem:[%s4306_s1 + $0x7ec] ss:$16 sps:$4 sm:$0xff]  }
  0xc2   :  { %1746 = vmatmul.mubr.bf16.vlgmr.msra.gmra.mrb[0].mxu0 %v2481_v17  ;;  %1918 = vmatmul.mubr.bf16.vlgmr.msra.gmra.mrb[0].mxu1 %v2481_v17  ;;  %v3234_v17 = vld [vmem:[%s4306_s1 + $0x7e8] ss:$16 sps:$4 sm:$0xff]  }
  0xc3   :  { %1757 = vmatpush1.bf16.msra.mxu0 %v3141_v13  ;;  %1929 = vmatpush1.bf16.msra.mxu1 %v3144_v19  ;;  %v3231_v13 = vld [vmem:[%s4306_s1 + $0x7e0] ss:$16 sps:$4 sm:$0xff]  }
  0xc4   :  { %1758 = vmatprep.subr.bf16.mxu0 %v3149_v20  ;;  %1930 = vmatprep.subr.bf16.mxu1 %v3152_v14  ;;  %v3237_v19 = vld [vmem:[%s4308_s3 + $0x40] sm:$0xff]   ;;  %v2483_v14 = vcombine.low %v3954_v16, %v3961_v18  ;;  %v3242_v16 = vld [vmem:[%s4308_s3 + $0xc8] sm:$0xff]  }
  0xc5   :  { %1788 = vmatprep.mubr.bf16.mxu0 %v2484_v22  ;;  %1960 = vmatprep.mubr.bf16.mxu1 %v2484_v22  ;;  %v3238_v20 = vld [vmem:[%s4308_s3 + $0xc0] sm:$0xff]   ;;  %v3241_v22 = vld [vmem:[%s4308_s3 + $0x48] sm:$0xff]  }
  0xc6   :  { %v3243_v18 = vld [vmem:[%s4308_s3 + $0x8] sm:$0xff]  }
  0xc7   :  { %1759 = vmatpush1.bf16.msra.mxu0 %v3147_v15  ;;  %1931 = vmatpush1.bf16.msra.mxu1 %v3150_v21  ;;  %v3239_v15 = vld [vmem:[%s4308_s3] sm:$0xff]  }
  0xc8   :  { %1760 = vmatprep.subr.bf16.mxu0 %v3155_v23  ;;  %1932 = vmatprep.subr.bf16.mxu1 %v3158_v24  ;;  %v3240_v21 = vld [vmem:[%s4308_s3 + $0x80] sm:$0xff]   ;;  %v3244_v23 = vld [vmem:[%s4308_s3 + $0x88] sm:$0xff]   ;;  %v3245_v24 = vld [vmem:[%s4308_s3 + $0x50] sm:$0xff]  }
  0xcb   :  { %1761 = vmatpush1.bf16.msra.mxu0 %v3153_v25  ;;  %1933 = vmatpush1.bf16.msra.mxu1 %v3156_v26  ;;  %v3246_v25 = vld [vmem:[%s4308_s3 + $0xd0] sm:$0xff]  }
  0xcc   :  { %1762 = vmatprep.subr.bf16.mxu0 %v3161_v27  ;;  %1934 = vmatprep.subr.bf16.mxu1 %v3164_v28  ;;  %v3247_v26 = vld [vmem:[%s4308_s3 + $0x10] sm:$0xff]   ;;  %v3249_v28 = vld [vmem:[%s4308_s3 + $0x58] sm:$0xff]  }
  0xcd   :  { %v3248_v27 = vld [vmem:[%s4308_s3 + $0x90] sm:$0xff]  }
  0xcf   :  { %1763 = vmatpush1.bf16.msra.mxu0 %v3159_v29  ;;  %1935 = vmatpush1.bf16.msra.mxu1 %v3162_v30  ;;  %v3250_v29 = vld [vmem:[%s4308_s3 + $0xd8] sm:$0xff]  }
  0xd0   :  { %1764 = vmatprep.subr.bf16.mxu0 %v3167_v31  ;;  %1936 = vmatprep.subr.bf16.mxu1 %v3170_v32  ;;  %v3251_v30 = vld [vmem:[%s4308_s3 + $0x18] sm:$0xff]   ;;  %v3253_v32 = vld [vmem:[%s4308_s3 + $0x60] sm:$0xff]  }
  0xd1   :  { %v3252_v31 = vld [vmem:[%s4308_s3 + $0x98] sm:$0xff]  }
  0xd3   :  { %1765 = vmatpush1.bf16.msra.mxu0 %v3165_v33  ;;  %1937 = vmatpush1.bf16.msra.mxu1 %v3168_v34  ;;  %v3254_v33 = vld [vmem:[%s4308_s3 + $0xe0] sm:$0xff]  }
  0xd4   :  { %1766 = vmatprep.subr.bf16.mxu0 %v3173_v35  ;;  %1938 = vmatprep.subr.bf16.mxu1 %v3176_v36  ;;  %v3255_v34 = vld [vmem:[%s4308_s3 + $0x20] sm:$0xff]   ;;  %v3257_v36 = vld [vmem:[%s4308_s3 + $0x68] sm:$0xff]  }
  0xd5   :  { %v3256_v35 = vld [vmem:[%s4308_s3 + $0xa0] sm:$0xff]  }
  0xd7   :  { %1767 = vmatpush1.bf16.msra.mxu0 %v3171_v37  ;;  %1939 = vmatpush1.bf16.msra.mxu1 %v3174_v38  ;;  %v3258_v37 = vld [vmem:[%s4308_s3 + $0xe8] sm:$0xff]  }
  0xd8   :  { %1768 = vmatprep.subr.bf16.mxu0 %v3179_v39  ;;  %1940 = vmatprep.subr.bf16.mxu1 %v3182_v40  ;;  %v3259_v38 = vld [vmem:[%s4308_s3 + $0x28] sm:$0xff]   ;;  %v3261_v40 = vld [vmem:[%s4308_s3 + $0x70] sm:$0xff]  }
  0xd9   :  { %v3260_v39 = vld [vmem:[%s4308_s3 + $0xa8] sm:$0xff]  }
  0xdb   :  { %1769 = vmatpush1.bf16.msra.mxu0 %v3177_v41  ;;  %1941 = vmatpush1.bf16.msra.mxu1 %v3180_v42  ;;  %v3262_v41 = vld [vmem:[%s4308_s3 + $0xf0] sm:$0xff]  }
  0xdc   :  { %1770 = vmatprep.subr.bf16.mxu0 %v3185_v43  ;;  %1942 = vmatprep.subr.bf16.mxu1 %v3188_v44  ;;  %v3263_v42 = vld [vmem:[%s4308_s3 + $0x30] sm:$0xff]   ;;  %v3265_v44 = vld [vmem:[%s4308_s3 + $0x78] sm:$0xff]  }
  0xdd   :  { %v3264_v43 = vld [vmem:[%s4308_s3 + $0xb0] sm:$0xff]  }
  0xdf   :  { %1771 = vmatpush1.bf16.msra.mxu0 %v3183_v45  ;;  %1943 = vmatpush1.bf16.msra.mxu1 %v3186_v46  ;;  %v3266_v45 = vld [vmem:[%s4308_s3 + $0xf8] sm:$0xff]  }
  0xe0   :  { %1772 = vmatprep.subr.bf16.mxu0 %v3191_v47  ;;  %1944 = vmatprep.subr.bf16.mxu1 %v3194_v48  ;;  %v3267_v46 = vld [vmem:[%s4308_s3 + $0x38] sm:$0xff]   ;;  %v287_v48 = vlaneseq }
  0xe1   :  { %v3268_v47 = vld [vmem:[%s4308_s3 + $0xb8] sm:$0xff]  }
  0xe3   :  { %1773 = vmatpush1.bf16.msra.mxu0 %v3189_v49  ;;  %1945 = vmatpush1.bf16.msra.mxu1 %v3192_v50  ;;  %v288_v49 = vshrl.u32 %v287_v48, 7 }
  0xe4   :  { %1774 = vmatprep.subr.bf16.mxu0 %v3197_v51  ;;  %1946 = vmatprep.subr.bf16.mxu1 %v3200_v52  ;;  %v285_v52 = vld [vmem:[%s4309_s2] sm:$0xf] }
  0xe5   :  { %v289_v50 = vsub.s32 0, %v288_v49  ;;  %v297_v51 = vsub.s32 2, %v288_v49 }
  0xe7   :  { %1775 = vmatpush1.bf16.msra.mxu0 %v3195_v53  ;;  %1947 = vmatpush1.bf16.msra.mxu1 %v3198_v54  ;;  %v293_v53 = vsub.s32 1, %v288_v49  ;;  %v301_v54 = vsub.s32 3, %v288_v49 }
  0xe8   :  { %1776 = vmatprep.subr.bf16.mxu0 %v3203_v55  ;;  %1948 = vmatprep.subr.bf16.mxu1 %v3206_v56  ;;  %v290_v55 = vrot.slane %v285_v52, %v289_v50  ;;  %v298_v56 = vrot.slane %v285_v52, %v297_v51 }
  0xeb   :  { %1777 = vmatpush1.bf16.msra.mxu0 %v3201_v57  ;;  %1949 = vmatpush1.bf16.msra.mxu1 %v3204_v58  ;;  %v294_v57 = vrot.slane %v285_v52, %v293_v53  ;;  %v302_v58 = vrot.slane %v285_v52, %v301_v54 }
  0xec   :  { %1778 = vmatprep.subr.bf16.mxu0 %v3209_v59  ;;  %1950 = vmatprep.subr.bf16.mxu1 %v3212_v60 }
  0xef   :  { %1779 = vmatpush1.bf16.msra.mxu0 %v3207_v61  ;;  %1951 = vmatpush1.bf16.msra.mxu1 %v3210_v62 }
  0xf0   :  { %1780 = vmatprep.subr.bf16.mxu0 %v3215_v63  ;;  %1952 = vmatprep.subr.bf16.mxu1 %v3218_v0 }
  0xf3   :  { %1781 = vmatpush1.bf16.msra.mxu0 %v3213_v1  ;;  %1953 = vmatpush1.bf16.msra.mxu1 %v3216_v2 }
  0xf4   :  { %1782 = vmatprep.subr.bf16.mxu0 %v3221_v3  ;;  %1954 = vmatprep.subr.bf16.mxu1 %v3224_v4 }
  0xf7   :  { %1783 = vmatpush1.bf16.msra.mxu0 %v3219_v5  ;;  %1955 = vmatpush1.bf16.msra.mxu1 %v3222_v6 }
  0xf8   :  { %1784 = vmatprep.subr.bf16.mxu0 %v3227_v7  ;;  %1956 = vmatprep.subr.bf16.mxu1 %v3230_v8 }
  0xfb   :  { %1785 = vmatpush1.bf16.msra.mxu0 %v3225_v9  ;;  %1957 = vmatpush1.bf16.msra.mxu1 %v3228_v10 }
  0xfc   :  { %1786 = vmatprep.subr.bf16.mxu0 %v3233_v11  ;;  %1958 = vmatprep.subr.bf16.mxu1 %v3236_v12 }
  0xff   :  { %1787 = vmatpush1.bf16.msra.mxu0 %v3231_v13  ;;  %1959 = vmatpush1.bf16.msra.mxu1 %v3234_v17 }
 0x100   :  { %2774 = vmatprep.subr.bf16.mxu0 %v3237_v19  ;;  %2796 = vmatprep.subr.bf16.mxu1 %v3238_v20 }
 0x102   :  { %1789 = vmatmul.mubr.bf16.vlgmr.msra.gmra.mrb[0].mxu0 %v2483_v14  ;;  %1961 = vmatmul.mubr.bf16.vlgmr.msra.gmra.mrb[0].mxu1 %v2483_v14 }
 0x103   :  { %2775 = vmatpush3.bf16.msra.mxu0 %v3239_v15  ;;  %2797 = vmatpush3.bf16.msra.mxu1 %v3240_v21 }
 0x104   :  { %2776 = vmatprep.subr.bf16.mxu0 %v3241_v22  ;;  %2798 = vmatprep.subr.bf16.mxu1 %v3242_v16 }
 0x107   :  { %2777 = vmatpush3.bf16.msra.mxu0 %v3243_v18  ;;  %2799 = vmatpush3.bf16.msra.mxu1 %v3244_v23 }
 0x108   :  { %2778 = vmatprep.subr.bf16.mxu0 %v3245_v24  ;;  %2800 = vmatprep.subr.bf16.mxu1 %v3246_v25 }
 0x10b   :  { %2779 = vmatpush3.bf16.msra.mxu0 %v3247_v26  ;;  %2801 = vmatpush3.bf16.msra.mxu1 %v3248_v27 }
 0x10c   :  { %2780 = vmatprep.subr.bf16.mxu0 %v3249_v28  ;;  %2802 = vmatprep.subr.bf16.mxu1 %v3250_v29 }
 0x10f   :  { %2781 = vmatpush3.bf16.msra.mxu0 %v3251_v30  ;;  %2803 = vmatpush3.bf16.msra.mxu1 %v3252_v31 }
 0x110   :  { %2782 = vmatprep.subr.bf16.mxu0 %v3253_v32  ;;  %2804 = vmatprep.subr.bf16.mxu1 %v3254_v33  ;;  %v2741_v33 = vld [vmem:[%s4310_s4] ss:$0 sm:$0xff]  ;;  %s3301_s4 = smov 112  }
 0x113   :  { %2783 = vmatpush3.bf16.msra.mxu0 %v3255_v34  ;;  %2805 = vmatpush3.bf16.msra.mxu1 %v3256_v35 }
 0x114   :  { %2784 = vmatprep.subr.bf16.mxu0 %v3257_v36  ;;  %2806 = vmatprep.subr.bf16.mxu1 %v3258_v37 }
 0x117   :  { %2785 = vmatpush3.bf16.msra.mxu0 %v3259_v38  ;;  %2807 = vmatpush3.bf16.msra.mxu1 %v3260_v39 }
 0x118   :  { %2786 = vmatprep.subr.bf16.mxu0 %v3261_v40  ;;  %2808 = vmatprep.subr.bf16.mxu1 %v3262_v41 }
 0x11b   :  { %2787 = vmatpush3.bf16.msra.mxu0 %v3263_v42  ;;  %2809 = vmatpush3.bf16.msra.mxu1 %v3264_v43 }
 0x11c   :  { %2788 = vmatprep.subr.bf16.mxu0 %v3265_v44  ;;  %2810 = vmatprep.subr.bf16.mxu1 %v3266_v45 }
 0x11f   :  { %2789 = vmatpush3.bf16.msra.mxu0 %v3267_v46  ;;  %2811 = vmatpush3.bf16.msra.mxu1 %v3268_v47 }
 0x1d5   :  { %v1790_v59 = vpop.f32.mrb[0].mxu0  ;;  %v1962_v60 = vpop.f32.mrb[0].mxu1 }
 0x1d6   :  { %v2818_v61 = vadd.f32 %v1790_v59, %v290_v55  ;;  %v2822_v62 = vadd.f32 %v1962_v60, %v298_v56  ;;  %v1792_v63 = vpop.f32.mrb[1].mxu0  ;;  %v1964_v0 = vpop.f32.mrb[1].mxu1 }
 0x1d7   :  { %v2819_v1 = vadd.f32 %v1792_v63, %v294_v57  ;;  %v2823_v2 = vadd.f32 %v1964_v0, %v302_v58  ;;  %v1794_v3 = vpop.f32.mrb[2].mxu0  ;;  %v1966_v4 = vpop.f32.mrb[2].mxu1 }
 0x1d8   :  { %vm1971_vm0 = vcmp.gt.f32.partialorder %v2818_v61, 0.0  ;;  %v1979_v5 = vmul.f32 0.01, %v2818_v61  ;;  %vm1973_vm1 = vcmp.gt.f32.partialorder %v2822_v62, 0.0  ;;  %v1981_v6 = vmul.f32 0.01, %v2822_v62 }
 0x1d9   :  { %vm1972_vm2 = vcmp.gt.f32.partialorder %v2819_v1, 0.0  ;;  %v1980_v7 = vmul.f32 0.01, %v2819_v1  ;;  %vm1974_vm3 = vcmp.gt.f32.partialorder %v2823_v2, 0.0  ;;  %v1982_v8 = vmul.f32 0.01, %v2823_v2 }
 0x1da   :  { %v2820_v9 = vadd.f32 %v1794_v3, %v290_v55  ;;  %v2824_v10 = vadd.f32 %v1966_v4, %v298_v56  ;;  %v1796_v11 = vpop.f32.mrb[3].mxu0  ;;  %v1968_v12 = vpop.f32.mrb[3].mxu1  ;;  %v1987_v13 = vsel %vm1971_vm0, %v2818_v61, %v1979_v5  ;;  %v1989_v17 = vsel %vm1973_vm1, %v2822_v62, %v1981_v6 }
 0x1db   :  { %v2821_v19 = vadd.f32 %v1796_v11, %v294_v57  ;;  %v2825_v20 = vadd.f32 %v1968_v12, %v302_v58  ;;  %v1988_v23 = vsel %vm1972_vm2, %v2819_v1, %v1980_v7  ;;  %v1990_v24 = vsel %vm1974_vm3, %v2823_v2, %v1982_v8 }
 0x1dc   :  { %vm1975_vm4 = vcmp.gt.f32.partialorder %v2820_v9, 0.0  ;;  %v1983_v14 = vmul.f32 0.01, %v2820_v9  ;;  %vm1977_vm5 = vcmp.gt.f32.partialorder %v2824_v10, 0.0  ;;  %v1985_v15 = vmul.f32 0.01, %v2824_v10 }
 0x1dd   :  { %vm1976_vm6 = vcmp.gt.f32.partialorder %v2821_v19, 0.0  ;;  %v1984_v21 = vmul.f32 0.01, %v2821_v19  ;;  %vm1978_vm7 = vcmp.gt.f32.partialorder %v2825_v20, 0.0  ;;  %v1986_v22 = vmul.f32 0.01, %v2825_v20 }
 0x1de   :  { %v1991_v16 = vsel %vm1975_vm4, %v2820_v9, %v1983_v14  ;;  %v1993_v18 = vsel %vm1977_vm5, %v2824_v10, %v1985_v15 }
 0x1df   :  { %v1995_v25 = vpack.c.bf16 %v1991_v16, %v1987_v13  ;;  %v1997_v26 = vpack.c.bf16 %v1993_v18, %v1989_v17  ;;  %v1992_v27 = vsel %vm1976_vm6, %v2821_v19, %v1984_v21  ;;  %v1994_v28 = vsel %vm1978_vm7, %v2825_v20, %v1986_v22 }
 0x1e0   :  { %v1996_v29 = vpack.c.bf16 %v1992_v27, %v1988_v23  ;;  %v1998_v30 = vpack.c.bf16 %v1994_v28, %v1990_v24 }
 0x1e2   :  { %2294 = vmatprep.mubr.bf16.mxu0 %v1996_v29  ;;  %2335 = vmatprep.mubr.bf16.mxu1 %v1998_v30 }
 0x1e3   :  { %2295 = vmatmul.mubr.bf16.vlgmr.msra.gmra.mrb[4].mxu0 %v1995_v25  ;;  %2336 = vmatmul.mubr.bf16.vlgmr.msra.gmra.mrb[4].mxu1 %v1997_v26 }
 0x2b6   :  { %v2790_v31 = vpop.f32.mrb[4].mxu0  ;;  %v2812_v32 = vpop.f32.mrb[4].mxu1 }
 0x2b7   :  { %v2791_v34 = vpop.f32.mrb[5].mxu0  ;;  %v2813_v35 = vpop.f32.mrb[5].mxu1 }
 0x2b8   :  { %v2792_v36 = vadd.f32 %v2791_v34, %v2790_v31  ;;  %v2814_v37 = vadd.f32 %v2813_v35, %v2812_v32  ;;  %v2793_v38 = vpop.f32.mrb[6].mxu0  ;;  %v2815_v39 = vpop.f32.mrb[6].mxu1 }
 0x2b9   :  { %v2794_v40 = vpop.f32.mrb[7].mxu0  ;;  %v2816_v41 = vpop.f32.mrb[7].mxu1 }
 0x2ba   :  { %v2297_v42 = vadd.f32 %v2792_v36, %v2741_v33  ;;  %v2795_v43 = vadd.f32 %v2794_v40, %v2793_v38  ;;  %v2817_v44 = vadd.f32 %v2816_v41, %v2815_v39 }
 0x2bc   :  { %v2338_v45 = vadd.f32 %v2814_v37, %v2297_v42  ;;  %v2300_v46 = vadd.f32 %v2795_v43, %v2741_v33 }
 0x2be   :  { %v4254_v47 = vadd.f32 %v2817_v44, %v2300_v46  ;;  %v2399_v48 = vsel %vm2398_vm8, %v2338_v45, -inf  ;;  %v2368_v49 = vsel %vm2367_vm9, %v2338_v45, -inf  ;;  %v2430_v53 = vsel %vm2429_vm10, %v2338_v45, -inf }
 0x2bf   :  { %2400 = vmax.xlane.f32.xlu1 %v2399_v48  ;;  %2369 = vmax.xlane.f32.xlu0 %v2368_v49  ;;  %v2345_v55 = vsel %vm2344_vm11, %v2338_v45, -inf }
 0x2c0   :  { %v2402_v50 = vsel %vm2398_vm8, %v4254_v47, -inf  ;;  %v2371_v51 = vsel %vm2367_vm9, %v4254_v47, -inf  ;;  %v2433_v52 = vsel %vm2429_vm10, %v4254_v47, -inf  ;;  %v2348_v54 = vsel %vm2344_vm11, %v4254_v47, -inf }
 0x2c3   :  { %2403 = vmax.xlane.f32.xlu1 %v2402_v50  ;;  %2372 = vmax.xlane.f32.xlu0 %v2371_v51 }
 0x2c7   :  { %2434 = vmax.xlane.f32.xlu1 %v2433_v52  ;;  %2431 = vmax.xlane.f32.xlu0 %v2430_v53 }
 0x2cb   :  { %2349 = vmax.xlane.f32.xlu1 %v2348_v54  ;;  %2346 = vmax.xlane.f32.xlu0 %v2345_v55 }
 0x34c   :  { %v2401_v56 = vpop.xlane.xlu1 %2400  ;;  %v2370_v57 = vpop.xlane.xlu0 %2369 }
 0x34d   :  { %v2405_v58 = vsub.f32 %v2338_v45, %v2401_v56  ;;  %v2374_v59 = vsub.f32 %v2338_v45, %v2370_v57 }
 0x34f   :  { %v2407_v60 = vmul.f32 1.442695, %v2405_v58  ;;  %v2376_v61 = vmul.f32 1.442695, %v2374_v59 }
 0x350   :  { %v2404_v62 = vpop.xlane.xlu1 %2403  ;;  %v2373_v63 = vpop.xlane.xlu0 %2372 }
 0x351   :  { %3269 = vpow2.f32 %v2407_v60  ;;  %v2406_v0 = vsub.f32 %v4254_v47, %v2404_v62  ;;  %v2375_v1 = vsub.f32 %v4254_v47, %v2373_v63 }
 0x352   :  { %3271 = vpow2.f32 %v2376_v61 }
 0x353   :  { %v2378_v2 = vmul.f32 1.442695, %v2375_v1  ;;  %v2409_v5 = vmul.f32 1.442695, %v2406_v0 }
 0x354   :  { %v2435_v3 = vpop.xlane.xlu1 %2434  ;;  %v2432_v4 = vpop.xlane.xlu0 %2431 }
 0x355   :  { %v2436_v6 = vsub.f32 %v2338_v45, %v2432_v4  ;;  %3273 = vpow2.f32 %v2378_v2  ;;  %v2437_v7 = vsub.f32 %v4254_v47, %v2435_v3 }
 0x356   :  { %3275 = vpow2.f32 %v2409_v5 }
 0x357   :  { %v2438_v8 = vmul.f32 1.442695, %v2436_v6  ;;  %v2440_v9 = vmul.f32 1.442695, %v2437_v7 }
 0x358   :  { %v2347_v20 = vpop.xlane.xlu0 %2346  ;;  %v2350_v21 = vpop.xlane.xlu1 %2349 }
 0x359   :  { %3277 = vpow2.f32 %v2438_v8  ;;  %v2351_v14 = vsub.f32 %v2338_v45, %v2347_v20  ;;  %v2352_v22 = vsub.f32 %v4254_v47, %v2350_v21 }
 0x35a   :  { %3279 = vpow2.f32 %v2440_v9 }
 0x35b   :  { %v4265_v10 = vpop.eup %3269  ;;  %v2353_v15 = vmul.f32 1.442695, %v2351_v14  ;;  %v2355_v16 = vmul.f32 1.442695, %v2352_v22 }
 0x35c   :  { %v4267_v11 = vpop.eup %3271  ;;  %2413 = vrot.lane.b32.xlu1 %v4265_v10, %s3301_s4 }
 0x35d   :  { %2382 = vrot.lane.b32.xlu0 %v4267_v11, %s3302_s27  ;;  %3281 = vpow2.f32 %v2353_v15 }
 0x35e   :  { %3283 = vpow2.f32 %v2355_v16 }
 0x35f   :  { %v4271_v12 = vpop.eup %3273 }
 0x360   :  { %2384 = vrot.lane.b32.xlu1 %v4271_v12, %s3302_s27  ;;  %v4274_v13 = vpop.eup %3275 }
 0x363   :  { %v4276_v17 = vpop.eup %3277 }
 0x364   :  { %2415 = vrot.lane.b32.xlu1 %v4274_v13, %s3301_s4  ;;  %2444 = vrot.lane.b32.xlu0 %v4276_v17, %s3303_s28  ;;  %v4280_v19 = vpop.eup %3279 }
 0x367   :  { %v3282_v18 = vpop.eup %3281 }
 0x368   :  { %2446 = vrot.lane.b32.xlu1 %v4280_v19, %s3303_s28  ;;  %v2357_v23 = vsel %vm2344_vm11, %v3282_v18, 0.0  ;;  %v3284_v24 = vpop.eup %3283 }
 0x369   :  { %v2360_v25 = vsel %vm2344_vm11, %v3284_v24, 0.0 }
 0x383   :  { %2358 = vadd.xlane.f32.xlu0 %v2357_v23 }
 0x38c   :  { %2361 = vadd.xlane.f32.xlu1 %v2360_v25 }
 0x3ce   :  { %v2414_v26 = vpop.permute.xlu1 %2413 }
 0x3cf   :  { %v2383_v27 = vpop.permute.xlu0 %2382  ;;  %v2419_v30 = vsel %vm2344_vm11, %v2414_v26, 0.0 }
 0x3d0   :  { %v2388_v28 = vsel %vm2344_vm11, %v2383_v27, 0.0 }
 0x3d1   :  { %2389 = vadd.xlane.f32.xlu0 %v2388_v28 }
 0x3d2   :  { %v2385_v29 = vpop.permute.xlu1 %2384 }
 0x3d3   :  { %v2391_v33 = vsel %vm2344_vm11, %v2385_v29, 0.0 }
 0x3d5   :  { %2420 = vadd.xlane.f32.xlu0 %v2419_v30 }
 0x3d6   :  { %v2416_v31 = vpop.permute.xlu1 %2415  ;;  %v2445_v34 = vpop.permute.xlu0 %2444 }
 0x3d7   :  { %v2422_v32 = vsel %vm2344_vm11, %v2416_v31, 0.0  ;;  %v2450_v37 = vsel %vm2344_vm11, %v2445_v34, 0.0 }
 0x3d8   :  { %2423 = vadd.xlane.f32.xlu1 %v2422_v32 }
 0x3d9   :  { %2392 = vadd.xlane.f32.xlu0 %v2391_v33 }
 0x3da   :  { %v2447_v35 = vpop.permute.xlu1 %2446 }
 0x3db   :  { %v2453_v36 = vsel %vm2344_vm11, %v2447_v35, 0.0 }
 0x3dc   :  { %2454 = vadd.xlane.f32.xlu1 %v2453_v36 }
 0x3dd   :  { %2451 = vadd.xlane.f32.xlu0 %v2450_v37 }
 0x410   :  { %v2359_v38 = vpop.xlane.xlu0 %2358 }
 0x411   :  { %3285 = vrcp.f32 %v2359_v38 }
 0x419   :  { %v2362_v40 = vpop.xlane.xlu1 %2361 }
 0x41a   :  { %3287 = vrcp.f32 %v2362_v40 }
 0x41b   :  { %v3286_v46 = vpop.eup %3285 }
 0x41c   :  { %v2364_v58 = vmul.f32 %v3286_v46, %v3282_v18 }
 0x424   :  { %v3288_v47 = vpop.eup %3287 }
 0x425   :  { %v2366_v52 = vmul.f32 %v3288_v47, %v3284_v24 }
 0x45e   :  { %v2390_v39 = vpop.xlane.xlu0 %2389 }
 0x45f   :  { %3289 = vrcp.f32 %v2390_v39 }
 0x462   :  { %v2421_v41 = vpop.xlane.xlu0 %2420 }
 0x463   :  { %3291 = vrcp.f32 %v2421_v41 }
 0x465   :  { %v2424_v42 = vpop.xlane.xlu1 %2423 }
 0x466   :  { %v2393_v43 = vpop.xlane.xlu0 %2392  ;;  %3293 = vrcp.f32 %v2424_v42 }
 0x467   :  { %3295 = vrcp.f32 %v2393_v43 }
 0x469   :  { %v2455_v44 = vpop.xlane.xlu1 %2454  ;;  %v3290_v48 = vpop.eup %3289 }
 0x46a   :  { %v2452_v45 = vpop.xlane.xlu0 %2451  ;;  %3297 = vrcp.f32 %v2455_v44  ;;  %v2395_v53 = vmul.f32 %v3290_v48, %v4267_v11 }
 0x46b   :  { %3299 = vrcp.f32 %v2452_v45 }
 0x46c   :  { %v2460_v62 = vsel %vm2344_vm11, %v2364_v58, %v2395_v53 }
 0x46d   :  { %v3292_v49 = vpop.eup %3291 }
 0x46e   :  { %v2426_v56 = vmul.f32 %v3292_v49, %v4265_v10 }
 0x470   :  { %v3294_v50 = vpop.eup %3293  ;;  %v2463_v1 = vsel %vm2462_vm12, %v2460_v62, %v2426_v56 }
 0x471   :  { %v3296_v51 = vpop.eup %3295  ;;  %v2428_v54 = vmul.f32 %v3294_v50, %v4274_v13 }
 0x472   :  { %v2397_v55 = vmul.f32 %v3296_v51, %v4271_v12 }
 0x474   :  { %v3298_v57 = vpop.eup %3297  ;;  %v2461_v59 = vsel %vm2344_vm11, %v2366_v52, %v2397_v55 }
 0x475   :  { %v3300_v60 = vpop.eup %3299  ;;  %v2459_v61 = vmul.f32 %v3298_v57, %v4280_v19  ;;  %v2464_v63 = vsel %vm2462_vm12, %v2461_v59, %v2428_v54 }
 0x476   :  { %v2457_v0 = vmul.f32 %v3300_v60, %v4276_v17 }
 0x477   :  { %v2467_v2 = vsel %vm2465_vm13, %v2464_v63, %v2459_v61 }
 0x478   :  { %v2470_v3 = vsel %vm2468_vm14, %v2467_v2, 0.0  ;;  %v2466_v4 = vsel %vm2465_vm13, %v2463_v1, %v2457_v0 }
 0x479   :  { %2472 = vst [vmem:[%s4311_s5 + $0x8] sm:$0xff] %v2470_v3  ;;  %v2469_v5 = vsel %vm2468_vm14, %v2466_v4, 0.0 }
 0x47a   :  { %2471 = vst [vmem:[%s4311_s5] sm:$0xff] %v2469_v5 }

// kernel: network_forward.8
= control target key start
LH: loop header
LB: loop body
LE: loop exit
PB: predicated region body
PF: predicated region fallthrough
CT: control target
= control target key end

     0   :  { %s13306_s0 = inlined_call_operand.vmem [shape: bf16[16,6400], index: 0, kind: input, shape index: {}]   ;;  %s13307_s1 = inlined_call_operand.vmem [shape: bf16[6400,1024], index: 1, kind: input, shape index: {}]   ;;  %s13308_s2 = inlined_call_operand.vmem [shape: f32[1,1024], index: 2, kind: input, shape index: {}]   ;;  %s13309_s3 = inlined_call_operand.vmem [shape: bf16[16,1024], index: 3, kind: output, shape index: {}]  }
   0x1   :  { %13311 = sst [smem:[#allocation7_spill]] %s13306_s0 }
   0x2   :  { %13312 = sst [smem:[#allocation8_spill]] %s13307_s1 }
   0x3   :  { %s10643_s12 = smov 0   ;;  %s10645_s13 = smov 0  }
   0x4   :  { %s10647_s14 = smov 0   ;;  %s10649_s15 = smov 0  }
   0x5   :  { %s10651_s16 = smov 0   ;;  %s10653_s17 = smov 0  }
   0x6   :  { %s10655_s18 = smov 0   ;;  %s10657_s19 = smov 0  }
   0x7   :  { %s10659_s20 = smov 0   ;;  %s10661_s21 = smov 0  }
   0x8   :  { %s10663_s22 = smov 0  }
   0x9 LB: > { %s8250_s23 = sadd.s32 4294967295, %s10620_s22   ;;  %s22_s24 = sadd.s32 1, %s10612_s20  ;;  %s10620_s22 = sphi %s10663_s22, %s13_s22   ;;  %s10616_s21 = sphi %s10661_s21, %s13329_s21   ;;  %s10612_s20 = sphi %s10659_s20, %s13328_s20   ;;  %s10608_s19 = sphi %s10657_s19, %s13327_s19   ;;  %s10604_s18 = sphi %s10655_s18, %s13326_s18   ;;  %s10600_s17 = sphi %s10653_s17, %s13325_s17   ;;  %s10596_s16 = sphi %s10651_s16, %s13324_s16   ;;  %s10592_s15 = sphi %s10649_s15, %s13323_s15   ;;  %s10588_s14 = sphi %s10647_s14, %s13322_s14   ;;  %s10584_s13 = sphi %s10645_s13, %s13321_s13   ;;  %s10580_s12 = sphi %s10643_s12, %s13320_s12  }
   0xa   : > { %p23_p0 = scmp.ge.s32.totalorder %s22_s24, 2  ;;  %s25_s25 = sadd.s32 1, %s10616_s21 }
   0xb   : > { %s32_s26 = sadd.s32 1, %s10600_s17  ;;  %p39_p1 = scmp.ne.s32.totalorder %s10600_s17, %s10596_s16 }
   0xc   : > { %s13331_s24 = smov (%p23_p0, %s22_s24), 0  ;;  %s13333_s25 = smov (!%p23_p0, %s25_s25), %s10616_s21 }
   0xd   : > { %s29_s27 = ssub.s32 %s10612_s20, %s13331_s24  ;;  %p40_p2 = scmp.eq.s32.totalorder %s10620_s22, 0 }
   0xe   : > { %p27_p3 = scmp.ge.s32.totalorder %s13333_s25, 2  ;;  %p30_p4 = scmp.eq.s32.totalorder %s29_s27, 0 }
   0xf   : > { %p10710_p5 = por %p40_p2, %p39_p1  ;;  %s60_s29 = sadd.s32 1, %s10592_s15 }
  0x10   : > { %s13335_s25 = smov (%p27_p3, %s13333_s25), 0  ;;  %p67_p6 = scmp.ne.s32.totalorder %s10592_s15, %s10588_s14 }
  0x11   : > { %13314 = sst [smem:[#allocation6_spill]] %s13335_s25  ;;  %s56_s4 = ssub.s32 %s10616_s21, %s13335_s25 }
  0x12   : > { %s10718_s30 = scalar_select %p30_p4, %s10600_s17, %s32_s26  }
  0x13   : > { %s57_s5 = sor.u32 %s56_s4, %s29_s27  ;;  %p110_p7 = scmp.eq.s32.totalorder %s56_s4, 0 }
  0x14   : > { %p58_p8 = scmp.eq.s32.totalorder %s57_s5, 0  ;;  %p10724_p9 = por %p67_p6, %p40_p2 }
  0x15   : > { %s112_s7 = sadd.s32 1, %s10584_s13  ;;  %p122_p10 = scmp.ne.s32.totalorder %s10584_s13, %s10580_s12 }
  0x16   : > { %s10732_s8 = scalar_select %p58_p8, %s10592_s15, %s60_s29  }
  0x17   : > { %s10735_s9 = scalar_select %p110_p7, %s10584_s13, %s112_s7  }
  0x18   : > { %p123_p11 = scmp.eq.s32.totalorder %s8250_s23, 3  ;;  %p8253_p13 = scmp.ge.s32.totalorder %s10620_s22, 4 }
  0x1a   : > { %p10737_p12 = por %p123_p11, %p122_p10  ;;  %145 = sbr.rel (%p8253_p13) target bundleno = 465 (0x1d1), region = 16 }
  0x21   : > { %148 = sbr.rel (!%p10710_p5) target bundleno = 55 (0x37), region = 20  ;;  %s150_s11 = sand.u32 (%p10710_p5), 1, %s10600_s17  }
  0x22   : > { %s9101_s26 = smul.u32 (%p10710_p5), 100, %s10612_s20  ;;  %s13317_s0 = sld [smem:[#allocation7_spill]] (%p10710_p5) }
  0x23   : > { %s9204_s27 = smul.u32 (%p10710_p5), 200, %s150_s11 }
  0x25   : > { %s10754_s23 = scalar_lea.vmem (%p10710_p5), [#allocation3], %s9204_s27 }
  0x28   : > { %s10749_s5 = scalar_lea.vmem %s13317_s0, %s9101_s26 }
  0x29   : > { %v170_v0 = vld [vmem:[%s10749_s5] sm:$0xff]  ;;  %v172_v1 = vld [vmem:[%s10749_s5 + $0x8] sm:$0xff]  ;;  %v174_v2 = vld [vmem:[%s10749_s5 + $0x10] sm:$0xff] }
  0x2a   : > { %171 = vst [vmem:[%s10754_s23] sm:$0xff] %v170_v0  ;;  %173 = vst [vmem:[%s10754_s23 + $0x8] sm:$0xff] %v172_v1  ;;  %v176_v3 = vld [vmem:[%s10749_s5 + $0x18] sm:$0xff]  ;;  %v178_v4 = vld [vmem:[%s10749_s5 + $0x20] sm:$0xff] }
  0x2b   : > { %175 = vst [vmem:[%s10754_s23 + $0x10] sm:$0xff] %v174_v2  ;;  %v180_v5 = vld [vmem:[%s10749_s5 + $0x28] sm:$0xff]  ;;  %177 = vst [vmem:[%s10754_s23 + $0x18] sm:$0xff] %v176_v3  ;;  %v182_v6 = vld [vmem:[%s10749_s5 + $0x30] sm:$0xff] }
  0x2c   : > { %179 = vst [vmem:[%s10754_s23 + $0x20] sm:$0xff] %v178_v4  ;;  %181 = vst [vmem:[%s10754_s23 + $0x28] sm:$0xff] %v180_v5  ;;  %v184_v7 = vld [vmem:[%s10749_s5 + $0x38] sm:$0xff]  ;;  %v186_v8 = vld [vmem:[%s10749_s5 + $0x40] sm:$0xff] }
  0x2d   : > { %183 = vst [vmem:[%s10754_s23 + $0x30] sm:$0xff] %v182_v6  ;;  %185 = vst [vmem:[%s10754_s23 + $0x38] sm:$0xff] %v184_v7  ;;  %v188_v9 = vld [vmem:[%s10749_s5 + $0x48] sm:$0xff]  ;;  %v190_v10 = vld [vmem:[%s10749_s5 + $0x50] sm:$0xff] }
  0x2e   : > { %187 = vst [vmem:[%s10754_s23 + $0x40] sm:$0xff] %v186_v8  ;;  %v192_v11 = vld [vmem:[%s10749_s5 + $0x58] sm:$0xff]  ;;  %189 = vst [vmem:[%s10754_s23 + $0x48] sm:$0xff] %v188_v9  ;;  %v194_v12 = vld [vmem:[%s10749_s5 + $0xc8] sm:$0xff] }
  0x2f   : > { %191 = vst [vmem:[%s10754_s23 + $0x50] sm:$0xff] %v190_v10  ;;  %193 = vst [vmem:[%s10754_s23 + $0x58] sm:$0xff] %v192_v11  ;;  %v196_v13 = vld [vmem:[%s10749_s5 + $0xd0] sm:$0xff]  ;;  %v198_v14 = vld [vmem:[%s10749_s5 + $0xd8] sm:$0xff] }
  0x30   : > { %195 = vst [vmem:[%s10754_s23 + $0x64] sm:$0xff] %v194_v12  ;;  %197 = vst [vmem:[%s10754_s23 + $0x6c] sm:$0xff] %v196_v13  ;;  %v200_v15 = vld [vmem:[%s10749_s5 + $0xe0] sm:$0xff]  ;;  %v202_v16 = vld [vmem:[%s10749_s5 + $0xe8] sm:$0xff] }
  0x31   : > { %199 = vst [vmem:[%s10754_s23 + $0x74] sm:$0xff] %v198_v14  ;;  %v204_v17 = vld [vmem:[%s10749_s5 + $0xf0] sm:$0xff]  ;;  %201 = vst [vmem:[%s10754_s23 + $0x7c] sm:$0xff] %v200_v15  ;;  %v206_v18 = vld [vmem:[%s10749_s5 + $0xf8] sm:$0xff] }
  0x32   : > { %203 = vst [vmem:[%s10754_s23 + $0x84] sm:$0xff] %v202_v16  ;;  %205 = vst [vmem:[%s10754_s23 + $0x8c] sm:$0xff] %v204_v17  ;;  %v208_v19 = vld [vmem:[%s10749_s5 + $0x100] sm:$0xff]  ;;  %v210_v20 = vld [vmem:[%s10749_s5 + $0x108] sm:$0xff] }
  0x33   : > { %207 = vst [vmem:[%s10754_s23 + $0x94] sm:$0xff] %v206_v18  ;;  %209 = vst [vmem:[%s10754_s23 + $0x9c] sm:$0xff] %v208_v19  ;;  %v212_v21 = vld [vmem:[%s10749_s5 + $0x110] sm:$0xff]  ;;  %v214_v22 = vld [vmem:[%s10749_s5 + $0x118] sm:$0xff] }
  0x34   : > { %211 = vst [vmem:[%s10754_s23 + $0xa4] sm:$0xff] %v210_v20  ;;  %v216_v23 = vld [vmem:[%s10749_s5 + $0x120] sm:$0xff]  ;;  %213 = vst [vmem:[%s10754_s23 + $0xac] sm:$0xff] %v212_v21  ;;  %v8257_v25 = vld [vmem:[%s10749_s5 + $0x128] sm:$0xf] }
  0x35   : > { %215 = vst [vmem:[%s10754_s23 + $0xb4] sm:$0xff] %v214_v22  ;;  %217 = vst [vmem:[%s10754_s23 + $0xbc] sm:$0xff] %v216_v23  ;;  %v8255_v24 = vld [vmem:[%s10749_s5 + $0x60] sm:$0xf] }
  0x36   : > { %8256 = vst [vmem:[%s10754_s23 + $0x60] sm:$0xf] %v8255_v24  ;;  %8258 = vst [vmem:[%s10754_s23 + $0xc4] sm:$0xf] %v8257_v25 }
  0x37 PF: > { %234 = sbr.rel (!%p10724_p9) target bundleno = 465 (0x1d1), region = 46  ;;  %s236_s28 = sand.u32 (%p10724_p9), 1, %s10592_s15  }
  0x38   : > { %s9205_s7 = smul.u32 (%p10724_p9), 6400, %s236_s28  ;;  %s8259_s11 = sshll.u32 (%p10724_p9), %s10616_s21, 2 }
  0x39   : > { %s9102_s26 = smul.u32 (%p10724_p9), 3200, %s10612_s20  ;;  %s13318_s1 = sld [smem:[#allocation8_spill]] (%p10724_p9) }
  0x3a   : > { %s10818_s6 = scalar_lea.vmem (%p10724_p9), [#allocation4], %s9205_s7 }
  0x3b   : > { %s242_s27 = sadd.s32 (%p10724_p9), %s9102_s26, %s8259_s11 }
  0x3c   : > { %s8261_s29 = sshll.u32 (%p10724_p9), %s242_s27, 2 }
  0x3f   : > { %s10813_s25 = scalar_lea.vmem %s13318_s1, %s8261_s29 }
  0x40   : > { %v257_v26 = vld [vmem:[%s10813_s25] sm:$0xff]  ;;  %v259_v27 = vld [vmem:[%s10813_s25 + $0x8] sm:$0xff] }
  0x41   : > { %v261_v28 = vld [vmem:[%s10813_s25 + $0x20] sm:$0xff]  ;;  %258 = vst [vmem:[%s10818_s6] sm:$0xff] %v257_v26  ;;  %260 = vst [vmem:[%s10818_s6 + $0x8] sm:$0xff] %v259_v27  ;;  %v263_v29 = vld [vmem:[%s10813_s25 + $0x28] sm:$0xff] }
  0x42   : > { %262 = vst [vmem:[%s10818_s6 + $0x10] sm:$0xff] %v261_v28  ;;  %v265_v30 = vld [vmem:[%s10813_s25 + $0x40] sm:$0xff]  ;;  %v267_v31 = vld [vmem:[%s10813_s25 + $0x48] sm:$0xff]  ;;  %264 = vst [vmem:[%s10818_s6 + $0x18] sm:$0xff] %v263_v29 }
  0x43   : > { %266 = vst [vmem:[%s10818_s6 + $0x20] sm:$0xff] %v265_v30  ;;  %268 = vst [vmem:[%s10818_s6 + $0x28] sm:$0xff] %v267_v31  ;;  %v269_v32 = vld [vmem:[%s10813_s25 + $0x60] sm:$0xff]  ;;  %v271_v33 = vld [vmem:[%s10813_s25 + $0x68] sm:$0xff] }
  0x44   : > { %v273_v34 = vld [vmem:[%s10813_s25 + $0x80] sm:$0xff]  ;;  %270 = vst [vmem:[%s10818_s6 + $0x30] sm:$0xff] %v269_v32  ;;  %272 = vst [vmem:[%s10818_s6 + $0x38] sm:$0xff] %v271_v33  ;;  %v275_v35 = vld [vmem:[%s10813_s25 + $0x88] sm:$0xff] }
  0x45   : > { %274 = vst [vmem:[%s10818_s6 + $0x40] sm:$0xff] %v273_v34  ;;  %v277_v36 = vld [vmem:[%s10813_s25 + $0xa0] sm:$0xff]  ;;  %v279_v37 = vld [vmem:[%s10813_s25 + $0xa8] sm:$0xff]  ;;  %276 = vst [vmem:[%s10818_s6 + $0x48] sm:$0xff] %v275_v35 }
  0x46   : > { %278 = vst [vmem:[%s10818_s6 + $0x50] sm:$0xff] %v277_v36  ;;  %280 = vst [vmem:[%s10818_s6 + $0x58] sm:$0xff] %v279_v37  ;;  %v281_v38 = vld [vmem:[%s10813_s25 + $0xc0] sm:$0xff]  ;;  %v283_v39 = vld [vmem:[%s10813_s25 + $0xc8] sm:$0xff] }
  0x47   : > { %v285_v40 = vld [vmem:[%s10813_s25 + $0xe0] sm:$0xff]  ;;  %282 = vst [vmem:[%s10818_s6 + $0x60] sm:$0xff] %v281_v38  ;;  %284 = vst [vmem:[%s10818_s6 + $0x68] sm:$0xff] %v283_v39  ;;  %v287_v41 = vld [vmem:[%s10813_s25 + $0xe8] sm:$0xff] }
  0x48   : > { %286 = vst [vmem:[%s10818_s6 + $0x70] sm:$0xff] %v285_v40  ;;  %v289_v42 = vld [vmem:[%s10813_s25 + $0x100] sm:$0xff]  ;;  %v291_v43 = vld [vmem:[%s10813_s25 + $0x108] sm:$0xff]  ;;  %288 = vst [vmem:[%s10818_s6 + $0x78] sm:$0xff] %v287_v41 }
  0x49   : > { %290 = vst [vmem:[%s10818_s6 + $0x80] sm:$0xff] %v289_v42  ;;  %292 = vst [vmem:[%s10818_s6 + $0x88] sm:$0xff] %v291_v43  ;;  %v293_v44 = vld [vmem:[%s10813_s25 + $0x120] sm:$0xff]  ;;  %v295_v45 = vld [vmem:[%s10813_s25 + $0x128] sm:$0xff] }
  0x4a   : > { %v297_v46 = vld [vmem:[%s10813_s25 + $0x140] sm:$0xff]  ;;  %294 = vst [vmem:[%s10818_s6 + $0x90] sm:$0xff] %v293_v44  ;;  %296 = vst [vmem:[%s10818_s6 + $0x98] sm:$0xff] %v295_v45  ;;  %v299_v47 = vld [vmem:[%s10813_s25 + $0x148] sm:$0xff] }
  0x4b   : > { %298 = vst [vmem:[%s10818_s6 + $0xa0] sm:$0xff] %v297_v46  ;;  %v301_v48 = vld [vmem:[%s10813_s25 + $0x160] sm:$0xff]  ;;  %v303_v49 = vld [vmem:[%s10813_s25 + $0x168] sm:$0xff]  ;;  %300 = vst [vmem:[%s10818_s6 + $0xa8] sm:$0xff] %v299_v47 }
  0x4c   : > { %302 = vst [vmem:[%s10818_s6 + $0xb0] sm:$0xff] %v301_v48  ;;  %304 = vst [vmem:[%s10818_s6 + $0xb8] sm:$0xff] %v303_v49  ;;  %v305_v50 = vld [vmem:[%s10813_s25 + $0x180] sm:$0xff]  ;;  %v307_v51 = vld [vmem:[%s10813_s25 + $0x188] sm:$0xff] }
  0x4d   : > { %v309_v52 = vld [vmem:[%s10813_s25 + $0x1a0] sm:$0xff]  ;;  %306 = vst [vmem:[%s10818_s6 + $0xc0] sm:$0xff] %v305_v50  ;;  %308 = vst [vmem:[%s10818_s6 + $0xc8] sm:$0xff] %v307_v51  ;;  %v311_v53 = vld [vmem:[%s10813_s25 + $0x1a8] sm:$0xff] }
  0x4e   : > { %310 = vst [vmem:[%s10818_s6 + $0xd0] sm:$0xff] %v309_v52  ;;  %v313_v54 = vld [vmem:[%s10813_s25 + $0x1c0] sm:$0xff]  ;;  %v315_v55 = vld [vmem:[%s10813_s25 + $0x1c8] sm:$0xff]  ;;  %312 = vst [vmem:[%s10818_s6 + $0xd8] sm:$0xff] %v311_v53 }
  0x4f   : > { %314 = vst [vmem:[%s10818_s6 + $0xe0] sm:$0xff] %v313_v54  ;;  %316 = vst [vmem:[%s10818_s6 + $0xe8] sm:$0xff] %v315_v55  ;;  %v317_v56 = vld [vmem:[%s10813_s25 + $0x1e0] sm:$0xff]  ;;  %v319_v57 = vld [vmem:[%s10813_s25 + $0x1e8] sm:$0xff] }
  0x50   : > { %v321_v58 = vld [vmem:[%s10813_s25 + $0x200] sm:$0xff]  ;;  %318 = vst [vmem:[%s10818_s6 + $0xf0] sm:$0xff] %v317_v56  ;;  %320 = vst [vmem:[%s10818_s6 + $0xf8] sm:$0xff] %v319_v57  ;;  %v323_v59 = vld [vmem:[%s10813_s25 + $0x208] sm:$0xff] }
  0x51   : > { %322 = vst [vmem:[%s10818_s6 + $0x100] sm:$0xff] %v321_v58  ;;  %v325_v60 = vld [vmem:[%s10813_s25 + $0x220] sm:$0xff]  ;;  %v327_v61 = vld [vmem:[%s10813_s25 + $0x228] sm:$0xff]  ;;  %324 = vst [vmem:[%s10818_s6 + $0x108] sm:$0xff] %v323_v59 }
  0x52   : > { %326 = vst [vmem:[%s10818_s6 + $0x110] sm:$0xff] %v325_v60  ;;  %328 = vst [vmem:[%s10818_s6 + $0x118] sm:$0xff] %v327_v61  ;;  %v329_v62 = vld [vmem:[%s10813_s25 + $0x240] sm:$0xff]  ;;  %v331_v63 = vld [vmem:[%s10813_s25 + $0x248] sm:$0xff] }
  0x53   : > { %v333_v0 = vld [vmem:[%s10813_s25 + $0x260] sm:$0xff]  ;;  %330 = vst [vmem:[%s10818_s6 + $0x120] sm:$0xff] %v329_v62  ;;  %332 = vst [vmem:[%s10818_s6 + $0x128] sm:$0xff] %v331_v63  ;;  %v335_v1 = vld [vmem:[%s10813_s25 + $0x268] sm:$0xff] }
  0x54   : > { %334 = vst [vmem:[%s10818_s6 + $0x130] sm:$0xff] %v333_v0  ;;  %v337_v2 = vld [vmem:[%s10813_s25 + $0x280] sm:$0xff]  ;;  %v339_v3 = vld [vmem:[%s10813_s25 + $0x288] sm:$0xff]  ;;  %336 = vst [vmem:[%s10818_s6 + $0x138] sm:$0xff] %v335_v1 }
  0x55   : > { %338 = vst [vmem:[%s10818_s6 + $0x140] sm:$0xff] %v337_v2  ;;  %340 = vst [vmem:[%s10818_s6 + $0x148] sm:$0xff] %v339_v3  ;;  %v341_v4 = vld [vmem:[%s10813_s25 + $0x2a0] sm:$0xff]  ;;  %v343_v5 = vld [vmem:[%s10813_s25 + $0x2a8] sm:$0xff] }
  0x56   : > { %v345_v6 = vld [vmem:[%s10813_s25 + $0x2c0] sm:$0xff]  ;;  %342 = vst [vmem:[%s10818_s6 + $0x150] sm:$0xff] %v341_v4  ;;  %344 = vst [vmem:[%s10818_s6 + $0x158] sm:$0xff] %v343_v5  ;;  %v347_v7 = vld [vmem:[%s10813_s25 + $0x2c8] sm:$0xff] }
  0x57   : > { %346 = vst [vmem:[%s10818_s6 + $0x160] sm:$0xff] %v345_v6  ;;  %v349_v8 = vld [vmem:[%s10813_s25 + $0x2e0] sm:$0xff]  ;;  %v351_v9 = vld [vmem:[%s10813_s25 + $0x2e8] sm:$0xff]  ;;  %348 = vst [vmem:[%s10818_s6 + $0x168] sm:$0xff] %v347_v7 }
  0x58   : > { %350 = vst [vmem:[%s10818_s6 + $0x170] sm:$0xff] %v349_v8  ;;  %352 = vst [vmem:[%s10818_s6 + $0x178] sm:$0xff] %v351_v9  ;;  %v353_v10 = vld [vmem:[%s10813_s25 + $0x300] sm:$0xff]  ;;  %v355_v11 = vld [vmem:[%s10813_s25 + $0x308] sm:$0xff] }
  0x59   : > { %v357_v12 = vld [vmem:[%s10813_s25 + $0x320] sm:$0xff]  ;;  %354 = vst [vmem:[%s10818_s6 + $0x180] sm:$0xff] %v353_v10  ;;  %356 = vst [vmem:[%s10818_s6 + $0x188] sm:$0xff] %v355_v11  ;;  %v359_v13 = vld [vmem:[%s10813_s25 + $0x328] sm:$0xff] }
  0x5a   : > { %358 = vst [vmem:[%s10818_s6 + $0x190] sm:$0xff] %v357_v12  ;;  %v361_v14 = vld [vmem:[%s10813_s25 + $0x340] sm:$0xff]  ;;  %v363_v15 = vld [vmem:[%s10813_s25 + $0x348] sm:$0xff]  ;;  %360 = vst [vmem:[%s10818_s6 + $0x198] sm:$0xff] %v359_v13 }
  0x5b   : > { %362 = vst [vmem:[%s10818_s6 + $0x1a0] sm:$0xff] %v361_v14  ;;  %364 = vst [vmem:[%s10818_s6 + $0x1a8] sm:$0xff] %v363_v15  ;;  %v365_v16 = vld [vmem:[%s10813_s25 + $0x360] sm:$0xff]  ;;  %v367_v17 = vld [vmem:[%s10813_s25 + $0x368] sm:$0xff] }
  0x5c   : > { %v369_v18 = vld [vmem:[%s10813_s25 + $0x380] sm:$0xff]  ;;  %366 = vst [vmem:[%s10818_s6 + $0x1b0] sm:$0xff] %v365_v16  ;;  %368 = vst [vmem:[%s10818_s6 + $0x1b8] sm:$0xff] %v367_v17  ;;  %v371_v19 = vld [vmem:[%s10813_s25 + $0x388] sm:$0xff] }
  0x5d   : > { %370 = vst [vmem:[%s10818_s6 + $0x1c0] sm:$0xff] %v369_v18  ;;  %v373_v20 = vld [vmem:[%s10813_s25 + $0x3a0] sm:$0xff]  ;;  %v375_v21 = vld [vmem:[%s10813_s25 + $0x3a8] sm:$0xff]  ;;  %372 = vst [vmem:[%s10818_s6 + $0x1c8] sm:$0xff] %v371_v19 }
  0x5e   : > { %374 = vst [vmem:[%s10818_s6 + $0x1d0] sm:$0xff] %v373_v20  ;;  %376 = vst [vmem:[%s10818_s6 + $0x1d8] sm:$0xff] %v375_v21  ;;  %v377_v22 = vld [vmem:[%s10813_s25 + $0x3c0] sm:$0xff]  ;;  %v379_v23 = vld [vmem:[%s10813_s25 + $0x3c8] sm:$0xff] }
  0x5f   : > { %v381_v24 = vld [vmem:[%s10813_s25 + $0x3e0] sm:$0xff]  ;;  %378 = vst [vmem:[%s10818_s6 + $0x1e0] sm:$0xff] %v377_v22  ;;  %380 = vst [vmem:[%s10818_s6 + $0x1e8] sm:$0xff] %v379_v23  ;;  %v383_v25 = vld [vmem:[%s10813_s25 + $0x3e8] sm:$0xff] }
  0x60   : > { %382 = vst [vmem:[%s10818_s6 + $0x1f0] sm:$0xff] %v381_v24  ;;  %v385_v26 = vld [vmem:[%s10813_s25 + $0x400] sm:$0xff]  ;;  %v387_v27 = vld [vmem:[%s10813_s25 + $0x408] sm:$0xff]  ;;  %384 = vst [vmem:[%s10818_s6 + $0x1f8] sm:$0xff] %v383_v25 }
  0x61   : > { %386 = vst [vmem:[%s10818_s6 + $0x200] sm:$0xff] %v385_v26  ;;  %388 = vst [vmem:[%s10818_s6 + $0x208] sm:$0xff] %v387_v27  ;;  %v389_v28 = vld [vmem:[%s10813_s25 + $0x420] sm:$0xff]  ;;  %v391_v29 = vld [vmem:[%s10813_s25 + $0x428] sm:$0xff] }
  0x62   : > { %v393_v30 = vld [vmem:[%s10813_s25 + $0x440] sm:$0xff]  ;;  %390 = vst [vmem:[%s10818_s6 + $0x210] sm:$0xff] %v389_v28  ;;  %392 = vst [vmem:[%s10818_s6 + $0x218] sm:$0xff] %v391_v29  ;;  %v395_v31 = vld [vmem:[%s10813_s25 + $0x448] sm:$0xff] }
  0x63   : > { %394 = vst [vmem:[%s10818_s6 + $0x220] sm:$0xff] %v393_v30  ;;  %v397_v32 = vld [vmem:[%s10813_s25 + $0x460] sm:$0xff]  ;;  %v399_v33 = vld [vmem:[%s10813_s25 + $0x468] sm:$0xff]  ;;  %396 = vst [vmem:[%s10818_s6 + $0x228] sm:$0xff] %v395_v31 }
  0x64   : > { %398 = vst [vmem:[%s10818_s6 + $0x230] sm:$0xff] %v397_v32  ;;  %400 = vst [vmem:[%s10818_s6 + $0x238] sm:$0xff] %v399_v33  ;;  %v401_v34 = vld [vmem:[%s10813_s25 + $0x480] sm:$0xff]  ;;  %v403_v35 = vld [vmem:[%s10813_s25 + $0x488] sm:$0xff] }
  0x65   : > { %v405_v36 = vld [vmem:[%s10813_s25 + $0x4a0] sm:$0xff]  ;;  %402 = vst [vmem:[%s10818_s6 + $0x240] sm:$0xff] %v401_v34  ;;  %404 = vst [vmem:[%s10818_s6 + $0x248] sm:$0xff] %v403_v35  ;;  %v407_v37 = vld [vmem:[%s10813_s25 + $0x4a8] sm:$0xff] }
  0x66   : > { %406 = vst [vmem:[%s10818_s6 + $0x250] sm:$0xff] %v405_v36  ;;  %v409_v38 = vld [vmem:[%s10813_s25 + $0x4c0] sm:$0xff]  ;;  %v411_v39 = vld [vmem:[%s10813_s25 + $0x4c8] sm:$0xff]  ;;  %408 = vst [vmem:[%s10818_s6 + $0x258] sm:$0xff] %v407_v37 }
  0x67   : > { %410 = vst [vmem:[%s10818_s6 + $0x260] sm:$0xff] %v409_v38  ;;  %412 = vst [vmem:[%s10818_s6 + $0x268] sm:$0xff] %v411_v39  ;;  %v413_v40 = vld [vmem:[%s10813_s25 + $0x4e0] sm:$0xff]  ;;  %v415_v41 = vld [vmem:[%s10813_s25 + $0x4e8] sm:$0xff] }
  0x68   : > { %v417_v42 = vld [vmem:[%s10813_s25 + $0x500] sm:$0xff]  ;;  %414 = vst [vmem:[%s10818_s6 + $0x270] sm:$0xff] %v413_v40  ;;  %416 = vst [vmem:[%s10818_s6 + $0x278] sm:$0xff] %v415_v41  ;;  %v419_v43 = vld [vmem:[%s10813_s25 + $0x508] sm:$0xff] }
  0x69   : > { %418 = vst [vmem:[%s10818_s6 + $0x280] sm:$0xff] %v417_v42  ;;  %v421_v44 = vld [vmem:[%s10813_s25 + $0x520] sm:$0xff]  ;;  %v423_v45 = vld [vmem:[%s10813_s25 + $0x528] sm:$0xff]  ;;  %420 = vst [vmem:[%s10818_s6 + $0x288] sm:$0xff] %v419_v43 }
  0x6a   : > { %422 = vst [vmem:[%s10818_s6 + $0x290] sm:$0xff] %v421_v44  ;;  %424 = vst [vmem:[%s10818_s6 + $0x298] sm:$0xff] %v423_v45  ;;  %v425_v46 = vld [vmem:[%s10813_s25 + $0x540] sm:$0xff]  ;;  %v427_v47 = vld [vmem:[%s10813_s25 + $0x548] sm:$0xff] }
  0x6b   : > { %v429_v48 = vld [vmem:[%s10813_s25 + $0x560] sm:$0xff]  ;;  %426 = vst [vmem:[%s10818_s6 + $0x2a0] sm:$0xff] %v425_v46  ;;  %428 = vst [vmem:[%s10818_s6 + $0x2a8] sm:$0xff] %v427_v47  ;;  %v431_v49 = vld [vmem:[%s10813_s25 + $0x568] sm:$0xff] }
  0x6c   : > { %430 = vst [vmem:[%s10818_s6 + $0x2b0] sm:$0xff] %v429_v48  ;;  %v433_v50 = vld [vmem:[%s10813_s25 + $0x580] sm:$0xff]  ;;  %v435_v51 = vld [vmem:[%s10813_s25 + $0x588] sm:$0xff]  ;;  %432 = vst [vmem:[%s10818_s6 + $0x2b8] sm:$0xff] %v431_v49 }
  0x6d   : > { %434 = vst [vmem:[%s10818_s6 + $0x2c0] sm:$0xff] %v433_v50  ;;  %436 = vst [vmem:[%s10818_s6 + $0x2c8] sm:$0xff] %v435_v51  ;;  %v437_v52 = vld [vmem:[%s10813_s25 + $0x5a0] sm:$0xff]  ;;  %v439_v53 = vld [vmem:[%s10813_s25 + $0x5a8] sm:$0xff] }
  0x6e   : > { %v441_v54 = vld [vmem:[%s10813_s25 + $0x5c0] sm:$0xff]  ;;  %438 = vst [vmem:[%s10818_s6 + $0x2d0] sm:$0xff] %v437_v52  ;;  %440 = vst [vmem:[%s10818_s6 + $0x2d8] sm:$0xff] %v439_v53  ;;  %v443_v55 = vld [vmem:[%s10813_s25 + $0x5c8] sm:$0xff] }
  0x6f   : > { %442 = vst [vmem:[%s10818_s6 + $0x2e0] sm:$0xff] %v441_v54  ;;  %v445_v56 = vld [vmem:[%s10813_s25 + $0x5e0] sm:$0xff]  ;;  %v447_v57 = vld [vmem:[%s10813_s25 + $0x5e8] sm:$0xff]  ;;  %444 = vst [vmem:[%s10818_s6 + $0x2e8] sm:$0xff] %v443_v55 }
  0x70   : > { %446 = vst [vmem:[%s10818_s6 + $0x2f0] sm:$0xff] %v445_v56  ;;  %448 = vst [vmem:[%s10818_s6 + $0x2f8] sm:$0xff] %v447_v57  ;;  %v449_v58 = vld [vmem:[%s10813_s25 + $0x600] sm:$0xff]  ;;  %v451_v59 = vld [vmem:[%s10813_s25 + $0x608] sm:$0xff] }
  0x71   : > { %v453_v60 = vld [vmem:[%s10813_s25 + $0x620] sm:$0xff]  ;;  %450 = vst [vmem:[%s10818_s6 + $0x300] sm:$0xff] %v449_v58  ;;  %452 = vst [vmem:[%s10818_s6 + $0x308] sm:$0xff] %v451_v59  ;;  %v455_v61 = vld [vmem:[%s10813_s25 + $0x628] sm:$0xff] }
  0x72   : > { %454 = vst [vmem:[%s10818_s6 + $0x310] sm:$0xff] %v453_v60  ;;  %v457_v62 = vld [vmem:[%s10813_s25 + $0x640] sm:$0xff]  ;;  %v459_v63 = vld [vmem:[%s10813_s25 + $0x648] sm:$0xff]  ;;  %456 = vst [vmem:[%s10818_s6 + $0x318] sm:$0xff] %v455_v61 }
  0x73   : > { %458 = vst [vmem:[%s10818_s6 + $0x320] sm:$0xff] %v457_v62  ;;  %460 = vst [vmem:[%s10818_s6 + $0x328] sm:$0xff] %v459_v63  ;;  %v461_v0 = vld [vmem:[%s10813_s25 + $0x660] sm:$0xff]  ;;  %v463_v1 = vld [vmem:[%s10813_s25 + $0x668] sm:$0xff] }
  0x74   : > { %v465_v2 = vld [vmem:[%s10813_s25 + $0x680] sm:$0xff]  ;;  %462 = vst [vmem:[%s10818_s6 + $0x330] sm:$0xff] %v461_v0  ;;  %464 = vst [vmem:[%s10818_s6 + $0x338] sm:$0xff] %v463_v1  ;;  %v467_v3 = vld [vmem:[%s10813_s25 + $0x688] sm:$0xff] }
  0x75   : > { %466 = vst [vmem:[%s10818_s6 + $0x340] sm:$0xff] %v465_v2  ;;  %v469_v4 = vld [vmem:[%s10813_s25 + $0x6a0] sm:$0xff]  ;;  %v471_v5 = vld [vmem:[%s10813_s25 + $0x6a8] sm:$0xff]  ;;  %468 = vst [vmem:[%s10818_s6 + $0x348] sm:$0xff] %v467_v3 }
  0x76   : > { %470 = vst [vmem:[%s10818_s6 + $0x350] sm:$0xff] %v469_v4  ;;  %472 = vst [vmem:[%s10818_s6 + $0x358] sm:$0xff] %v471_v5  ;;  %v473_v6 = vld [vmem:[%s10813_s25 + $0x6c0] sm:$0xff]  ;;  %v475_v7 = vld [vmem:[%s10813_s25 + $0x6c8] sm:$0xff] }
  0x77   : > { %v477_v8 = vld [vmem:[%s10813_s25 + $0x6e0] sm:$0xff]  ;;  %474 = vst [vmem:[%s10818_s6 + $0x360] sm:$0xff] %v473_v6  ;;  %476 = vst [vmem:[%s10818_s6 + $0x368] sm:$0xff] %v475_v7  ;;  %v479_v9 = vld [vmem:[%s10813_s25 + $0x6e8] sm:$0xff] }
  0x78   : > { %478 = vst [vmem:[%s10818_s6 + $0x370] sm:$0xff] %v477_v8  ;;  %v481_v10 = vld [vmem:[%s10813_s25 + $0x700] sm:$0xff]  ;;  %v483_v11 = vld [vmem:[%s10813_s25 + $0x708] sm:$0xff]  ;;  %480 = vst [vmem:[%s10818_s6 + $0x378] sm:$0xff] %v479_v9 }
  0x79   : > { %482 = vst [vmem:[%s10818_s6 + $0x380] sm:$0xff] %v481_v10  ;;  %484 = vst [vmem:[%s10818_s6 + $0x388] sm:$0xff] %v483_v11  ;;  %v485_v12 = vld [vmem:[%s10813_s25 + $0x720] sm:$0xff]  ;;  %v487_v13 = vld [vmem:[%s10813_s25 + $0x728] sm:$0xff] }
  0x7a   : > { %v489_v14 = vld [vmem:[%s10813_s25 + $0x740] sm:$0xff]  ;;  %486 = vst [vmem:[%s10818_s6 + $0x390] sm:$0xff] %v485_v12  ;;  %488 = vst [vmem:[%s10818_s6 + $0x398] sm:$0xff] %v487_v13  ;;  %v491_v15 = vld [vmem:[%s10813_s25 + $0x748] sm:$0xff] }
  0x7b   : > { %490 = vst [vmem:[%s10818_s6 + $0x3a0] sm:$0xff] %v489_v14  ;;  %v493_v16 = vld [vmem:[%s10813_s25 + $0x760] sm:$0xff]  ;;  %v495_v17 = vld [vmem:[%s10813_s25 + $0x768] sm:$0xff]  ;;  %492 = vst [vmem:[%s10818_s6 + $0x3a8] sm:$0xff] %v491_v15 }
  0x7c   : > { %494 = vst [vmem:[%s10818_s6 + $0x3b0] sm:$0xff] %v493_v16  ;;  %496 = vst [vmem:[%s10818_s6 + $0x3b8] sm:$0xff] %v495_v17  ;;  %v497_v18 = vld [vmem:[%s10813_s25 + $0x780] sm:$0xff]  ;;  %v499_v19 = vld [vmem:[%s10813_s25 + $0x788] sm:$0xff] }
  0x7d   : > { %v501_v20 = vld [vmem:[%s10813_s25 + $0x7a0] sm:$0xff]  ;;  %498 = vst [vmem:[%s10818_s6 + $0x3c0] sm:$0xff] %v497_v18  ;;  %500 = vst [vmem:[%s10818_s6 + $0x3c8] sm:$0xff] %v499_v19  ;;  %v503_v21 = vld [vmem:[%s10813_s25 + $0x7a8] sm:$0xff] }
  0x7e   : > { %502 = vst [vmem:[%s10818_s6 + $0x3d0] sm:$0xff] %v501_v20  ;;  %v505_v22 = vld [vmem:[%s10813_s25 + $0x7c0] sm:$0xff]  ;;  %v507_v23 = vld [vmem:[%s10813_s25 + $0x7c8] sm:$0xff]  ;;  %504 = vst [vmem:[%s10818_s6 + $0x3d8] sm:$0xff] %v503_v21 }
  0x7f   : > { %506 = vst [vmem:[%s10818_s6 + $0x3e0] sm:$0xff] %v505_v22  ;;  %508 = vst [vmem:[%s10818_s6 + $0x3e8] sm:$0xff] %v507_v23  ;;  %v509_v24 = vld [vmem:[%s10813_s25 + $0x7e0] sm:$0xff]  ;;  %v511_v25 = vld [vmem:[%s10813_s25 + $0x7e8] sm:$0xff] }
  0x80   : > { %v513_v26 = vld [vmem:[%s10813_s25 + $0x800] sm:$0xff]  ;;  %510 = vst [vmem:[%s10818_s6 + $0x3f0] sm:$0xff] %v509_v24  ;;  %512 = vst [vmem:[%s10818_s6 + $0x3f8] sm:$0xff] %v511_v25  ;;  %v515_v27 = vld [vmem:[%s10813_s25 + $0x808] sm:$0xff] }
  0x81   : > { %514 = vst [vmem:[%s10818_s6 + $0x400] sm:$0xff] %v513_v26  ;;  %v517_v28 = vld [vmem:[%s10813_s25 + $0x820] sm:$0xff]  ;;  %v519_v29 = vld [vmem:[%s10813_s25 + $0x828] sm:$0xff]  ;;  %516 = vst [vmem:[%s10818_s6 + $0x408] sm:$0xff] %v515_v27 }
  0x82   : > { %518 = vst [vmem:[%s10818_s6 + $0x410] sm:$0xff] %v517_v28  ;;  %520 = vst [vmem:[%s10818_s6 + $0x418] sm:$0xff] %v519_v29  ;;  %v521_v30 = vld [vmem:[%s10813_s25 + $0x840] sm:$0xff]  ;;  %v523_v31 = vld [vmem:[%s10813_s25 + $0x848] sm:$0xff] }
  0x83   : > { %v525_v32 = vld [vmem:[%s10813_s25 + $0x860] sm:$0xff]  ;;  %522 = vst [vmem:[%s10818_s6 + $0x420] sm:$0xff] %v521_v30  ;;  %524 = vst [vmem:[%s10818_s6 + $0x428] sm:$0xff] %v523_v31  ;;  %v527_v33 = vld [vmem:[%s10813_s25 + $0x868] sm:$0xff] }
  0x84   : > { %526 = vst [vmem:[%s10818_s6 + $0x430] sm:$0xff] %v525_v32  ;;  %v529_v34 = vld [vmem:[%s10813_s25 + $0x880] sm:$0xff]  ;;  %v531_v35 = vld [vmem:[%s10813_s25 + $0x888] sm:$0xff]  ;;  %528 = vst [vmem:[%s10818_s6 + $0x438] sm:$0xff] %v527_v33 }
  0x85   : > { %530 = vst [vmem:[%s10818_s6 + $0x440] sm:$0xff] %v529_v34  ;;  %532 = vst [vmem:[%s10818_s6 + $0x448] sm:$0xff] %v531_v35  ;;  %v533_v36 = vld [vmem:[%s10813_s25 + $0x8a0] sm:$0xff]  ;;  %v535_v37 = vld [vmem:[%s10813_s25 + $0x8a8] sm:$0xff] }
  0x86   : > { %v537_v38 = vld [vmem:[%s10813_s25 + $0x8c0] sm:$0xff]  ;;  %534 = vst [vmem:[%s10818_s6 + $0x450] sm:$0xff] %v533_v36  ;;  %536 = vst [vmem:[%s10818_s6 + $0x458] sm:$0xff] %v535_v37  ;;  %v539_v39 = vld [vmem:[%s10813_s25 + $0x8c8] sm:$0xff] }
  0x87   : > { %538 = vst [vmem:[%s10818_s6 + $0x460] sm:$0xff] %v537_v38  ;;  %v541_v40 = vld [vmem:[%s10813_s25 + $0x8e0] sm:$0xff]  ;;  %v543_v41 = vld [vmem:[%s10813_s25 + $0x8e8] sm:$0xff]  ;;  %540 = vst [vmem:[%s10818_s6 + $0x468] sm:$0xff] %v539_v39 }
  0x88   : > { %542 = vst [vmem:[%s10818_s6 + $0x470] sm:$0xff] %v541_v40  ;;  %544 = vst [vmem:[%s10818_s6 + $0x478] sm:$0xff] %v543_v41  ;;  %v545_v42 = vld [vmem:[%s10813_s25 + $0x900] sm:$0xff]  ;;  %v547_v43 = vld [vmem:[%s10813_s25 + $0x908] sm:$0xff] }
  0x89   : > { %v549_v44 = vld [vmem:[%s10813_s25 + $0x920] sm:$0xff]  ;;  %546 = vst [vmem:[%s10818_s6 + $0x480] sm:$0xff] %v545_v42  ;;  %548 = vst [vmem:[%s10818_s6 + $0x488] sm:$0xff] %v547_v43  ;;  %v551_v45 = vld [vmem:[%s10813_s25 + $0x928] sm:$0xff] }
  0x8a   : > { %550 = vst [vmem:[%s10818_s6 + $0x490] sm:$0xff] %v549_v44  ;;  %v553_v46 = vld [vmem:[%s10813_s25 + $0x940] sm:$0xff]  ;;  %v555_v47 = vld [vmem:[%s10813_s25 + $0x948] sm:$0xff]  ;;  %552 = vst [vmem:[%s10818_s6 + $0x498] sm:$0xff] %v551_v45 }
  0x8b   : > { %554 = vst [vmem:[%s10818_s6 + $0x4a0] sm:$0xff] %v553_v46  ;;  %556 = vst [vmem:[%s10818_s6 + $0x4a8] sm:$0xff] %v555_v47  ;;  %v557_v48 = vld [vmem:[%s10813_s25 + $0x960] sm:$0xff]  ;;  %v559_v49 = vld [vmem:[%s10813_s25 + $0x968] sm:$0xff] }
  0x8c   : > { %v561_v50 = vld [vmem:[%s10813_s25 + $0x980] sm:$0xff]  ;;  %558 = vst [vmem:[%s10818_s6 + $0x4b0] sm:$0xff] %v557_v48  ;;  %560 = vst [vmem:[%s10818_s6 + $0x4b8] sm:$0xff] %v559_v49  ;;  %v563_v51 = vld [vmem:[%s10813_s25 + $0x988] sm:$0xff] }
  0x8d   : > { %562 = vst [vmem:[%s10818_s6 + $0x4c0] sm:$0xff] %v561_v50  ;;  %v565_v52 = vld [vmem:[%s10813_s25 + $0x9a0] sm:$0xff]  ;;  %v567_v53 = vld [vmem:[%s10813_s25 + $0x9a8] sm:$0xff]  ;;  %564 = vst [vmem:[%s10818_s6 + $0x4c8] sm:$0xff] %v563_v51 }
  0x8e   : > { %566 = vst [vmem:[%s10818_s6 + $0x4d0] sm:$0xff] %v565_v52  ;;  %568 = vst [vmem:[%s10818_s6 + $0x4d8] sm:$0xff] %v567_v53  ;;  %v569_v54 = vld [vmem:[%s10813_s25 + $0x9c0] sm:$0xff]  ;;  %v571_v55 = vld [vmem:[%s10813_s25 + $0x9c8] sm:$0xff] }
  0x8f   : > { %v573_v56 = vld [vmem:[%s10813_s25 + $0x9e0] sm:$0xff]  ;;  %570 = vst [vmem:[%s10818_s6 + $0x4e0] sm:$0xff] %v569_v54  ;;  %572 = vst [vmem:[%s10818_s6 + $0x4e8] sm:$0xff] %v571_v55  ;;  %v575_v57 = vld [vmem:[%s10813_s25 + $0x9e8] sm:$0xff] }
  0x90   : > { %574 = vst [vmem:[%s10818_s6 + $0x4f0] sm:$0xff] %v573_v56  ;;  %v577_v58 = vld [vmem:[%s10813_s25 + $0xa00] sm:$0xff]  ;;  %v579_v59 = vld [vmem:[%s10813_s25 + $0xa08] sm:$0xff]  ;;  %576 = vst [vmem:[%s10818_s6 + $0x4f8] sm:$0xff] %v575_v57 }
  0x91   : > { %578 = vst [vmem:[%s10818_s6 + $0x500] sm:$0xff] %v577_v58  ;;  %580 = vst [vmem:[%s10818_s6 + $0x508] sm:$0xff] %v579_v59  ;;  %v581_v60 = vld [vmem:[%s10813_s25 + $0xa20] sm:$0xff]  ;;  %v583_v61 = vld [vmem:[%s10813_s25 + $0xa28] sm:$0xff] }
  0x92   : > { %v585_v62 = vld [vmem:[%s10813_s25 + $0xa40] sm:$0xff]  ;;  %582 = vst [vmem:[%s10818_s6 + $0x510] sm:$0xff] %v581_v60  ;;  %584 = vst [vmem:[%s10818_s6 + $0x518] sm:$0xff] %v583_v61  ;;  %v587_v63 = vld [vmem:[%s10813_s25 + $0xa48] sm:$0xff] }
  0x93   : > { %586 = vst [vmem:[%s10818_s6 + $0x520] sm:$0xff] %v585_v62  ;;  %v589_v0 = vld [vmem:[%s10813_s25 + $0xa60] sm:$0xff]  ;;  %v591_v1 = vld [vmem:[%s10813_s25 + $0xa68] sm:$0xff]  ;;  %588 = vst [vmem:[%s10818_s6 + $0x528] sm:$0xff] %v587_v63 }
  0x94   : > { %590 = vst [vmem:[%s10818_s6 + $0x530] sm:$0xff] %v589_v0  ;;  %592 = vst [vmem:[%s10818_s6 + $0x538] sm:$0xff] %v591_v1  ;;  %v593_v2 = vld [vmem:[%s10813_s25 + $0xa80] sm:$0xff]  ;;  %v595_v3 = vld [vmem:[%s10813_s25 + $0xa88] sm:$0xff] }
  0x95   : > { %v597_v4 = vld [vmem:[%s10813_s25 + $0xaa0] sm:$0xff]  ;;  %594 = vst [vmem:[%s10818_s6 + $0x540] sm:$0xff] %v593_v2  ;;  %596 = vst [vmem:[%s10818_s6 + $0x548] sm:$0xff] %v595_v3  ;;  %v599_v5 = vld [vmem:[%s10813_s25 + $0xaa8] sm:$0xff] }
  0x96   : > { %598 = vst [vmem:[%s10818_s6 + $0x550] sm:$0xff] %v597_v4  ;;  %v601_v6 = vld [vmem:[%s10813_s25 + $0xac0] sm:$0xff]  ;;  %v603_v7 = vld [vmem:[%s10813_s25 + $0xac8] sm:$0xff]  ;;  %600 = vst [vmem:[%s10818_s6 + $0x558] sm:$0xff] %v599_v5 }
  0x97   : > { %602 = vst [vmem:[%s10818_s6 + $0x560] sm:$0xff] %v601_v6  ;;  %604 = vst [vmem:[%s10818_s6 + $0x568] sm:$0xff] %v603_v7  ;;  %v605_v8 = vld [vmem:[%s10813_s25 + $0xae0] sm:$0xff]  ;;  %v607_v9 = vld [vmem:[%s10813_s25 + $0xae8] sm:$0xff] }
  0x98   : > { %v609_v10 = vld [vmem:[%s10813_s25 + $0xb00] sm:$0xff]  ;;  %606 = vst [vmem:[%s10818_s6 + $0x570] sm:$0xff] %v605_v8  ;;  %608 = vst [vmem:[%s10818_s6 + $0x578] sm:$0xff] %v607_v9  ;;  %v611_v11 = vld [vmem:[%s10813_s25 + $0xb08] sm:$0xff] }
  0x99   : > { %610 = vst [vmem:[%s10818_s6 + $0x580] sm:$0xff] %v609_v10  ;;  %v613_v12 = vld [vmem:[%s10813_s25 + $0xb20] sm:$0xff]  ;;  %v615_v13 = vld [vmem:[%s10813_s25 + $0xb28] sm:$0xff]  ;;  %612 = vst [vmem:[%s10818_s6 + $0x588] sm:$0xff] %v611_v11 }
  0x9a   : > { %614 = vst [vmem:[%s10818_s6 + $0x590] sm:$0xff] %v613_v12  ;;  %616 = vst [vmem:[%s10818_s6 + $0x598] sm:$0xff] %v615_v13  ;;  %v617_v14 = vld [vmem:[%s10813_s25 + $0xb40] sm:$0xff]  ;;  %v619_v15 = vld [vmem:[%s10813_s25 + $0xb48] sm:$0xff] }
  0x9b   : > { %v621_v16 = vld [vmem:[%s10813_s25 + $0xb60] sm:$0xff]  ;;  %618 = vst [vmem:[%s10818_s6 + $0x5a0] sm:$0xff] %v617_v14  ;;  %620 = vst [vmem:[%s10818_s6 + $0x5a8] sm:$0xff] %v619_v15  ;;  %v623_v17 = vld [vmem:[%s10813_s25 + $0xb68] sm:$0xff] }
  0x9c   : > { %622 = vst [vmem:[%s10818_s6 + $0x5b0] sm:$0xff] %v621_v16  ;;  %v625_v18 = vld [vmem:[%s10813_s25 + $0xb80] sm:$0xff]  ;;  %v627_v19 = vld [vmem:[%s10813_s25 + $0xb88] sm:$0xff]  ;;  %624 = vst [vmem:[%s10818_s6 + $0x5b8] sm:$0xff] %v623_v17 }
  0x9d   : > { %626 = vst [vmem:[%s10818_s6 + $0x5c0] sm:$0xff] %v625_v18  ;;  %628 = vst [vmem:[%s10818_s6 + $0x5c8] sm:$0xff] %v627_v19  ;;  %v629_v20 = vld [vmem:[%s10813_s25 + $0xba0] sm:$0xff]  ;;  %v631_v21 = vld [vmem:[%s10813_s25 + $0xba8] sm:$0xff] }
  0x9e   : > { %v633_v22 = vld [vmem:[%s10813_s25 + $0xbc0] sm:$0xff]  ;;  %630 = vst [vmem:[%s10818_s6 + $0x5d0] sm:$0xff] %v629_v20  ;;  %632 = vst [vmem:[%s10818_s6 + $0x5d8] sm:$0xff] %v631_v21  ;;  %v635_v23 = vld [vmem:[%s10813_s25 + $0xbc8] sm:$0xff] }
  0x9f   : > { %634 = vst [vmem:[%s10818_s6 + $0x5e0] sm:$0xff] %v633_v22  ;;  %v637_v24 = vld [vmem:[%s10813_s25 + $0xbe0] sm:$0xff]  ;;  %v639_v25 = vld [vmem:[%s10813_s25 + $0xbe8] sm:$0xff]  ;;  %636 = vst [vmem:[%s10818_s6 + $0x5e8] sm:$0xff] %v635_v23 }
  0xa0   : > { %638 = vst [vmem:[%s10818_s6 + $0x5f0] sm:$0xff] %v637_v24  ;;  %640 = vst [vmem:[%s10818_s6 + $0x5f8] sm:$0xff] %v639_v25  ;;  %v641_v26 = vld [vmem:[%s10813_s25 + $0xc00] sm:$0xff]  ;;  %v643_v27 = vld [vmem:[%s10813_s25 + $0xc08] sm:$0xff] }
  0xa1   : > { %v645_v28 = vld [vmem:[%s10813_s25 + $0xc20] sm:$0xff]  ;;  %642 = vst [vmem:[%s10818_s6 + $0x600] sm:$0xff] %v641_v26  ;;  %644 = vst [vmem:[%s10818_s6 + $0x608] sm:$0xff] %v643_v27  ;;  %v647_v29 = vld [vmem:[%s10813_s25 + $0xc28] sm:$0xff] }
  0xa2   : > { %646 = vst [vmem:[%s10818_s6 + $0x610] sm:$0xff] %v645_v28  ;;  %v649_v30 = vld [vmem:[%s10813_s25 + $0xc40] sm:$0xff]  ;;  %v651_v31 = vld [vmem:[%s10813_s25 + $0xc48] sm:$0xff]  ;;  %648 = vst [vmem:[%s10818_s6 + $0x618] sm:$0xff] %v647_v29 }
  0xa3   : > { %650 = vst [vmem:[%s10818_s6 + $0x620] sm:$0xff] %v649_v30  ;;  %652 = vst [vmem:[%s10818_s6 + $0x628] sm:$0xff] %v651_v31  ;;  %v653_v32 = vld [vmem:[%s10813_s25 + $0xc60] sm:$0xff]  ;;  %v655_v33 = vld [vmem:[%s10813_s25 + $0xc68] sm:$0xff] }
  0xa4   : > { %v657_v34 = vld [vmem:[%s10813_s25 + $0xc80] sm:$0xff]  ;;  %654 = vst [vmem:[%s10818_s6 + $0x630] sm:$0xff] %v653_v32  ;;  %656 = vst [vmem:[%s10818_s6 + $0x638] sm:$0xff] %v655_v33  ;;  %v659_v35 = vld [vmem:[%s10813_s25 + $0xc88] sm:$0xff] }
  0xa5   : > { %658 = vst [vmem:[%s10818_s6 + $0x640] sm:$0xff] %v657_v34  ;;  %v661_v36 = vld [vmem:[%s10813_s25 + $0xca0] sm:$0xff]  ;;  %v663_v37 = vld [vmem:[%s10813_s25 + $0xca8] sm:$0xff]  ;;  %660 = vst [vmem:[%s10818_s6 + $0x648] sm:$0xff] %v659_v35 }
  0xa6   : > { %662 = vst [vmem:[%s10818_s6 + $0x650] sm:$0xff] %v661_v36  ;;  %664 = vst [vmem:[%s10818_s6 + $0x658] sm:$0xff] %v663_v37  ;;  %v665_v38 = vld [vmem:[%s10813_s25 + $0xcc0] sm:$0xff]  ;;  %v667_v39 = vld [vmem:[%s10813_s25 + $0xcc8] sm:$0xff] }
  0xa7   : > { %v669_v40 = vld [vmem:[%s10813_s25 + $0xce0] sm:$0xff]  ;;  %666 = vst [vmem:[%s10818_s6 + $0x660] sm:$0xff] %v665_v38  ;;  %668 = vst [vmem:[%s10818_s6 + $0x668] sm:$0xff] %v667_v39  ;;  %v671_v41 = vld [vmem:[%s10813_s25 + $0xce8] sm:$0xff] }
  0xa8   : > { %670 = vst [vmem:[%s10818_s6 + $0x670] sm:$0xff] %v669_v40  ;;  %v673_v42 = vld [vmem:[%s10813_s25 + $0xd00] sm:$0xff]  ;;  %v675_v43 = vld [vmem:[%s10813_s25 + $0xd08] sm:$0xff]  ;;  %672 = vst [vmem:[%s10818_s6 + $0x678] sm:$0xff] %v671_v41 }
  0xa9   : > { %674 = vst [vmem:[%s10818_s6 + $0x680] sm:$0xff] %v673_v42  ;;  %676 = vst [vmem:[%s10818_s6 + $0x688] sm:$0xff] %v675_v43  ;;  %v677_v44 = vld [vmem:[%s10813_s25 + $0xd20] sm:$0xff]  ;;  %v679_v45 = vld [vmem:[%s10813_s25 + $0xd28] sm:$0xff] }
  0xaa   : > { %v681_v46 = vld [vmem:[%s10813_s25 + $0xd40] sm:$0xff]  ;;  %678 = vst [vmem:[%s10818_s6 + $0x690] sm:$0xff] %v677_v44  ;;  %680 = vst [vmem:[%s10818_s6 + $0x698] sm:$0xff] %v679_v45  ;;  %v683_v47 = vld [vmem:[%s10813_s25 + $0xd48] sm:$0xff] }
  0xab   : > { %682 = vst [vmem:[%s10818_s6 + $0x6a0] sm:$0xff] %v681_v46  ;;  %v685_v48 = vld [vmem:[%s10813_s25 + $0xd60] sm:$0xff]  ;;  %v687_v49 = vld [vmem:[%s10813_s25 + $0xd68] sm:$0xff]  ;;  %684 = vst [vmem:[%s10818_s6 + $0x6a8] sm:$0xff] %v683_v47 }
  0xac   : > { %686 = vst [vmem:[%s10818_s6 + $0x6b0] sm:$0xff] %v685_v48  ;;  %688 = vst [vmem:[%s10818_s6 + $0x6b8] sm:$0xff] %v687_v49  ;;  %v689_v50 = vld [vmem:[%s10813_s25 + $0xd80] sm:$0xff]  ;;  %v691_v51 = vld [vmem:[%s10813_s25 + $0xd88] sm:$0xff] }
  0xad   : > { %v693_v52 = vld [vmem:[%s10813_s25 + $0xda0] sm:$0xff]  ;;  %690 = vst [vmem:[%s10818_s6 + $0x6c0] sm:$0xff] %v689_v50  ;;  %692 = vst [vmem:[%s10818_s6 + $0x6c8] sm:$0xff] %v691_v51  ;;  %v695_v53 = vld [vmem:[%s10813_s25 + $0xda8] sm:$0xff] }
  0xae   : > { %694 = vst [vmem:[%s10818_s6 + $0x6d0] sm:$0xff] %v693_v52  ;;  %v697_v54 = vld [vmem:[%s10813_s25 + $0xdc0] sm:$0xff]  ;;  %v699_v55 = vld [vmem:[%s10813_s25 + $0xdc8] sm:$0xff]  ;;  %696 = vst [vmem:[%s10818_s6 + $0x6d8] sm:$0xff] %v695_v53 }
  0xaf   : > { %698 = vst [vmem:[%s10818_s6 + $0x6e0] sm:$0xff] %v697_v54  ;;  %700 = vst [vmem:[%s10818_s6 + $0x6e8] sm:$0xff] %v699_v55  ;;  %v701_v56 = vld [vmem:[%s10813_s25 + $0xde0] sm:$0xff]  ;;  %v703_v57 = vld [vmem:[%s10813_s25 + $0xde8] sm:$0xff] }
  0xb0   : > { %v705_v58 = vld [vmem:[%s10813_s25 + $0xe00] sm:$0xff]  ;;  %702 = vst [vmem:[%s10818_s6 + $0x6f0] sm:$0xff] %v701_v56  ;;  %704 = vst [vmem:[%s10818_s6 + $0x6f8] sm:$0xff] %v703_v57  ;;  %v707_v59 = vld [vmem:[%s10813_s25 + $0xe08] sm:$0xff] }
  0xb1   : > { %706 = vst [vmem:[%s10818_s6 + $0x700] sm:$0xff] %v705_v58  ;;  %v709_v60 = vld [vmem:[%s10813_s25 + $0xe20] sm:$0xff]  ;;  %v711_v61 = vld [vmem:[%s10813_s25 + $0xe28] sm:$0xff]  ;;  %708 = vst [vmem:[%s10818_s6 + $0x708] sm:$0xff] %v707_v59 }
  0xb2   : > { %710 = vst [vmem:[%s10818_s6 + $0x710] sm:$0xff] %v709_v60  ;;  %712 = vst [vmem:[%s10818_s6 + $0x718] sm:$0xff] %v711_v61  ;;  %v713_v62 = vld [vmem:[%s10813_s25 + $0xe40] sm:$0xff]  ;;  %v715_v63 = vld [vmem:[%s10813_s25 + $0xe48] sm:$0xff] }
  0xb3   : > { %v717_v0 = vld [vmem:[%s10813_s25 + $0xe60] sm:$0xff]  ;;  %714 = vst [vmem:[%s10818_s6 + $0x720] sm:$0xff] %v713_v62  ;;  %716 = vst [vmem:[%s10818_s6 + $0x728] sm:$0xff] %v715_v63  ;;  %v719_v1 = vld [vmem:[%s10813_s25 + $0xe68] sm:$0xff] }
  0xb4   : > { %718 = vst [vmem:[%s10818_s6 + $0x730] sm:$0xff] %v717_v0  ;;  %v721_v2 = vld [vmem:[%s10813_s25 + $0xe80] sm:$0xff]  ;;  %v723_v3 = vld [vmem:[%s10813_s25 + $0xe88] sm:$0xff]  ;;  %720 = vst [vmem:[%s10818_s6 + $0x738] sm:$0xff] %v719_v1 }
  0xb5   : > { %722 = vst [vmem:[%s10818_s6 + $0x740] sm:$0xff] %v721_v2  ;;  %724 = vst [vmem:[%s10818_s6 + $0x748] sm:$0xff] %v723_v3  ;;  %v725_v4 = vld [vmem:[%s10813_s25 + $0xea0] sm:$0xff]  ;;  %v727_v5 = vld [vmem:[%s10813_s25 + $0xea8] sm:$0xff] }
  0xb6   : > { %v729_v6 = vld [vmem:[%s10813_s25 + $0xec0] sm:$0xff]  ;;  %726 = vst [vmem:[%s10818_s6 + $0x750] sm:$0xff] %v725_v4  ;;  %728 = vst [vmem:[%s10818_s6 + $0x758] sm:$0xff] %v727_v5  ;;  %v731_v7 = vld [vmem:[%s10813_s25 + $0xec8] sm:$0xff] }
  0xb7   : > { %730 = vst [vmem:[%s10818_s6 + $0x760] sm:$0xff] %v729_v6  ;;  %v733_v8 = vld [vmem:[%s10813_s25 + $0xee0] sm:$0xff]  ;;  %v735_v9 = vld [vmem:[%s10813_s25 + $0xee8] sm:$0xff]  ;;  %732 = vst [vmem:[%s10818_s6 + $0x768] sm:$0xff] %v731_v7 }
  0xb8   : > { %734 = vst [vmem:[%s10818_s6 + $0x770] sm:$0xff] %v733_v8  ;;  %736 = vst [vmem:[%s10818_s6 + $0x778] sm:$0xff] %v735_v9  ;;  %v737_v10 = vld [vmem:[%s10813_s25 + $0xf00] sm:$0xff]  ;;  %v739_v11 = vld [vmem:[%s10813_s25 + $0xf08] sm:$0xff] }
  0xb9   : > { %v741_v12 = vld [vmem:[%s10813_s25 + $0xf20] sm:$0xff]  ;;  %738 = vst [vmem:[%s10818_s6 + $0x780] sm:$0xff] %v737_v10  ;;  %740 = vst [vmem:[%s10818_s6 + $0x788] sm:$0xff] %v739_v11  ;;  %v743_v13 = vld [vmem:[%s10813_s25 + $0xf28] sm:$0xff] }
  0xba   : > { %742 = vst [vmem:[%s10818_s6 + $0x790] sm:$0xff] %v741_v12  ;;  %v745_v14 = vld [vmem:[%s10813_s25 + $0xf40] sm:$0xff]  ;;  %v747_v15 = vld [vmem:[%s10813_s25 + $0xf48] sm:$0xff]  ;;  %744 = vst [vmem:[%s10818_s6 + $0x798] sm:$0xff] %v743_v13 }
  0xbb   : > { %746 = vst [vmem:[%s10818_s6 + $0x7a0] sm:$0xff] %v745_v14  ;;  %748 = vst [vmem:[%s10818_s6 + $0x7a8] sm:$0xff] %v747_v15  ;;  %v749_v16 = vld [vmem:[%s10813_s25 + $0xf60] sm:$0xff]  ;;  %v751_v17 = vld [vmem:[%s10813_s25 + $0xf68] sm:$0xff] }
  0xbc   : > { %v753_v18 = vld [vmem:[%s10813_s25 + $0xf80] sm:$0xff]  ;;  %750 = vst [vmem:[%s10818_s6 + $0x7b0] sm:$0xff] %v749_v16  ;;  %752 = vst [vmem:[%s10818_s6 + $0x7b8] sm:$0xff] %v751_v17  ;;  %v755_v19 = vld [vmem:[%s10813_s25 + $0xf88] sm:$0xff] }
  0xbd   : > { %754 = vst [vmem:[%s10818_s6 + $0x7c0] sm:$0xff] %v753_v18  ;;  %v757_v20 = vld [vmem:[%s10813_s25 + $0xfa0] sm:$0xff]  ;;  %v759_v21 = vld [vmem:[%s10813_s25 + $0xfa8] sm:$0xff]  ;;  %756 = vst [vmem:[%s10818_s6 + $0x7c8] sm:$0xff] %v755_v19 }
  0xbe   : > { %758 = vst [vmem:[%s10818_s6 + $0x7d0] sm:$0xff] %v757_v20  ;;  %760 = vst [vmem:[%s10818_s6 + $0x7d8] sm:$0xff] %v759_v21  ;;  %v761_v22 = vld [vmem:[%s10813_s25 + $0xfc0] sm:$0xff]  ;;  %v763_v23 = vld [vmem:[%s10813_s25 + $0xfc8] sm:$0xff] }
  0xbf   : > { %v765_v24 = vld [vmem:[%s10813_s25 + $0xfe0] sm:$0xff]  ;;  %762 = vst [vmem:[%s10818_s6 + $0x7e0] sm:$0xff] %v761_v22  ;;  %764 = vst [vmem:[%s10818_s6 + $0x7e8] sm:$0xff] %v763_v23  ;;  %v767_v25 = vld [vmem:[%s10813_s25 + $0xfe8] sm:$0xff] }
  0xc0   : > { %766 = vst [vmem:[%s10818_s6 + $0x7f0] sm:$0xff] %v765_v24  ;;  %v769_v26 = vld [vmem:[%s10813_s25 + $0x1000] sm:$0xff]  ;;  %v771_v27 = vld [vmem:[%s10813_s25 + $0x1008] sm:$0xff]  ;;  %768 = vst [vmem:[%s10818_s6 + $0x7f8] sm:$0xff] %v767_v25 }
  0xc1   : > { %770 = vst [vmem:[%s10818_s6 + $0x800] sm:$0xff] %v769_v26  ;;  %772 = vst [vmem:[%s10818_s6 + $0x808] sm:$0xff] %v771_v27  ;;  %v773_v28 = vld [vmem:[%s10813_s25 + $0x1020] sm:$0xff]  ;;  %v775_v29 = vld [vmem:[%s10813_s25 + $0x1028] sm:$0xff] }
  0xc2   : > { %v777_v30 = vld [vmem:[%s10813_s25 + $0x1040] sm:$0xff]  ;;  %774 = vst [vmem:[%s10818_s6 + $0x810] sm:$0xff] %v773_v28  ;;  %776 = vst [vmem:[%s10818_s6 + $0x818] sm:$0xff] %v775_v29  ;;  %v779_v31 = vld [vmem:[%s10813_s25 + $0x1048] sm:$0xff] }
  0xc3   : > { %778 = vst [vmem:[%s10818_s6 + $0x820] sm:$0xff] %v777_v30  ;;  %v781_v32 = vld [vmem:[%s10813_s25 + $0x1060] sm:$0xff]  ;;  %v783_v33 = vld [vmem:[%s10813_s25 + $0x1068] sm:$0xff]  ;;  %780 = vst [vmem:[%s10818_s6 + $0x828] sm:$0xff] %v779_v31 }
  0xc4   : > { %782 = vst [vmem:[%s10818_s6 + $0x830] sm:$0xff] %v781_v32  ;;  %784 = vst [vmem:[%s10818_s6 + $0x838] sm:$0xff] %v783_v33  ;;  %v785_v34 = vld [vmem:[%s10813_s25 + $0x1080] sm:$0xff]  ;;  %v787_v35 = vld [vmem:[%s10813_s25 + $0x1088] sm:$0xff] }
  0xc5   : > { %v789_v36 = vld [vmem:[%s10813_s25 + $0x10a0] sm:$0xff]  ;;  %786 = vst [vmem:[%s10818_s6 + $0x840] sm:$0xff] %v785_v34  ;;  %788 = vst [vmem:[%s10818_s6 + $0x848] sm:$0xff] %v787_v35  ;;  %v791_v37 = vld [vmem:[%s10813_s25 + $0x10a8] sm:$0xff] }
  0xc6   : > { %790 = vst [vmem:[%s10818_s6 + $0x850] sm:$0xff] %v789_v36  ;;  %v793_v38 = vld [vmem:[%s10813_s25 + $0x10c0] sm:$0xff]  ;;  %v795_v39 = vld [vmem:[%s10813_s25 + $0x10c8] sm:$0xff]  ;;  %792 = vst [vmem:[%s10818_s6 + $0x858] sm:$0xff] %v791_v37 }
  0xc7   : > { %794 = vst [vmem:[%s10818_s6 + $0x860] sm:$0xff] %v793_v38  ;;  %796 = vst [vmem:[%s10818_s6 + $0x868] sm:$0xff] %v795_v39  ;;  %v797_v40 = vld [vmem:[%s10813_s25 + $0x10e0] sm:$0xff]  ;;  %v799_v41 = vld [vmem:[%s10813_s25 + $0x10e8] sm:$0xff] }
  0xc8   : > { %v801_v42 = vld [vmem:[%s10813_s25 + $0x1100] sm:$0xff]  ;;  %798 = vst [vmem:[%s10818_s6 + $0x870] sm:$0xff] %v797_v40  ;;  %800 = vst [vmem:[%s10818_s6 + $0x878] sm:$0xff] %v799_v41  ;;  %v803_v43 = vld [vmem:[%s10813_s25 + $0x1108] sm:$0xff] }
  0xc9   : > { %802 = vst [vmem:[%s10818_s6 + $0x880] sm:$0xff] %v801_v42  ;;  %v805_v44 = vld [vmem:[%s10813_s25 + $0x1120] sm:$0xff]  ;;  %v807_v45 = vld [vmem:[%s10813_s25 + $0x1128] sm:$0xff]  ;;  %804 = vst [vmem:[%s10818_s6 + $0x888] sm:$0xff] %v803_v43 }
  0xca   : > { %806 = vst [vmem:[%s10818_s6 + $0x890] sm:$0xff] %v805_v44  ;;  %808 = vst [vmem:[%s10818_s6 + $0x898] sm:$0xff] %v807_v45  ;;  %v809_v46 = vld [vmem:[%s10813_s25 + $0x1140] sm:$0xff]  ;;  %v811_v47 = vld [vmem:[%s10813_s25 + $0x1148] sm:$0xff] }
  0xcb   : > { %v813_v48 = vld [vmem:[%s10813_s25 + $0x1160] sm:$0xff]  ;;  %810 = vst [vmem:[%s10818_s6 + $0x8a0] sm:$0xff] %v809_v46  ;;  %812 = vst [vmem:[%s10818_s6 + $0x8a8] sm:$0xff] %v811_v47  ;;  %v815_v49 = vld [vmem:[%s10813_s25 + $0x1168] sm:$0xff] }
  0xcc   : > { %814 = vst [vmem:[%s10818_s6 + $0x8b0] sm:$0xff] %v813_v48  ;;  %v817_v50 = vld [vmem:[%s10813_s25 + $0x1180] sm:$0xff]  ;;  %v819_v51 = vld [vmem:[%s10813_s25 + $0x1188] sm:$0xff]  ;;  %816 = vst [vmem:[%s10818_s6 + $0x8b8] sm:$0xff] %v815_v49 }
  0xcd   : > { %818 = vst [vmem:[%s10818_s6 + $0x8c0] sm:$0xff] %v817_v50  ;;  %820 = vst [vmem:[%s10818_s6 + $0x8c8] sm:$0xff] %v819_v51  ;;  %v821_v52 = vld [vmem:[%s10813_s25 + $0x11a0] sm:$0xff]  ;;  %v823_v53 = vld [vmem:[%s10813_s25 + $0x11a8] sm:$0xff] }
  0xce   : > { %v825_v54 = vld [vmem:[%s10813_s25 + $0x11c0] sm:$0xff]  ;;  %822 = vst [vmem:[%s10818_s6 + $0x8d0] sm:$0xff] %v821_v52  ;;  %824 = vst [vmem:[%s10818_s6 + $0x8d8] sm:$0xff] %v823_v53  ;;  %v827_v55 = vld [vmem:[%s10813_s25 + $0x11c8] sm:$0xff] }
  0xcf   : > { %826 = vst [vmem:[%s10818_s6 + $0x8e0] sm:$0xff] %v825_v54  ;;  %v829_v56 = vld [vmem:[%s10813_s25 + $0x11e0] sm:$0xff]  ;;  %v831_v57 = vld [vmem:[%s10813_s25 + $0x11e8] sm:$0xff]  ;;  %828 = vst [vmem:[%s10818_s6 + $0x8e8] sm:$0xff] %v827_v55 }
  0xd0   : > { %830 = vst [vmem:[%s10818_s6 + $0x8f0] sm:$0xff] %v829_v56  ;;  %832 = vst [vmem:[%s10818_s6 + $0x8f8] sm:$0xff] %v831_v57  ;;  %v833_v58 = vld [vmem:[%s10813_s25 + $0x1200] sm:$0xff]  ;;  %v835_v59 = vld [vmem:[%s10813_s25 + $0x1208] sm:$0xff] }
  0xd1   : > { %v837_v60 = vld [vmem:[%s10813_s25 + $0x1220] sm:$0xff]  ;;  %834 = vst [vmem:[%s10818_s6 + $0x900] sm:$0xff] %v833_v58  ;;  %836 = vst [vmem:[%s10818_s6 + $0x908] sm:$0xff] %v835_v59  ;;  %v839_v61 = vld [vmem:[%s10813_s25 + $0x1228] sm:$0xff] }
  0xd2   : > { %838 = vst [vmem:[%s10818_s6 + $0x910] sm:$0xff] %v837_v60  ;;  %v841_v62 = vld [vmem:[%s10813_s25 + $0x1240] sm:$0xff]  ;;  %v843_v63 = vld [vmem:[%s10813_s25 + $0x1248] sm:$0xff]  ;;  %840 = vst [vmem:[%s10818_s6 + $0x918] sm:$0xff] %v839_v61 }
  0xd3   : > { %842 = vst [vmem:[%s10818_s6 + $0x920] sm:$0xff] %v841_v62  ;;  %844 = vst [vmem:[%s10818_s6 + $0x928] sm:$0xff] %v843_v63  ;;  %v845_v0 = vld [vmem:[%s10813_s25 + $0x1260] sm:$0xff]  ;;  %v847_v1 = vld [vmem:[%s10813_s25 + $0x1268] sm:$0xff] }
  0xd4   : > { %v849_v2 = vld [vmem:[%s10813_s25 + $0x1280] sm:$0xff]  ;;  %846 = vst [vmem:[%s10818_s6 + $0x930] sm:$0xff] %v845_v0  ;;  %848 = vst [vmem:[%s10818_s6 + $0x938] sm:$0xff] %v847_v1  ;;  %v851_v3 = vld [vmem:[%s10813_s25 + $0x1288] sm:$0xff] }
  0xd5   : > { %850 = vst [vmem:[%s10818_s6 + $0x940] sm:$0xff] %v849_v2  ;;  %v853_v4 = vld [vmem:[%s10813_s25 + $0x12a0] sm:$0xff]  ;;  %v855_v5 = vld [vmem:[%s10813_s25 + $0x12a8] sm:$0xff]  ;;  %852 = vst [vmem:[%s10818_s6 + $0x948] sm:$0xff] %v851_v3 }
  0xd6   : > { %854 = vst [vmem:[%s10818_s6 + $0x950] sm:$0xff] %v853_v4  ;;  %856 = vst [vmem:[%s10818_s6 + $0x958] sm:$0xff] %v855_v5  ;;  %v857_v6 = vld [vmem:[%s10813_s25 + $0x12c0] sm:$0xff]  ;;  %v859_v7 = vld [vmem:[%s10813_s25 + $0x12c8] sm:$0xff] }
  0xd7   : > { %v861_v8 = vld [vmem:[%s10813_s25 + $0x12e0] sm:$0xff]  ;;  %858 = vst [vmem:[%s10818_s6 + $0x960] sm:$0xff] %v857_v6  ;;  %860 = vst [vmem:[%s10818_s6 + $0x968] sm:$0xff] %v859_v7  ;;  %v863_v9 = vld [vmem:[%s10813_s25 + $0x12e8] sm:$0xff] }
  0xd8   : > { %862 = vst [vmem:[%s10818_s6 + $0x970] sm:$0xff] %v861_v8  ;;  %v865_v10 = vld [vmem:[%s10813_s25 + $0x1300] sm:$0xff]  ;;  %v867_v11 = vld [vmem:[%s10813_s25 + $0x1308] sm:$0xff]  ;;  %864 = vst [vmem:[%s10818_s6 + $0x978] sm:$0xff] %v863_v9 }
  0xd9   : > { %866 = vst [vmem:[%s10818_s6 + $0x980] sm:$0xff] %v865_v10  ;;  %868 = vst [vmem:[%s10818_s6 + $0x988] sm:$0xff] %v867_v11  ;;  %v869_v12 = vld [vmem:[%s10813_s25 + $0x1320] sm:$0xff]  ;;  %v871_v13 = vld [vmem:[%s10813_s25 + $0x1328] sm:$0xff] }
  0xda   : > { %v873_v14 = vld [vmem:[%s10813_s25 + $0x1340] sm:$0xff]  ;;  %870 = vst [vmem:[%s10818_s6 + $0x990] sm:$0xff] %v869_v12  ;;  %872 = vst [vmem:[%s10818_s6 + $0x998] sm:$0xff] %v871_v13  ;;  %v875_v15 = vld [vmem:[%s10813_s25 + $0x1348] sm:$0xff] }
  0xdb   : > { %874 = vst [vmem:[%s10818_s6 + $0x9a0] sm:$0xff] %v873_v14  ;;  %v877_v16 = vld [vmem:[%s10813_s25 + $0x1360] sm:$0xff]  ;;  %v879_v17 = vld [vmem:[%s10813_s25 + $0x1368] sm:$0xff]  ;;  %876 = vst [vmem:[%s10818_s6 + $0x9a8] sm:$0xff] %v875_v15 }
  0xdc   : > { %878 = vst [vmem:[%s10818_s6 + $0x9b0] sm:$0xff] %v877_v16  ;;  %880 = vst [vmem:[%s10818_s6 + $0x9b8] sm:$0xff] %v879_v17  ;;  %v881_v18 = vld [vmem:[%s10813_s25 + $0x1380] sm:$0xff]  ;;  %v883_v19 = vld [vmem:[%s10813_s25 + $0x1388] sm:$0xff] }
  0xdd   : > { %v885_v20 = vld [vmem:[%s10813_s25 + $0x13a0] sm:$0xff]  ;;  %882 = vst [vmem:[%s10818_s6 + $0x9c0] sm:$0xff] %v881_v18  ;;  %884 = vst [vmem:[%s10818_s6 + $0x9c8] sm:$0xff] %v883_v19  ;;  %v887_v21 = vld [vmem:[%s10813_s25 + $0x13a8] sm:$0xff] }
  0xde   : > { %886 = vst [vmem:[%s10818_s6 + $0x9d0] sm:$0xff] %v885_v20  ;;  %v889_v22 = vld [vmem:[%s10813_s25 + $0x13c0] sm:$0xff]  ;;  %v891_v23 = vld [vmem:[%s10813_s25 + $0x13c8] sm:$0xff]  ;;  %888 = vst [vmem:[%s10818_s6 + $0x9d8] sm:$0xff] %v887_v21 }
  0xdf   : > { %890 = vst [vmem:[%s10818_s6 + $0x9e0] sm:$0xff] %v889_v22  ;;  %892 = vst [vmem:[%s10818_s6 + $0x9e8] sm:$0xff] %v891_v23  ;;  %v893_v24 = vld [vmem:[%s10813_s25 + $0x13e0] sm:$0xff]  ;;  %v895_v25 = vld [vmem:[%s10813_s25 + $0x13e8] sm:$0xff] }
  0xe0   : > { %v897_v26 = vld [vmem:[%s10813_s25 + $0x1400] sm:$0xff]  ;;  %894 = vst [vmem:[%s10818_s6 + $0x9f0] sm:$0xff] %v893_v24  ;;  %896 = vst [vmem:[%s10818_s6 + $0x9f8] sm:$0xff] %v895_v25  ;;  %v899_v27 = vld [vmem:[%s10813_s25 + $0x1408] sm:$0xff] }
  0xe1   : > { %898 = vst [vmem:[%s10818_s6 + $0xa00] sm:$0xff] %v897_v26  ;;  %v901_v28 = vld [vmem:[%s10813_s25 + $0x1420] sm:$0xff]  ;;  %v903_v29 = vld [vmem:[%s10813_s25 + $0x1428] sm:$0xff]  ;;  %900 = vst [vmem:[%s10818_s6 + $0xa08] sm:$0xff] %v899_v27 }
  0xe2   : > { %902 = vst [vmem:[%s10818_s6 + $0xa10] sm:$0xff] %v901_v28  ;;  %904 = vst [vmem:[%s10818_s6 + $0xa18] sm:$0xff] %v903_v29  ;;  %v905_v30 = vld [vmem:[%s10813_s25 + $0x1440] sm:$0xff]  ;;  %v907_v31 = vld [vmem:[%s10813_s25 + $0x1448] sm:$0xff] }
  0xe3   : > { %v909_v32 = vld [vmem:[%s10813_s25 + $0x1460] sm:$0xff]  ;;  %906 = vst [vmem:[%s10818_s6 + $0xa20] sm:$0xff] %v905_v30  ;;  %908 = vst [vmem:[%s10818_s6 + $0xa28] sm:$0xff] %v907_v31  ;;  %v911_v33 = vld [vmem:[%s10813_s25 + $0x1468] sm:$0xff] }
  0xe4   : > { %910 = vst [vmem:[%s10818_s6 + $0xa30] sm:$0xff] %v909_v32  ;;  %v913_v34 = vld [vmem:[%s10813_s25 + $0x1480] sm:$0xff]  ;;  %v915_v35 = vld [vmem:[%s10813_s25 + $0x1488] sm:$0xff]  ;;  %912 = vst [vmem:[%s10818_s6 + $0xa38] sm:$0xff] %v911_v33 }
  0xe5   : > { %914 = vst [vmem:[%s10818_s6 + $0xa40] sm:$0xff] %v913_v34  ;;  %916 = vst [vmem:[%s10818_s6 + $0xa48] sm:$0xff] %v915_v35  ;;  %v917_v36 = vld [vmem:[%s10813_s25 + $0x14a0] sm:$0xff]  ;;  %v919_v37 = vld [vmem:[%s10813_s25 + $0x14a8] sm:$0xff] }
  0xe6   : > { %v921_v38 = vld [vmem:[%s10813_s25 + $0x14c0] sm:$0xff]  ;;  %918 = vst [vmem:[%s10818_s6 + $0xa50] sm:$0xff] %v917_v36  ;;  %920 = vst [vmem:[%s10818_s6 + $0xa58] sm:$0xff] %v919_v37  ;;  %v923_v39 = vld [vmem:[%s10813_s25 + $0x14c8] sm:$0xff] }
  0xe7   : > { %922 = vst [vmem:[%s10818_s6 + $0xa60] sm:$0xff] %v921_v38  ;;  %v925_v40 = vld [vmem:[%s10813_s25 + $0x14e0] sm:$0xff]  ;;  %v927_v41 = vld [vmem:[%s10813_s25 + $0x14e8] sm:$0xff]  ;;  %924 = vst [vmem:[%s10818_s6 + $0xa68] sm:$0xff] %v923_v39 }
  0xe8   : > { %926 = vst [vmem:[%s10818_s6 + $0xa70] sm:$0xff] %v925_v40  ;;  %928 = vst [vmem:[%s10818_s6 + $0xa78] sm:$0xff] %v927_v41  ;;  %v929_v42 = vld [vmem:[%s10813_s25 + $0x1500] sm:$0xff]  ;;  %v931_v43 = vld [vmem:[%s10813_s25 + $0x1508] sm:$0xff] }
  0xe9   : > { %v933_v44 = vld [vmem:[%s10813_s25 + $0x1520] sm:$0xff]  ;;  %930 = vst [vmem:[%s10818_s6 + $0xa80] sm:$0xff] %v929_v42  ;;  %932 = vst [vmem:[%s10818_s6 + $0xa88] sm:$0xff] %v931_v43  ;;  %v935_v45 = vld [vmem:[%s10813_s25 + $0x1528] sm:$0xff] }
  0xea   : > { %934 = vst [vmem:[%s10818_s6 + $0xa90] sm:$0xff] %v933_v44  ;;  %v937_v46 = vld [vmem:[%s10813_s25 + $0x1540] sm:$0xff]  ;;  %v939_v47 = vld [vmem:[%s10813_s25 + $0x1548] sm:$0xff]  ;;  %936 = vst [vmem:[%s10818_s6 + $0xa98] sm:$0xff] %v935_v45 }
  0xeb   : > { %938 = vst [vmem:[%s10818_s6 + $0xaa0] sm:$0xff] %v937_v46  ;;  %940 = vst [vmem:[%s10818_s6 + $0xaa8] sm:$0xff] %v939_v47  ;;  %v941_v48 = vld [vmem:[%s10813_s25 + $0x1560] sm:$0xff]  ;;  %v943_v49 = vld [vmem:[%s10813_s25 + $0x1568] sm:$0xff] }
  0xec   : > { %v945_v50 = vld [vmem:[%s10813_s25 + $0x1580] sm:$0xff]  ;;  %942 = vst [vmem:[%s10818_s6 + $0xab0] sm:$0xff] %v941_v48  ;;  %944 = vst [vmem:[%s10818_s6 + $0xab8] sm:$0xff] %v943_v49  ;;  %v947_v51 = vld [vmem:[%s10813_s25 + $0x1588] sm:$0xff] }
  0xed   : > { %946 = vst [vmem:[%s10818_s6 + $0xac0] sm:$0xff] %v945_v50  ;;  %v949_v52 = vld [vmem:[%s10813_s25 + $0x15a0] sm:$0xff]  ;;  %v951_v53 = vld [vmem:[%s10813_s25 + $0x15a8] sm:$0xff]  ;;  %948 = vst [vmem:[%s10818_s6 + $0xac8] sm:$0xff] %v947_v51 }
  0xee   : > { %950 = vst [vmem:[%s10818_s6 + $0xad0] sm:$0xff] %v949_v52  ;;  %952 = vst [vmem:[%s10818_s6 + $0xad8] sm:$0xff] %v951_v53  ;;  %v953_v54 = vld [vmem:[%s10813_s25 + $0x15c0] sm:$0xff]  ;;  %v955_v55 = vld [vmem:[%s10813_s25 + $0x15c8] sm:$0xff] }
  0xef   : > { %v957_v56 = vld [vmem:[%s10813_s25 + $0x15e0] sm:$0xff]  ;;  %954 = vst [vmem:[%s10818_s6 + $0xae0] sm:$0xff] %v953_v54  ;;  %956 = vst [vmem:[%s10818_s6 + $0xae8] sm:$0xff] %v955_v55  ;;  %v959_v57 = vld [vmem:[%s10813_s25 + $0x15e8] sm:$0xff] }
  0xf0   : > { %958 = vst [vmem:[%s10818_s6 + $0xaf0] sm:$0xff] %v957_v56  ;;  %v961_v58 = vld [vmem:[%s10813_s25 + $0x1600] sm:$0xff]  ;;  %v963_v59 = vld [vmem:[%s10813_s25 + $0x1608] sm:$0xff]  ;;  %960 = vst [vmem:[%s10818_s6 + $0xaf8] sm:$0xff] %v959_v57 }
  0xf1   : > { %962 = vst [vmem:[%s10818_s6 + $0xb00] sm:$0xff] %v961_v58  ;;  %964 = vst [vmem:[%s10818_s6 + $0xb08] sm:$0xff] %v963_v59  ;;  %v965_v60 = vld [vmem:[%s10813_s25 + $0x1620] sm:$0xff]  ;;  %v967_v61 = vld [vmem:[%s10813_s25 + $0x1628] sm:$0xff] }
  0xf2   : > { %v969_v62 = vld [vmem:[%s10813_s25 + $0x1640] sm:$0xff]  ;;  %966 = vst [vmem:[%s10818_s6 + $0xb10] sm:$0xff] %v965_v60  ;;  %968 = vst [vmem:[%s10818_s6 + $0xb18] sm:$0xff] %v967_v61  ;;  %v971_v63 = vld [vmem:[%s10813_s25 + $0x1648] sm:$0xff] }
  0xf3   : > { %970 = vst [vmem:[%s10818_s6 + $0xb20] sm:$0xff] %v969_v62  ;;  %v973_v0 = vld [vmem:[%s10813_s25 + $0x1660] sm:$0xff]  ;;  %v975_v1 = vld [vmem:[%s10813_s25 + $0x1668] sm:$0xff]  ;;  %972 = vst [vmem:[%s10818_s6 + $0xb28] sm:$0xff] %v971_v63 }
  0xf4   : > { %974 = vst [vmem:[%s10818_s6 + $0xb30] sm:$0xff] %v973_v0  ;;  %976 = vst [vmem:[%s10818_s6 + $0xb38] sm:$0xff] %v975_v1  ;;  %v977_v2 = vld [vmem:[%s10813_s25 + $0x1680] sm:$0xff]  ;;  %v979_v3 = vld [vmem:[%s10813_s25 + $0x1688] sm:$0xff] }
  0xf5   : > { %v981_v4 = vld [vmem:[%s10813_s25 + $0x16a0] sm:$0xff]  ;;  %978 = vst [vmem:[%s10818_s6 + $0xb40] sm:$0xff] %v977_v2  ;;  %980 = vst [vmem:[%s10818_s6 + $0xb48] sm:$0xff] %v979_v3  ;;  %v983_v5 = vld [vmem:[%s10813_s25 + $0x16a8] sm:$0xff] }
  0xf6   : > { %982 = vst [vmem:[%s10818_s6 + $0xb50] sm:$0xff] %v981_v4  ;;  %v985_v6 = vld [vmem:[%s10813_s25 + $0x16c0] sm:$0xff]  ;;  %v987_v7 = vld [vmem:[%s10813_s25 + $0x16c8] sm:$0xff]  ;;  %984 = vst [vmem:[%s10818_s6 + $0xb58] sm:$0xff] %v983_v5 }
  0xf7   : > { %986 = vst [vmem:[%s10818_s6 + $0xb60] sm:$0xff] %v985_v6  ;;  %988 = vst [vmem:[%s10818_s6 + $0xb68] sm:$0xff] %v987_v7  ;;  %v989_v8 = vld [vmem:[%s10813_s25 + $0x16e0] sm:$0xff]  ;;  %v991_v9 = vld [vmem:[%s10813_s25 + $0x16e8] sm:$0xff] }
  0xf8   : > { %v993_v10 = vld [vmem:[%s10813_s25 + $0x1700] sm:$0xff]  ;;  %990 = vst [vmem:[%s10818_s6 + $0xb70] sm:$0xff] %v989_v8  ;;  %992 = vst [vmem:[%s10818_s6 + $0xb78] sm:$0xff] %v991_v9  ;;  %v995_v11 = vld [vmem:[%s10813_s25 + $0x1708] sm:$0xff] }
  0xf9   : > { %994 = vst [vmem:[%s10818_s6 + $0xb80] sm:$0xff] %v993_v10  ;;  %v997_v12 = vld [vmem:[%s10813_s25 + $0x1720] sm:$0xff]  ;;  %v999_v13 = vld [vmem:[%s10813_s25 + $0x1728] sm:$0xff]  ;;  %996 = vst [vmem:[%s10818_s6 + $0xb88] sm:$0xff] %v995_v11 }
  0xfa   : > { %998 = vst [vmem:[%s10818_s6 + $0xb90] sm:$0xff] %v997_v12  ;;  %1000 = vst [vmem:[%s10818_s6 + $0xb98] sm:$0xff] %v999_v13  ;;  %v1001_v14 = vld [vmem:[%s10813_s25 + $0x1740] sm:$0xff]  ;;  %v1003_v15 = vld [vmem:[%s10813_s25 + $0x1748] sm:$0xff] }
  0xfb   : > { %v1005_v16 = vld [vmem:[%s10813_s25 + $0x1760] sm:$0xff]  ;;  %1002 = vst [vmem:[%s10818_s6 + $0xba0] sm:$0xff] %v1001_v14  ;;  %1004 = vst [vmem:[%s10818_s6 + $0xba8] sm:$0xff] %v1003_v15  ;;  %v1007_v17 = vld [vmem:[%s10813_s25 + $0x1768] sm:$0xff] }
  0xfc   : > { %1006 = vst [vmem:[%s10818_s6 + $0xbb0] sm:$0xff] %v1005_v16  ;;  %v1009_v18 = vld [vmem:[%s10813_s25 + $0x1780] sm:$0xff]  ;;  %v1011_v19 = vld [vmem:[%s10813_s25 + $0x1788] sm:$0xff]  ;;  %1008 = vst [vmem:[%s10818_s6 + $0xbb8] sm:$0xff] %v1007_v17 }
  0xfd   : > { %1010 = vst [vmem:[%s10818_s6 + $0xbc0] sm:$0xff] %v1009_v18  ;;  %1012 = vst [vmem:[%s10818_s6 + $0xbc8] sm:$0xff] %v1011_v19  ;;  %v1013_v20 = vld [vmem:[%s10813_s25 + $0x17a0] sm:$0xff]  ;;  %v1015_v21 = vld [vmem:[%s10813_s25 + $0x17a8] sm:$0xff] }
  0xfe   : > { %v1017_v22 = vld [vmem:[%s10813_s25 + $0x17c0] sm:$0xff]  ;;  %1014 = vst [vmem:[%s10818_s6 + $0xbd0] sm:$0xff] %v1013_v20  ;;  %1016 = vst [vmem:[%s10818_s6 + $0xbd8] sm:$0xff] %v1015_v21  ;;  %v1019_v23 = vld [vmem:[%s10813_s25 + $0x17c8] sm:$0xff] }
  0xff   : > { %1018 = vst [vmem:[%s10818_s6 + $0xbe0] sm:$0xff] %v1017_v22  ;;  %v1021_v24 = vld [vmem:[%s10813_s25 + $0x17e0] sm:$0xff]  ;;  %v1023_v25 = vld [vmem:[%s10813_s25 + $0x17e8] sm:$0xff]  ;;  %1020 = vst [vmem:[%s10818_s6 + $0xbe8] sm:$0xff] %v1019_v23 }
 0x100   : > { %1022 = vst [vmem:[%s10818_s6 + $0xbf0] sm:$0xff] %v1021_v24  ;;  %1024 = vst [vmem:[%s10818_s6 + $0xbf8] sm:$0xff] %v1023_v25  ;;  %v1025_v26 = vld [vmem:[%s10813_s25 + $0x1800] sm:$0xff]  ;;  %v1027_v27 = vld [vmem:[%s10813_s25 + $0x1808] sm:$0xff] }
 0x101   : > { %v1029_v28 = vld [vmem:[%s10813_s25 + $0x1820] sm:$0xff]  ;;  %1026 = vst [vmem:[%s10818_s6 + $0xc00] sm:$0xff] %v1025_v26  ;;  %1028 = vst [vmem:[%s10818_s6 + $0xc08] sm:$0xff] %v1027_v27  ;;  %v1031_v29 = vld [vmem:[%s10813_s25 + $0x1828] sm:$0xff] }
 0x102   : > { %1030 = vst [vmem:[%s10818_s6 + $0xc10] sm:$0xff] %v1029_v28  ;;  %v1033_v30 = vld [vmem:[%s10813_s25 + $0x1840] sm:$0xff]  ;;  %v1035_v31 = vld [vmem:[%s10813_s25 + $0x1848] sm:$0xff]  ;;  %1032 = vst [vmem:[%s10818_s6 + $0xc18] sm:$0xff] %v1031_v29 }
 0x103   : > { %1034 = vst [vmem:[%s10818_s6 + $0xc20] sm:$0xff] %v1033_v30  ;;  %1036 = vst [vmem:[%s10818_s6 + $0xc28] sm:$0xff] %v1035_v31  ;;  %v1037_v32 = vld [vmem:[%s10813_s25 + $0x1860] sm:$0xff]  ;;  %v1039_v33 = vld [vmem:[%s10813_s25 + $0x1868] sm:$0xff] }
 0x104   : > { %v1041_v34 = vld [vmem:[%s10813_s25 + $0x1880] sm:$0xff]  ;;  %1038 = vst [vmem:[%s10818_s6 + $0xc30] sm:$0xff] %v1037_v32  ;;  %1040 = vst [vmem:[%s10818_s6 + $0xc38] sm:$0xff] %v1039_v33  ;;  %v1043_v35 = vld [vmem:[%s10813_s25 + $0x1888] sm:$0xff] }
 0x105   : > { %1042 = vst [vmem:[%s10818_s6 + $0xc40] sm:$0xff] %v1041_v34  ;;  %v1045_v36 = vld [vmem:[%s10813_s25 + $0x18a0] sm:$0xff]  ;;  %v1047_v37 = vld [vmem:[%s10813_s25 + $0x18a8] sm:$0xff]  ;;  %1044 = vst [vmem:[%s10818_s6 + $0xc48] sm:$0xff] %v1043_v35 }
 0x106   : > { %1046 = vst [vmem:[%s10818_s6 + $0xc50] sm:$0xff] %v1045_v36  ;;  %1048 = vst [vmem:[%s10818_s6 + $0xc58] sm:$0xff] %v1047_v37  ;;  %v1049_v38 = vld [vmem:[%s10813_s25 + $0x18c0] sm:$0xff]  ;;  %v1051_v39 = vld [vmem:[%s10813_s25 + $0x18c8] sm:$0xff] }
 0x107   : > { %v1053_v40 = vld [vmem:[%s10813_s25 + $0x18e0] sm:$0xff]  ;;  %1050 = vst [vmem:[%s10818_s6 + $0xc60] sm:$0xff] %v1049_v38  ;;  %1052 = vst [vmem:[%s10818_s6 + $0xc68] sm:$0xff] %v1051_v39  ;;  %v1055_v41 = vld [vmem:[%s10813_s25 + $0x18e8] sm:$0xff] }
 0x108   : > { %1054 = vst [vmem:[%s10818_s6 + $0xc70] sm:$0xff] %v1053_v40  ;;  %v1057_v42 = vld [vmem:[%s10813_s25 + $0x1900] sm:$0xff]  ;;  %v1059_v43 = vld [vmem:[%s10813_s25 + $0x1908] sm:$0xff]  ;;  %1056 = vst [vmem:[%s10818_s6 + $0xc78] sm:$0xff] %v1055_v41 }
 0x109   : > { %1058 = vst [vmem:[%s10818_s6 + $0xc80] sm:$0xff] %v1057_v42  ;;  %1060 = vst [vmem:[%s10818_s6 + $0xc88] sm:$0xff] %v1059_v43  ;;  %v1061_v44 = vld [vmem:[%s10813_s25 + $0x1920] sm:$0xff]  ;;  %v1063_v45 = vld [vmem:[%s10813_s25 + $0x1928] sm:$0xff] }
 0x10a   : > { %v1065_v46 = vld [vmem:[%s10813_s25 + $0x1940] sm:$0xff]  ;;  %1062 = vst [vmem:[%s10818_s6 + $0xc90] sm:$0xff] %v1061_v44  ;;  %1064 = vst [vmem:[%s10818_s6 + $0xc98] sm:$0xff] %v1063_v45  ;;  %v1067_v47 = vld [vmem:[%s10813_s25 + $0x1948] sm:$0xff] }
 0x10b   : > { %1066 = vst [vmem:[%s10818_s6 + $0xca0] sm:$0xff] %v1065_v46  ;;  %v1069_v48 = vld [vmem:[%s10813_s25 + $0x1960] sm:$0xff]  ;;  %v1071_v49 = vld [vmem:[%s10813_s25 + $0x1968] sm:$0xff]  ;;  %1068 = vst [vmem:[%s10818_s6 + $0xca8] sm:$0xff] %v1067_v47 }
 0x10c   : > { %1070 = vst [vmem:[%s10818_s6 + $0xcb0] sm:$0xff] %v1069_v48  ;;  %1072 = vst [vmem:[%s10818_s6 + $0xcb8] sm:$0xff] %v1071_v49  ;;  %v1073_v50 = vld [vmem:[%s10813_s25 + $0x1980] sm:$0xff]  ;;  %v1075_v51 = vld [vmem:[%s10813_s25 + $0x1988] sm:$0xff] }
 0x10d   : > { %v1077_v52 = vld [vmem:[%s10813_s25 + $0x19a0] sm:$0xff]  ;;  %1074 = vst [vmem:[%s10818_s6 + $0xcc0] sm:$0xff] %v1073_v50  ;;  %1076 = vst [vmem:[%s10818_s6 + $0xcc8] sm:$0xff] %v1075_v51  ;;  %v1079_v53 = vld [vmem:[%s10813_s25 + $0x19a8] sm:$0xff] }
 0x10e   : > { %1078 = vst [vmem:[%s10818_s6 + $0xcd0] sm:$0xff] %v1077_v52  ;;  %v1081_v54 = vld [vmem:[%s10813_s25 + $0x19c0] sm:$0xff]  ;;  %v1083_v55 = vld [vmem:[%s10813_s25 + $0x19c8] sm:$0xff]  ;;  %1080 = vst [vmem:[%s10818_s6 + $0xcd8] sm:$0xff] %v1079_v53 }
 0x10f   : > { %1082 = vst [vmem:[%s10818_s6 + $0xce0] sm:$0xff] %v1081_v54  ;;  %1084 = vst [vmem:[%s10818_s6 + $0xce8] sm:$0xff] %v1083_v55  ;;  %v1085_v56 = vld [vmem:[%s10813_s25 + $0x19e0] sm:$0xff]  ;;  %v1087_v57 = vld [vmem:[%s10813_s25 + $0x19e8] sm:$0xff] }
 0x110   : > { %v1089_v58 = vld [vmem:[%s10813_s25 + $0x1a00] sm:$0xff]  ;;  %1086 = vst [vmem:[%s10818_s6 + $0xcf0] sm:$0xff] %v1085_v56  ;;  %1088 = vst [vmem:[%s10818_s6 + $0xcf8] sm:$0xff] %v1087_v57  ;;  %v1091_v59 = vld [vmem:[%s10813_s25 + $0x1a08] sm:$0xff] }
 0x111   : > { %1090 = vst [vmem:[%s10818_s6 + $0xd00] sm:$0xff] %v1089_v58  ;;  %v1093_v60 = vld [vmem:[%s10813_s25 + $0x1a20] sm:$0xff]  ;;  %v1095_v61 = vld [vmem:[%s10813_s25 + $0x1a28] sm:$0xff]  ;;  %1092 = vst [vmem:[%s10818_s6 + $0xd08] sm:$0xff] %v1091_v59 }
 0x112   : > { %1094 = vst [vmem:[%s10818_s6 + $0xd10] sm:$0xff] %v1093_v60  ;;  %1096 = vst [vmem:[%s10818_s6 + $0xd18] sm:$0xff] %v1095_v61  ;;  %v1097_v62 = vld [vmem:[%s10813_s25 + $0x1a40] sm:$0xff]  ;;  %v1099_v63 = vld [vmem:[%s10813_s25 + $0x1a48] sm:$0xff] }
 0x113   : > { %v1101_v0 = vld [vmem:[%s10813_s25 + $0x1a60] sm:$0xff]  ;;  %1098 = vst [vmem:[%s10818_s6 + $0xd20] sm:$0xff] %v1097_v62  ;;  %1100 = vst [vmem:[%s10818_s6 + $0xd28] sm:$0xff] %v1099_v63  ;;  %v1103_v1 = vld [vmem:[%s10813_s25 + $0x1a68] sm:$0xff] }
 0x114   : > { %1102 = vst [vmem:[%s10818_s6 + $0xd30] sm:$0xff] %v1101_v0  ;;  %v1105_v2 = vld [vmem:[%s10813_s25 + $0x1a80] sm:$0xff]  ;;  %v1107_v3 = vld [vmem:[%s10813_s25 + $0x1a88] sm:$0xff]  ;;  %1104 = vst [vmem:[%s10818_s6 + $0xd38] sm:$0xff] %v1103_v1 }
 0x115   : > { %1106 = vst [vmem:[%s10818_s6 + $0xd40] sm:$0xff] %v1105_v2  ;;  %1108 = vst [vmem:[%s10818_s6 + $0xd48] sm:$0xff] %v1107_v3  ;;  %v1109_v4 = vld [vmem:[%s10813_s25 + $0x1aa0] sm:$0xff]  ;;  %v1111_v5 = vld [vmem:[%s10813_s25 + $0x1aa8] sm:$0xff] }
 0x116   : > { %v1113_v6 = vld [vmem:[%s10813_s25 + $0x1ac0] sm:$0xff]  ;;  %1110 = vst [vmem:[%s10818_s6 + $0xd50] sm:$0xff] %v1109_v4  ;;  %1112 = vst [vmem:[%s10818_s6 + $0xd58] sm:$0xff] %v1111_v5  ;;  %v1115_v7 = vld [vmem:[%s10813_s25 + $0x1ac8] sm:$0xff] }
 0x117   : > { %1114 = vst [vmem:[%s10818_s6 + $0xd60] sm:$0xff] %v1113_v6  ;;  %v1117_v8 = vld [vmem:[%s10813_s25 + $0x1ae0] sm:$0xff]  ;;  %v1119_v9 = vld [vmem:[%s10813_s25 + $0x1ae8] sm:$0xff]  ;;  %1116 = vst [vmem:[%s10818_s6 + $0xd68] sm:$0xff] %v1115_v7 }
 0x118   : > { %1118 = vst [vmem:[%s10818_s6 + $0xd70] sm:$0xff] %v1117_v8  ;;  %1120 = vst [vmem:[%s10818_s6 + $0xd78] sm:$0xff] %v1119_v9  ;;  %v1121_v10 = vld [vmem:[%s10813_s25 + $0x1b00] sm:$0xff]  ;;  %v1123_v11 = vld [vmem:[%s10813_s25 + $0x1b08] sm:$0xff] }
 0x119   : > { %v1125_v12 = vld [vmem:[%s10813_s25 + $0x1b20] sm:$0xff]  ;;  %1122 = vst [vmem:[%s10818_s6 + $0xd80] sm:$0xff] %v1121_v10  ;;  %1124 = vst [vmem:[%s10818_s6 + $0xd88] sm:$0xff] %v1123_v11  ;;  %v1127_v13 = vld [vmem:[%s10813_s25 + $0x1b28] sm:$0xff] }
 0x11a   : > { %1126 = vst [vmem:[%s10818_s6 + $0xd90] sm:$0xff] %v1125_v12  ;;  %v1129_v14 = vld [vmem:[%s10813_s25 + $0x1b40] sm:$0xff]  ;;  %v1131_v15 = vld [vmem:[%s10813_s25 + $0x1b48] sm:$0xff]  ;;  %1128 = vst [vmem:[%s10818_s6 + $0xd98] sm:$0xff] %v1127_v13 }
 0x11b   : > { %1130 = vst [vmem:[%s10818_s6 + $0xda0] sm:$0xff] %v1129_v14  ;;  %1132 = vst [vmem:[%s10818_s6 + $0xda8] sm:$0xff] %v1131_v15  ;;  %v1133_v16 = vld [vmem:[%s10813_s25 + $0x1b60] sm:$0xff]  ;;  %v1135_v17 = vld [vmem:[%s10813_s25 + $0x1b68] sm:$0xff] }
 0x11c   : > { %v1137_v18 = vld [vmem:[%s10813_s25 + $0x1b80] sm:$0xff]  ;;  %1134 = vst [vmem:[%s10818_s6 + $0xdb0] sm:$0xff] %v1133_v16  ;;  %1136 = vst [vmem:[%s10818_s6 + $0xdb8] sm:$0xff] %v1135_v17  ;;  %v1139_v19 = vld [vmem:[%s10813_s25 + $0x1b88] sm:$0xff] }
 0x11d   : > { %1138 = vst [vmem:[%s10818_s6 + $0xdc0] sm:$0xff] %v1137_v18  ;;  %v1141_v20 = vld [vmem:[%s10813_s25 + $0x1ba0] sm:$0xff]  ;;  %v1143_v21 = vld [vmem:[%s10813_s25 + $0x1ba8] sm:$0xff]  ;;  %1140 = vst [vmem:[%s10818_s6 + $0xdc8] sm:$0xff] %v1139_v19 }
 0x11e   : > { %1142 = vst [vmem:[%s10818_s6 + $0xdd0] sm:$0xff] %v1141_v20  ;;  %1144 = vst [vmem:[%s10818_s6 + $0xdd8] sm:$0xff] %v1143_v21  ;;  %v1145_v22 = vld [vmem:[%s10813_s25 + $0x1bc0] sm:$0xff]  ;;  %v1147_v23 = vld [vmem:[%s10813_s25 + $0x1bc8] sm:$0xff] }
 0x11f   : > { %v1149_v24 = vld [vmem:[%s10813_s25 + $0x1be0] sm:$0xff]  ;;  %1146 = vst [vmem:[%s10818_s6 + $0xde0] sm:$0xff] %v1145_v22  ;;  %1148 = vst [vmem:[%s10818_s6 + $0xde8] sm:$0xff] %v1147_v23  ;;  %v1151_v25 = vld [vmem:[%s10813_s25 + $0x1be8] sm:$0xff] }
 0x120   : > { %1150 = vst [vmem:[%s10818_s6 + $0xdf0] sm:$0xff] %v1149_v24  ;;  %v1153_v26 = vld [vmem:[%s10813_s25 + $0x1c00] sm:$0xff]  ;;  %v1155_v27 = vld [vmem:[%s10813_s25 + $0x1c08] sm:$0xff]  ;;  %1152 = vst [vmem:[%s10818_s6 + $0xdf8] sm:$0xff] %v1151_v25 }
 0x121   : > { %1154 = vst [vmem:[%s10818_s6 + $0xe00] sm:$0xff] %v1153_v26  ;;  %1156 = vst [vmem:[%s10818_s6 + $0xe08] sm:$0xff] %v1155_v27  ;;  %v1157_v28 = vld [vmem:[%s10813_s25 + $0x1c20] sm:$0xff]  ;;  %v1159_v29 = vld [vmem:[%s10813_s25 + $0x1c28] sm:$0xff] }
 0x122   : > { %v1161_v30 = vld [vmem:[%s10813_s25 + $0x1c40] sm:$0xff]  ;;  %1158 = vst [vmem:[%s10818_s6 + $0xe10] sm:$0xff] %v1157_v28  ;;  %1160 = vst [vmem:[%s10818_s6 + $0xe18] sm:$0xff] %v1159_v29  ;;  %v1163_v31 = vld [vmem:[%s10813_s25 + $0x1c48] sm:$0xff] }
 0x123   : > { %1162 = vst [vmem:[%s10818_s6 + $0xe20] sm:$0xff] %v1161_v30  ;;  %v1165_v32 = vld [vmem:[%s10813_s25 + $0x1c60] sm:$0xff]  ;;  %v1167_v33 = vld [vmem:[%s10813_s25 + $0x1c68] sm:$0xff]  ;;  %1164 = vst [vmem:[%s10818_s6 + $0xe28] sm:$0xff] %v1163_v31 }
 0x124   : > { %1166 = vst [vmem:[%s10818_s6 + $0xe30] sm:$0xff] %v1165_v32  ;;  %1168 = vst [vmem:[%s10818_s6 + $0xe38] sm:$0xff] %v1167_v33  ;;  %v1169_v34 = vld [vmem:[%s10813_s25 + $0x1c80] sm:$0xff]  ;;  %v1171_v35 = vld [vmem:[%s10813_s25 + $0x1c88] sm:$0xff] }
 0x125   : > { %v1173_v36 = vld [vmem:[%s10813_s25 + $0x1ca0] sm:$0xff]  ;;  %1170 = vst [vmem:[%s10818_s6 + $0xe40] sm:$0xff] %v1169_v34  ;;  %1172 = vst [vmem:[%s10818_s6 + $0xe48] sm:$0xff] %v1171_v35  ;;  %v1175_v37 = vld [vmem:[%s10813_s25 + $0x1ca8] sm:$0xff] }
 0x126   : > { %1174 = vst [vmem:[%s10818_s6 + $0xe50] sm:$0xff] %v1173_v36  ;;  %v1177_v38 = vld [vmem:[%s10813_s25 + $0x1cc0] sm:$0xff]  ;;  %v1179_v39 = vld [vmem:[%s10813_s25 + $0x1cc8] sm:$0xff]  ;;  %1176 = vst [vmem:[%s10818_s6 + $0xe58] sm:$0xff] %v1175_v37 }
 0x127   : > { %1178 = vst [vmem:[%s10818_s6 + $0xe60] sm:$0xff] %v1177_v38  ;;  %1180 = vst [vmem:[%s10818_s6 + $0xe68] sm:$0xff] %v1179_v39  ;;  %v1181_v40 = vld [vmem:[%s10813_s25 + $0x1ce0] sm:$0xff]  ;;  %v1183_v41 = vld [vmem:[%s10813_s25 + $0x1ce8] sm:$0xff] }
 0x128   : > { %v1185_v42 = vld [vmem:[%s10813_s25 + $0x1d00] sm:$0xff]  ;;  %1182 = vst [vmem:[%s10818_s6 + $0xe70] sm:$0xff] %v1181_v40  ;;  %1184 = vst [vmem:[%s10818_s6 + $0xe78] sm:$0xff] %v1183_v41  ;;  %v1187_v43 = vld [vmem:[%s10813_s25 + $0x1d08] sm:$0xff] }
 0x129   : > { %1186 = vst [vmem:[%s10818_s6 + $0xe80] sm:$0xff] %v1185_v42  ;;  %v1189_v44 = vld [vmem:[%s10813_s25 + $0x1d20] sm:$0xff]  ;;  %v1191_v45 = vld [vmem:[%s10813_s25 + $0x1d28] sm:$0xff]  ;;  %1188 = vst [vmem:[%s10818_s6 + $0xe88] sm:$0xff] %v1187_v43 }
 0x12a   : > { %1190 = vst [vmem:[%s10818_s6 + $0xe90] sm:$0xff] %v1189_v44  ;;  %1192 = vst [vmem:[%s10818_s6 + $0xe98] sm:$0xff] %v1191_v45  ;;  %v1193_v46 = vld [vmem:[%s10813_s25 + $0x1d40] sm:$0xff]  ;;  %v1195_v47 = vld [vmem:[%s10813_s25 + $0x1d48] sm:$0xff] }
 0x12b   : > { %v1197_v48 = vld [vmem:[%s10813_s25 + $0x1d60] sm:$0xff]  ;;  %1194 = vst [vmem:[%s10818_s6 + $0xea0] sm:$0xff] %v1193_v46  ;;  %1196 = vst [vmem:[%s10818_s6 + $0xea8] sm:$0xff] %v1195_v47  ;;  %v1199_v49 = vld [vmem:[%s10813_s25 + $0x1d68] sm:$0xff] }
 0x12c   : > { %1198 = vst [vmem:[%s10818_s6 + $0xeb0] sm:$0xff] %v1197_v48  ;;  %v1201_v50 = vld [vmem:[%s10813_s25 + $0x1d80] sm:$0xff]  ;;  %v1203_v51 = vld [vmem:[%s10813_s25 + $0x1d88] sm:$0xff]  ;;  %1200 = vst [vmem:[%s10818_s6 + $0xeb8] sm:$0xff] %v1199_v49 }
 0x12d   : > { %1202 = vst [vmem:[%s10818_s6 + $0xec0] sm:$0xff] %v1201_v50  ;;  %1204 = vst [vmem:[%s10818_s6 + $0xec8] sm:$0xff] %v1203_v51  ;;  %v1205_v52 = vld [vmem:[%s10813_s25 + $0x1da0] sm:$0xff]  ;;  %v1207_v53 = vld [vmem:[%s10813_s25 + $0x1da8] sm:$0xff] }
 0x12e   : > { %v1209_v54 = vld [vmem:[%s10813_s25 + $0x1dc0] sm:$0xff]  ;;  %1206 = vst [vmem:[%s10818_s6 + $0xed0] sm:$0xff] %v1205_v52  ;;  %1208 = vst [vmem:[%s10818_s6 + $0xed8] sm:$0xff] %v1207_v53  ;;  %v1211_v55 = vld [vmem:[%s10813_s25 + $0x1dc8] sm:$0xff] }
 0x12f   : > { %1210 = vst [vmem:[%s10818_s6 + $0xee0] sm:$0xff] %v1209_v54  ;;  %v1213_v56 = vld [vmem:[%s10813_s25 + $0x1de0] sm:$0xff]  ;;  %v1215_v57 = vld [vmem:[%s10813_s25 + $0x1de8] sm:$0xff]  ;;  %1212 = vst [vmem:[%s10818_s6 + $0xee8] sm:$0xff] %v1211_v55 }
 0x130   : > { %1214 = vst [vmem:[%s10818_s6 + $0xef0] sm:$0xff] %v1213_v56  ;;  %1216 = vst [vmem:[%s10818_s6 + $0xef8] sm:$0xff] %v1215_v57  ;;  %v1217_v58 = vld [vmem:[%s10813_s25 + $0x1e00] sm:$0xff]  ;;  %v1219_v59 = vld [vmem:[%s10813_s25 + $0x1e08] sm:$0xff] }
 0x131   : > { %v1221_v60 = vld [vmem:[%s10813_s25 + $0x1e20] sm:$0xff]  ;;  %1218 = vst [vmem:[%s10818_s6 + $0xf00] sm:$0xff] %v1217_v58  ;;  %1220 = vst [vmem:[%s10818_s6 + $0xf08] sm:$0xff] %v1219_v59  ;;  %v1223_v61 = vld [vmem:[%s10813_s25 + $0x1e28] sm:$0xff] }
 0x132   : > { %1222 = vst [vmem:[%s10818_s6 + $0xf10] sm:$0xff] %v1221_v60  ;;  %v1225_v62 = vld [vmem:[%s10813_s25 + $0x1e40] sm:$0xff]  ;;  %v1227_v63 = vld [vmem:[%s10813_s25 + $0x1e48] sm:$0xff]  ;;  %1224 = vst [vmem:[%s10818_s6 + $0xf18] sm:$0xff] %v1223_v61 }
 0x133   : > { %1226 = vst [vmem:[%s10818_s6 + $0xf20] sm:$0xff] %v1225_v62  ;;  %1228 = vst [vmem:[%s10818_s6 + $0xf28] sm:$0xff] %v1227_v63  ;;  %v1229_v0 = vld [vmem:[%s10813_s25 + $0x1e60] sm:$0xff]  ;;  %v1231_v1 = vld [vmem:[%s10813_s25 + $0x1e68] sm:$0xff] }
 0x134   : > { %v1233_v2 = vld [vmem:[%s10813_s25 + $0x1e80] sm:$0xff]  ;;  %1230 = vst [vmem:[%s10818_s6 + $0xf30] sm:$0xff] %v1229_v0  ;;  %1232 = vst [vmem:[%s10818_s6 + $0xf38] sm:$0xff] %v1231_v1  ;;  %v1235_v3 = vld [vmem:[%s10813_s25 + $0x1e88] sm:$0xff] }
 0x135   : > { %1234 = vst [vmem:[%s10818_s6 + $0xf40] sm:$0xff] %v1233_v2  ;;  %v1237_v4 = vld [vmem:[%s10813_s25 + $0x1ea0] sm:$0xff]  ;;  %v1239_v5 = vld [vmem:[%s10813_s25 + $0x1ea8] sm:$0xff]  ;;  %1236 = vst [vmem:[%s10818_s6 + $0xf48] sm:$0xff] %v1235_v3 }
 0x136   : > { %1238 = vst [vmem:[%s10818_s6 + $0xf50] sm:$0xff] %v1237_v4  ;;  %1240 = vst [vmem:[%s10818_s6 + $0xf58] sm:$0xff] %v1239_v5  ;;  %v1241_v6 = vld [vmem:[%s10813_s25 + $0x1ec0] sm:$0xff]  ;;  %v1243_v7 = vld [vmem:[%s10813_s25 + $0x1ec8] sm:$0xff] }
 0x137   : > { %v1245_v8 = vld [vmem:[%s10813_s25 + $0x1ee0] sm:$0xff]  ;;  %1242 = vst [vmem:[%s10818_s6 + $0xf60] sm:$0xff] %v1241_v6  ;;  %1244 = vst [vmem:[%s10818_s6 + $0xf68] sm:$0xff] %v1243_v7  ;;  %v1247_v9 = vld [vmem:[%s10813_s25 + $0x1ee8] sm:$0xff] }
 0x138   : > { %1246 = vst [vmem:[%s10818_s6 + $0xf70] sm:$0xff] %v1245_v8  ;;  %v1249_v10 = vld [vmem:[%s10813_s25 + $0x1f00] sm:$0xff]  ;;  %v1251_v11 = vld [vmem:[%s10813_s25 + $0x1f08] sm:$0xff]  ;;  %1248 = vst [vmem:[%s10818_s6 + $0xf78] sm:$0xff] %v1247_v9 }
 0x139   : > { %1250 = vst [vmem:[%s10818_s6 + $0xf80] sm:$0xff] %v1249_v10  ;;  %1252 = vst [vmem:[%s10818_s6 + $0xf88] sm:$0xff] %v1251_v11  ;;  %v1253_v12 = vld [vmem:[%s10813_s25 + $0x1f20] sm:$0xff]  ;;  %v1255_v13 = vld [vmem:[%s10813_s25 + $0x1f28] sm:$0xff] }
 0x13a   : > { %v1257_v14 = vld [vmem:[%s10813_s25 + $0x1f40] sm:$0xff]  ;;  %1254 = vst [vmem:[%s10818_s6 + $0xf90] sm:$0xff] %v1253_v12  ;;  %1256 = vst [vmem:[%s10818_s6 + $0xf98] sm:$0xff] %v1255_v13  ;;  %v1259_v15 = vld [vmem:[%s10813_s25 + $0x1f48] sm:$0xff] }
 0x13b   : > { %1258 = vst [vmem:[%s10818_s6 + $0xfa0] sm:$0xff] %v1257_v14  ;;  %v1261_v16 = vld [vmem:[%s10813_s25 + $0x1f60] sm:$0xff]  ;;  %v1263_v17 = vld [vmem:[%s10813_s25 + $0x1f68] sm:$0xff]  ;;  %1260 = vst [vmem:[%s10818_s6 + $0xfa8] sm:$0xff] %v1259_v15 }
 0x13c   : > { %1262 = vst [vmem:[%s10818_s6 + $0xfb0] sm:$0xff] %v1261_v16  ;;  %1264 = vst [vmem:[%s10818_s6 + $0xfb8] sm:$0xff] %v1263_v17  ;;  %v1265_v18 = vld [vmem:[%s10813_s25 + $0x1f80] sm:$0xff]  ;;  %v1267_v19 = vld [vmem:[%s10813_s25 + $0x1f88] sm:$0xff] }
 0x13d   : > { %v1269_v20 = vld [vmem:[%s10813_s25 + $0x1fa0] sm:$0xff]  ;;  %1266 = vst [vmem:[%s10818_s6 + $0xfc0] sm:$0xff] %v1265_v18  ;;  %1268 = vst [vmem:[%s10818_s6 + $0xfc8] sm:$0xff] %v1267_v19  ;;  %v1271_v21 = vld [vmem:[%s10813_s25 + $0x1fa8] sm:$0xff] }
 0x13e   : > { %1270 = vst [vmem:[%s10818_s6 + $0xfd0] sm:$0xff] %v1269_v20  ;;  %v1273_v22 = vld [vmem:[%s10813_s25 + $0x1fc0] sm:$0xff]  ;;  %v1275_v23 = vld [vmem:[%s10813_s25 + $0x1fc8] sm:$0xff]  ;;  %1272 = vst [vmem:[%s10818_s6 + $0xfd8] sm:$0xff] %v1271_v21 }
 0x13f   : > { %1274 = vst [vmem:[%s10818_s6 + $0xfe0] sm:$0xff] %v1273_v22  ;;  %1276 = vst [vmem:[%s10818_s6 + $0xfe8] sm:$0xff] %v1275_v23  ;;  %v1277_v24 = vld [vmem:[%s10813_s25 + $0x1fe0] sm:$0xff]  ;;  %v1279_v25 = vld [vmem:[%s10813_s25 + $0x1fe8] sm:$0xff] }
 0x140   : > { %v1281_v26 = vld [vmem:[%s10813_s25 + $0x2000] sm:$0xff]  ;;  %1278 = vst [vmem:[%s10818_s6 + $0xff0] sm:$0xff] %v1277_v24  ;;  %1280 = vst [vmem:[%s10818_s6 + $0xff8] sm:$0xff] %v1279_v25  ;;  %v1283_v27 = vld [vmem:[%s10813_s25 + $0x2008] sm:$0xff] }
 0x141   : > { %1282 = vst [vmem:[%s10818_s6 + $0x1000] sm:$0xff] %v1281_v26  ;;  %v1285_v28 = vld [vmem:[%s10813_s25 + $0x2020] sm:$0xff]  ;;  %v1287_v29 = vld [vmem:[%s10813_s25 + $0x2028] sm:$0xff]  ;;  %1284 = vst [vmem:[%s10818_s6 + $0x1008] sm:$0xff] %v1283_v27 }
 0x142   : > { %1286 = vst [vmem:[%s10818_s6 + $0x1010] sm:$0xff] %v1285_v28  ;;  %1288 = vst [vmem:[%s10818_s6 + $0x1018] sm:$0xff] %v1287_v29  ;;  %v1289_v30 = vld [vmem:[%s10813_s25 + $0x2040] sm:$0xff]  ;;  %v1291_v31 = vld [vmem:[%s10813_s25 + $0x2048] sm:$0xff] }
 0x143   : > { %v1293_v32 = vld [vmem:[%s10813_s25 + $0x2060] sm:$0xff]  ;;  %1290 = vst [vmem:[%s10818_s6 + $0x1020] sm:$0xff] %v1289_v30  ;;  %1292 = vst [vmem:[%s10818_s6 + $0x1028] sm:$0xff] %v1291_v31  ;;  %v1295_v33 = vld [vmem:[%s10813_s25 + $0x2068] sm:$0xff] }
 0x144   : > { %1294 = vst [vmem:[%s10818_s6 + $0x1030] sm:$0xff] %v1293_v32  ;;  %v1297_v34 = vld [vmem:[%s10813_s25 + $0x2080] sm:$0xff]  ;;  %v1299_v35 = vld [vmem:[%s10813_s25 + $0x2088] sm:$0xff]  ;;  %1296 = vst [vmem:[%s10818_s6 + $0x1038] sm:$0xff] %v1295_v33 }
 0x145   : > { %1298 = vst [vmem:[%s10818_s6 + $0x1040] sm:$0xff] %v1297_v34  ;;  %1300 = vst [vmem:[%s10818_s6 + $0x1048] sm:$0xff] %v1299_v35  ;;  %v1301_v36 = vld [vmem:[%s10813_s25 + $0x20a0] sm:$0xff]  ;;  %v1303_v37 = vld [vmem:[%s10813_s25 + $0x20a8] sm:$0xff] }
 0x146   : > { %v1305_v38 = vld [vmem:[%s10813_s25 + $0x20c0] sm:$0xff]  ;;  %1302 = vst [vmem:[%s10818_s6 + $0x1050] sm:$0xff] %v1301_v36  ;;  %1304 = vst [vmem:[%s10818_s6 + $0x1058] sm:$0xff] %v1303_v37  ;;  %v1307_v39 = vld [vmem:[%s10813_s25 + $0x20c8] sm:$0xff] }
 0x147   : > { %1306 = vst [vmem:[%s10818_s6 + $0x1060] sm:$0xff] %v1305_v38  ;;  %v1309_v40 = vld [vmem:[%s10813_s25 + $0x20e0] sm:$0xff]  ;;  %v1311_v41 = vld [vmem:[%s10813_s25 + $0x20e8] sm:$0xff]  ;;  %1308 = vst [vmem:[%s10818_s6 + $0x1068] sm:$0xff] %v1307_v39 }
 0x148   : > { %1310 = vst [vmem:[%s10818_s6 + $0x1070] sm:$0xff] %v1309_v40  ;;  %1312 = vst [vmem:[%s10818_s6 + $0x1078] sm:$0xff] %v1311_v41  ;;  %v1313_v42 = vld [vmem:[%s10813_s25 + $0x2100] sm:$0xff]  ;;  %v1315_v43 = vld [vmem:[%s10813_s25 + $0x2108] sm:$0xff] }
 0x149   : > { %v1317_v44 = vld [vmem:[%s10813_s25 + $0x2120] sm:$0xff]  ;;  %1314 = vst [vmem:[%s10818_s6 + $0x1080] sm:$0xff] %v1313_v42  ;;  %1316 = vst [vmem:[%s10818_s6 + $0x1088] sm:$0xff] %v1315_v43  ;;  %v1319_v45 = vld [vmem:[%s10813_s25 + $0x2128] sm:$0xff] }
 0x14a   : > { %1318 = vst [vmem:[%s10818_s6 + $0x1090] sm:$0xff] %v1317_v44  ;;  %v1321_v46 = vld [vmem:[%s10813_s25 + $0x2140] sm:$0xff]  ;;  %v1323_v47 = vld [vmem:[%s10813_s25 + $0x2148] sm:$0xff]  ;;  %1320 = vst [vmem:[%s10818_s6 + $0x1098] sm:$0xff] %v1319_v45 }
 0x14b   : > { %1322 = vst [vmem:[%s10818_s6 + $0x10a0] sm:$0xff] %v1321_v46  ;;  %1324 = vst [vmem:[%s10818_s6 + $0x10a8] sm:$0xff] %v1323_v47  ;;  %v1325_v48 = vld [vmem:[%s10813_s25 + $0x2160] sm:$0xff]  ;;  %v1327_v49 = vld [vmem:[%s10813_s25 + $0x2168] sm:$0xff] }
 0x14c   : > { %v1329_v50 = vld [vmem:[%s10813_s25 + $0x2180] sm:$0xff]  ;;  %1326 = vst [vmem:[%s10818_s6 + $0x10b0] sm:$0xff] %v1325_v48  ;;  %1328 = vst [vmem:[%s10818_s6 + $0x10b8] sm:$0xff] %v1327_v49  ;;  %v1331_v51 = vld [vmem:[%s10813_s25 + $0x2188] sm:$0xff] }
 0x14d   : > { %1330 = vst [vmem:[%s10818_s6 + $0x10c0] sm:$0xff] %v1329_v50  ;;  %v1333_v52 = vld [vmem:[%s10813_s25 + $0x21a0] sm:$0xff]  ;;  %v1335_v53 = vld [vmem:[%s10813_s25 + $0x21a8] sm:$0xff]  ;;  %1332 = vst [vmem:[%s10818_s6 + $0x10c8] sm:$0xff] %v1331_v51 }
 0x14e   : > { %1334 = vst [vmem:[%s10818_s6 + $0x10d0] sm:$0xff] %v1333_v52  ;;  %1336 = vst [vmem:[%s10818_s6 + $0x10d8] sm:$0xff] %v1335_v53  ;;  %v1337_v54 = vld [vmem:[%s10813_s25 + $0x21c0] sm:$0xff]  ;;  %v1339_v55 = vld [vmem:[%s10813_s25 + $0x21c8] sm:$0xff] }
 0x14f   : > { %v1341_v56 = vld [vmem:[%s10813_s25 + $0x21e0] sm:$0xff]  ;;  %1338 = vst [vmem:[%s10818_s6 + $0x10e0] sm:$0xff] %v1337_v54  ;;  %1340 = vst [vmem:[%s10818_s6 + $0x10e8] sm:$0xff] %v1339_v55  ;;  %v1343_v57 = vld [vmem:[%s10813_s25 + $0x21e8] sm:$0xff] }
 0x150   : > { %1342 = vst [vmem:[%s10818_s6 + $0x10f0] sm:$0xff] %v1341_v56  ;;  %v1345_v58 = vld [vmem:[%s10813_s25 + $0x2200] sm:$0xff]  ;;  %v1347_v59 = vld [vmem:[%s10813_s25 + $0x2208] sm:$0xff]  ;;  %1344 = vst [vmem:[%s10818_s6 + $0x10f8] sm:$0xff] %v1343_v57 }
 0x151   : > { %1346 = vst [vmem:[%s10818_s6 + $0x1100] sm:$0xff] %v1345_v58  ;;  %1348 = vst [vmem:[%s10818_s6 + $0x1108] sm:$0xff] %v1347_v59  ;;  %v1349_v60 = vld [vmem:[%s10813_s25 + $0x2220] sm:$0xff]  ;;  %v1351_v61 = vld [vmem:[%s10813_s25 + $0x2228] sm:$0xff] }
 0x152   : > { %v1353_v62 = vld [vmem:[%s10813_s25 + $0x2240] sm:$0xff]  ;;  %1350 = vst [vmem:[%s10818_s6 + $0x1110] sm:$0xff] %v1349_v60  ;;  %1352 = vst [vmem:[%s10818_s6 + $0x1118] sm:$0xff] %v1351_v61  ;;  %v1355_v63 = vld [vmem:[%s10813_s25 + $0x2248] sm:$0xff] }
 0x153   : > { %1354 = vst [vmem:[%s10818_s6 + $0x1120] sm:$0xff] %v1353_v62  ;;  %v1357_v0 = vld [vmem:[%s10813_s25 + $0x2260] sm:$0xff]  ;;  %v1359_v1 = vld [vmem:[%s10813_s25 + $0x2268] sm:$0xff]  ;;  %1356 = vst [vmem:[%s10818_s6 + $0x1128] sm:$0xff] %v1355_v63 }
 0x154   : > { %1358 = vst [vmem:[%s10818_s6 + $0x1130] sm:$0xff] %v1357_v0  ;;  %1360 = vst [vmem:[%s10818_s6 + $0x1138] sm:$0xff] %v1359_v1  ;;  %v1361_v2 = vld [vmem:[%s10813_s25 + $0x2280] sm:$0xff]  ;;  %v1363_v3 = vld [vmem:[%s10813_s25 + $0x2288] sm:$0xff] }
 0x155   : > { %v1365_v4 = vld [vmem:[%s10813_s25 + $0x22a0] sm:$0xff]  ;;  %1362 = vst [vmem:[%s10818_s6 + $0x1140] sm:$0xff] %v1361_v2  ;;  %1364 = vst [vmem:[%s10818_s6 + $0x1148] sm:$0xff] %v1363_v3  ;;  %v1367_v5 = vld [vmem:[%s10813_s25 + $0x22a8] sm:$0xff] }
 0x156   : > { %1366 = vst [vmem:[%s10818_s6 + $0x1150] sm:$0xff] %v1365_v4  ;;  %v1369_v6 = vld [vmem:[%s10813_s25 + $0x22c0] sm:$0xff]  ;;  %v1371_v7 = vld [vmem:[%s10813_s25 + $0x22c8] sm:$0xff]  ;;  %1368 = vst [vmem:[%s10818_s6 + $0x1158] sm:$0xff] %v1367_v5 }
 0x157   : > { %1370 = vst [vmem:[%s10818_s6 + $0x1160] sm:$0xff] %v1369_v6  ;;  %1372 = vst [vmem:[%s10818_s6 + $0x1168] sm:$0xff] %v1371_v7  ;;  %v1373_v8 = vld [vmem:[%s10813_s25 + $0x22e0] sm:$0xff]  ;;  %v1375_v9 = vld [vmem:[%s10813_s25 + $0x22e8] sm:$0xff] }
 0x158   : > { %v1377_v10 = vld [vmem:[%s10813_s25 + $0x2300] sm:$0xff]  ;;  %1374 = vst [vmem:[%s10818_s6 + $0x1170] sm:$0xff] %v1373_v8  ;;  %1376 = vst [vmem:[%s10818_s6 + $0x1178] sm:$0xff] %v1375_v9  ;;  %v1379_v11 = vld [vmem:[%s10813_s25 + $0x2308] sm:$0xff] }
 0x159   : > { %1378 = vst [vmem:[%s10818_s6 + $0x1180] sm:$0xff] %v1377_v10  ;;  %v1381_v12 = vld [vmem:[%s10813_s25 + $0x2320] sm:$0xff]  ;;  %v1383_v13 = vld [vmem:[%s10813_s25 + $0x2328] sm:$0xff]  ;;  %1380 = vst [vmem:[%s10818_s6 + $0x1188] sm:$0xff] %v1379_v11 }
 0x15a   : > { %1382 = vst [vmem:[%s10818_s6 + $0x1190] sm:$0xff] %v1381_v12  ;;  %1384 = vst [vmem:[%s10818_s6 + $0x1198] sm:$0xff] %v1383_v13  ;;  %v1385_v14 = vld [vmem:[%s10813_s25 + $0x2340] sm:$0xff]  ;;  %v1387_v15 = vld [vmem:[%s10813_s25 + $0x2348] sm:$0xff] }
 0x15b   : > { %v1389_v16 = vld [vmem:[%s10813_s25 + $0x2360] sm:$0xff]  ;;  %1386 = vst [vmem:[%s10818_s6 + $0x11a0] sm:$0xff] %v1385_v14  ;;  %1388 = vst [vmem:[%s10818_s6 + $0x11a8] sm:$0xff] %v1387_v15  ;;  %v1391_v17 = vld [vmem:[%s10813_s25 + $0x2368] sm:$0xff] }
 0x15c   : > { %1390 = vst [vmem:[%s10818_s6 + $0x11b0] sm:$0xff] %v1389_v16  ;;  %v1393_v18 = vld [vmem:[%s10813_s25 + $0x2380] sm:$0xff]  ;;  %v1395_v19 = vld [vmem:[%s10813_s25 + $0x2388] sm:$0xff]  ;;  %1392 = vst [vmem:[%s10818_s6 + $0x11b8] sm:$0xff] %v1391_v17 }
 0x15d   : > { %1394 = vst [vmem:[%s10818_s6 + $0x11c0] sm:$0xff] %v1393_v18  ;;  %1396 = vst [vmem:[%s10818_s6 + $0x11c8] sm:$0xff] %v1395_v19  ;;  %v1397_v20 = vld [vmem:[%s10813_s25 + $0x23a0] sm:$0xff]  ;;  %v1399_v21 = vld [vmem:[%s10813_s25 + $0x23a8] sm:$0xff] }
 0x15e   : > { %v1401_v22 = vld [vmem:[%s10813_s25 + $0x23c0] sm:$0xff]  ;;  %1398 = vst [vmem:[%s10818_s6 + $0x11d0] sm:$0xff] %v1397_v20  ;;  %1400 = vst [vmem:[%s10818_s6 + $0x11d8] sm:$0xff] %v1399_v21  ;;  %v1403_v23 = vld [vmem:[%s10813_s25 + $0x23c8] sm:$0xff] }
 0x15f   : > { %1402 = vst [vmem:[%s10818_s6 + $0x11e0] sm:$0xff] %v1401_v22  ;;  %v1405_v24 = vld [vmem:[%s10813_s25 + $0x23e0] sm:$0xff]  ;;  %v1407_v25 = vld [vmem:[%s10813_s25 + $0x23e8] sm:$0xff]  ;;  %1404 = vst [vmem:[%s10818_s6 + $0x11e8] sm:$0xff] %v1403_v23 }
 0x160   : > { %1406 = vst [vmem:[%s10818_s6 + $0x11f0] sm:$0xff] %v1405_v24  ;;  %1408 = vst [vmem:[%s10818_s6 + $0x11f8] sm:$0xff] %v1407_v25  ;;  %v1409_v26 = vld [vmem:[%s10813_s25 + $0x2400] sm:$0xff]  ;;  %v1411_v27 = vld [vmem:[%s10813_s25 + $0x2408] sm:$0xff] }
 0x161   : > { %v1413_v28 = vld [vmem:[%s10813_s25 + $0x2420] sm:$0xff]  ;;  %1410 = vst [vmem:[%s10818_s6 + $0x1200] sm:$0xff] %v1409_v26  ;;  %1412 = vst [vmem:[%s10818_s6 + $0x1208] sm:$0xff] %v1411_v27  ;;  %v1415_v29 = vld [vmem:[%s10813_s25 + $0x2428] sm:$0xff] }
 0x162   : > { %1414 = vst [vmem:[%s10818_s6 + $0x1210] sm:$0xff] %v1413_v28  ;;  %v1417_v30 = vld [vmem:[%s10813_s25 + $0x2440] sm:$0xff]  ;;  %v1419_v31 = vld [vmem:[%s10813_s25 + $0x2448] sm:$0xff]  ;;  %1416 = vst [vmem:[%s10818_s6 + $0x1218] sm:$0xff] %v1415_v29 }
 0x163   : > { %1418 = vst [vmem:[%s10818_s6 + $0x1220] sm:$0xff] %v1417_v30  ;;  %1420 = vst [vmem:[%s10818_s6 + $0x1228] sm:$0xff] %v1419_v31  ;;  %v1421_v32 = vld [vmem:[%s10813_s25 + $0x2460] sm:$0xff]  ;;  %v1423_v33 = vld [vmem:[%s10813_s25 + $0x2468] sm:$0xff] }
 0x164   : > { %v1425_v34 = vld [vmem:[%s10813_s25 + $0x2480] sm:$0xff]  ;;  %1422 = vst [vmem:[%s10818_s6 + $0x1230] sm:$0xff] %v1421_v32  ;;  %1424 = vst [vmem:[%s10818_s6 + $0x1238] sm:$0xff] %v1423_v33  ;;  %v1427_v35 = vld [vmem:[%s10813_s25 + $0x2488] sm:$0xff] }
 0x165   : > { %1426 = vst [vmem:[%s10818_s6 + $0x1240] sm:$0xff] %v1425_v34  ;;  %v1429_v36 = vld [vmem:[%s10813_s25 + $0x24a0] sm:$0xff]  ;;  %v1431_v37 = vld [vmem:[%s10813_s25 + $0x24a8] sm:$0xff]  ;;  %1428 = vst [vmem:[%s10818_s6 + $0x1248] sm:$0xff] %v1427_v35 }
 0x166   : > { %1430 = vst [vmem:[%s10818_s6 + $0x1250] sm:$0xff] %v1429_v36  ;;  %1432 = vst [vmem:[%s10818_s6 + $0x1258] sm:$0xff] %v1431_v37  ;;  %v1433_v38 = vld [vmem:[%s10813_s25 + $0x24c0] sm:$0xff]  ;;  %v1435_v39 = vld [vmem:[%s10813_s25 + $0x24c8] sm:$0xff] }
 0x167   : > { %v1437_v40 = vld [vmem:[%s10813_s25 + $0x24e0] sm:$0xff]  ;;  %1434 = vst [vmem:[%s10818_s6 + $0x1260] sm:$0xff] %v1433_v38  ;;  %1436 = vst [vmem:[%s10818_s6 + $0x1268] sm:$0xff] %v1435_v39  ;;  %v1439_v41 = vld [vmem:[%s10813_s25 + $0x24e8] sm:$0xff] }
 0x168   : > { %1438 = vst [vmem:[%s10818_s6 + $0x1270] sm:$0xff] %v1437_v40  ;;  %v1441_v42 = vld [vmem:[%s10813_s25 + $0x2500] sm:$0xff]  ;;  %v1443_v43 = vld [vmem:[%s10813_s25 + $0x2508] sm:$0xff]  ;;  %1440 = vst [vmem:[%s10818_s6 + $0x1278] sm:$0xff] %v1439_v41 }
 0x169   : > { %1442 = vst [vmem:[%s10818_s6 + $0x1280] sm:$0xff] %v1441_v42  ;;  %1444 = vst [vmem:[%s10818_s6 + $0x1288] sm:$0xff] %v1443_v43  ;;  %v1445_v44 = vld [vmem:[%s10813_s25 + $0x2520] sm:$0xff]  ;;  %v1447_v45 = vld [vmem:[%s10813_s25 + $0x2528] sm:$0xff] }
 0x16a   : > { %v1449_v46 = vld [vmem:[%s10813_s25 + $0x2540] sm:$0xff]  ;;  %1446 = vst [vmem:[%s10818_s6 + $0x1290] sm:$0xff] %v1445_v44  ;;  %1448 = vst [vmem:[%s10818_s6 + $0x1298] sm:$0xff] %v1447_v45  ;;  %v1451_v47 = vld [vmem:[%s10813_s25 + $0x2548] sm:$0xff] }
 0x16b   : > { %1450 = vst [vmem:[%s10818_s6 + $0x12a0] sm:$0xff] %v1449_v46  ;;  %v1453_v48 = vld [vmem:[%s10813_s25 + $0x2560] sm:$0xff]  ;;  %v1455_v49 = vld [vmem:[%s10813_s25 + $0x2568] sm:$0xff]  ;;  %1452 = vst [vmem:[%s10818_s6 + $0x12a8] sm:$0xff] %v1451_v47 }
 0x16c   : > { %1454 = vst [vmem:[%s10818_s6 + $0x12b0] sm:$0xff] %v1453_v48  ;;  %1456 = vst [vmem:[%s10818_s6 + $0x12b8] sm:$0xff] %v1455_v49  ;;  %v1457_v50 = vld [vmem:[%s10813_s25 + $0x2580] sm:$0xff]  ;;  %v1459_v51 = vld [vmem:[%s10813_s25 + $0x2588] sm:$0xff] }
 0x16d   : > { %v1461_v52 = vld [vmem:[%s10813_s25 + $0x25a0] sm:$0xff]  ;;  %1458 = vst [vmem:[%s10818_s6 + $0x12c0] sm:$0xff] %v1457_v50  ;;  %1460 = vst [vmem:[%s10818_s6 + $0x12c8] sm:$0xff] %v1459_v51  ;;  %v1463_v53 = vld [vmem:[%s10813_s25 + $0x25a8] sm:$0xff] }
 0x16e   : > { %1462 = vst [vmem:[%s10818_s6 + $0x12d0] sm:$0xff] %v1461_v52  ;;  %v1465_v54 = vld [vmem:[%s10813_s25 + $0x25c0] sm:$0xff]  ;;  %v1467_v55 = vld [vmem:[%s10813_s25 + $0x25c8] sm:$0xff]  ;;  %1464 = vst [vmem:[%s10818_s6 + $0x12d8] sm:$0xff] %v1463_v53 }
 0x16f   : > { %1466 = vst [vmem:[%s10818_s6 + $0x12e0] sm:$0xff] %v1465_v54  ;;  %1468 = vst [vmem:[%s10818_s6 + $0x12e8] sm:$0xff] %v1467_v55  ;;  %v1469_v56 = vld [vmem:[%s10813_s25 + $0x25e0] sm:$0xff]  ;;  %v1471_v57 = vld [vmem:[%s10813_s25 + $0x25e8] sm:$0xff] }
 0x170   : > { %v1473_v58 = vld [vmem:[%s10813_s25 + $0x2600] sm:$0xff]  ;;  %1470 = vst [vmem:[%s10818_s6 + $0x12f0] sm:$0xff] %v1469_v56  ;;  %1472 = vst [vmem:[%s10818_s6 + $0x12f8] sm:$0xff] %v1471_v57  ;;  %v1475_v59 = vld [vmem:[%s10813_s25 + $0x2608] sm:$0xff] }
 0x171   : > { %1474 = vst [vmem:[%s10818_s6 + $0x1300] sm:$0xff] %v1473_v58  ;;  %v1477_v60 = vld [vmem:[%s10813_s25 + $0x2620] sm:$0xff]  ;;  %v1479_v61 = vld [vmem:[%s10813_s25 + $0x2628] sm:$0xff]  ;;  %1476 = vst [vmem:[%s10818_s6 + $0x1308] sm:$0xff] %v1475_v59 }
 0x172   : > { %1478 = vst [vmem:[%s10818_s6 + $0x1310] sm:$0xff] %v1477_v60  ;;  %1480 = vst [vmem:[%s10818_s6 + $0x1318] sm:$0xff] %v1479_v61  ;;  %v1481_v62 = vld [vmem:[%s10813_s25 + $0x2640] sm:$0xff]  ;;  %v1483_v63 = vld [vmem:[%s10813_s25 + $0x2648] sm:$0xff] }
 0x173   : > { %v1485_v0 = vld [vmem:[%s10813_s25 + $0x2660] sm:$0xff]  ;;  %1482 = vst [vmem:[%s10818_s6 + $0x1320] sm:$0xff] %v1481_v62  ;;  %1484 = vst [vmem:[%s10818_s6 + $0x1328] sm:$0xff] %v1483_v63  ;;  %v1487_v1 = vld [vmem:[%s10813_s25 + $0x2668] sm:$0xff] }
 0x174   : > { %1486 = vst [vmem:[%s10818_s6 + $0x1330] sm:$0xff] %v1485_v0  ;;  %v1489_v2 = vld [vmem:[%s10813_s25 + $0x2680] sm:$0xff]  ;;  %v1491_v3 = vld [vmem:[%s10813_s25 + $0x2688] sm:$0xff]  ;;  %1488 = vst [vmem:[%s10818_s6 + $0x1338] sm:$0xff] %v1487_v1 }
 0x175   : > { %1490 = vst [vmem:[%s10818_s6 + $0x1340] sm:$0xff] %v1489_v2  ;;  %1492 = vst [vmem:[%s10818_s6 + $0x1348] sm:$0xff] %v1491_v3  ;;  %v1493_v4 = vld [vmem:[%s10813_s25 + $0x26a0] sm:$0xff]  ;;  %v1495_v5 = vld [vmem:[%s10813_s25 + $0x26a8] sm:$0xff] }
 0x176   : > { %v1497_v6 = vld [vmem:[%s10813_s25 + $0x26c0] sm:$0xff]  ;;  %1494 = vst [vmem:[%s10818_s6 + $0x1350] sm:$0xff] %v1493_v4  ;;  %1496 = vst [vmem:[%s10818_s6 + $0x1358] sm:$0xff] %v1495_v5  ;;  %v1499_v7 = vld [vmem:[%s10813_s25 + $0x26c8] sm:$0xff] }
 0x177   : > { %1498 = vst [vmem:[%s10818_s6 + $0x1360] sm:$0xff] %v1497_v6  ;;  %v1501_v8 = vld [vmem:[%s10813_s25 + $0x26e0] sm:$0xff]  ;;  %v1503_v9 = vld [vmem:[%s10813_s25 + $0x26e8] sm:$0xff]  ;;  %1500 = vst [vmem:[%s10818_s6 + $0x1368] sm:$0xff] %v1499_v7 }
 0x178   : > { %1502 = vst [vmem:[%s10818_s6 + $0x1370] sm:$0xff] %v1501_v8  ;;  %1504 = vst [vmem:[%s10818_s6 + $0x1378] sm:$0xff] %v1503_v9  ;;  %v1505_v10 = vld [vmem:[%s10813_s25 + $0x2700] sm:$0xff]  ;;  %v1507_v11 = vld [vmem:[%s10813_s25 + $0x2708] sm:$0xff] }
 0x179   : > { %v1509_v12 = vld [vmem:[%s10813_s25 + $0x2720] sm:$0xff]  ;;  %1506 = vst [vmem:[%s10818_s6 + $0x1380] sm:$0xff] %v1505_v10  ;;  %1508 = vst [vmem:[%s10818_s6 + $0x1388] sm:$0xff] %v1507_v11  ;;  %v1511_v13 = vld [vmem:[%s10813_s25 + $0x2728] sm:$0xff] }
 0x17a   : > { %1510 = vst [vmem:[%s10818_s6 + $0x1390] sm:$0xff] %v1509_v12  ;;  %v1513_v14 = vld [vmem:[%s10813_s25 + $0x2740] sm:$0xff]  ;;  %v1515_v15 = vld [vmem:[%s10813_s25 + $0x2748] sm:$0xff]  ;;  %1512 = vst [vmem:[%s10818_s6 + $0x1398] sm:$0xff] %v1511_v13 }
 0x17b   : > { %1514 = vst [vmem:[%s10818_s6 + $0x13a0] sm:$0xff] %v1513_v14  ;;  %1516 = vst [vmem:[%s10818_s6 + $0x13a8] sm:$0xff] %v1515_v15  ;;  %v1517_v16 = vld [vmem:[%s10813_s25 + $0x2760] sm:$0xff]  ;;  %v1519_v17 = vld [vmem:[%s10813_s25 + $0x2768] sm:$0xff] }
 0x17c   : > { %v1521_v18 = vld [vmem:[%s10813_s25 + $0x2780] sm:$0xff]  ;;  %1518 = vst [vmem:[%s10818_s6 + $0x13b0] sm:$0xff] %v1517_v16  ;;  %1520 = vst [vmem:[%s10818_s6 + $0x13b8] sm:$0xff] %v1519_v17  ;;  %v1523_v19 = vld [vmem:[%s10813_s25 + $0x2788] sm:$0xff] }
 0x17d   : > { %1522 = vst [vmem:[%s10818_s6 + $0x13c0] sm:$0xff] %v1521_v18  ;;  %v1525_v20 = vld [vmem:[%s10813_s25 + $0x27a0] sm:$0xff]  ;;  %v1527_v21 = vld [vmem:[%s10813_s25 + $0x27a8] sm:$0xff]  ;;  %1524 = vst [vmem:[%s10818_s6 + $0x13c8] sm:$0xff] %v1523_v19 }
 0x17e   : > { %1526 = vst [vmem:[%s10818_s6 + $0x13d0] sm:$0xff] %v1525_v20  ;;  %1528 = vst [vmem:[%s10818_s6 + $0x13d8] sm:$0xff] %v1527_v21  ;;  %v1529_v22 = vld [vmem:[%s10813_s25 + $0x27c0] sm:$0xff]  ;;  %v1531_v23 = vld [vmem:[%s10813_s25 + $0x27c8] sm:$0xff] }
 0x17f   : > { %v1533_v24 = vld [vmem:[%s10813_s25 + $0x27e0] sm:$0xff]  ;;  %1530 = vst [vmem:[%s10818_s6 + $0x13e0] sm:$0xff] %v1529_v22  ;;  %1532 = vst [vmem:[%s10818_s6 + $0x13e8] sm:$0xff] %v1531_v23  ;;  %v1535_v25 = vld [vmem:[%s10813_s25 + $0x27e8] sm:$0xff] }
 0x180   : > { %1534 = vst [vmem:[%s10818_s6 + $0x13f0] sm:$0xff] %v1533_v24  ;;  %v1537_v26 = vld [vmem:[%s10813_s25 + $0x2800] sm:$0xff]  ;;  %v1539_v27 = vld [vmem:[%s10813_s25 + $0x2808] sm:$0xff]  ;;  %1536 = vst [vmem:[%s10818_s6 + $0x13f8] sm:$0xff] %v1535_v25 }
 0x181   : > { %1538 = vst [vmem:[%s10818_s6 + $0x1400] sm:$0xff] %v1537_v26  ;;  %1540 = vst [vmem:[%s10818_s6 + $0x1408] sm:$0xff] %v1539_v27  ;;  %v1541_v28 = vld [vmem:[%s10813_s25 + $0x2820] sm:$0xff]  ;;  %v1543_v29 = vld [vmem:[%s10813_s25 + $0x2828] sm:$0xff] }
 0x182   : > { %v1545_v30 = vld [vmem:[%s10813_s25 + $0x2840] sm:$0xff]  ;;  %1542 = vst [vmem:[%s10818_s6 + $0x1410] sm:$0xff] %v1541_v28  ;;  %1544 = vst [vmem:[%s10818_s6 + $0x1418] sm:$0xff] %v1543_v29  ;;  %v1547_v31 = vld [vmem:[%s10813_s25 + $0x2848] sm:$0xff] }
 0x183   : > { %1546 = vst [vmem:[%s10818_s6 + $0x1420] sm:$0xff] %v1545_v30  ;;  %v1549_v32 = vld [vmem:[%s10813_s25 + $0x2860] sm:$0xff]  ;;  %v1551_v33 = vld [vmem:[%s10813_s25 + $0x2868] sm:$0xff]  ;;  %1548 = vst [vmem:[%s10818_s6 + $0x1428] sm:$0xff] %v1547_v31 }
 0x184   : > { %1550 = vst [vmem:[%s10818_s6 + $0x1430] sm:$0xff] %v1549_v32  ;;  %1552 = vst [vmem:[%s10818_s6 + $0x1438] sm:$0xff] %v1551_v33  ;;  %v1553_v34 = vld [vmem:[%s10813_s25 + $0x2880] sm:$0xff]  ;;  %v1555_v35 = vld [vmem:[%s10813_s25 + $0x2888] sm:$0xff] }
 0x185   : > { %v1557_v36 = vld [vmem:[%s10813_s25 + $0x28a0] sm:$0xff]  ;;  %1554 = vst [vmem:[%s10818_s6 + $0x1440] sm:$0xff] %v1553_v34  ;;  %1556 = vst [vmem:[%s10818_s6 + $0x1448] sm:$0xff] %v1555_v35  ;;  %v1559_v37 = vld [vmem:[%s10813_s25 + $0x28a8] sm:$0xff] }
 0x186   : > { %1558 = vst [vmem:[%s10818_s6 + $0x1450] sm:$0xff] %v1557_v36  ;;  %v1561_v38 = vld [vmem:[%s10813_s25 + $0x28c0] sm:$0xff]  ;;  %v1563_v39 = vld [vmem:[%s10813_s25 + $0x28c8] sm:$0xff]  ;;  %1560 = vst [vmem:[%s10818_s6 + $0x1458] sm:$0xff] %v1559_v37 }
 0x187   : > { %1562 = vst [vmem:[%s10818_s6 + $0x1460] sm:$0xff] %v1561_v38  ;;  %1564 = vst [vmem:[%s10818_s6 + $0x1468] sm:$0xff] %v1563_v39  ;;  %v1565_v40 = vld [vmem:[%s10813_s25 + $0x28e0] sm:$0xff]  ;;  %v1567_v41 = vld [vmem:[%s10813_s25 + $0x28e8] sm:$0xff] }
 0x188   : > { %v1569_v42 = vld [vmem:[%s10813_s25 + $0x2900] sm:$0xff]  ;;  %1566 = vst [vmem:[%s10818_s6 + $0x1470] sm:$0xff] %v1565_v40  ;;  %1568 = vst [vmem:[%s10818_s6 + $0x1478] sm:$0xff] %v1567_v41  ;;  %v1571_v43 = vld [vmem:[%s10813_s25 + $0x2908] sm:$0xff] }
 0x189   : > { %1570 = vst [vmem:[%s10818_s6 + $0x1480] sm:$0xff] %v1569_v42  ;;  %v1573_v44 = vld [vmem:[%s10813_s25 + $0x2920] sm:$0xff]  ;;  %v1575_v45 = vld [vmem:[%s10813_s25 + $0x2928] sm:$0xff]  ;;  %1572 = vst [vmem:[%s10818_s6 + $0x1488] sm:$0xff] %v1571_v43 }
 0x18a   : > { %1574 = vst [vmem:[%s10818_s6 + $0x1490] sm:$0xff] %v1573_v44  ;;  %1576 = vst [vmem:[%s10818_s6 + $0x1498] sm:$0xff] %v1575_v45  ;;  %v1577_v46 = vld [vmem:[%s10813_s25 + $0x2940] sm:$0xff]  ;;  %v1579_v47 = vld [vmem:[%s10813_s25 + $0x2948] sm:$0xff] }
 0x18b   : > { %v1581_v48 = vld [vmem:[%s10813_s25 + $0x2960] sm:$0xff]  ;;  %1578 = vst [vmem:[%s10818_s6 + $0x14a0] sm:$0xff] %v1577_v46  ;;  %1580 = vst [vmem:[%s10818_s6 + $0x14a8] sm:$0xff] %v1579_v47  ;;  %v1583_v49 = vld [vmem:[%s10813_s25 + $0x2968] sm:$0xff] }
 0x18c   : > { %1582 = vst [vmem:[%s10818_s6 + $0x14b0] sm:$0xff] %v1581_v48  ;;  %v1585_v50 = vld [vmem:[%s10813_s25 + $0x2980] sm:$0xff]  ;;  %v1587_v51 = vld [vmem:[%s10813_s25 + $0x2988] sm:$0xff]  ;;  %1584 = vst [vmem:[%s10818_s6 + $0x14b8] sm:$0xff] %v1583_v49 }
 0x18d   : > { %1586 = vst [vmem:[%s10818_s6 + $0x14c0] sm:$0xff] %v1585_v50  ;;  %1588 = vst [vmem:[%s10818_s6 + $0x14c8] sm:$0xff] %v1587_v51  ;;  %v1589_v52 = vld [vmem:[%s10813_s25 + $0x29a0] sm:$0xff]  ;;  %v1591_v53 = vld [vmem:[%s10813_s25 + $0x29a8] sm:$0xff] }
 0x18e   : > { %v1593_v54 = vld [vmem:[%s10813_s25 + $0x29c0] sm:$0xff]  ;;  %1590 = vst [vmem:[%s10818_s6 + $0x14d0] sm:$0xff] %v1589_v52  ;;  %1592 = vst [vmem:[%s10818_s6 + $0x14d8] sm:$0xff] %v1591_v53  ;;  %v1595_v55 = vld [vmem:[%s10813_s25 + $0x29c8] sm:$0xff] }
 0x18f   : > { %1594 = vst [vmem:[%s10818_s6 + $0x14e0] sm:$0xff] %v1593_v54  ;;  %v1597_v56 = vld [vmem:[%s10813_s25 + $0x29e0] sm:$0xff]  ;;  %v1599_v57 = vld [vmem:[%s10813_s25 + $0x29e8] sm:$0xff]  ;;  %1596 = vst [vmem:[%s10818_s6 + $0x14e8] sm:$0xff] %v1595_v55 }
 0x190   : > { %1598 = vst [vmem:[%s10818_s6 + $0x14f0] sm:$0xff] %v1597_v56  ;;  %1600 = vst [vmem:[%s10818_s6 + $0x14f8] sm:$0xff] %v1599_v57  ;;  %v1601_v58 = vld [vmem:[%s10813_s25 + $0x2a00] sm:$0xff]  ;;  %v1603_v59 = vld [vmem:[%s10813_s25 + $0x2a08] sm:$0xff] }
 0x191   : > { %v1605_v60 = vld [vmem:[%s10813_s25 + $0x2a20] sm:$0xff]  ;;  %1602 = vst [vmem:[%s10818_s6 + $0x1500] sm:$0xff] %v1601_v58  ;;  %1604 = vst [vmem:[%s10818_s6 + $0x1508] sm:$0xff] %v1603_v59  ;;  %v1607_v61 = vld [vmem:[%s10813_s25 + $0x2a28] sm:$0xff] }
 0x192   : > { %1606 = vst [vmem:[%s10818_s6 + $0x1510] sm:$0xff] %v1605_v60  ;;  %v1609_v62 = vld [vmem:[%s10813_s25 + $0x2a40] sm:$0xff]  ;;  %v1611_v63 = vld [vmem:[%s10813_s25 + $0x2a48] sm:$0xff]  ;;  %1608 = vst [vmem:[%s10818_s6 + $0x1518] sm:$0xff] %v1607_v61 }
 0x193   : > { %1610 = vst [vmem:[%s10818_s6 + $0x1520] sm:$0xff] %v1609_v62  ;;  %1612 = vst [vmem:[%s10818_s6 + $0x1528] sm:$0xff] %v1611_v63  ;;  %v1613_v0 = vld [vmem:[%s10813_s25 + $0x2a60] sm:$0xff]  ;;  %v1615_v1 = vld [vmem:[%s10813_s25 + $0x2a68] sm:$0xff] }
 0x194   : > { %v1617_v2 = vld [vmem:[%s10813_s25 + $0x2a80] sm:$0xff]  ;;  %1614 = vst [vmem:[%s10818_s6 + $0x1530] sm:$0xff] %v1613_v0  ;;  %1616 = vst [vmem:[%s10818_s6 + $0x1538] sm:$0xff] %v1615_v1  ;;  %v1619_v3 = vld [vmem:[%s10813_s25 + $0x2a88] sm:$0xff] }
 0x195   : > { %1618 = vst [vmem:[%s10818_s6 + $0x1540] sm:$0xff] %v1617_v2  ;;  %v1621_v4 = vld [vmem:[%s10813_s25 + $0x2aa0] sm:$0xff]  ;;  %v1623_v5 = vld [vmem:[%s10813_s25 + $0x2aa8] sm:$0xff]  ;;  %1620 = vst [vmem:[%s10818_s6 + $0x1548] sm:$0xff] %v1619_v3 }
 0x196   : > { %1622 = vst [vmem:[%s10818_s6 + $0x1550] sm:$0xff] %v1621_v4  ;;  %1624 = vst [vmem:[%s10818_s6 + $0x1558] sm:$0xff] %v1623_v5  ;;  %v1625_v6 = vld [vmem:[%s10813_s25 + $0x2ac0] sm:$0xff]  ;;  %v1627_v7 = vld [vmem:[%s10813_s25 + $0x2ac8] sm:$0xff] }
 0x197   : > { %v1629_v8 = vld [vmem:[%s10813_s25 + $0x2ae0] sm:$0xff]  ;;  %1626 = vst [vmem:[%s10818_s6 + $0x1560] sm:$0xff] %v1625_v6  ;;  %1628 = vst [vmem:[%s10818_s6 + $0x1568] sm:$0xff] %v1627_v7  ;;  %v1631_v9 = vld [vmem:[%s10813_s25 + $0x2ae8] sm:$0xff] }
 0x198   : > { %1630 = vst [vmem:[%s10818_s6 + $0x1570] sm:$0xff] %v1629_v8  ;;  %v1633_v10 = vld [vmem:[%s10813_s25 + $0x2b00] sm:$0xff]  ;;  %v1635_v11 = vld [vmem:[%s10813_s25 + $0x2b08] sm:$0xff]  ;;  %1632 = vst [vmem:[%s10818_s6 + $0x1578] sm:$0xff] %v1631_v9 }
 0x199   : > { %1634 = vst [vmem:[%s10818_s6 + $0x1580] sm:$0xff] %v1633_v10  ;;  %1636 = vst [vmem:[%s10818_s6 + $0x1588] sm:$0xff] %v1635_v11  ;;  %v1637_v12 = vld [vmem:[%s10813_s25 + $0x2b20] sm:$0xff]  ;;  %v1639_v13 = vld [vmem:[%s10813_s25 + $0x2b28] sm:$0xff] }
 0x19a   : > { %v1641_v14 = vld [vmem:[%s10813_s25 + $0x2b40] sm:$0xff]  ;;  %1638 = vst [vmem:[%s10818_s6 + $0x1590] sm:$0xff] %v1637_v12  ;;  %1640 = vst [vmem:[%s10818_s6 + $0x1598] sm:$0xff] %v1639_v13  ;;  %v1643_v15 = vld [vmem:[%s10813_s25 + $0x2b48] sm:$0xff] }
 0x19b   : > { %1642 = vst [vmem:[%s10818_s6 + $0x15a0] sm:$0xff] %v1641_v14  ;;  %v1645_v16 = vld [vmem:[%s10813_s25 + $0x2b60] sm:$0xff]  ;;  %v1647_v17 = vld [vmem:[%s10813_s25 + $0x2b68] sm:$0xff]  ;;  %1644 = vst [vmem:[%s10818_s6 + $0x15a8] sm:$0xff] %v1643_v15 }
 0x19c   : > { %1646 = vst [vmem:[%s10818_s6 + $0x15b0] sm:$0xff] %v1645_v16  ;;  %1648 = vst [vmem:[%s10818_s6 + $0x15b8] sm:$0xff] %v1647_v17  ;;  %v1649_v18 = vld [vmem:[%s10813_s25 + $0x2b80] sm:$0xff]  ;;  %v1651_v19 = vld [vmem:[%s10813_s25 + $0x2b88] sm:$0xff] }
 0x19d   : > { %v1653_v20 = vld [vmem:[%s10813_s25 + $0x2ba0] sm:$0xff]  ;;  %1650 = vst [vmem:[%s10818_s6 + $0x15c0] sm:$0xff] %v1649_v18  ;;  %1652 = vst [vmem:[%s10818_s6 + $0x15c8] sm:$0xff] %v1651_v19  ;;  %v1655_v21 = vld [vmem:[%s10813_s25 + $0x2ba8] sm:$0xff] }
 0x19e   : > { %1654 = vst [vmem:[%s10818_s6 + $0x15d0] sm:$0xff] %v1653_v20  ;;  %v1657_v22 = vld [vmem:[%s10813_s25 + $0x2bc0] sm:$0xff]  ;;  %v1659_v23 = vld [vmem:[%s10813_s25 + $0x2bc8] sm:$0xff]  ;;  %1656 = vst [vmem:[%s10818_s6 + $0x15d8] sm:$0xff] %v1655_v21 }
 0x19f   : > { %1658 = vst [vmem:[%s10818_s6 + $0x15e0] sm:$0xff] %v1657_v22  ;;  %1660 = vst [vmem:[%s10818_s6 + $0x15e8] sm:$0xff] %v1659_v23  ;;  %v1661_v24 = vld [vmem:[%s10813_s25 + $0x2be0] sm:$0xff]  ;;  %v1663_v25 = vld [vmem:[%s10813_s25 + $0x2be8] sm:$0xff] }
 0x1a0   : > { %v1665_v26 = vld [vmem:[%s10813_s25 + $0x2c00] sm:$0xff]  ;;  %1662 = vst [vmem:[%s10818_s6 + $0x15f0] sm:$0xff] %v1661_v24  ;;  %1664 = vst [vmem:[%s10818_s6 + $0x15f8] sm:$0xff] %v1663_v25  ;;  %v1667_v27 = vld [vmem:[%s10813_s25 + $0x2c08] sm:$0xff] }
 0x1a1   : > { %1666 = vst [vmem:[%s10818_s6 + $0x1600] sm:$0xff] %v1665_v26  ;;  %v1669_v28 = vld [vmem:[%s10813_s25 + $0x2c20] sm:$0xff]  ;;  %v1671_v29 = vld [vmem:[%s10813_s25 + $0x2c28] sm:$0xff]  ;;  %1668 = vst [vmem:[%s10818_s6 + $0x1608] sm:$0xff] %v1667_v27 }
 0x1a2   : > { %1670 = vst [vmem:[%s10818_s6 + $0x1610] sm:$0xff] %v1669_v28  ;;  %1672 = vst [vmem:[%s10818_s6 + $0x1618] sm:$0xff] %v1671_v29  ;;  %v1673_v30 = vld [vmem:[%s10813_s25 + $0x2c40] sm:$0xff]  ;;  %v1675_v31 = vld [vmem:[%s10813_s25 + $0x2c48] sm:$0xff] }
 0x1a3   : > { %v1677_v32 = vld [vmem:[%s10813_s25 + $0x2c60] sm:$0xff]  ;;  %1674 = vst [vmem:[%s10818_s6 + $0x1620] sm:$0xff] %v1673_v30  ;;  %1676 = vst [vmem:[%s10818_s6 + $0x1628] sm:$0xff] %v1675_v31  ;;  %v1679_v33 = vld [vmem:[%s10813_s25 + $0x2c68] sm:$0xff] }
 0x1a4   : > { %1678 = vst [vmem:[%s10818_s6 + $0x1630] sm:$0xff] %v1677_v32  ;;  %v1681_v34 = vld [vmem:[%s10813_s25 + $0x2c80] sm:$0xff]  ;;  %v1683_v35 = vld [vmem:[%s10813_s25 + $0x2c88] sm:$0xff]  ;;  %1680 = vst [vmem:[%s10818_s6 + $0x1638] sm:$0xff] %v1679_v33 }
 0x1a5   : > { %1682 = vst [vmem:[%s10818_s6 + $0x1640] sm:$0xff] %v1681_v34  ;;  %1684 = vst [vmem:[%s10818_s6 + $0x1648] sm:$0xff] %v1683_v35  ;;  %v1685_v36 = vld [vmem:[%s10813_s25 + $0x2ca0] sm:$0xff]  ;;  %v1687_v37 = vld [vmem:[%s10813_s25 + $0x2ca8] sm:$0xff] }
 0x1a6   : > { %v1689_v38 = vld [vmem:[%s10813_s25 + $0x2cc0] sm:$0xff]  ;;  %1686 = vst [vmem:[%s10818_s6 + $0x1650] sm:$0xff] %v1685_v36  ;;  %1688 = vst [vmem:[%s10818_s6 + $0x1658] sm:$0xff] %v1687_v37  ;;  %v1691_v39 = vld [vmem:[%s10813_s25 + $0x2cc8] sm:$0xff] }
 0x1a7   : > { %1690 = vst [vmem:[%s10818_s6 + $0x1660] sm:$0xff] %v1689_v38  ;;  %v1693_v40 = vld [vmem:[%s10813_s25 + $0x2ce0] sm:$0xff]  ;;  %v1695_v41 = vld [vmem:[%s10813_s25 + $0x2ce8] sm:$0xff]  ;;  %1692 = vst [vmem:[%s10818_s6 + $0x1668] sm:$0xff] %v1691_v39 }
 0x1a8   : > { %1694 = vst [vmem:[%s10818_s6 + $0x1670] sm:$0xff] %v1693_v40  ;;  %1696 = vst [vmem:[%s10818_s6 + $0x1678] sm:$0xff] %v1695_v41  ;;  %v1697_v42 = vld [vmem:[%s10813_s25 + $0x2d00] sm:$0xff]  ;;  %v1699_v43 = vld [vmem:[%s10813_s25 + $0x2d08] sm:$0xff] }
 0x1a9   : > { %v1701_v44 = vld [vmem:[%s10813_s25 + $0x2d20] sm:$0xff]  ;;  %1698 = vst [vmem:[%s10818_s6 + $0x1680] sm:$0xff] %v1697_v42  ;;  %1700 = vst [vmem:[%s10818_s6 + $0x1688] sm:$0xff] %v1699_v43  ;;  %v1703_v45 = vld [vmem:[%s10813_s25 + $0x2d28] sm:$0xff] }
 0x1aa   : > { %1702 = vst [vmem:[%s10818_s6 + $0x1690] sm:$0xff] %v1701_v44  ;;  %v1705_v46 = vld [vmem:[%s10813_s25 + $0x2d40] sm:$0xff]  ;;  %v1707_v47 = vld [vmem:[%s10813_s25 + $0x2d48] sm:$0xff]  ;;  %1704 = vst [vmem:[%s10818_s6 + $0x1698] sm:$0xff] %v1703_v45 }
 0x1ab   : > { %1706 = vst [vmem:[%s10818_s6 + $0x16a0] sm:$0xff] %v1705_v46  ;;  %1708 = vst [vmem:[%s10818_s6 + $0x16a8] sm:$0xff] %v1707_v47  ;;  %v1709_v48 = vld [vmem:[%s10813_s25 + $0x2d60] sm:$0xff]  ;;  %v1711_v49 = vld [vmem:[%s10813_s25 + $0x2d68] sm:$0xff] }
 0x1ac   : > { %v1713_v50 = vld [vmem:[%s10813_s25 + $0x2d80] sm:$0xff]  ;;  %1710 = vst [vmem:[%s10818_s6 + $0x16b0] sm:$0xff] %v1709_v48  ;;  %1712 = vst [vmem:[%s10818_s6 + $0x16b8] sm:$0xff] %v1711_v49  ;;  %v1715_v51 = vld [vmem:[%s10813_s25 + $0x2d88] sm:$0xff] }
 0x1ad   : > { %1714 = vst [vmem:[%s10818_s6 + $0x16c0] sm:$0xff] %v1713_v50  ;;  %v1717_v52 = vld [vmem:[%s10813_s25 + $0x2da0] sm:$0xff]  ;;  %v1719_v53 = vld [vmem:[%s10813_s25 + $0x2da8] sm:$0xff]  ;;  %1716 = vst [vmem:[%s10818_s6 + $0x16c8] sm:$0xff] %v1715_v51 }
 0x1ae   : > { %1718 = vst [vmem:[%s10818_s6 + $0x16d0] sm:$0xff] %v1717_v52  ;;  %1720 = vst [vmem:[%s10818_s6 + $0x16d8] sm:$0xff] %v1719_v53  ;;  %v1721_v54 = vld [vmem:[%s10813_s25 + $0x2dc0] sm:$0xff]  ;;  %v1723_v55 = vld [vmem:[%s10813_s25 + $0x2dc8] sm:$0xff] }
 0x1af   : > { %v1725_v56 = vld [vmem:[%s10813_s25 + $0x2de0] sm:$0xff]  ;;  %1722 = vst [vmem:[%s10818_s6 + $0x16e0] sm:$0xff] %v1721_v54  ;;  %1724 = vst [vmem:[%s10818_s6 + $0x16e8] sm:$0xff] %v1723_v55  ;;  %v1727_v57 = vld [vmem:[%s10813_s25 + $0x2de8] sm:$0xff] }
 0x1b0   : > { %1726 = vst [vmem:[%s10818_s6 + $0x16f0] sm:$0xff] %v1725_v56  ;;  %v1729_v58 = vld [vmem:[%s10813_s25 + $0x2e00] sm:$0xff]  ;;  %v1731_v59 = vld [vmem:[%s10813_s25 + $0x2e08] sm:$0xff]  ;;  %1728 = vst [vmem:[%s10818_s6 + $0x16f8] sm:$0xff] %v1727_v57 }
 0x1b1   : > { %1730 = vst [vmem:[%s10818_s6 + $0x1700] sm:$0xff] %v1729_v58  ;;  %1732 = vst [vmem:[%s10818_s6 + $0x1708] sm:$0xff] %v1731_v59  ;;  %v1733_v60 = vld [vmem:[%s10813_s25 + $0x2e20] sm:$0xff]  ;;  %v1735_v61 = vld [vmem:[%s10813_s25 + $0x2e28] sm:$0xff] }
 0x1b2   : > { %v1737_v62 = vld [vmem:[%s10813_s25 + $0x2e40] sm:$0xff]  ;;  %1734 = vst [vmem:[%s10818_s6 + $0x1710] sm:$0xff] %v1733_v60  ;;  %1736 = vst [vmem:[%s10818_s6 + $0x1718] sm:$0xff] %v1735_v61  ;;  %v1739_v63 = vld [vmem:[%s10813_s25 + $0x2e48] sm:$0xff] }
 0x1b3   : > { %1738 = vst [vmem:[%s10818_s6 + $0x1720] sm:$0xff] %v1737_v62  ;;  %v1741_v0 = vld [vmem:[%s10813_s25 + $0x2e60] sm:$0xff]  ;;  %v1743_v1 = vld [vmem:[%s10813_s25 + $0x2e68] sm:$0xff]  ;;  %1740 = vst [vmem:[%s10818_s6 + $0x1728] sm:$0xff] %v1739_v63 }
 0x1b4   : > { %1742 = vst [vmem:[%s10818_s6 + $0x1730] sm:$0xff] %v1741_v0  ;;  %1744 = vst [vmem:[%s10818_s6 + $0x1738] sm:$0xff] %v1743_v1  ;;  %v1745_v2 = vld [vmem:[%s10813_s25 + $0x2e80] sm:$0xff]  ;;  %v1747_v3 = vld [vmem:[%s10813_s25 + $0x2e88] sm:$0xff] }
 0x1b5   : > { %v1749_v4 = vld [vmem:[%s10813_s25 + $0x2ea0] sm:$0xff]  ;;  %1746 = vst [vmem:[%s10818_s6 + $0x1740] sm:$0xff] %v1745_v2  ;;  %1748 = vst [vmem:[%s10818_s6 + $0x1748] sm:$0xff] %v1747_v3  ;;  %v1751_v5 = vld [vmem:[%s10813_s25 + $0x2ea8] sm:$0xff] }
 0x1b6   : > { %1750 = vst [vmem:[%s10818_s6 + $0x1750] sm:$0xff] %v1749_v4  ;;  %v1753_v6 = vld [vmem:[%s10813_s25 + $0x2ec0] sm:$0xff]  ;;  %v1755_v7 = vld [vmem:[%s10813_s25 + $0x2ec8] sm:$0xff]  ;;  %1752 = vst [vmem:[%s10818_s6 + $0x1758] sm:$0xff] %v1751_v5 }
 0x1b7   : > { %1754 = vst [vmem:[%s10818_s6 + $0x1760] sm:$0xff] %v1753_v6  ;;  %1756 = vst [vmem:[%s10818_s6 + $0x1768] sm:$0xff] %v1755_v7  ;;  %v1757_v8 = vld [vmem:[%s10813_s25 + $0x2ee0] sm:$0xff]  ;;  %v1759_v9 = vld [vmem:[%s10813_s25 + $0x2ee8] sm:$0xff] }
 0x1b8   : > { %v1761_v10 = vld [vmem:[%s10813_s25 + $0x2f00] sm:$0xff]  ;;  %1758 = vst [vmem:[%s10818_s6 + $0x1770] sm:$0xff] %v1757_v8  ;;  %1760 = vst [vmem:[%s10818_s6 + $0x1778] sm:$0xff] %v1759_v9  ;;  %v1763_v11 = vld [vmem:[%s10813_s25 + $0x2f08] sm:$0xff] }
 0x1b9   : > { %1762 = vst [vmem:[%s10818_s6 + $0x1780] sm:$0xff] %v1761_v10  ;;  %v1765_v12 = vld [vmem:[%s10813_s25 + $0x2f20] sm:$0xff]  ;;  %v1767_v13 = vld [vmem:[%s10813_s25 + $0x2f28] sm:$0xff]  ;;  %1764 = vst [vmem:[%s10818_s6 + $0x1788] sm:$0xff] %v1763_v11 }
 0x1ba   : > { %1766 = vst [vmem:[%s10818_s6 + $0x1790] sm:$0xff] %v1765_v12  ;;  %1768 = vst [vmem:[%s10818_s6 + $0x1798] sm:$0xff] %v1767_v13  ;;  %v1769_v14 = vld [vmem:[%s10813_s25 + $0x2f40] sm:$0xff]  ;;  %v1771_v15 = vld [vmem:[%s10813_s25 + $0x2f48] sm:$0xff] }
 0x1bb   : > { %v1773_v16 = vld [vmem:[%s10813_s25 + $0x2f60] sm:$0xff]  ;;  %1770 = vst [vmem:[%s10818_s6 + $0x17a0] sm:$0xff] %v1769_v14  ;;  %1772 = vst [vmem:[%s10818_s6 + $0x17a8] sm:$0xff] %v1771_v15  ;;  %v1775_v17 = vld [vmem:[%s10813_s25 + $0x2f68] sm:$0xff] }
 0x1bc   : > { %1774 = vst [vmem:[%s10818_s6 + $0x17b0] sm:$0xff] %v1773_v16  ;;  %v1777_v18 = vld [vmem:[%s10813_s25 + $0x2f80] sm:$0xff]  ;;  %v1779_v19 = vld [vmem:[%s10813_s25 + $0x2f88] sm:$0xff]  ;;  %1776 = vst [vmem:[%s10818_s6 + $0x17b8] sm:$0xff] %v1775_v17 }
 0x1bd   : > { %1778 = vst [vmem:[%s10818_s6 + $0x17c0] sm:$0xff] %v1777_v18  ;;  %1780 = vst [vmem:[%s10818_s6 + $0x17c8] sm:$0xff] %v1779_v19  ;;  %v1781_v20 = vld [vmem:[%s10813_s25 + $0x2fa0] sm:$0xff]  ;;  %v1783_v21 = vld [vmem:[%s10813_s25 + $0x2fa8] sm:$0xff] }
 0x1be   : > { %v1785_v22 = vld [vmem:[%s10813_s25 + $0x2fc0] sm:$0xff]  ;;  %1782 = vst [vmem:[%s10818_s6 + $0x17d0] sm:$0xff] %v1781_v20  ;;  %1784 = vst [vmem:[%s10818_s6 + $0x17d8] sm:$0xff] %v1783_v21  ;;  %v1787_v23 = vld [vmem:[%s10813_s25 + $0x2fc8] sm:$0xff] }
 0x1bf   : > { %1786 = vst [vmem:[%s10818_s6 + $0x17e0] sm:$0xff] %v1785_v22  ;;  %v1789_v24 = vld [vmem:[%s10813_s25 + $0x2fe0] sm:$0xff]  ;;  %v1791_v25 = vld [vmem:[%s10813_s25 + $0x2fe8] sm:$0xff]  ;;  %1788 = vst [vmem:[%s10818_s6 + $0x17e8] sm:$0xff] %v1787_v23 }
 0x1c0   : > { %1790 = vst [vmem:[%s10818_s6 + $0x17f0] sm:$0xff] %v1789_v24  ;;  %1792 = vst [vmem:[%s10818_s6 + $0x17f8] sm:$0xff] %v1791_v25  ;;  %v1793_v26 = vld [vmem:[%s10813_s25 + $0x3000] sm:$0xff]  ;;  %v1795_v27 = vld [vmem:[%s10813_s25 + $0x3008] sm:$0xff] }
 0x1c1   : > { %v1797_v28 = vld [vmem:[%s10813_s25 + $0x3020] sm:$0xff]  ;;  %1794 = vst [vmem:[%s10818_s6 + $0x1800] sm:$0xff] %v1793_v26  ;;  %1796 = vst [vmem:[%s10818_s6 + $0x1808] sm:$0xff] %v1795_v27  ;;  %v1799_v29 = vld [vmem:[%s10813_s25 + $0x3028] sm:$0xff] }
 0x1c2   : > { %1798 = vst [vmem:[%s10818_s6 + $0x1810] sm:$0xff] %v1797_v28  ;;  %v1801_v30 = vld [vmem:[%s10813_s25 + $0x3040] sm:$0xff]  ;;  %v1803_v31 = vld [vmem:[%s10813_s25 + $0x3048] sm:$0xff]  ;;  %1800 = vst [vmem:[%s10818_s6 + $0x1818] sm:$0xff] %v1799_v29 }
 0x1c3   : > { %1802 = vst [vmem:[%s10818_s6 + $0x1820] sm:$0xff] %v1801_v30  ;;  %1804 = vst [vmem:[%s10818_s6 + $0x1828] sm:$0xff] %v1803_v31  ;;  %v1805_v32 = vld [vmem:[%s10813_s25 + $0x3060] sm:$0xff]  ;;  %v1807_v33 = vld [vmem:[%s10813_s25 + $0x3068] sm:$0xff] }
 0x1c4   : > { %v1809_v34 = vld [vmem:[%s10813_s25 + $0x3080] sm:$0xff]  ;;  %1806 = vst [vmem:[%s10818_s6 + $0x1830] sm:$0xff] %v1805_v32  ;;  %1808 = vst [vmem:[%s10818_s6 + $0x1838] sm:$0xff] %v1807_v33  ;;  %v1811_v35 = vld [vmem:[%s10813_s25 + $0x3088] sm:$0xff] }
 0x1c5   : > { %1810 = vst [vmem:[%s10818_s6 + $0x1840] sm:$0xff] %v1809_v34  ;;  %v1813_v36 = vld [vmem:[%s10813_s25 + $0x30a0] sm:$0xff]  ;;  %v1815_v37 = vld [vmem:[%s10813_s25 + $0x30a8] sm:$0xff]  ;;  %1812 = vst [vmem:[%s10818_s6 + $0x1848] sm:$0xff] %v1811_v35 }
 0x1c6   : > { %1814 = vst [vmem:[%s10818_s6 + $0x1850] sm:$0xff] %v1813_v36  ;;  %1816 = vst [vmem:[%s10818_s6 + $0x1858] sm:$0xff] %v1815_v37  ;;  %v1817_v38 = vld [vmem:[%s10813_s25 + $0x30c0] sm:$0xff]  ;;  %v1819_v39 = vld [vmem:[%s10813_s25 + $0x30c8] sm:$0xff] }
 0x1c7   : > { %v1821_v40 = vld [vmem:[%s10813_s25 + $0x30e0] sm:$0xff]  ;;  %1818 = vst [vmem:[%s10818_s6 + $0x1860] sm:$0xff] %v1817_v38  ;;  %1820 = vst [vmem:[%s10818_s6 + $0x1868] sm:$0xff] %v1819_v39  ;;  %v1823_v41 = vld [vmem:[%s10813_s25 + $0x30e8] sm:$0xff] }
 0x1c8   : > { %1822 = vst [vmem:[%s10818_s6 + $0x1870] sm:$0xff] %v1821_v40  ;;  %v1825_v42 = vld [vmem:[%s10813_s25 + $0x3100] sm:$0xff]  ;;  %v1827_v43 = vld [vmem:[%s10813_s25 + $0x3108] sm:$0xff]  ;;  %1824 = vst [vmem:[%s10818_s6 + $0x1878] sm:$0xff] %v1823_v41 }
 0x1c9   : > { %1826 = vst [vmem:[%s10818_s6 + $0x1880] sm:$0xff] %v1825_v42  ;;  %1828 = vst [vmem:[%s10818_s6 + $0x1888] sm:$0xff] %v1827_v43  ;;  %v1829_v44 = vld [vmem:[%s10813_s25 + $0x3120] sm:$0xff]  ;;  %v1831_v45 = vld [vmem:[%s10813_s25 + $0x3128] sm:$0xff] }
 0x1ca   : > { %v1833_v46 = vld [vmem:[%s10813_s25 + $0x3140] sm:$0xff]  ;;  %1830 = vst [vmem:[%s10818_s6 + $0x1890] sm:$0xff] %v1829_v44  ;;  %1832 = vst [vmem:[%s10818_s6 + $0x1898] sm:$0xff] %v1831_v45  ;;  %v1835_v47 = vld [vmem:[%s10813_s25 + $0x3148] sm:$0xff] }
 0x1cb   : > { %1834 = vst [vmem:[%s10818_s6 + $0x18a0] sm:$0xff] %v1833_v46  ;;  %v1837_v48 = vld [vmem:[%s10813_s25 + $0x3160] sm:$0xff]  ;;  %v1839_v49 = vld [vmem:[%s10813_s25 + $0x3168] sm:$0xff]  ;;  %1836 = vst [vmem:[%s10818_s6 + $0x18a8] sm:$0xff] %v1835_v47 }
 0x1cc   : > { %1838 = vst [vmem:[%s10818_s6 + $0x18b0] sm:$0xff] %v1837_v48  ;;  %1840 = vst [vmem:[%s10818_s6 + $0x18b8] sm:$0xff] %v1839_v49  ;;  %v1841_v50 = vld [vmem:[%s10813_s25 + $0x3180] sm:$0xff]  ;;  %v1843_v51 = vld [vmem:[%s10813_s25 + $0x3188] sm:$0xff] }
 0x1cd   : > { %v1845_v52 = vld [vmem:[%s10813_s25 + $0x31a0] sm:$0xff]  ;;  %1842 = vst [vmem:[%s10818_s6 + $0x18c0] sm:$0xff] %v1841_v50  ;;  %1844 = vst [vmem:[%s10818_s6 + $0x18c8] sm:$0xff] %v1843_v51  ;;  %v1847_v53 = vld [vmem:[%s10813_s25 + $0x31a8] sm:$0xff] }
 0x1ce   : > { %1846 = vst [vmem:[%s10818_s6 + $0x18d0] sm:$0xff] %v1845_v52  ;;  %v1849_v54 = vld [vmem:[%s10813_s25 + $0x31c0] sm:$0xff]  ;;  %v1851_v55 = vld [vmem:[%s10813_s25 + $0x31c8] sm:$0xff]  ;;  %1848 = vst [vmem:[%s10818_s6 + $0x18d8] sm:$0xff] %v1847_v53 }
 0x1cf   : > { %1850 = vst [vmem:[%s10818_s6 + $0x18e0] sm:$0xff] %v1849_v54  ;;  %1852 = vst [vmem:[%s10818_s6 + $0x18e8] sm:$0xff] %v1851_v55  ;;  %v1853_v56 = vld [vmem:[%s10813_s25 + $0x31e0] sm:$0xff]  ;;  %v1855_v57 = vld [vmem:[%s10813_s25 + $0x31e8] sm:$0xff] }
 0x1d0   : > { %1854 = vst [vmem:[%s10818_s6 + $0x18f0] sm:$0xff] %v1853_v56  ;;  %1856 = vst [vmem:[%s10818_s6 + $0x18f8] sm:$0xff] %v1855_v57 }
 0x1d1 PF: > { %p8262_p0 = scmp.ge.s32.totalorder %s10620_s22, 1  ;;  %p1869_p1 = scmp.lt.s32.totalorder %s10620_s22, 5 }
 0x1d3   : > { %p1870_p2 = pnand %p8262_p0, %p1869_p1 }
 0x1d4   : > { %s1876_s0 = sand.u32 (!%p1870_p2), 1, %s10596_s16   ;;  %s1883_s5 = sand.u32 (!%p1870_p2), 1, %s10588_s14  }
 0x1d5   : > { %1873 = sbr.rel (%p1870_p2) target bundleno = 1532 (0x5fc), region = 73  ;;  %s1910_s28 = sand.u32 (!%p1870_p2), 1, %s10580_s12  }
 0x1d6   : > { %s9206_s23 = smul.u32 (!%p1870_p2), 200, %s1876_s0  ;;  %s8263_s25 = sshll.u32 (!%p1870_p2), %s1910_s28, 5 }
 0x1d7   : > { %s9207_s7 = smul.u32 (!%p1870_p2), 6400, %s1883_s5  ;;  %s8264_s11 = sshll.u32 (!%p1870_p2), %s10608_s19, 2 }
 0x1d8   : > { %p1917_p3 = scmp.lt.s32.totalorder (!%p1870_p2), %s8264_s11, 7  ;;  %s12426_s4 = scalar_lea.vmem (!%p1870_p2), [#allocation3], %s9206_s23 }
 0x1d9   : > { %s12428_s6 = scalar_lea.vmem (!%p1870_p2), [#allocation4], %s9207_s7  ;;  %s12430_s1 = scalar_lea.vmem (!%p1870_p2), [#allocation5], %s8263_s25 }
 0x1da   : > { %p8265_p4 = scmp.ne.s32.totalorder (!%p1870_p2), %s10604_s18, 0 }
 0x1dc   : > { %s13337_s11 = smov (!%p1917_p3, %s8264_s11), 7  ;;  %1926 = sbr.rel (%p8265_p4) target bundleno = 489 (0x1e9), region = 85 }
 0x1dd   : > { %s1919_s29 = scalar_lea.vmem %s13308_s2, %s13337_s11  ;;  %v1929_v58 = vlaneseq (!%p8265_p4) }
 0x1de   : > { %v1927_v60 = vld [vmem:[%s1919_s29] sm:$0xf] (!%p8265_p4) }
 0x1df   : > { %v1930_v59 = vshrl.u32 (!%p8265_p4), %v1929_v58, 7 }
 0x1e1   : > { %v1931_v61 = vsub.s32 (!%p8265_p4), 0, %v1930_v59  ;;  %v1935_v62 = vsub.s32 (!%p8265_p4), 1, %v1930_v59  ;;  %v1939_v63 = vsub.s32 (!%p8265_p4), 2, %v1930_v59  ;;  %v1943_v0 = vsub.s32 (!%p8265_p4), 3, %v1930_v59 }
 0x1e3   : > { %v1932_v1 = vrot.slane %v1927_v60, %v1931_v61  ;;  %v1936_v2 = vrot.slane %v1927_v60, %v1935_v62  ;;  %v1940_v3 = vrot.slane %v1927_v60, %v1939_v63  ;;  %v1944_v4 = vrot.slane %v1927_v60, %v1943_v0 }
 0x1e5   : > { %1949 = vst [vmem:[#allocation2] sm:$0xff] %v1932_v1  ;;  %1953 = vst [vmem:[#allocation2 + $0x20] sm:$0xff] %v1932_v1 }
 0x1e6   : > { %1950 = vst [vmem:[#allocation2 + $0x8] sm:$0xff] %v1936_v2  ;;  %1954 = vst [vmem:[#allocation2 + $0x28] sm:$0xff] %v1936_v2 }
 0x1e7   : > { %1951 = vst [vmem:[#allocation2 + $0x10] sm:$0xff] %v1940_v3  ;;  %1955 = vst [vmem:[#allocation2 + $0x30] sm:$0xff] %v1940_v3 }
 0x1e8   : > { %1952 = vst [vmem:[#allocation2 + $0x18] sm:$0xff] %v1944_v4  ;;  %1956 = vst [vmem:[#allocation2 + $0x38] sm:$0xff] %v1944_v4 }
 0x1e9 PF: > { %v9297_v5 = vld [vmem:[%s12428_s6 + $0x4] ss:$16 sps:$4 sm:$0xff]   ;;  %v9299_v6 = vld [vmem:[%s12428_s6 + $0xc] ss:$16 sps:$4 sm:$0xff]   ;;  %v9301_v7 = vld [vmem:[%s12428_s6] ss:$16 sps:$4 sm:$0xff]  }
 0x1ea   : > { %6917 = vmatprep.subr.bf16.mxu0 %v9297_v5  ;;  %v9302_v8 = vld [vmem:[%s12428_s6 + $0x8] ss:$16 sps:$4 sm:$0xff]   ;;  %7476 = vmatprep.subr.bf16.mxu1 %v9299_v6  ;;  %v9303_v9 = vld [vmem:[%s12428_s6 + $0x24] ss:$16 sps:$4 sm:$0xff]   ;;  %v9305_v10 = vld [vmem:[%s12428_s6 + $0x2c] ss:$16 sps:$4 sm:$0xff]  }
 0x1eb   : > { %6918 = vmatpush1.bf16.msra.mxu0 %v9301_v7  ;;  %7477 = vmatpush1.bf16.msra.mxu1 %v9302_v8  ;;  %v9307_v11 = vld [vmem:[%s12428_s6 + $0x20] ss:$16 sps:$4 sm:$0xff]   ;;  %v9308_v12 = vld [vmem:[%s12428_s6 + $0x28] ss:$16 sps:$4 sm:$0xff]   ;;  %v9309_v13 = vld [vmem:[%s12428_s6 + $0x44] ss:$16 sps:$4 sm:$0xff]  }
 0x1ec   : > { %6919 = vmatprep.subr.bf16.mxu0 %v9303_v9  ;;  %7478 = vmatprep.subr.bf16.mxu1 %v9305_v10  ;;  %v9311_v14 = vld [vmem:[%s12428_s6 + $0x4c] ss:$16 sps:$4 sm:$0xff]   ;;  %v9313_v15 = vld [vmem:[%s12428_s6 + $0x40] ss:$16 sps:$4 sm:$0xff]   ;;  %v9314_v16 = vld [vmem:[%s12428_s6 + $0x48] ss:$16 sps:$4 sm:$0xff]  }
 0x1ed   : > { %v9315_v17 = vld [vmem:[%s12428_s6 + $0x64] ss:$16 sps:$4 sm:$0xff]   ;;  %v9317_v18 = vld [vmem:[%s12428_s6 + $0x6c] ss:$16 sps:$4 sm:$0xff]   ;;  %v9319_v19 = vld [vmem:[%s12428_s6 + $0x60] ss:$16 sps:$4 sm:$0xff]  }
 0x1ee   : > { %v9320_v20 = vld [vmem:[%s12428_s6 + $0x68] ss:$16 sps:$4 sm:$0xff]   ;;  %v9321_v21 = vld [vmem:[%s12428_s6 + $0x84] ss:$16 sps:$4 sm:$0xff]   ;;  %v9323_v22 = vld [vmem:[%s12428_s6 + $0x8c] ss:$16 sps:$4 sm:$0xff]  }
 0x1ef   : > { %6920 = vmatpush1.bf16.msra.mxu0 %v9307_v11  ;;  %7479 = vmatpush1.bf16.msra.mxu1 %v9308_v12  ;;  %v9325_v23 = vld [vmem:[%s12428_s6 + $0x80] ss:$16 sps:$4 sm:$0xff]   ;;  %v9326_v24 = vld [vmem:[%s12428_s6 + $0x88] ss:$16 sps:$4 sm:$0xff]   ;;  %v9327_v25 = vld [vmem:[%s12428_s6 + $0xa4] ss:$16 sps:$4 sm:$0xff]  }
 0x1f0   : > { %6921 = vmatprep.subr.bf16.mxu0 %v9309_v13  ;;  %7480 = vmatprep.subr.bf16.mxu1 %v9311_v14  ;;  %v9329_v26 = vld [vmem:[%s12428_s6 + $0xac] ss:$16 sps:$4 sm:$0xff]   ;;  %v9331_v27 = vld [vmem:[%s12428_s6 + $0xa0] ss:$16 sps:$4 sm:$0xff]   ;;  %v9332_v28 = vld [vmem:[%s12428_s6 + $0xa8] ss:$16 sps:$4 sm:$0xff]  }
 0x1f1   : > { %v9333_v29 = vld [vmem:[%s12428_s6 + $0xc4] ss:$16 sps:$4 sm:$0xff]   ;;  %v9335_v30 = vld [vmem:[%s12428_s6 + $0xcc] ss:$16 sps:$4 sm:$0xff]   ;;  %v9337_v31 = vld [vmem:[%s12428_s6 + $0xc0] ss:$16 sps:$4 sm:$0xff]  }
 0x1f2   : > { %v9338_v32 = vld [vmem:[%s12428_s6 + $0xc8] ss:$16 sps:$4 sm:$0xff]   ;;  %v9339_v33 = vld [vmem:[%s12428_s6 + $0xe4] ss:$16 sps:$4 sm:$0xff]   ;;  %v9341_v34 = vld [vmem:[%s12428_s6 + $0xec] ss:$16 sps:$4 sm:$0xff]  }
 0x1f3   : > { %6922 = vmatpush1.bf16.msra.mxu0 %v9313_v15  ;;  %7481 = vmatpush1.bf16.msra.mxu1 %v9314_v16  ;;  %v9343_v35 = vld [vmem:[%s12428_s6 + $0xe0] ss:$16 sps:$4 sm:$0xff]   ;;  %v9344_v36 = vld [vmem:[%s12428_s6 + $0xe8] ss:$16 sps:$4 sm:$0xff]   ;;  %v9345_v37 = vld [vmem:[%s12428_s6 + $0x104] ss:$16 sps:$4 sm:$0xff]  }
 0x1f4   : > { %6923 = vmatprep.subr.bf16.mxu0 %v9315_v17  ;;  %7482 = vmatprep.subr.bf16.mxu1 %v9317_v18  ;;  %v9347_v38 = vld [vmem:[%s12428_s6 + $0x10c] ss:$16 sps:$4 sm:$0xff]   ;;  %v9349_v39 = vld [vmem:[%s12428_s6 + $0x100] ss:$16 sps:$4 sm:$0xff]   ;;  %v9350_v40 = vld [vmem:[%s12428_s6 + $0x108] ss:$16 sps:$4 sm:$0xff]  }
 0x1f5   : > { %v9351_v41 = vld [vmem:[%s12428_s6 + $0x124] ss:$16 sps:$4 sm:$0xff]   ;;  %v9353_v42 = vld [vmem:[%s12428_s6 + $0x12c] ss:$16 sps:$4 sm:$0xff]   ;;  %v9355_v43 = vld [vmem:[%s12428_s6 + $0x120] ss:$16 sps:$4 sm:$0xff]  }
 0x1f6   : > { %v9356_v44 = vld [vmem:[%s12428_s6 + $0x128] ss:$16 sps:$4 sm:$0xff]   ;;  %v9357_v45 = vld [vmem:[%s12428_s6 + $0x144] ss:$16 sps:$4 sm:$0xff]   ;;  %v9359_v46 = vld [vmem:[%s12428_s6 + $0x14c] ss:$16 sps:$4 sm:$0xff]  }
 0x1f7   : > { %6924 = vmatpush1.bf16.msra.mxu0 %v9319_v19  ;;  %7483 = vmatpush1.bf16.msra.mxu1 %v9320_v20  ;;  %v9361_v47 = vld [vmem:[%s12428_s6 + $0x140] ss:$16 sps:$4 sm:$0xff]   ;;  %v9362_v48 = vld [vmem:[%s12428_s6 + $0x148] ss:$16 sps:$4 sm:$0xff]   ;;  %v9363_v49 = vld [vmem:[%s12428_s6 + $0x164] ss:$16 sps:$4 sm:$0xff]  }
 0x1f8   : > { %6925 = vmatprep.subr.bf16.mxu0 %v9321_v21  ;;  %7484 = vmatprep.subr.bf16.mxu1 %v9323_v22  ;;  %v9365_v50 = vld [vmem:[%s12428_s6 + $0x16c] ss:$16 sps:$4 sm:$0xff]   ;;  %v9367_v51 = vld [vmem:[%s12428_s6 + $0x160] ss:$16 sps:$4 sm:$0xff]   ;;  %v9368_v52 = vld [vmem:[%s12428_s6 + $0x168] ss:$16 sps:$4 sm:$0xff]  }
 0x1f9   : > { %v9395_v53 = vld [vmem:[%s12426_s4 + $0x4] ss:$100 sps:$4 sm:$0xff]   ;;  %p9091_p5 = scmp.ne.s32.totalorder %s10604_s18, 1 }
 0x1fa   : > { %v9369_v54 = vld [vmem:[%s12428_s6 + $0x184] ss:$16 sps:$4 sm:$0xff]   ;;  %v9371_v55 = vld [vmem:[%s12428_s6 + $0x18c] ss:$16 sps:$4 sm:$0xff]   ;;  %6949 = vmatprep.mubr.bf16.mxu0 %v9395_v53  ;;  %7508 = vmatprep.mubr.bf16.mxu1 %v9395_v53  ;;  %v9373_v56 = vld [vmem:[%s12428_s6 + $0x180] ss:$16 sps:$4 sm:$0xff]  }
 0x1fb   : > { %6926 = vmatpush1.bf16.msra.mxu0 %v9325_v23  ;;  %7485 = vmatpush1.bf16.msra.mxu1 %v9326_v24  ;;  %v9374_v57 = vld [vmem:[%s12428_s6 + $0x188] ss:$16 sps:$4 sm:$0xff]   ;;  %v9375_v58 = vld [vmem:[%s12428_s6 + $0x1a4] ss:$16 sps:$4 sm:$0xff]   ;;  %v9377_v59 = vld [vmem:[%s12428_s6 + $0x1ac] ss:$16 sps:$4 sm:$0xff]  }
 0x1fc   : > { %6927 = vmatprep.subr.bf16.mxu0 %v9327_v25  ;;  %7486 = vmatprep.subr.bf16.mxu1 %v9329_v26  ;;  %v9379_v60 = vld [vmem:[%s12428_s6 + $0x1a0] ss:$16 sps:$4 sm:$0xff]   ;;  %v9380_v61 = vld [vmem:[%s12428_s6 + $0x1a8] ss:$16 sps:$4 sm:$0xff]   ;;  %v9381_v62 = vld [vmem:[%s12428_s6 + $0x1c4] ss:$16 sps:$4 sm:$0xff]  }
 0x1fd   : > { %v9383_v63 = vld [vmem:[%s12428_s6 + $0x1cc] ss:$16 sps:$4 sm:$0xff]   ;;  %v9385_v0 = vld [vmem:[%s12428_s6 + $0x1c0] ss:$16 sps:$4 sm:$0xff]   ;;  %v9386_v1 = vld [vmem:[%s12428_s6 + $0x1c8] ss:$16 sps:$4 sm:$0xff]  }
 0x1fe   : > { %v9387_v2 = vld [vmem:[%s12428_s6 + $0x1e4] ss:$16 sps:$4 sm:$0xff]   ;;  %v9389_v3 = vld [vmem:[%s12428_s6 + $0x1ec] ss:$16 sps:$4 sm:$0xff]   ;;  %v9391_v4 = vld [vmem:[%s12428_s6 + $0x1e0] ss:$16 sps:$4 sm:$0xff]  }
 0x1ff   : > { %6928 = vmatpush1.bf16.msra.mxu0 %v9331_v27  ;;  %7487 = vmatpush1.bf16.msra.mxu1 %v9332_v28  ;;  %v9392_v5 = vld [vmem:[%s12428_s6 + $0x1e8] ss:$16 sps:$4 sm:$0xff]   ;;  %v9398_v6 = vld [vmem:[%s12428_s6 + $0x204] ss:$16 sps:$4 sm:$0xff]   ;;  %v9401_v7 = vld [vmem:[%s12428_s6 + $0x20c] ss:$16 sps:$4 sm:$0xff]  }
 0x200   : > { %6929 = vmatprep.subr.bf16.mxu0 %v9333_v29  ;;  %7488 = vmatprep.subr.bf16.mxu1 %v9335_v30  ;;  %v9393_v8 = vld [vmem:[%s12426_s4] ss:$100 sps:$4 sm:$0xff]  }
 0x201   : > { %v9396_v9 = vld [vmem:[%s12428_s6 + $0x200] ss:$16 sps:$4 sm:$0xff]   ;;  %v9399_v10 = vld [vmem:[%s12428_s6 + $0x208] ss:$16 sps:$4 sm:$0xff]   ;;  %v9404_v11 = vld [vmem:[%s12428_s6 + $0x224] ss:$16 sps:$4 sm:$0xff]  }
 0x202   : > { %v9407_v12 = vld [vmem:[%s12428_s6 + $0x22c] ss:$16 sps:$4 sm:$0xff]   ;;  %v9402_v13 = vld [vmem:[%s12428_s6 + $0x220] ss:$16 sps:$4 sm:$0xff]   ;;  %v9405_v14 = vld [vmem:[%s12428_s6 + $0x228] ss:$16 sps:$4 sm:$0xff]  }
 0x203   : > { %6930 = vmatpush1.bf16.msra.mxu0 %v9337_v31  ;;  %7489 = vmatpush1.bf16.msra.mxu1 %v9338_v32  ;;  %v9410_v15 = vld [vmem:[%s12428_s6 + $0x244] ss:$16 sps:$4 sm:$0xff]   ;;  %v9413_v16 = vld [vmem:[%s12428_s6 + $0x24c] ss:$16 sps:$4 sm:$0xff]   ;;  %v9408_v17 = vld [vmem:[%s12428_s6 + $0x240] ss:$16 sps:$4 sm:$0xff]  }
 0x204   : > { %6931 = vmatprep.subr.bf16.mxu0 %v9339_v33  ;;  %7490 = vmatprep.subr.bf16.mxu1 %v9341_v34  ;;  %v9411_v18 = vld [vmem:[%s12428_s6 + $0x248] ss:$16 sps:$4 sm:$0xff]   ;;  %v9416_v19 = vld [vmem:[%s12428_s6 + $0x264] ss:$16 sps:$4 sm:$0xff]   ;;  %v9419_v20 = vld [vmem:[%s12428_s6 + $0x26c] ss:$16 sps:$4 sm:$0xff]  }
 0x205   : > { %v9414_v21 = vld [vmem:[%s12428_s6 + $0x260] ss:$16 sps:$4 sm:$0xff]   ;;  %v9417_v22 = vld [vmem:[%s12428_s6 + $0x268] ss:$16 sps:$4 sm:$0xff]   ;;  %v9422_v23 = vld [vmem:[%s12428_s6 + $0x284] ss:$16 sps:$4 sm:$0xff]  }
 0x206   : > { %v9425_v24 = vld [vmem:[%s12428_s6 + $0x28c] ss:$16 sps:$4 sm:$0xff]   ;;  %v9420_v25 = vld [vmem:[%s12428_s6 + $0x280] ss:$16 sps:$4 sm:$0xff]   ;;  %v9423_v26 = vld [vmem:[%s12428_s6 + $0x288] ss:$16 sps:$4 sm:$0xff]  }
 0x207   : > { %6932 = vmatpush1.bf16.msra.mxu0 %v9343_v35  ;;  %7491 = vmatpush1.bf16.msra.mxu1 %v9344_v36  ;;  %v9428_v27 = vld [vmem:[%s12428_s6 + $0x2a4] ss:$16 sps:$4 sm:$0xff]   ;;  %v9431_v28 = vld [vmem:[%s12428_s6 + $0x2ac] ss:$16 sps:$4 sm:$0xff]   ;;  %v9426_v29 = vld [vmem:[%s12428_s6 + $0x2a0] ss:$16 sps:$4 sm:$0xff]  }
 0x208   : > { %6933 = vmatprep.subr.bf16.mxu0 %v9345_v37  ;;  %7492 = vmatprep.subr.bf16.mxu1 %v9347_v38  ;;  %v9429_v30 = vld [vmem:[%s12428_s6 + $0x2a8] ss:$16 sps:$4 sm:$0xff]   ;;  %v9434_v31 = vld [vmem:[%s12428_s6 + $0x2c4] ss:$16 sps:$4 sm:$0xff]   ;;  %v9437_v32 = vld [vmem:[%s12428_s6 + $0x2cc] ss:$16 sps:$4 sm:$0xff]  }
 0x209   : > { %v9432_v33 = vld [vmem:[%s12428_s6 + $0x2c0] ss:$16 sps:$4 sm:$0xff]   ;;  %v9435_v34 = vld [vmem:[%s12428_s6 + $0x2c8] ss:$16 sps:$4 sm:$0xff]   ;;  %v9440_v36 = vld [vmem:[%s12428_s6 + $0x2e4] ss:$16 sps:$4 sm:$0xff]  }
 0x20a   : > { %v9494_v35 = vld [vmem:[%s12426_s4 + $0xc] ss:$100 sps:$4 sm:$0xff]  }
 0x20b   : > { %6934 = vmatpush1.bf16.msra.mxu0 %v9349_v39  ;;  %7493 = vmatpush1.bf16.msra.mxu1 %v9350_v40  ;;  %v9443_v37 = vld [vmem:[%s12428_s6 + $0x2ec] ss:$16 sps:$4 sm:$0xff]   ;;  %v9438_v38 = vld [vmem:[%s12428_s6 + $0x2e0] ss:$16 sps:$4 sm:$0xff]   ;;  %v9441_v39 = vld [vmem:[%s12428_s6 + $0x2e8] ss:$16 sps:$4 sm:$0xff]  }
 0x20c   : > { %6935 = vmatprep.subr.bf16.mxu0 %v9351_v41  ;;  %7494 = vmatprep.subr.bf16.mxu1 %v9353_v42  ;;  %v9446_v40 = vld [vmem:[%s12428_s6 + $0x304] ss:$16 sps:$4 sm:$0xff]   ;;  %v9449_v41 = vld [vmem:[%s12428_s6 + $0x30c] ss:$16 sps:$4 sm:$0xff]   ;;  %v9444_v42 = vld [vmem:[%s12428_s6 + $0x300] ss:$16 sps:$4 sm:$0xff]  }
 0x20d   : > { %v9467_v53 = vld [vmem:[%s12428_s6 + $0x36c] ss:$16 sps:$4 sm:$0xff]  }
 0x20f   : > { %6936 = vmatpush1.bf16.msra.mxu0 %v9355_v43  ;;  %7495 = vmatpush1.bf16.msra.mxu1 %v9356_v44  ;;  %v9447_v43 = vld [vmem:[%s12428_s6 + $0x308] ss:$16 sps:$4 sm:$0xff]   ;;  %v9452_v44 = vld [vmem:[%s12428_s6 + $0x324] ss:$16 sps:$4 sm:$0xff]  }
 0x210   : > { %6937 = vmatprep.subr.bf16.mxu0 %v9357_v45  ;;  %7496 = vmatprep.subr.bf16.mxu1 %v9359_v46  ;;  %v9455_v45 = vld [vmem:[%s12428_s6 + $0x32c] ss:$16 sps:$4 sm:$0xff]   ;;  %v9450_v46 = vld [vmem:[%s12428_s6 + $0x320] ss:$16 sps:$4 sm:$0xff]  }
 0x213   : > { %6938 = vmatpush1.bf16.msra.mxu0 %v9361_v47  ;;  %7497 = vmatpush1.bf16.msra.mxu1 %v9362_v48  ;;  %v9453_v47 = vld [vmem:[%s12428_s6 + $0x328] ss:$16 sps:$4 sm:$0xff]   ;;  %v9458_v48 = vld [vmem:[%s12428_s6 + $0x344] ss:$16 sps:$4 sm:$0xff]  }
 0x214   : > { %6939 = vmatprep.subr.bf16.mxu0 %v9363_v49  ;;  %7498 = vmatprep.subr.bf16.mxu1 %v9365_v50  ;;  %v9461_v49 = vld [vmem:[%s12428_s6 + $0x34c] ss:$16 sps:$4 sm:$0xff]   ;;  %v9456_v50 = vld [vmem:[%s12428_s6 + $0x340] ss:$16 sps:$4 sm:$0xff]  }
 0x217   : > { %6940 = vmatpush1.bf16.msra.mxu0 %v9367_v51  ;;  %7499 = vmatpush1.bf16.msra.mxu1 %v9368_v52  ;;  %v9459_v51 = vld [vmem:[%s12428_s6 + $0x348] ss:$16 sps:$4 sm:$0xff]   ;;  %v9464_v52 = vld [vmem:[%s12428_s6 + $0x364] ss:$16 sps:$4 sm:$0xff]  }
 0x218   : > { %6941 = vmatprep.subr.bf16.mxu0 %v9369_v54  ;;  %7500 = vmatprep.subr.bf16.mxu1 %v9371_v55  ;;  %v9462_v54 = vld [vmem:[%s12428_s6 + $0x360] ss:$16 sps:$4 sm:$0xff]   ;;  %v9465_v55 = vld [vmem:[%s12428_s6 + $0x368] ss:$16 sps:$4 sm:$0xff]  }
 0x21b   : > { %6942 = vmatpush1.bf16.msra.mxu0 %v9373_v56  ;;  %7501 = vmatpush1.bf16.msra.mxu1 %v9374_v57  ;;  %v9470_v56 = vld [vmem:[%s12428_s6 + $0x384] ss:$16 sps:$4 sm:$0xff]   ;;  %v9473_v57 = vld [vmem:[%s12428_s6 + $0x38c] ss:$16 sps:$4 sm:$0xff]  }
 0x21c   : > { %6943 = vmatprep.subr.bf16.mxu0 %v9375_v58  ;;  %7502 = vmatprep.subr.bf16.mxu1 %v9377_v59  ;;  %v9468_v58 = vld [vmem:[%s12428_s6 + $0x380] ss:$16 sps:$4 sm:$0xff]   ;;  %v9471_v59 = vld [vmem:[%s12428_s6 + $0x388] ss:$16 sps:$4 sm:$0xff]  }
 0x21f   : > { %6944 = vmatpush1.bf16.msra.mxu0 %v9379_v60  ;;  %7503 = vmatpush1.bf16.msra.mxu1 %v9380_v61  ;;  %v9476_v60 = vld [vmem:[%s12428_s6 + $0x3a4] ss:$16 sps:$4 sm:$0xff]   ;;  %v9479_v61 = vld [vmem:[%s12428_s6 + $0x3ac] ss:$16 sps:$4 sm:$0xff]  }
 0x220   : > { %6945 = vmatprep.subr.bf16.mxu0 %v9381_v62  ;;  %7504 = vmatprep.subr.bf16.mxu1 %v9383_v63  ;;  %v9474_v62 = vld [vmem:[%s12428_s6 + $0x3a0] ss:$16 sps:$4 sm:$0xff]   ;;  %v9477_v63 = vld [vmem:[%s12428_s6 + $0x3a8] ss:$16 sps:$4 sm:$0xff]  }
 0x223   : > { %6946 = vmatpush1.bf16.msra.mxu0 %v9385_v0  ;;  %7505 = vmatpush1.bf16.msra.mxu1 %v9386_v1  ;;  %v9482_v0 = vld [vmem:[%s12428_s6 + $0x3c4] ss:$16 sps:$4 sm:$0xff]   ;;  %v9485_v1 = vld [vmem:[%s12428_s6 + $0x3cc] ss:$16 sps:$4 sm:$0xff]  }
 0x224   : > { %6947 = vmatprep.subr.bf16.mxu0 %v9387_v2  ;;  %7506 = vmatprep.subr.bf16.mxu1 %v9389_v3  ;;  %v9480_v2 = vld [vmem:[%s12428_s6 + $0x3c0] ss:$16 sps:$4 sm:$0xff]   ;;  %v9483_v3 = vld [vmem:[%s12428_s6 + $0x3c8] ss:$16 sps:$4 sm:$0xff]  }
 0x227   : > { %6948 = vmatpush1.bf16.msra.mxu0 %v9391_v4  ;;  %7507 = vmatpush1.bf16.msra.mxu1 %v9392_v5  ;;  %v9488_v4 = vld [vmem:[%s12428_s6 + $0x3e4] ss:$16 sps:$4 sm:$0xff]   ;;  %v9491_v5 = vld [vmem:[%s12428_s6 + $0x3ec] ss:$16 sps:$4 sm:$0xff]  }
 0x228   : > { %6960 = vmatprep.subr.bf16.mxu0 %v9398_v6  ;;  %7519 = vmatprep.subr.bf16.mxu1 %v9401_v7  ;;  %v9486_v6 = vld [vmem:[%s12428_s6 + $0x3e0] ss:$16 sps:$4 sm:$0xff]   ;;  %v9489_v7 = vld [vmem:[%s12428_s6 + $0x3e8] ss:$16 sps:$4 sm:$0xff]  }
 0x22a   : > { %6950 = vmatmul.mubr.bf16.vlgmr.msra.gmra.mrb[0].mxu0 %v9393_v8  ;;  %7509 = vmatmul.mubr.bf16.vlgmr.msra.gmra.mrb[0].mxu1 %v9393_v8  ;;  %v9497_v8 = vld [vmem:[%s12428_s6 + $0x404] ss:$16 sps:$4 sm:$0xff]  }
 0x22b   : > { %6961 = vmatpush1.bf16.msra.mxu0 %v9396_v9  ;;  %7520 = vmatpush1.bf16.msra.mxu1 %v9399_v10  ;;  %v9500_v9 = vld [vmem:[%s12428_s6 + $0x40c] ss:$16 sps:$4 sm:$0xff]  }
 0x22c   : > { %6962 = vmatprep.subr.bf16.mxu0 %v9404_v11  ;;  %7521 = vmatprep.subr.bf16.mxu1 %v9407_v12  ;;  %v9492_v10 = vld [vmem:[%s12426_s4 + $0x8] ss:$100 sps:$4 sm:$0xff]  }
 0x22d   : > { %6992 = vmatprep.mubr.bf16.mxu0 %v9494_v35  ;;  %7551 = vmatprep.mubr.bf16.mxu1 %v9494_v35  ;;  %v9495_v11 = vld [vmem:[%s12428_s6 + $0x400] ss:$16 sps:$4 sm:$0xff]   ;;  %v9498_v12 = vld [vmem:[%s12428_s6 + $0x408] ss:$16 sps:$4 sm:$0xff]   ;;  %v9536_v35 = vld [vmem:[%s12428_s6 + $0x4cc] ss:$16 sps:$4 sm:$0xff]  }
 0x22f   : > { %6963 = vmatpush1.bf16.msra.mxu0 %v9402_v13  ;;  %7522 = vmatpush1.bf16.msra.mxu1 %v9405_v14  ;;  %v9503_v13 = vld [vmem:[%s12428_s6 + $0x424] ss:$16 sps:$4 sm:$0xff]   ;;  %v9506_v14 = vld [vmem:[%s12428_s6 + $0x42c] ss:$16 sps:$4 sm:$0xff]  }
 0x230   : > { %6964 = vmatprep.subr.bf16.mxu0 %v9410_v15  ;;  %7523 = vmatprep.subr.bf16.mxu1 %v9413_v16  ;;  %v9501_v15 = vld [vmem:[%s12428_s6 + $0x420] ss:$16 sps:$4 sm:$0xff]   ;;  %v9504_v16 = vld [vmem:[%s12428_s6 + $0x428] ss:$16 sps:$4 sm:$0xff]  }
 0x233   : > { %6965 = vmatpush1.bf16.msra.mxu0 %v9408_v17  ;;  %7524 = vmatpush1.bf16.msra.mxu1 %v9411_v18  ;;  %v9593_v17 = vld [vmem:[%s12426_s4 + $0x14] ss:$100 sps:$4 sm:$0xff]  }
 0x234   : > { %6966 = vmatprep.subr.bf16.mxu0 %v9416_v19  ;;  %7525 = vmatprep.subr.bf16.mxu1 %v9419_v20  ;;  %v9509_v18 = vld [vmem:[%s12428_s6 + $0x444] ss:$16 sps:$4 sm:$0xff]   ;;  %v9512_v19 = vld [vmem:[%s12428_s6 + $0x44c] ss:$16 sps:$4 sm:$0xff]   ;;  %v9507_v20 = vld [vmem:[%s12428_s6 + $0x440] ss:$16 sps:$4 sm:$0xff]  }
 0x237   : > { %6967 = vmatpush1.bf16.msra.mxu0 %v9414_v21  ;;  %7526 = vmatpush1.bf16.msra.mxu1 %v9417_v22  ;;  %v9510_v21 = vld [vmem:[%s12428_s6 + $0x448] ss:$16 sps:$4 sm:$0xff]   ;;  %v9515_v22 = vld [vmem:[%s12428_s6 + $0x464] ss:$16 sps:$4 sm:$0xff]  }
 0x238   : > { %6968 = vmatprep.subr.bf16.mxu0 %v9422_v23  ;;  %7527 = vmatprep.subr.bf16.mxu1 %v9425_v24  ;;  %v9518_v23 = vld [vmem:[%s12428_s6 + $0x46c] ss:$16 sps:$4 sm:$0xff]   ;;  %v9513_v24 = vld [vmem:[%s12428_s6 + $0x460] ss:$16 sps:$4 sm:$0xff]  }
 0x23b   : > { %6969 = vmatpush1.bf16.msra.mxu0 %v9420_v25  ;;  %7528 = vmatpush1.bf16.msra.mxu1 %v9423_v26  ;;  %v9516_v25 = vld [vmem:[%s12428_s6 + $0x468] ss:$16 sps:$4 sm:$0xff]   ;;  %v9521_v26 = vld [vmem:[%s12428_s6 + $0x484] ss:$16 sps:$4 sm:$0xff]  }
 0x23c   : > { %6970 = vmatprep.subr.bf16.mxu0 %v9428_v27  ;;  %7529 = vmatprep.subr.bf16.mxu1 %v9431_v28  ;;  %v9524_v27 = vld [vmem:[%s12428_s6 + $0x48c] ss:$16 sps:$4 sm:$0xff]   ;;  %v9519_v28 = vld [vmem:[%s12428_s6 + $0x480] ss:$16 sps:$4 sm:$0xff]  }
 0x23f   : > { %6971 = vmatpush1.bf16.msra.mxu0 %v9426_v29  ;;  %7530 = vmatpush1.bf16.msra.mxu1 %v9429_v30  ;;  %v9522_v29 = vld [vmem:[%s12428_s6 + $0x488] ss:$16 sps:$4 sm:$0xff]   ;;  %v9527_v30 = vld [vmem:[%s12428_s6 + $0x4a4] ss:$16 sps:$4 sm:$0xff]  }
 0x240   : > { %6972 = vmatprep.subr.bf16.mxu0 %v9434_v31  ;;  %7531 = vmatprep.subr.bf16.mxu1 %v9437_v32  ;;  %v9530_v31 = vld [vmem:[%s12428_s6 + $0x4ac] ss:$16 sps:$4 sm:$0xff]   ;;  %v9525_v32 = vld [vmem:[%s12428_s6 + $0x4a0] ss:$16 sps:$4 sm:$0xff]  }
 0x243   : > { %6973 = vmatpush1.bf16.msra.mxu0 %v9432_v33  ;;  %7532 = vmatpush1.bf16.msra.mxu1 %v9435_v34  ;;  %v9528_v33 = vld [vmem:[%s12428_s6 + $0x4a8] ss:$16 sps:$4 sm:$0xff]   ;;  %v9533_v34 = vld [vmem:[%s12428_s6 + $0x4c4] ss:$16 sps:$4 sm:$0xff]  }
 0x244   : > { %6974 = vmatprep.subr.bf16.mxu0 %v9440_v36  ;;  %7533 = vmatprep.subr.bf16.mxu1 %v9443_v37  ;;  %v9531_v36 = vld [vmem:[%s12428_s6 + $0x4c0] ss:$16 sps:$4 sm:$0xff]   ;;  %v9534_v37 = vld [vmem:[%s12428_s6 + $0x4c8] ss:$16 sps:$4 sm:$0xff]  }
 0x247   : > { %6975 = vmatpush1.bf16.msra.mxu0 %v9438_v38  ;;  %7534 = vmatpush1.bf16.msra.mxu1 %v9441_v39  ;;  %v9539_v38 = vld [vmem:[%s12428_s6 + $0x4e4] ss:$16 sps:$4 sm:$0xff]   ;;  %v9542_v39 = vld [vmem:[%s12428_s6 + $0x4ec] ss:$16 sps:$4 sm:$0xff]  }
 0x248   : > { %6976 = vmatprep.subr.bf16.mxu0 %v9446_v40  ;;  %7535 = vmatprep.subr.bf16.mxu1 %v9449_v41  ;;  %v9537_v40 = vld [vmem:[%s12428_s6 + $0x4e0] ss:$16 sps:$4 sm:$0xff]   ;;  %v9540_v41 = vld [vmem:[%s12428_s6 + $0x4e8] ss:$16 sps:$4 sm:$0xff]  }
 0x24b   : > { %6977 = vmatpush1.bf16.msra.mxu0 %v9444_v42  ;;  %7536 = vmatpush1.bf16.msra.mxu1 %v9447_v43  ;;  %v9545_v42 = vld [vmem:[%s12428_s6 + $0x504] ss:$16 sps:$4 sm:$0xff]   ;;  %v9548_v43 = vld [vmem:[%s12428_s6 + $0x50c] ss:$16 sps:$4 sm:$0xff]  }
 0x24c   : > { %6978 = vmatprep.subr.bf16.mxu0 %v9452_v44  ;;  %7537 = vmatprep.subr.bf16.mxu1 %v9455_v45  ;;  %v9543_v44 = vld [vmem:[%s12428_s6 + $0x500] ss:$16 sps:$4 sm:$0xff]   ;;  %v9546_v45 = vld [vmem:[%s12428_s6 + $0x508] ss:$16 sps:$4 sm:$0xff]  }
 0x24f   : > { %6979 = vmatpush1.bf16.msra.mxu0 %v9450_v46  ;;  %7538 = vmatpush1.bf16.msra.mxu1 %v9453_v47  ;;  %v9551_v46 = vld [vmem:[%s12428_s6 + $0x524] ss:$16 sps:$4 sm:$0xff]   ;;  %v9554_v47 = vld [vmem:[%s12428_s6 + $0x52c] ss:$16 sps:$4 sm:$0xff]  }
 0x250   : > { %6980 = vmatprep.subr.bf16.mxu0 %v9458_v48  ;;  %7539 = vmatprep.subr.bf16.mxu1 %v9461_v49  ;;  %v9549_v48 = vld [vmem:[%s12428_s6 + $0x520] ss:$16 sps:$4 sm:$0xff]   ;;  %v9552_v49 = vld [vmem:[%s12428_s6 + $0x528] ss:$16 sps:$4 sm:$0xff]  }
 0x253   : > { %6981 = vmatpush1.bf16.msra.mxu0 %v9456_v50  ;;  %7540 = vmatpush1.bf16.msra.mxu1 %v9459_v51  ;;  %v9557_v50 = vld [vmem:[%s12428_s6 + $0x544] ss:$16 sps:$4 sm:$0xff]   ;;  %v9560_v51 = vld [vmem:[%s12428_s6 + $0x54c] ss:$16 sps:$4 sm:$0xff]  }
 0x254   : > { %6982 = vmatprep.subr.bf16.mxu0 %v9464_v52  ;;  %7541 = vmatprep.subr.bf16.mxu1 %v9467_v53  ;;  %v9555_v52 = vld [vmem:[%s12428_s6 + $0x540] ss:$16 sps:$4 sm:$0xff]   ;;  %v9558_v53 = vld [vmem:[%s12428_s6 + $0x548] ss:$16 sps:$4 sm:$0xff]  }
 0x257   : > { %6983 = vmatpush1.bf16.msra.mxu0 %v9462_v54  ;;  %7542 = vmatpush1.bf16.msra.mxu1 %v9465_v55  ;;  %v9563_v54 = vld [vmem:[%s12428_s6 + $0x564] ss:$16 sps:$4 sm:$0xff]   ;;  %v9566_v55 = vld [vmem:[%s12428_s6 + $0x56c] ss:$16 sps:$4 sm:$0xff]  }
 0x258   : > { %6984 = vmatprep.subr.bf16.mxu0 %v9470_v56  ;;  %7543 = vmatprep.subr.bf16.mxu1 %v9473_v57  ;;  %v9561_v56 = vld [vmem:[%s12428_s6 + $0x560] ss:$16 sps:$4 sm:$0xff]   ;;  %v9564_v57 = vld [vmem:[%s12428_s6 + $0x568] ss:$16 sps:$4 sm:$0xff]  }
 0x25b   : > { %6985 = vmatpush1.bf16.msra.mxu0 %v9468_v58  ;;  %7544 = vmatpush1.bf16.msra.mxu1 %v9471_v59  ;;  %v9569_v58 = vld [vmem:[%s12428_s6 + $0x584] ss:$16 sps:$4 sm:$0xff]   ;;  %v9572_v59 = vld [vmem:[%s12428_s6 + $0x58c] ss:$16 sps:$4 sm:$0xff]  }
 0x25c   : > { %6986 = vmatprep.subr.bf16.mxu0 %v9476_v60  ;;  %7545 = vmatprep.subr.bf16.mxu1 %v9479_v61  ;;  %v9567_v60 = vld [vmem:[%s12428_s6 + $0x580] ss:$16 sps:$4 sm:$0xff]   ;;  %v9570_v61 = vld [vmem:[%s12428_s6 + $0x588] ss:$16 sps:$4 sm:$0xff]  }
 0x25f   : > { %6987 = vmatpush1.bf16.msra.mxu0 %v9474_v62  ;;  %7546 = vmatpush1.bf16.msra.mxu1 %v9477_v63  ;;  %v9575_v62 = vld [vmem:[%s12428_s6 + $0x5a4] ss:$16 sps:$4 sm:$0xff]   ;;  %v9578_v63 = vld [vmem:[%s12428_s6 + $0x5ac] ss:$16 sps:$4 sm:$0xff]  }
 0x260   : > { %6988 = vmatprep.subr.bf16.mxu0 %v9482_v0  ;;  %7547 = vmatprep.subr.bf16.mxu1 %v9485_v1  ;;  %v9573_v0 = vld [vmem:[%s12428_s6 + $0x5a0] ss:$16 sps:$4 sm:$0xff]   ;;  %v9576_v1 = vld [vmem:[%s12428_s6 + $0x5a8] ss:$16 sps:$4 sm:$0xff]  }
 0x263   : > { %6989 = vmatpush1.bf16.msra.mxu0 %v9480_v2  ;;  %7548 = vmatpush1.bf16.msra.mxu1 %v9483_v3  ;;  %v9581_v2 = vld [vmem:[%s12428_s6 + $0x5c4] ss:$16 sps:$4 sm:$0xff]   ;;  %v9584_v3 = vld [vmem:[%s12428_s6 + $0x5cc] ss:$16 sps:$4 sm:$0xff]  }
 0x264   : > { %6990 = vmatprep.subr.bf16.mxu0 %v9488_v4  ;;  %7549 = vmatprep.subr.bf16.mxu1 %v9491_v5  ;;  %v9579_v4 = vld [vmem:[%s12428_s6 + $0x5c0] ss:$16 sps:$4 sm:$0xff]   ;;  %v9582_v5 = vld [vmem:[%s12428_s6 + $0x5c8] ss:$16 sps:$4 sm:$0xff]  }
 0x267   : > { %6991 = vmatpush1.bf16.msra.mxu0 %v9486_v6  ;;  %7550 = vmatpush1.bf16.msra.mxu1 %v9489_v7  ;;  %v9587_v6 = vld [vmem:[%s12428_s6 + $0x5e4] ss:$16 sps:$4 sm:$0xff]   ;;  %v9590_v7 = vld [vmem:[%s12428_s6 + $0x5ec] ss:$16 sps:$4 sm:$0xff]  }
 0x268   : > { %7003 = vmatprep.subr.bf16.mxu0 %v9497_v8  ;;  %7562 = vmatprep.subr.bf16.mxu1 %v9500_v9  ;;  %v9585_v8 = vld [vmem:[%s12428_s6 + $0x5e0] ss:$16 sps:$4 sm:$0xff]   ;;  %v9588_v9 = vld [vmem:[%s12428_s6 + $0x5e8] ss:$16 sps:$4 sm:$0xff]  }
 0x26a   : > { %6993 = vmatmul.mubr.bf16.vlgmr.msra.gmra.mrb[0].mxu0 %v9492_v10  ;;  %7552 = vmatmul.mubr.bf16.vlgmr.msra.gmra.mrb[0].mxu1 %v9492_v10  ;;  %v9596_v10 = vld [vmem:[%s12428_s6 + $0x604] ss:$16 sps:$4 sm:$0xff]  }
 0x26b   : > { %7004 = vmatpush1.bf16.msra.mxu0 %v9495_v11  ;;  %7563 = vmatpush1.bf16.msra.mxu1 %v9498_v12  ;;  %v9599_v11 = vld [vmem:[%s12428_s6 + $0x60c] ss:$16 sps:$4 sm:$0xff]  }
 0x26c   : > { %7005 = vmatprep.subr.bf16.mxu0 %v9503_v13  ;;  %7564 = vmatprep.subr.bf16.mxu1 %v9506_v14  ;;  %v9591_v12 = vld [vmem:[%s12426_s4 + $0x10] ss:$100 sps:$4 sm:$0xff]  }
 0x26d   : > { %7035 = vmatprep.mubr.bf16.mxu0 %v9593_v17  ;;  %7594 = vmatprep.mubr.bf16.mxu1 %v9593_v17  ;;  %v9594_v13 = vld [vmem:[%s12428_s6 + $0x600] ss:$16 sps:$4 sm:$0xff]   ;;  %v9597_v14 = vld [vmem:[%s12428_s6 + $0x608] ss:$16 sps:$4 sm:$0xff]  }
 0x26e   : > { %v9692_v17 = vld [vmem:[%s12426_s4 + $0x1c] ss:$100 sps:$4 sm:$0xff]  }
 0x26f   : > { %7006 = vmatpush1.bf16.msra.mxu0 %v9501_v15  ;;  %7565 = vmatpush1.bf16.msra.mxu1 %v9504_v16  ;;  %v9602_v15 = vld [vmem:[%s12428_s6 + $0x624] ss:$16 sps:$4 sm:$0xff]   ;;  %v9605_v16 = vld [vmem:[%s12428_s6 + $0x62c] ss:$16 sps:$4 sm:$0xff]  }
 0x270   : > { %7007 = vmatprep.subr.bf16.mxu0 %v9509_v18  ;;  %7566 = vmatprep.subr.bf16.mxu1 %v9512_v19  ;;  %v9600_v18 = vld [vmem:[%s12428_s6 + $0x620] ss:$16 sps:$4 sm:$0xff]   ;;  %v9603_v19 = vld [vmem:[%s12428_s6 + $0x628] ss:$16 sps:$4 sm:$0xff]  }
 0x273   : > { %7008 = vmatpush1.bf16.msra.mxu0 %v9507_v20  ;;  %7567 = vmatpush1.bf16.msra.mxu1 %v9510_v21  ;;  %v9608_v20 = vld [vmem:[%s12428_s6 + $0x644] ss:$16 sps:$4 sm:$0xff]   ;;  %v9611_v21 = vld [vmem:[%s12428_s6 + $0x64c] ss:$16 sps:$4 sm:$0xff]  }
 0x274   : > { %7009 = vmatprep.subr.bf16.mxu0 %v9515_v22  ;;  %7568 = vmatprep.subr.bf16.mxu1 %v9518_v23  ;;  %v9606_v22 = vld [vmem:[%s12428_s6 + $0x640] ss:$16 sps:$4 sm:$0xff]   ;;  %v9609_v23 = vld [vmem:[%s12428_s6 + $0x648] ss:$16 sps:$4 sm:$0xff]  }
 0x277   : > { %7010 = vmatpush1.bf16.msra.mxu0 %v9513_v24  ;;  %7569 = vmatpush1.bf16.msra.mxu1 %v9516_v25  ;;  %v9614_v24 = vld [vmem:[%s12428_s6 + $0x664] ss:$16 sps:$4 sm:$0xff]   ;;  %v9617_v25 = vld [vmem:[%s12428_s6 + $0x66c] ss:$16 sps:$4 sm:$0xff]  }
 0x278   : > { %7011 = vmatprep.subr.bf16.mxu0 %v9521_v26  ;;  %7570 = vmatprep.subr.bf16.mxu1 %v9524_v27  ;;  %v9612_v26 = vld [vmem:[%s12428_s6 + $0x660] ss:$16 sps:$4 sm:$0xff]   ;;  %v9615_v27 = vld [vmem:[%s12428_s6 + $0x668] ss:$16 sps:$4 sm:$0xff]  }
 0x27b   : > { %7012 = vmatpush1.bf16.msra.mxu0 %v9519_v28  ;;  %7571 = vmatpush1.bf16.msra.mxu1 %v9522_v29  ;;  %v9620_v28 = vld [vmem:[%s12428_s6 + $0x684] ss:$16 sps:$4 sm:$0xff]   ;;  %v9623_v29 = vld [vmem:[%s12428_s6 + $0x68c] ss:$16 sps:$4 sm:$0xff]  }
 0x27c   : > { %7013 = vmatprep.subr.bf16.mxu0 %v9527_v30  ;;  %7572 = vmatprep.subr.bf16.mxu1 %v9530_v31  ;;  %v9618_v30 = vld [vmem:[%s12428_s6 + $0x680] ss:$16 sps:$4 sm:$0xff]   ;;  %v9621_v31 = vld [vmem:[%s12428_s6 + $0x688] ss:$16 sps:$4 sm:$0xff]  }
 0x27f   : > { %7014 = vmatpush1.bf16.msra.mxu0 %v9525_v32  ;;  %7573 = vmatpush1.bf16.msra.mxu1 %v9528_v33  ;;  %v9626_v32 = vld [vmem:[%s12428_s6 + $0x6a4] ss:$16 sps:$4 sm:$0xff]   ;;  %v9629_v33 = vld [vmem:[%s12428_s6 + $0x6ac] ss:$16 sps:$4 sm:$0xff]  }
 0x280   : > { %7015 = vmatprep.subr.bf16.mxu0 %v9533_v34  ;;  %7574 = vmatprep.subr.bf16.mxu1 %v9536_v35  ;;  %v9624_v34 = vld [vmem:[%s12428_s6 + $0x6a0] ss:$16 sps:$4 sm:$0xff]   ;;  %v9627_v35 = vld [vmem:[%s12428_s6 + $0x6a8] ss:$16 sps:$4 sm:$0xff]  }
 0x283   : > { %7016 = vmatpush1.bf16.msra.mxu0 %v9531_v36  ;;  %7575 = vmatpush1.bf16.msra.mxu1 %v9534_v37  ;;  %v9632_v36 = vld [vmem:[%s12428_s6 + $0x6c4] ss:$16 sps:$4 sm:$0xff]   ;;  %v9635_v37 = vld [vmem:[%s12428_s6 + $0x6cc] ss:$16 sps:$4 sm:$0xff]  }
 0x284   : > { %7017 = vmatprep.subr.bf16.mxu0 %v9539_v38  ;;  %7576 = vmatprep.subr.bf16.mxu1 %v9542_v39  ;;  %v9630_v38 = vld [vmem:[%s12428_s6 + $0x6c0] ss:$16 sps:$4 sm:$0xff]   ;;  %v9633_v39 = vld [vmem:[%s12428_s6 + $0x6c8] ss:$16 sps:$4 sm:$0xff]  }
 0x287   : > { %7018 = vmatpush1.bf16.msra.mxu0 %v9537_v40  ;;  %7577 = vmatpush1.bf16.msra.mxu1 %v9540_v41  ;;  %v9638_v40 = vld [vmem:[%s12428_s6 + $0x6e4] ss:$16 sps:$4 sm:$0xff]   ;;  %v9641_v41 = vld [vmem:[%s12428_s6 + $0x6ec] ss:$16 sps:$4 sm:$0xff]  }
 0x288   : > { %7019 = vmatprep.subr.bf16.mxu0 %v9545_v42  ;;  %7578 = vmatprep.subr.bf16.mxu1 %v9548_v43  ;;  %v9636_v42 = vld [vmem:[%s12428_s6 + $0x6e0] ss:$16 sps:$4 sm:$0xff]   ;;  %v9639_v43 = vld [vmem:[%s12428_s6 + $0x6e8] ss:$16 sps:$4 sm:$0xff]  }
 0x28b   : > { %7020 = vmatpush1.bf16.msra.mxu0 %v9543_v44  ;;  %7579 = vmatpush1.bf16.msra.mxu1 %v9546_v45  ;;  %v9644_v44 = vld [vmem:[%s12428_s6 + $0x704] ss:$16 sps:$4 sm:$0xff]   ;;  %v9647_v45 = vld [vmem:[%s12428_s6 + $0x70c] ss:$16 sps:$4 sm:$0xff]  }
 0x28c   : > { %7021 = vmatprep.subr.bf16.mxu0 %v9551_v46  ;;  %7580 = vmatprep.subr.bf16.mxu1 %v9554_v47  ;;  %v9642_v46 = vld [vmem:[%s12428_s6 + $0x700] ss:$16 sps:$4 sm:$0xff]   ;;  %v9645_v47 = vld [vmem:[%s12428_s6 + $0x708] ss:$16 sps:$4 sm:$0xff]  }
 0x28f   : > { %7022 = vmatpush1.bf16.msra.mxu0 %v9549_v48  ;;  %7581 = vmatpush1.bf16.msra.mxu1 %v9552_v49  ;;  %v9650_v48 = vld [vmem:[%s12428_s6 + $0x724] ss:$16 sps:$4 sm:$0xff]   ;;  %v9653_v49 = vld [vmem:[%s12428_s6 + $0x72c] ss:$16 sps:$4 sm:$0xff]  }
 0x290   : > { %7023 = vmatprep.subr.bf16.mxu0 %v9557_v50  ;;  %7582 = vmatprep.subr.bf16.mxu1 %v9560_v51  ;;  %v9648_v50 = vld [vmem:[%s12428_s6 + $0x720] ss:$16 sps:$4 sm:$0xff]   ;;  %v9651_v51 = vld [vmem:[%s12428_s6 + $0x728] ss:$16 sps:$4 sm:$0xff]  }
 0x293   : > { %7024 = vmatpush1.bf16.msra.mxu0 %v9555_v52  ;;  %7583 = vmatpush1.bf16.msra.mxu1 %v9558_v53  ;;  %v9656_v52 = vld [vmem:[%s12428_s6 + $0x744] ss:$16 sps:$4 sm:$0xff]   ;;  %v9659_v53 = vld [vmem:[%s12428_s6 + $0x74c] ss:$16 sps:$4 sm:$0xff]  }
 0x294   : > { %7025 = vmatprep.subr.bf16.mxu0 %v9563_v54  ;;  %7584 = vmatprep.subr.bf16.mxu1 %v9566_v55  ;;  %v9654_v54 = vld [vmem:[%s12428_s6 + $0x740] ss:$16 sps:$4 sm:$0xff]   ;;  %v9657_v55 = vld [vmem:[%s12428_s6 + $0x748] ss:$16 sps:$4 sm:$0xff]  }
 0x297   : > { %7026 = vmatpush1.bf16.msra.mxu0 %v9561_v56  ;;  %7585 = vmatpush1.bf16.msra.mxu1 %v9564_v57  ;;  %v9662_v56 = vld [vmem:[%s12428_s6 + $0x764] ss:$16 sps:$4 sm:$0xff]   ;;  %v9665_v57 = vld [vmem:[%s12428_s6 + $0x76c] ss:$16 sps:$4 sm:$0xff]  }
 0x298   : > { %7027 = vmatprep.subr.bf16.mxu0 %v9569_v58  ;;  %7586 = vmatprep.subr.bf16.mxu1 %v9572_v59  ;;  %v9660_v58 = vld [vmem:[%s12428_s6 + $0x760] ss:$16 sps:$4 sm:$0xff]   ;;  %v9663_v59 = vld [vmem:[%s12428_s6 + $0x768] ss:$16 sps:$4 sm:$0xff]  }
 0x29b   : > { %7028 = vmatpush1.bf16.msra.mxu0 %v9567_v60  ;;  %7587 = vmatpush1.bf16.msra.mxu1 %v9570_v61  ;;  %v9668_v60 = vld [vmem:[%s12428_s6 + $0x784] ss:$16 sps:$4 sm:$0xff]   ;;  %v9671_v61 = vld [vmem:[%s12428_s6 + $0x78c] ss:$16 sps:$4 sm:$0xff]  }
 0x29c   : > { %7029 = vmatprep.subr.bf16.mxu0 %v9575_v62  ;;  %7588 = vmatprep.subr.bf16.mxu1 %v9578_v63  ;;  %v9666_v62 = vld [vmem:[%s12428_s6 + $0x780] ss:$16 sps:$4 sm:$0xff]   ;;  %v9669_v63 = vld [vmem:[%s12428_s6 + $0x788] ss:$16 sps:$4 sm:$0xff]  }
 0x29f   : > { %7030 = vmatpush1.bf16.msra.mxu0 %v9573_v0  ;;  %7589 = vmatpush1.bf16.msra.mxu1 %v9576_v1  ;;  %v9674_v0 = vld [vmem:[%s12428_s6 + $0x7a4] ss:$16 sps:$4 sm:$0xff]   ;;  %v9677_v1 = vld [vmem:[%s12428_s6 + $0x7ac] ss:$16 sps:$4 sm:$0xff]  }
 0x2a0   : > { %7031 = vmatprep.subr.bf16.mxu0 %v9581_v2  ;;  %7590 = vmatprep.subr.bf16.mxu1 %v9584_v3  ;;  %v9672_v2 = vld [vmem:[%s12428_s6 + $0x7a0] ss:$16 sps:$4 sm:$0xff]   ;;  %v9675_v3 = vld [vmem:[%s12428_s6 + $0x7a8] ss:$16 sps:$4 sm:$0xff]  }
 0x2a3   : > { %7032 = vmatpush1.bf16.msra.mxu0 %v9579_v4  ;;  %7591 = vmatpush1.bf16.msra.mxu1 %v9582_v5  ;;  %v9680_v4 = vld [vmem:[%s12428_s6 + $0x7c4] ss:$16 sps:$4 sm:$0xff]   ;;  %v9683_v5 = vld [vmem:[%s12428_s6 + $0x7cc] ss:$16 sps:$4 sm:$0xff]  }
 0x2a4   : > { %7033 = vmatprep.subr.bf16.mxu0 %v9587_v6  ;;  %7592 = vmatprep.subr.bf16.mxu1 %v9590_v7  ;;  %v9678_v6 = vld [vmem:[%s12428_s6 + $0x7c0] ss:$16 sps:$4 sm:$0xff]   ;;  %v9681_v7 = vld [vmem:[%s12428_s6 + $0x7c8] ss:$16 sps:$4 sm:$0xff]  }
 0x2a7   : > { %7034 = vmatpush1.bf16.msra.mxu0 %v9585_v8  ;;  %7593 = vmatpush1.bf16.msra.mxu1 %v9588_v9  ;;  %v9686_v8 = vld [vmem:[%s12428_s6 + $0x7e4] ss:$16 sps:$4 sm:$0xff]   ;;  %v9689_v9 = vld [vmem:[%s12428_s6 + $0x7ec] ss:$16 sps:$4 sm:$0xff]  }
 0x2a8   : > { %7046 = vmatprep.subr.bf16.mxu0 %v9596_v10  ;;  %7605 = vmatprep.subr.bf16.mxu1 %v9599_v11  ;;  %v9684_v10 = vld [vmem:[%s12428_s6 + $0x7e0] ss:$16 sps:$4 sm:$0xff]   ;;  %v9687_v11 = vld [vmem:[%s12428_s6 + $0x7e8] ss:$16 sps:$4 sm:$0xff]  }
 0x2aa   : > { %7036 = vmatmul.mubr.bf16.vlgmr.msra.gmra.mrb[0].mxu0 %v9591_v12  ;;  %7595 = vmatmul.mubr.bf16.vlgmr.msra.gmra.mrb[0].mxu1 %v9591_v12  ;;  %v9695_v12 = vld [vmem:[%s12428_s6 + $0x804] ss:$16 sps:$4 sm:$0xff]  }
 0x2ab   : > { %7047 = vmatpush1.bf16.msra.mxu0 %v9594_v13  ;;  %7606 = vmatpush1.bf16.msra.mxu1 %v9597_v14  ;;  %v9698_v13 = vld [vmem:[%s12428_s6 + $0x80c] ss:$16 sps:$4 sm:$0xff]  }
 0x2ac   : > { %7048 = vmatprep.subr.bf16.mxu0 %v9602_v15  ;;  %7607 = vmatprep.subr.bf16.mxu1 %v9605_v16  ;;  %v9690_v14 = vld [vmem:[%s12426_s4 + $0x18] ss:$100 sps:$4 sm:$0xff]  }
 0x2ad   : > { %7078 = vmatprep.mubr.bf16.mxu0 %v9692_v17  ;;  %7637 = vmatprep.mubr.bf16.mxu1 %v9692_v17  ;;  %v9693_v15 = vld [vmem:[%s12428_s6 + $0x800] ss:$16 sps:$4 sm:$0xff]   ;;  %v9696_v16 = vld [vmem:[%s12428_s6 + $0x808] ss:$16 sps:$4 sm:$0xff]   ;;  %v9701_v17 = vld [vmem:[%s12428_s6 + $0x824] ss:$16 sps:$4 sm:$0xff]  }
 0x2af   : > { %7049 = vmatpush1.bf16.msra.mxu0 %v9600_v18  ;;  %7608 = vmatpush1.bf16.msra.mxu1 %v9603_v19  ;;  %v9704_v18 = vld [vmem:[%s12428_s6 + $0x82c] ss:$16 sps:$4 sm:$0xff]  }
 0x2b0   : > { %7050 = vmatprep.subr.bf16.mxu0 %v9608_v20  ;;  %7609 = vmatprep.subr.bf16.mxu1 %v9611_v21  ;;  %v9791_v19 = vld [vmem:[%s12426_s4 + $0x24] ss:$100 sps:$4 sm:$0xff]  }
 0x2b1   : > { %v9699_v20 = vld [vmem:[%s12428_s6 + $0x820] ss:$16 sps:$4 sm:$0xff]   ;;  %v9702_v21 = vld [vmem:[%s12428_s6 + $0x828] ss:$16 sps:$4 sm:$0xff]  }
 0x2b3   : > { %7051 = vmatpush1.bf16.msra.mxu0 %v9606_v22  ;;  %7610 = vmatpush1.bf16.msra.mxu1 %v9609_v23  ;;  %v9707_v22 = vld [vmem:[%s12428_s6 + $0x844] ss:$16 sps:$4 sm:$0xff]   ;;  %v9710_v23 = vld [vmem:[%s12428_s6 + $0x84c] ss:$16 sps:$4 sm:$0xff]  }
 0x2b4   : > { %7052 = vmatprep.subr.bf16.mxu0 %v9614_v24  ;;  %7611 = vmatprep.subr.bf16.mxu1 %v9617_v25  ;;  %v9705_v24 = vld [vmem:[%s12428_s6 + $0x840] ss:$16 sps:$4 sm:$0xff]   ;;  %v9708_v25 = vld [vmem:[%s12428_s6 + $0x848] ss:$16 sps:$4 sm:$0xff]  }
 0x2b7   : > { %7053 = vmatpush1.bf16.msra.mxu0 %v9612_v26  ;;  %7612 = vmatpush1.bf16.msra.mxu1 %v9615_v27  ;;  %v9713_v26 = vld [vmem:[%s12428_s6 + $0x864] ss:$16 sps:$4 sm:$0xff]   ;;  %v9716_v27 = vld [vmem:[%s12428_s6 + $0x86c] ss:$16 sps:$4 sm:$0xff]  }
 0x2b8   : > { %7054 = vmatprep.subr.bf16.mxu0 %v9620_v28  ;;  %7613 = vmatprep.subr.bf16.mxu1 %v9623_v29  ;;  %v9711_v28 = vld [vmem:[%s12428_s6 + $0x860] ss:$16 sps:$4 sm:$0xff]   ;;  %v9714_v29 = vld [vmem:[%s12428_s6 + $0x868] ss:$16 sps:$4 sm:$0xff]  }
 0x2bb   : > { %7055 = vmatpush1.bf16.msra.mxu0 %v9618_v30  ;;  %7614 = vmatpush1.bf16.msra.mxu1 %v9621_v31  ;;  %v9719_v30 = vld [vmem:[%s12428_s6 + $0x884] ss:$16 sps:$4 sm:$0xff]   ;;  %v9722_v31 = vld [vmem:[%s12428_s6 + $0x88c] ss:$16 sps:$4 sm:$0xff]  }
 0x2bc   : > { %7056 = vmatprep.subr.bf16.mxu0 %v9626_v32  ;;  %7615 = vmatprep.subr.bf16.mxu1 %v9629_v33  ;;  %v9717_v32 = vld [vmem:[%s12428_s6 + $0x880] ss:$16 sps:$4 sm:$0xff]   ;;  %v9720_v33 = vld [vmem:[%s12428_s6 + $0x888] ss:$16 sps:$4 sm:$0xff]  }
 0x2bf   : > { %7057 = vmatpush1.bf16.msra.mxu0 %v9624_v34  ;;  %7616 = vmatpush1.bf16.msra.mxu1 %v9627_v35  ;;  %v9725_v34 = vld [vmem:[%s12428_s6 + $0x8a4] ss:$16 sps:$4 sm:$0xff]   ;;  %v9728_v35 = vld [vmem:[%s12428_s6 + $0x8ac] ss:$16 sps:$4 sm:$0xff]  }
 0x2c0   : > { %7058 = vmatprep.subr.bf16.mxu0 %v9632_v36  ;;  %7617 = vmatprep.subr.bf16.mxu1 %v9635_v37  ;;  %v9723_v36 = vld [vmem:[%s12428_s6 + $0x8a0] ss:$16 sps:$4 sm:$0xff]   ;;  %v9726_v37 = vld [vmem:[%s12428_s6 + $0x8a8] ss:$16 sps:$4 sm:$0xff]  }
 0x2c3   : > { %7059 = vmatpush1.bf16.msra.mxu0 %v9630_v38  ;;  %7618 = vmatpush1.bf16.msra.mxu1 %v9633_v39  ;;  %v9731_v38 = vld [vmem:[%s12428_s6 + $0x8c4] ss:$16 sps:$4 sm:$0xff]   ;;  %v9734_v39 = vld [vmem:[%s12428_s6 + $0x8cc] ss:$16 sps:$4 sm:$0xff]  }
 0x2c4   : > { %7060 = vmatprep.subr.bf16.mxu0 %v9638_v40  ;;  %7619 = vmatprep.subr.bf16.mxu1 %v9641_v41  ;;  %v9729_v40 = vld [vmem:[%s12428_s6 + $0x8c0] ss:$16 sps:$4 sm:$0xff]   ;;  %v9732_v41 = vld [vmem:[%s12428_s6 + $0x8c8] ss:$16 sps:$4 sm:$0xff]  }
 0x2c7   : > { %7061 = vmatpush1.bf16.msra.mxu0 %v9636_v42  ;;  %7620 = vmatpush1.bf16.msra.mxu1 %v9639_v43  ;;  %v9737_v42 = vld [vmem:[%s12428_s6 + $0x8e4] ss:$16 sps:$4 sm:$0xff]   ;;  %v9740_v43 = vld [vmem:[%s12428_s6 + $0x8ec] ss:$16 sps:$4 sm:$0xff]  }
 0x2c8   : > { %7062 = vmatprep.subr.bf16.mxu0 %v9644_v44  ;;  %7621 = vmatprep.subr.bf16.mxu1 %v9647_v45  ;;  %v9735_v44 = vld [vmem:[%s12428_s6 + $0x8e0] ss:$16 sps:$4 sm:$0xff]   ;;  %v9738_v45 = vld [vmem:[%s12428_s6 + $0x8e8] ss:$16 sps:$4 sm:$0xff]  }
 0x2cb   : > { %7063 = vmatpush1.bf16.msra.mxu0 %v9642_v46  ;;  %7622 = vmatpush1.bf16.msra.mxu1 %v9645_v47  ;;  %v9743_v46 = vld [vmem:[%s12428_s6 + $0x904] ss:$16 sps:$4 sm:$0xff]   ;;  %v9746_v47 = vld [vmem:[%s12428_s6 + $0x90c] ss:$16 sps:$4 sm:$0xff]  }
 0x2cc   : > { %7064 = vmatprep.subr.bf16.mxu0 %v9650_v48  ;;  %7623 = vmatprep.subr.bf16.mxu1 %v9653_v49  ;;  %v9741_v48 = vld [vmem:[%s12428_s6 + $0x900] ss:$16 sps:$4 sm:$0xff]   ;;  %v9744_v49 = vld [vmem:[%s12428_s6 + $0x908] ss:$16 sps:$4 sm:$0xff]  }
 0x2cf   : > { %7065 = vmatpush1.bf16.msra.mxu0 %v9648_v50  ;;  %7624 = vmatpush1.bf16.msra.mxu1 %v9651_v51  ;;  %v9749_v50 = vld [vmem:[%s12428_s6 + $0x924] ss:$16 sps:$4 sm:$0xff]   ;;  %v9752_v51 = vld [vmem:[%s12428_s6 + $0x92c] ss:$16 sps:$4 sm:$0xff]  }
 0x2d0   : > { %7066 = vmatprep.subr.bf16.mxu0 %v9656_v52  ;;  %7625 = vmatprep.subr.bf16.mxu1 %v9659_v53  ;;  %v9747_v52 = vld [vmem:[%s12428_s6 + $0x920] ss:$16 sps:$4 sm:$0xff]   ;;  %v9750_v53 = vld [vmem:[%s12428_s6 + $0x928] ss:$16 sps:$4 sm:$0xff]  }
 0x2d3   : > { %7067 = vmatpush1.bf16.msra.mxu0 %v9654_v54  ;;  %7626 = vmatpush1.bf16.msra.mxu1 %v9657_v55  ;;  %v9755_v54 = vld [vmem:[%s12428_s6 + $0x944] ss:$16 sps:$4 sm:$0xff]   ;;  %v9758_v55 = vld [vmem:[%s12428_s6 + $0x94c] ss:$16 sps:$4 sm:$0xff]  }
 0x2d4   : > { %7068 = vmatprep.subr.bf16.mxu0 %v9662_v56  ;;  %7627 = vmatprep.subr.bf16.mxu1 %v9665_v57  ;;  %v9753_v56 = vld [vmem:[%s12428_s6 + $0x940] ss:$16 sps:$4 sm:$0xff]   ;;  %v9756_v57 = vld [vmem:[%s12428_s6 + $0x948] ss:$16 sps:$4 sm:$0xff]  }
 0x2d7   : > { %7069 = vmatpush1.bf16.msra.mxu0 %v9660_v58  ;;  %7628 = vmatpush1.bf16.msra.mxu1 %v9663_v59  ;;  %v9761_v58 = vld [vmem:[%s12428_s6 + $0x964] ss:$16 sps:$4 sm:$0xff]   ;;  %v9764_v59 = vld [vmem:[%s12428_s6 + $0x96c] ss:$16 sps:$4 sm:$0xff]  }
 0x2d8   : > { %7070 = vmatprep.subr.bf16.mxu0 %v9668_v60  ;;  %7629 = vmatprep.subr.bf16.mxu1 %v9671_v61  ;;  %v9759_v60 = vld [vmem:[%s12428_s6 + $0x960] ss:$16 sps:$4 sm:$0xff]   ;;  %v9762_v61 = vld [vmem:[%s12428_s6 + $0x968] ss:$16 sps:$4 sm:$0xff]  }
 0x2db   : > { %7071 = vmatpush1.bf16.msra.mxu0 %v9666_v62  ;;  %7630 = vmatpush1.bf16.msra.mxu1 %v9669_v63  ;;  %v9767_v62 = vld [vmem:[%s12428_s6 + $0x984] ss:$16 sps:$4 sm:$0xff]   ;;  %v9770_v63 = vld [vmem:[%s12428_s6 + $0x98c] ss:$16 sps:$4 sm:$0xff]  }
 0x2dc   : > { %7072 = vmatprep.subr.bf16.mxu0 %v9674_v0  ;;  %7631 = vmatprep.subr.bf16.mxu1 %v9677_v1  ;;  %v9765_v0 = vld [vmem:[%s12428_s6 + $0x980] ss:$16 sps:$4 sm:$0xff]   ;;  %v9768_v1 = vld [vmem:[%s12428_s6 + $0x988] ss:$16 sps:$4 sm:$0xff]  }
 0x2df   : > { %7073 = vmatpush1.bf16.msra.mxu0 %v9672_v2  ;;  %7632 = vmatpush1.bf16.msra.mxu1 %v9675_v3  ;;  %v9773_v2 = vld [vmem:[%s12428_s6 + $0x9a4] ss:$16 sps:$4 sm:$0xff]   ;;  %v9776_v3 = vld [vmem:[%s12428_s6 + $0x9ac] ss:$16 sps:$4 sm:$0xff]  }
 0x2e0   : > { %7074 = vmatprep.subr.bf16.mxu0 %v9680_v4  ;;  %7633 = vmatprep.subr.bf16.mxu1 %v9683_v5  ;;  %v9771_v4 = vld [vmem:[%s12428_s6 + $0x9a0] ss:$16 sps:$4 sm:$0xff]   ;;  %v9774_v5 = vld [vmem:[%s12428_s6 + $0x9a8] ss:$16 sps:$4 sm:$0xff]  }
 0x2e3   : > { %7075 = vmatpush1.bf16.msra.mxu0 %v9678_v6  ;;  %7634 = vmatpush1.bf16.msra.mxu1 %v9681_v7  ;;  %v9779_v6 = vld [vmem:[%s12428_s6 + $0x9c4] ss:$16 sps:$4 sm:$0xff]   ;;  %v9782_v7 = vld [vmem:[%s12428_s6 + $0x9cc] ss:$16 sps:$4 sm:$0xff]  }
 0x2e4   : > { %7076 = vmatprep.subr.bf16.mxu0 %v9686_v8  ;;  %7635 = vmatprep.subr.bf16.mxu1 %v9689_v9  ;;  %v9777_v8 = vld [vmem:[%s12428_s6 + $0x9c0] ss:$16 sps:$4 sm:$0xff]   ;;  %v9780_v9 = vld [vmem:[%s12428_s6 + $0x9c8] ss:$16 sps:$4 sm:$0xff]  }
 0x2e7   : > { %7077 = vmatpush1.bf16.msra.mxu0 %v9684_v10  ;;  %7636 = vmatpush1.bf16.msra.mxu1 %v9687_v11  ;;  %v9785_v10 = vld [vmem:[%s12428_s6 + $0x9e4] ss:$16 sps:$4 sm:$0xff]   ;;  %v9788_v11 = vld [vmem:[%s12428_s6 + $0x9ec] ss:$16 sps:$4 sm:$0xff]  }
 0x2e8   : > { %7089 = vmatprep.subr.bf16.mxu0 %v9695_v12  ;;  %7648 = vmatprep.subr.bf16.mxu1 %v9698_v13  ;;  %v9783_v12 = vld [vmem:[%s12428_s6 + $0x9e0] ss:$16 sps:$4 sm:$0xff]   ;;  %v9786_v13 = vld [vmem:[%s12428_s6 + $0x9e8] ss:$16 sps:$4 sm:$0xff]  }
 0x2ea   : > { %7079 = vmatmul.mubr.bf16.vlgmr.msra.gmra.mrb[0].mxu0 %v9690_v14  ;;  %7638 = vmatmul.mubr.bf16.vlgmr.msra.gmra.mrb[0].mxu1 %v9690_v14  ;;  %v9789_v14 = vld [vmem:[%s12426_s4 + $0x20] ss:$100 sps:$4 sm:$0xff]  }
 0x2eb   : > { %7090 = vmatpush1.bf16.msra.mxu0 %v9693_v15  ;;  %7649 = vmatpush1.bf16.msra.mxu1 %v9696_v16  ;;  %v9794_v15 = vld [vmem:[%s12428_s6 + $0xa04] ss:$16 sps:$4 sm:$0xff]   ;;  %v9797_v16 = vld [vmem:[%s12428_s6 + $0xa0c] ss:$16 sps:$4 sm:$0xff]  }
 0x2ec   : > { %7091 = vmatprep.subr.bf16.mxu0 %v9701_v17  ;;  %7650 = vmatprep.subr.bf16.mxu1 %v9704_v18  ;;  %v9792_v17 = vld [vmem:[%s12428_s6 + $0xa00] ss:$16 sps:$4 sm:$0xff]   ;;  %v9795_v18 = vld [vmem:[%s12428_s6 + $0xa08] ss:$16 sps:$4 sm:$0xff]  }
 0x2ed   : > { %7121 = vmatprep.mubr.bf16.mxu0 %v9791_v19  ;;  %7680 = vmatprep.mubr.bf16.mxu1 %v9791_v19  ;;  %v9800_v19 = vld [vmem:[%s12428_s6 + $0xa24] ss:$16 sps:$4 sm:$0xff]  }
 0x2ef   : > { %7092 = vmatpush1.bf16.msra.mxu0 %v9699_v20  ;;  %7651 = vmatpush1.bf16.msra.mxu1 %v9702_v21  ;;  %v9803_v20 = vld [vmem:[%s12428_s6 + $0xa2c] ss:$16 sps:$4 sm:$0xff]  }
 0x2f0   : > { %7093 = vmatprep.subr.bf16.mxu0 %v9707_v22  ;;  %7652 = vmatprep.subr.bf16.mxu1 %v9710_v23  ;;  %v9890_v21 = vld [vmem:[%s12426_s4 + $0x2c] ss:$100 sps:$4 sm:$0xff]  }
 0x2f1   : > { %v9798_v22 = vld [vmem:[%s12428_s6 + $0xa20] ss:$16 sps:$4 sm:$0xff]   ;;  %v9801_v23 = vld [vmem:[%s12428_s6 + $0xa28] ss:$16 sps:$4 sm:$0xff]  }
 0x2f3   : > { %7094 = vmatpush1.bf16.msra.mxu0 %v9705_v24  ;;  %7653 = vmatpush1.bf16.msra.mxu1 %v9708_v25  ;;  %v9806_v24 = vld [vmem:[%s12428_s6 + $0xa44] ss:$16 sps:$4 sm:$0xff]   ;;  %v9809_v25 = vld [vmem:[%s12428_s6 + $0xa4c] ss:$16 sps:$4 sm:$0xff]  }
 0x2f4   : > { %7095 = vmatprep.subr.bf16.mxu0 %v9713_v26  ;;  %7654 = vmatprep.subr.bf16.mxu1 %v9716_v27  ;;  %v9804_v26 = vld [vmem:[%s12428_s6 + $0xa40] ss:$16 sps:$4 sm:$0xff]   ;;  %v9807_v27 = vld [vmem:[%s12428_s6 + $0xa48] ss:$16 sps:$4 sm:$0xff]  }
 0x2f7   : > { %7096 = vmatpush1.bf16.msra.mxu0 %v9711_v28  ;;  %7655 = vmatpush1.bf16.msra.mxu1 %v9714_v29  ;;  %v9812_v28 = vld [vmem:[%s12428_s6 + $0xa64] ss:$16 sps:$4 sm:$0xff]   ;;  %v9815_v29 = vld [vmem:[%s12428_s6 + $0xa6c] ss:$16 sps:$4 sm:$0xff]  }
 0x2f8   : > { %7097 = vmatprep.subr.bf16.mxu0 %v9719_v30  ;;  %7656 = vmatprep.subr.bf16.mxu1 %v9722_v31  ;;  %v9810_v30 = vld [vmem:[%s12428_s6 + $0xa60] ss:$16 sps:$4 sm:$0xff]   ;;  %v9813_v31 = vld [vmem:[%s12428_s6 + $0xa68] ss:$16 sps:$4 sm:$0xff]  }
 0x2fb   : > { %7098 = vmatpush1.bf16.msra.mxu0 %v9717_v32  ;;  %7657 = vmatpush1.bf16.msra.mxu1 %v9720_v33  ;;  %v9818_v32 = vld [vmem:[%s12428_s6 + $0xa84] ss:$16 sps:$4 sm:$0xff]   ;;  %v9821_v33 = vld [vmem:[%s12428_s6 + $0xa8c] ss:$16 sps:$4 sm:$0xff]  }
 0x2fc   : > { %7099 = vmatprep.subr.bf16.mxu0 %v9725_v34  ;;  %7658 = vmatprep.subr.bf16.mxu1 %v9728_v35  ;;  %v9816_v34 = vld [vmem:[%s12428_s6 + $0xa80] ss:$16 sps:$4 sm:$0xff]   ;;  %v9819_v35 = vld [vmem:[%s12428_s6 + $0xa88] ss:$16 sps:$4 sm:$0xff]  }
 0x2ff   : > { %7100 = vmatpush1.bf16.msra.mxu0 %v9723_v36  ;;  %7659 = vmatpush1.bf16.msra.mxu1 %v9726_v37  ;;  %v9824_v36 = vld [vmem:[%s12428_s6 + $0xaa4] ss:$16 sps:$4 sm:$0xff]   ;;  %v9827_v37 = vld [vmem:[%s12428_s6 + $0xaac] ss:$16 sps:$4 sm:$0xff]  }
 0x300   : > { %7101 = vmatprep.subr.bf16.mxu0 %v9731_v38  ;;  %7660 = vmatprep.subr.bf16.mxu1 %v9734_v39  ;;  %v9822_v38 = vld [vmem:[%s12428_s6 + $0xaa0] ss:$16 sps:$4 sm:$0xff]   ;;  %v9825_v39 = vld [vmem:[%s12428_s6 + $0xaa8] ss:$16 sps:$4 sm:$0xff]  }
 0x303   : > { %7102 = vmatpush1.bf16.msra.mxu0 %v9729_v40  ;;  %7661 = vmatpush1.bf16.msra.mxu1 %v9732_v41  ;;  %v9830_v40 = vld [vmem:[%s12428_s6 + $0xac4] ss:$16 sps:$4 sm:$0xff]   ;;  %v9833_v41 = vld [vmem:[%s12428_s6 + $0xacc] ss:$16 sps:$4 sm:$0xff]  }
 0x304   : > { %7103 = vmatprep.subr.bf16.mxu0 %v9737_v42  ;;  %7662 = vmatprep.subr.bf16.mxu1 %v9740_v43  ;;  %v9828_v42 = vld [vmem:[%s12428_s6 + $0xac0] ss:$16 sps:$4 sm:$0xff]   ;;  %v9831_v43 = vld [vmem:[%s12428_s6 + $0xac8] ss:$16 sps:$4 sm:$0xff]  }
 0x307   : > { %7104 = vmatpush1.bf16.msra.mxu0 %v9735_v44  ;;  %7663 = vmatpush1.bf16.msra.mxu1 %v9738_v45  ;;  %v9836_v44 = vld [vmem:[%s12428_s6 + $0xae4] ss:$16 sps:$4 sm:$0xff]   ;;  %v9839_v45 = vld [vmem:[%s12428_s6 + $0xaec] ss:$16 sps:$4 sm:$0xff]  }
 0x308   : > { %7105 = vmatprep.subr.bf16.mxu0 %v9743_v46  ;;  %7664 = vmatprep.subr.bf16.mxu1 %v9746_v47  ;;  %v9834_v46 = vld [vmem:[%s12428_s6 + $0xae0] ss:$16 sps:$4 sm:$0xff]   ;;  %v9837_v47 = vld [vmem:[%s12428_s6 + $0xae8] ss:$16 sps:$4 sm:$0xff]  }
 0x30b   : > { %7106 = vmatpush1.bf16.msra.mxu0 %v9741_v48  ;;  %7665 = vmatpush1.bf16.msra.mxu1 %v9744_v49  ;;  %v9842_v48 = vld [vmem:[%s12428_s6 + $0xb04] ss:$16 sps:$4 sm:$0xff]   ;;  %v9845_v49 = vld [vmem:[%s12428_s6 + $0xb0c] ss:$16 sps:$4 sm:$0xff]  }
 0x30c   : > { %7107 = vmatprep.subr.bf16.mxu0 %v9749_v50  ;;  %7666 = vmatprep.subr.bf16.mxu1 %v9752_v51  ;;  %v9840_v50 = vld [vmem:[%s12428_s6 + $0xb00] ss:$16 sps:$4 sm:$0xff]   ;;  %v9843_v51 = vld [vmem:[%s12428_s6 + $0xb08] ss:$16 sps:$4 sm:$0xff]  }
 0x30f   : > { %7108 = vmatpush1.bf16.msra.mxu0 %v9747_v52  ;;  %7667 = vmatpush1.bf16.msra.mxu1 %v9750_v53  ;;  %v9848_v52 = vld [vmem:[%s12428_s6 + $0xb24] ss:$16 sps:$4 sm:$0xff]   ;;  %v9851_v53 = vld [vmem:[%s12428_s6 + $0xb2c] ss:$16 sps:$4 sm:$0xff]  }
 0x310   : > { %7109 = vmatprep.subr.bf16.mxu0 %v9755_v54  ;;  %7668 = vmatprep.subr.bf16.mxu1 %v9758_v55  ;;  %v9846_v54 = vld [vmem:[%s12428_s6 + $0xb20] ss:$16 sps:$4 sm:$0xff]   ;;  %v9849_v55 = vld [vmem:[%s12428_s6 + $0xb28] ss:$16 sps:$4 sm:$0xff]  }
 0x313   : > { %7110 = vmatpush1.bf16.msra.mxu0 %v9753_v56  ;;  %7669 = vmatpush1.bf16.msra.mxu1 %v9756_v57  ;;  %v9854_v56 = vld [vmem:[%s12428_s6 + $0xb44] ss:$16 sps:$4 sm:$0xff]   ;;  %v9857_v57 = vld [vmem:[%s12428_s6 + $0xb4c] ss:$16 sps:$4 sm:$0xff]  }
 0x314   : > { %7111 = vmatprep.subr.bf16.mxu0 %v9761_v58  ;;  %7670 = vmatprep.subr.bf16.mxu1 %v9764_v59  ;;  %v9852_v58 = vld [vmem:[%s12428_s6 + $0xb40] ss:$16 sps:$4 sm:$0xff]   ;;  %v9855_v59 = vld [vmem:[%s12428_s6 + $0xb48] ss:$16 sps:$4 sm:$0xff]  }
 0x317   : > { %7112 = vmatpush1.bf16.msra.mxu0 %v9759_v60  ;;  %7671 = vmatpush1.bf16.msra.mxu1 %v9762_v61  ;;  %v9860_v60 = vld [vmem:[%s12428_s6 + $0xb64] ss:$16 sps:$4 sm:$0xff]   ;;  %v9863_v61 = vld [vmem:[%s12428_s6 + $0xb6c] ss:$16 sps:$4 sm:$0xff]  }
 0x318   : > { %7113 = vmatprep.subr.bf16.mxu0 %v9767_v62  ;;  %7672 = vmatprep.subr.bf16.mxu1 %v9770_v63  ;;  %v9858_v62 = vld [vmem:[%s12428_s6 + $0xb60] ss:$16 sps:$4 sm:$0xff]   ;;  %v9861_v63 = vld [vmem:[%s12428_s6 + $0xb68] ss:$16 sps:$4 sm:$0xff]  }
 0x31b   : > { %7114 = vmatpush1.bf16.msra.mxu0 %v9765_v0  ;;  %7673 = vmatpush1.bf16.msra.mxu1 %v9768_v1  ;;  %v9866_v0 = vld [vmem:[%s12428_s6 + $0xb84] ss:$16 sps:$4 sm:$0xff]   ;;  %v9869_v1 = vld [vmem:[%s12428_s6 + $0xb8c] ss:$16 sps:$4 sm:$0xff]  }
 0x31c   : > { %7115 = vmatprep.subr.bf16.mxu0 %v9773_v2  ;;  %7674 = vmatprep.subr.bf16.mxu1 %v9776_v3  ;;  %v9864_v2 = vld [vmem:[%s12428_s6 + $0xb80] ss:$16 sps:$4 sm:$0xff]   ;;  %v9867_v3 = vld [vmem:[%s12428_s6 + $0xb88] ss:$16 sps:$4 sm:$0xff]  }
 0x31f   : > { %7116 = vmatpush1.bf16.msra.mxu0 %v9771_v4  ;;  %7675 = vmatpush1.bf16.msra.mxu1 %v9774_v5  ;;  %v9872_v4 = vld [vmem:[%s12428_s6 + $0xba4] ss:$16 sps:$4 sm:$0xff]   ;;  %v9875_v5 = vld [vmem:[%s12428_s6 + $0xbac] ss:$16 sps:$4 sm:$0xff]  }
 0x320   : > { %7117 = vmatprep.subr.bf16.mxu0 %v9779_v6  ;;  %7676 = vmatprep.subr.bf16.mxu1 %v9782_v7  ;;  %v9870_v6 = vld [vmem:[%s12428_s6 + $0xba0] ss:$16 sps:$4 sm:$0xff]   ;;  %v9873_v7 = vld [vmem:[%s12428_s6 + $0xba8] ss:$16 sps:$4 sm:$0xff]  }
 0x323   : > { %7118 = vmatpush1.bf16.msra.mxu0 %v9777_v8  ;;  %7677 = vmatpush1.bf16.msra.mxu1 %v9780_v9  ;;  %v9878_v8 = vld [vmem:[%s12428_s6 + $0xbc4] ss:$16 sps:$4 sm:$0xff]   ;;  %v9881_v9 = vld [vmem:[%s12428_s6 + $0xbcc] ss:$16 sps:$4 sm:$0xff]  }
 0x324   : > { %7119 = vmatprep.subr.bf16.mxu0 %v9785_v10  ;;  %7678 = vmatprep.subr.bf16.mxu1 %v9788_v11  ;;  %v9876_v10 = vld [vmem:[%s12428_s6 + $0xbc0] ss:$16 sps:$4 sm:$0xff]   ;;  %v9879_v11 = vld [vmem:[%s12428_s6 + $0xbc8] ss:$16 sps:$4 sm:$0xff]  }
 0x327   : > { %7120 = vmatpush1.bf16.msra.mxu0 %v9783_v12  ;;  %7679 = vmatpush1.bf16.msra.mxu1 %v9786_v13  ;;  %v9884_v12 = vld [vmem:[%s12428_s6 + $0xbe4] ss:$16 sps:$4 sm:$0xff]   ;;  %v9887_v13 = vld [vmem:[%s12428_s6 + $0xbec] ss:$16 sps:$4 sm:$0xff]  }
 0x328   : > { %7132 = vmatprep.subr.bf16.mxu0 %v9794_v15  ;;  %7691 = vmatprep.subr.bf16.mxu1 %v9797_v16  ;;  %v9885_v15 = vld [vmem:[%s12428_s6 + $0xbe8] ss:$16 sps:$4 sm:$0xff]  }
 0x329   : > { %v9888_v16 = vld [vmem:[%s12426_s4 + $0x28] ss:$100 sps:$4 sm:$0xff]  }
 0x32a   : > { %7122 = vmatmul.mubr.bf16.vlgmr.msra.gmra.mrb[0].mxu0 %v9789_v14  ;;  %7681 = vmatmul.mubr.bf16.vlgmr.msra.gmra.mrb[0].mxu1 %v9789_v14  ;;  %v9882_v14 = vld [vmem:[%s12428_s6 + $0xbe0] ss:$16 sps:$4 sm:$0xff]  }
 0x32b   : > { %7133 = vmatpush1.bf16.msra.mxu0 %v9792_v17  ;;  %7692 = vmatpush1.bf16.msra.mxu1 %v9795_v18  ;;  %v9893_v17 = vld [vmem:[%s12428_s6 + $0xc04] ss:$16 sps:$4 sm:$0xff]   ;;  %v9896_v18 = vld [vmem:[%s12428_s6 + $0xc0c] ss:$16 sps:$4 sm:$0xff]  }
 0x32c   : > { %7134 = vmatprep.subr.bf16.mxu0 %v9800_v19  ;;  %7693 = vmatprep.subr.bf16.mxu1 %v9803_v20  ;;  %v9891_v19 = vld [vmem:[%s12428_s6 + $0xc00] ss:$16 sps:$4 sm:$0xff]   ;;  %v9894_v20 = vld [vmem:[%s12428_s6 + $0xc08] ss:$16 sps:$4 sm:$0xff]  }
 0x32d   : > { %7164 = vmatprep.mubr.bf16.mxu0 %v9890_v21  ;;  %7723 = vmatprep.mubr.bf16.mxu1 %v9890_v21  ;;  %v9899_v21 = vld [vmem:[%s12428_s6 + $0xc24] ss:$16 sps:$4 sm:$0xff]  }
 0x32f   : > { %7135 = vmatpush1.bf16.msra.mxu0 %v9798_v22  ;;  %7694 = vmatpush1.bf16.msra.mxu1 %v9801_v23  ;;  %v9902_v22 = vld [vmem:[%s12428_s6 + $0xc2c] ss:$16 sps:$4 sm:$0xff]  }
 0x330   : > { %7136 = vmatprep.subr.bf16.mxu0 %v9806_v24  ;;  %7695 = vmatprep.subr.bf16.mxu1 %v9809_v25  ;;  %v9989_v23 = vld [vmem:[%s12426_s4 + $0x34] ss:$100 sps:$4 sm:$0xff]  }
 0x331   : > { %v9897_v24 = vld [vmem:[%s12428_s6 + $0xc20] ss:$16 sps:$4 sm:$0xff]   ;;  %v9900_v25 = vld [vmem:[%s12428_s6 + $0xc28] ss:$16 sps:$4 sm:$0xff]  }
 0x333   : > { %7137 = vmatpush1.bf16.msra.mxu0 %v9804_v26  ;;  %7696 = vmatpush1.bf16.msra.mxu1 %v9807_v27  ;;  %v9905_v26 = vld [vmem:[%s12428_s6 + $0xc44] ss:$16 sps:$4 sm:$0xff]   ;;  %v9908_v27 = vld [vmem:[%s12428_s6 + $0xc4c] ss:$16 sps:$4 sm:$0xff]  }
 0x334   : > { %7138 = vmatprep.subr.bf16.mxu0 %v9812_v28  ;;  %7697 = vmatprep.subr.bf16.mxu1 %v9815_v29  ;;  %v9903_v28 = vld [vmem:[%s12428_s6 + $0xc40] ss:$16 sps:$4 sm:$0xff]   ;;  %v9906_v29 = vld [vmem:[%s12428_s6 + $0xc48] ss:$16 sps:$4 sm:$0xff]  }
 0x337   : > { %7139 = vmatpush1.bf16.msra.mxu0 %v9810_v30  ;;  %7698 = vmatpush1.bf16.msra.mxu1 %v9813_v31  ;;  %v9911_v30 = vld [vmem:[%s12428_s6 + $0xc64] ss:$16 sps:$4 sm:$0xff]   ;;  %v9914_v31 = vld [vmem:[%s12428_s6 + $0xc6c] ss:$16 sps:$4 sm:$0xff]  }
 0x338   : > { %7140 = vmatprep.subr.bf16.mxu0 %v9818_v32  ;;  %7699 = vmatprep.subr.bf16.mxu1 %v9821_v33  ;;  %v9909_v32 = vld [vmem:[%s12428_s6 + $0xc60] ss:$16 sps:$4 sm:$0xff]   ;;  %v9912_v33 = vld [vmem:[%s12428_s6 + $0xc68] ss:$16 sps:$4 sm:$0xff]  }
 0x33b   : > { %7141 = vmatpush1.bf16.msra.mxu0 %v9816_v34  ;;  %7700 = vmatpush1.bf16.msra.mxu1 %v9819_v35  ;;  %v9917_v34 = vld [vmem:[%s12428_s6 + $0xc84] ss:$16 sps:$4 sm:$0xff]   ;;  %v9920_v35 = vld [vmem:[%s12428_s6 + $0xc8c] ss:$16 sps:$4 sm:$0xff]  }
 0x33c   : > { %7142 = vmatprep.subr.bf16.mxu0 %v9824_v36  ;;  %7701 = vmatprep.subr.bf16.mxu1 %v9827_v37  ;;  %v9915_v36 = vld [vmem:[%s12428_s6 + $0xc80] ss:$16 sps:$4 sm:$0xff]   ;;  %v9918_v37 = vld [vmem:[%s12428_s6 + $0xc88] ss:$16 sps:$4 sm:$0xff]  }
 0x33f   : > { %7143 = vmatpush1.bf16.msra.mxu0 %v9822_v38  ;;  %7702 = vmatpush1.bf16.msra.mxu1 %v9825_v39  ;;  %v9923_v38 = vld [vmem:[%s12428_s6 + $0xca4] ss:$16 sps:$4 sm:$0xff]   ;;  %v9926_v39 = vld [vmem:[%s12428_s6 + $0xcac] ss:$16 sps:$4 sm:$0xff]  }
 0x340   : > { %7144 = vmatprep.subr.bf16.mxu0 %v9830_v40  ;;  %7703 = vmatprep.subr.bf16.mxu1 %v9833_v41  ;;  %v9921_v40 = vld [vmem:[%s12428_s6 + $0xca0] ss:$16 sps:$4 sm:$0xff]   ;;  %v9924_v41 = vld [vmem:[%s12428_s6 + $0xca8] ss:$16 sps:$4 sm:$0xff]  }
 0x343   : > { %7145 = vmatpush1.bf16.msra.mxu0 %v9828_v42  ;;  %7704 = vmatpush1.bf16.msra.mxu1 %v9831_v43  ;;  %v9929_v42 = vld [vmem:[%s12428_s6 + $0xcc4] ss:$16 sps:$4 sm:$0xff]   ;;  %v9932_v43 = vld [vmem:[%s12428_s6 + $0xccc] ss:$16 sps:$4 sm:$0xff]  }
 0x344   : > { %7146 = vmatprep.subr.bf16.mxu0 %v9836_v44  ;;  %7705 = vmatprep.subr.bf16.mxu1 %v9839_v45  ;;  %v9927_v44 = vld [vmem:[%s12428_s6 + $0xcc0] ss:$16 sps:$4 sm:$0xff]   ;;  %v9930_v45 = vld [vmem:[%s12428_s6 + $0xcc8] ss:$16 sps:$4 sm:$0xff]  }
 0x347   : > { %7147 = vmatpush1.bf16.msra.mxu0 %v9834_v46  ;;  %7706 = vmatpush1.bf16.msra.mxu1 %v9837_v47  ;;  %v9935_v46 = vld [vmem:[%s12428_s6 + $0xce4] ss:$16 sps:$4 sm:$0xff]   ;;  %v9938_v47 = vld [vmem:[%s12428_s6 + $0xcec] ss:$16 sps:$4 sm:$0xff]  }
 0x348   : > { %7148 = vmatprep.subr.bf16.mxu0 %v9842_v48  ;;  %7707 = vmatprep.subr.bf16.mxu1 %v9845_v49  ;;  %v9933_v48 = vld [vmem:[%s12428_s6 + $0xce0] ss:$16 sps:$4 sm:$0xff]   ;;  %v9936_v49 = vld [vmem:[%s12428_s6 + $0xce8] ss:$16 sps:$4 sm:$0xff]  }
 0x34b   : > { %7149 = vmatpush1.bf16.msra.mxu0 %v9840_v50  ;;  %7708 = vmatpush1.bf16.msra.mxu1 %v9843_v51  ;;  %v9941_v50 = vld [vmem:[%s12428_s6 + $0xd04] ss:$16 sps:$4 sm:$0xff]   ;;  %v9944_v51 = vld [vmem:[%s12428_s6 + $0xd0c] ss:$16 sps:$4 sm:$0xff]  }
 0x34c   : > { %7150 = vmatprep.subr.bf16.mxu0 %v9848_v52  ;;  %7709 = vmatprep.subr.bf16.mxu1 %v9851_v53  ;;  %v9939_v52 = vld [vmem:[%s12428_s6 + $0xd00] ss:$16 sps:$4 sm:$0xff]   ;;  %v9942_v53 = vld [vmem:[%s12428_s6 + $0xd08] ss:$16 sps:$4 sm:$0xff]  }
 0x34f   : > { %7151 = vmatpush1.bf16.msra.mxu0 %v9846_v54  ;;  %7710 = vmatpush1.bf16.msra.mxu1 %v9849_v55  ;;  %v9947_v54 = vld [vmem:[%s12428_s6 + $0xd24] ss:$16 sps:$4 sm:$0xff]   ;;  %v9950_v55 = vld [vmem:[%s12428_s6 + $0xd2c] ss:$16 sps:$4 sm:$0xff]  }
 0x350   : > { %7152 = vmatprep.subr.bf16.mxu0 %v9854_v56  ;;  %7711 = vmatprep.subr.bf16.mxu1 %v9857_v57  ;;  %v9945_v56 = vld [vmem:[%s12428_s6 + $0xd20] ss:$16 sps:$4 sm:$0xff]   ;;  %v9948_v57 = vld [vmem:[%s12428_s6 + $0xd28] ss:$16 sps:$4 sm:$0xff]  }
 0x353   : > { %7153 = vmatpush1.bf16.msra.mxu0 %v9852_v58  ;;  %7712 = vmatpush1.bf16.msra.mxu1 %v9855_v59  ;;  %v9953_v58 = vld [vmem:[%s12428_s6 + $0xd44] ss:$16 sps:$4 sm:$0xff]   ;;  %v9956_v59 = vld [vmem:[%s12428_s6 + $0xd4c] ss:$16 sps:$4 sm:$0xff]  }
 0x354   : > { %7154 = vmatprep.subr.bf16.mxu0 %v9860_v60  ;;  %7713 = vmatprep.subr.bf16.mxu1 %v9863_v61  ;;  %v9951_v60 = vld [vmem:[%s12428_s6 + $0xd40] ss:$16 sps:$4 sm:$0xff]   ;;  %v9954_v61 = vld [vmem:[%s12428_s6 + $0xd48] ss:$16 sps:$4 sm:$0xff]  }
 0x357   : > { %7155 = vmatpush1.bf16.msra.mxu0 %v9858_v62  ;;  %7714 = vmatpush1.bf16.msra.mxu1 %v9861_v63  ;;  %v9959_v62 = vld [vmem:[%s12428_s6 + $0xd64] ss:$16 sps:$4 sm:$0xff]   ;;  %v9962_v63 = vld [vmem:[%s12428_s6 + $0xd6c] ss:$16 sps:$4 sm:$0xff]  }
 0x358   : > { %7156 = vmatprep.subr.bf16.mxu0 %v9866_v0  ;;  %7715 = vmatprep.subr.bf16.mxu1 %v9869_v1  ;;  %v9957_v0 = vld [vmem:[%s12428_s6 + $0xd60] ss:$16 sps:$4 sm:$0xff]   ;;  %v9960_v1 = vld [vmem:[%s12428_s6 + $0xd68] ss:$16 sps:$4 sm:$0xff]  }
 0x35b   : > { %7157 = vmatpush1.bf16.msra.mxu0 %v9864_v2  ;;  %7716 = vmatpush1.bf16.msra.mxu1 %v9867_v3  ;;  %v9965_v2 = vld [vmem:[%s12428_s6 + $0xd84] ss:$16 sps:$4 sm:$0xff]   ;;  %v9968_v3 = vld [vmem:[%s12428_s6 + $0xd8c] ss:$16 sps:$4 sm:$0xff]  }
 0x35c   : > { %7158 = vmatprep.subr.bf16.mxu0 %v9872_v4  ;;  %7717 = vmatprep.subr.bf16.mxu1 %v9875_v5  ;;  %v9963_v4 = vld [vmem:[%s12428_s6 + $0xd80] ss:$16 sps:$4 sm:$0xff]   ;;  %v9966_v5 = vld [vmem:[%s12428_s6 + $0xd88] ss:$16 sps:$4 sm:$0xff]  }
 0x35f   : > { %7159 = vmatpush1.bf16.msra.mxu0 %v9870_v6  ;;  %7718 = vmatpush1.bf16.msra.mxu1 %v9873_v7  ;;  %v9971_v6 = vld [vmem:[%s12428_s6 + $0xda4] ss:$16 sps:$4 sm:$0xff]   ;;  %v9974_v7 = vld [vmem:[%s12428_s6 + $0xdac] ss:$16 sps:$4 sm:$0xff]  }
 0x360   : > { %7160 = vmatprep.subr.bf16.mxu0 %v9878_v8  ;;  %7719 = vmatprep.subr.bf16.mxu1 %v9881_v9  ;;  %v9969_v8 = vld [vmem:[%s12428_s6 + $0xda0] ss:$16 sps:$4 sm:$0xff]   ;;  %v9972_v9 = vld [vmem:[%s12428_s6 + $0xda8] ss:$16 sps:$4 sm:$0xff]  }
 0x363   : > { %7161 = vmatpush1.bf16.msra.mxu0 %v9876_v10  ;;  %7720 = vmatpush1.bf16.msra.mxu1 %v9879_v11  ;;  %v9977_v10 = vld [vmem:[%s12428_s6 + $0xdc4] ss:$16 sps:$4 sm:$0xff]   ;;  %v9980_v11 = vld [vmem:[%s12428_s6 + $0xdcc] ss:$16 sps:$4 sm:$0xff]  }
 0x364   : > { %7162 = vmatprep.subr.bf16.mxu0 %v9884_v12  ;;  %7721 = vmatprep.subr.bf16.mxu1 %v9887_v13  ;;  %v9975_v12 = vld [vmem:[%s12428_s6 + $0xdc0] ss:$16 sps:$4 sm:$0xff]   ;;  %v9978_v13 = vld [vmem:[%s12428_s6 + $0xdc8] ss:$16 sps:$4 sm:$0xff]  }
 0x367   : > { %7163 = vmatpush1.bf16.msra.mxu0 %v9882_v14  ;;  %7722 = vmatpush1.bf16.msra.mxu1 %v9885_v15  ;;  %v9983_v14 = vld [vmem:[%s12428_s6 + $0xde4] ss:$16 sps:$4 sm:$0xff]   ;;  %v9986_v15 = vld [vmem:[%s12428_s6 + $0xdec] ss:$16 sps:$4 sm:$0xff]  }
 0x368   : > { %7175 = vmatprep.subr.bf16.mxu0 %v9893_v17  ;;  %7734 = vmatprep.subr.bf16.mxu1 %v9896_v18  ;;  %v9984_v17 = vld [vmem:[%s12428_s6 + $0xde8] ss:$16 sps:$4 sm:$0xff]  }
 0x369   : > { %v9987_v18 = vld [vmem:[%s12426_s4 + $0x30] ss:$100 sps:$4 sm:$0xff]  }
 0x36a   : > { %7165 = vmatmul.mubr.bf16.vlgmr.msra.gmra.mrb[0].mxu0 %v9888_v16  ;;  %7724 = vmatmul.mubr.bf16.vlgmr.msra.gmra.mrb[0].mxu1 %v9888_v16  ;;  %v9981_v16 = vld [vmem:[%s12428_s6 + $0xde0] ss:$16 sps:$4 sm:$0xff]  }
 0x36b   : > { %7176 = vmatpush1.bf16.msra.mxu0 %v9891_v19  ;;  %7735 = vmatpush1.bf16.msra.mxu1 %v9894_v20  ;;  %v9992_v19 = vld [vmem:[%s12428_s6 + $0xe04] ss:$16 sps:$4 sm:$0xff]   ;;  %v9995_v20 = vld [vmem:[%s12428_s6 + $0xe0c] ss:$16 sps:$4 sm:$0xff]  }
 0x36c   : > { %7177 = vmatprep.subr.bf16.mxu0 %v9899_v21  ;;  %7736 = vmatprep.subr.bf16.mxu1 %v9902_v22  ;;  %v9990_v21 = vld [vmem:[%s12428_s6 + $0xe00] ss:$16 sps:$4 sm:$0xff]   ;;  %v9993_v22 = vld [vmem:[%s12428_s6 + $0xe08] ss:$16 sps:$4 sm:$0xff]  }
 0x36d   : > { %7207 = vmatprep.mubr.bf16.mxu0 %v9989_v23  ;;  %7766 = vmatprep.mubr.bf16.mxu1 %v9989_v23  ;;  %v9998_v23 = vld [vmem:[%s12428_s6 + $0xe24] ss:$16 sps:$4 sm:$0xff]  }
 0x36f   : > { %7178 = vmatpush1.bf16.msra.mxu0 %v9897_v24  ;;  %7737 = vmatpush1.bf16.msra.mxu1 %v9900_v25  ;;  %v10001_v24 = vld [vmem:[%s12428_s6 + $0xe2c] ss:$16 sps:$4 sm:$0xff]  }
 0x370   : > { %7179 = vmatprep.subr.bf16.mxu0 %v9905_v26  ;;  %7738 = vmatprep.subr.bf16.mxu1 %v9908_v27  ;;  %v10088_v25 = vld [vmem:[%s12426_s4 + $0x3c] ss:$100 sps:$4 sm:$0xff]  }
 0x371   : > { %v9996_v26 = vld [vmem:[%s12428_s6 + $0xe20] ss:$16 sps:$4 sm:$0xff]   ;;  %v9999_v27 = vld [vmem:[%s12428_s6 + $0xe28] ss:$16 sps:$4 sm:$0xff]  }
 0x373   : > { %7180 = vmatpush1.bf16.msra.mxu0 %v9903_v28  ;;  %7739 = vmatpush1.bf16.msra.mxu1 %v9906_v29  ;;  %v10004_v28 = vld [vmem:[%s12428_s6 + $0xe44] ss:$16 sps:$4 sm:$0xff]   ;;  %v10007_v29 = vld [vmem:[%s12428_s6 + $0xe4c] ss:$16 sps:$4 sm:$0xff]  }
 0x374   : > { %7181 = vmatprep.subr.bf16.mxu0 %v9911_v30  ;;  %7740 = vmatprep.subr.bf16.mxu1 %v9914_v31  ;;  %v10002_v30 = vld [vmem:[%s12428_s6 + $0xe40] ss:$16 sps:$4 sm:$0xff]   ;;  %v10005_v31 = vld [vmem:[%s12428_s6 + $0xe48] ss:$16 sps:$4 sm:$0xff]  }
 0x377   : > { %7182 = vmatpush1.bf16.msra.mxu0 %v9909_v32  ;;  %7741 = vmatpush1.bf16.msra.mxu1 %v9912_v33  ;;  %v10010_v32 = vld [vmem:[%s12428_s6 + $0xe64] ss:$16 sps:$4 sm:$0xff]   ;;  %v10013_v33 = vld [vmem:[%s12428_s6 + $0xe6c] ss:$16 sps:$4 sm:$0xff]  }
 0x378   : > { %7183 = vmatprep.subr.bf16.mxu0 %v9917_v34  ;;  %7742 = vmatprep.subr.bf16.mxu1 %v9920_v35  ;;  %v10008_v34 = vld [vmem:[%s12428_s6 + $0xe60] ss:$16 sps:$4 sm:$0xff]   ;;  %v10011_v35 = vld [vmem:[%s12428_s6 + $0xe68] ss:$16 sps:$4 sm:$0xff]  }
 0x37b   : > { %7184 = vmatpush1.bf16.msra.mxu0 %v9915_v36  ;;  %7743 = vmatpush1.bf16.msra.mxu1 %v9918_v37  ;;  %v10016_v36 = vld [vmem:[%s12428_s6 + $0xe84] ss:$16 sps:$4 sm:$0xff]   ;;  %v10019_v37 = vld [vmem:[%s12428_s6 + $0xe8c] ss:$16 sps:$4 sm:$0xff]  }
 0x37c   : > { %7185 = vmatprep.subr.bf16.mxu0 %v9923_v38  ;;  %7744 = vmatprep.subr.bf16.mxu1 %v9926_v39  ;;  %v10014_v38 = vld [vmem:[%s12428_s6 + $0xe80] ss:$16 sps:$4 sm:$0xff]   ;;  %v10017_v39 = vld [vmem:[%s12428_s6 + $0xe88] ss:$16 sps:$4 sm:$0xff]  }
 0x37f   : > { %7186 = vmatpush1.bf16.msra.mxu0 %v9921_v40  ;;  %7745 = vmatpush1.bf16.msra.mxu1 %v9924_v41  ;;  %v10022_v40 = vld [vmem:[%s12428_s6 + $0xea4] ss:$16 sps:$4 sm:$0xff]   ;;  %v10025_v41 = vld [vmem:[%s12428_s6 + $0xeac] ss:$16 sps:$4 sm:$0xff]  }
 0x380   : > { %7187 = vmatprep.subr.bf16.mxu0 %v9929_v42  ;;  %7746 = vmatprep.subr.bf16.mxu1 %v9932_v43  ;;  %v10020_v42 = vld [vmem:[%s12428_s6 + $0xea0] ss:$16 sps:$4 sm:$0xff]   ;;  %v10023_v43 = vld [vmem:[%s12428_s6 + $0xea8] ss:$16 sps:$4 sm:$0xff]  }
 0x383   : > { %7188 = vmatpush1.bf16.msra.mxu0 %v9927_v44  ;;  %7747 = vmatpush1.bf16.msra.mxu1 %v9930_v45  ;;  %v10028_v44 = vld [vmem:[%s12428_s6 + $0xec4] ss:$16 sps:$4 sm:$0xff]   ;;  %v10031_v45 = vld [vmem:[%s12428_s6 + $0xecc] ss:$16 sps:$4 sm:$0xff]  }
 0x384   : > { %7189 = vmatprep.subr.bf16.mxu0 %v9935_v46  ;;  %7748 = vmatprep.subr.bf16.mxu1 %v9938_v47  ;;  %v10026_v46 = vld [vmem:[%s12428_s6 + $0xec0] ss:$16 sps:$4 sm:$0xff]   ;;  %v10029_v47 = vld [vmem:[%s12428_s6 + $0xec8] ss:$16 sps:$4 sm:$0xff]  }
 0x387   : > { %7190 = vmatpush1.bf16.msra.mxu0 %v9933_v48  ;;  %7749 = vmatpush1.bf16.msra.mxu1 %v9936_v49  ;;  %v10034_v48 = vld [vmem:[%s12428_s6 + $0xee4] ss:$16 sps:$4 sm:$0xff]   ;;  %v10037_v49 = vld [vmem:[%s12428_s6 + $0xeec] ss:$16 sps:$4 sm:$0xff]  }
 0x388   : > { %7191 = vmatprep.subr.bf16.mxu0 %v9941_v50  ;;  %7750 = vmatprep.subr.bf16.mxu1 %v9944_v51  ;;  %v10032_v50 = vld [vmem:[%s12428_s6 + $0xee0] ss:$16 sps:$4 sm:$0xff]   ;;  %v10035_v51 = vld [vmem:[%s12428_s6 + $0xee8] ss:$16 sps:$4 sm:$0xff]  }
 0x38b   : > { %7192 = vmatpush1.bf16.msra.mxu0 %v9939_v52  ;;  %7751 = vmatpush1.bf16.msra.mxu1 %v9942_v53  ;;  %v10040_v52 = vld [vmem:[%s12428_s6 + $0xf04] ss:$16 sps:$4 sm:$0xff]   ;;  %v10043_v53 = vld [vmem:[%s12428_s6 + $0xf0c] ss:$16 sps:$4 sm:$0xff]  }
 0x38c   : > { %7193 = vmatprep.subr.bf16.mxu0 %v9947_v54  ;;  %7752 = vmatprep.subr.bf16.mxu1 %v9950_v55  ;;  %v10038_v54 = vld [vmem:[%s12428_s6 + $0xf00] ss:$16 sps:$4 sm:$0xff]   ;;  %v10041_v55 = vld [vmem:[%s12428_s6 + $0xf08] ss:$16 sps:$4 sm:$0xff]  }
 0x38f   : > { %7194 = vmatpush1.bf16.msra.mxu0 %v9945_v56  ;;  %7753 = vmatpush1.bf16.msra.mxu1 %v9948_v57  ;;  %v10046_v56 = vld [vmem:[%s12428_s6 + $0xf24] ss:$16 sps:$4 sm:$0xff]   ;;  %v10049_v57 = vld [vmem:[%s12428_s6 + $0xf2c] ss:$16 sps:$4 sm:$0xff]  }
 0x390   : > { %7195 = vmatprep.subr.bf16.mxu0 %v9953_v58  ;;  %7754 = vmatprep.subr.bf16.mxu1 %v9956_v59  ;;  %v10044_v58 = vld [vmem:[%s12428_s6 + $0xf20] ss:$16 sps:$4 sm:$0xff]   ;;  %v10047_v59 = vld [vmem:[%s12428_s6 + $0xf28] ss:$16 sps:$4 sm:$0xff]  }
 0x393   : > { %7196 = vmatpush1.bf16.msra.mxu0 %v9951_v60  ;;  %7755 = vmatpush1.bf16.msra.mxu1 %v9954_v61  ;;  %v10052_v60 = vld [vmem:[%s12428_s6 + $0xf44] ss:$16 sps:$4 sm:$0xff]   ;;  %v10055_v61 = vld [vmem:[%s12428_s6 + $0xf4c] ss:$16 sps:$4 sm:$0xff]  }
 0x394   : > { %7197 = vmatprep.subr.bf16.mxu0 %v9959_v62  ;;  %7756 = vmatprep.subr.bf16.mxu1 %v9962_v63  ;;  %v10050_v62 = vld [vmem:[%s12428_s6 + $0xf40] ss:$16 sps:$4 sm:$0xff]   ;;  %v10053_v63 = vld [vmem:[%s12428_s6 + $0xf48] ss:$16 sps:$4 sm:$0xff]  }
 0x397   : > { %7198 = vmatpush1.bf16.msra.mxu0 %v9957_v0  ;;  %7757 = vmatpush1.bf16.msra.mxu1 %v9960_v1  ;;  %v10058_v0 = vld [vmem:[%s12428_s6 + $0xf64] ss:$16 sps:$4 sm:$0xff]   ;;  %v10061_v1 = vld [vmem:[%s12428_s6 + $0xf6c] ss:$16 sps:$4 sm:$0xff]  }
 0x398   : > { %7199 = vmatprep.subr.bf16.mxu0 %v9965_v2  ;;  %7758 = vmatprep.subr.bf16.mxu1 %v9968_v3  ;;  %v10056_v2 = vld [vmem:[%s12428_s6 + $0xf60] ss:$16 sps:$4 sm:$0xff]   ;;  %v10059_v3 = vld [vmem:[%s12428_s6 + $0xf68] ss:$16 sps:$4 sm:$0xff]  }
 0x39b   : > { %7200 = vmatpush1.bf16.msra.mxu0 %v9963_v4  ;;  %7759 = vmatpush1.bf16.msra.mxu1 %v9966_v5  ;;  %v10064_v4 = vld [vmem:[%s12428_s6 + $0xf84] ss:$16 sps:$4 sm:$0xff]   ;;  %v10067_v5 = vld [vmem:[%s12428_s6 + $0xf8c] ss:$16 sps:$4 sm:$0xff]  }
 0x39c   : > { %7201 = vmatprep.subr.bf16.mxu0 %v9971_v6  ;;  %7760 = vmatprep.subr.bf16.mxu1 %v9974_v7  ;;  %v10062_v6 = vld [vmem:[%s12428_s6 + $0xf80] ss:$16 sps:$4 sm:$0xff]   ;;  %v10065_v7 = vld [vmem:[%s12428_s6 + $0xf88] ss:$16 sps:$4 sm:$0xff]  }
 0x39f   : > { %7202 = vmatpush1.bf16.msra.mxu0 %v9969_v8  ;;  %7761 = vmatpush1.bf16.msra.mxu1 %v9972_v9  ;;  %v10070_v8 = vld [vmem:[%s12428_s6 + $0xfa4] ss:$16 sps:$4 sm:$0xff]   ;;  %v10073_v9 = vld [vmem:[%s12428_s6 + $0xfac] ss:$16 sps:$4 sm:$0xff]  }
 0x3a0   : > { %7203 = vmatprep.subr.bf16.mxu0 %v9977_v10  ;;  %7762 = vmatprep.subr.bf16.mxu1 %v9980_v11  ;;  %v10068_v10 = vld [vmem:[%s12428_s6 + $0xfa0] ss:$16 sps:$4 sm:$0xff]   ;;  %v10071_v11 = vld [vmem:[%s12428_s6 + $0xfa8] ss:$16 sps:$4 sm:$0xff]  }
 0x3a3   : > { %7204 = vmatpush1.bf16.msra.mxu0 %v9975_v12  ;;  %7763 = vmatpush1.bf16.msra.mxu1 %v9978_v13  ;;  %v10076_v12 = vld [vmem:[%s12428_s6 + $0xfc4] ss:$16 sps:$4 sm:$0xff]   ;;  %v10079_v13 = vld [vmem:[%s12428_s6 + $0xfcc] ss:$16 sps:$4 sm:$0xff]  }
 0x3a4   : > { %7205 = vmatprep.subr.bf16.mxu0 %v9983_v14  ;;  %7764 = vmatprep.subr.bf16.mxu1 %v9986_v15  ;;  %v10074_v14 = vld [vmem:[%s12428_s6 + $0xfc0] ss:$16 sps:$4 sm:$0xff]   ;;  %v10077_v15 = vld [vmem:[%s12428_s6 + $0xfc8] ss:$16 sps:$4 sm:$0xff]  }
 0x3a7   : > { %7206 = vmatpush1.bf16.msra.mxu0 %v9981_v16  ;;  %7765 = vmatpush1.bf16.msra.mxu1 %v9984_v17  ;;  %v10082_v16 = vld [vmem:[%s12428_s6 + $0xfe4] ss:$16 sps:$4 sm:$0xff]   ;;  %v10085_v17 = vld [vmem:[%s12428_s6 + $0xfec] ss:$16 sps:$4 sm:$0xff]  }
 0x3a8   : > { %7218 = vmatprep.subr.bf16.mxu0 %v9992_v19  ;;  %7777 = vmatprep.subr.bf16.mxu1 %v9995_v20  ;;  %v10083_v19 = vld [vmem:[%s12428_s6 + $0xfe8] ss:$16 sps:$4 sm:$0xff]   ;;  %v10091_v20 = vld [vmem:[%s12428_s6 + $0x1004] ss:$16 sps:$4 sm:$0xff]  }
 0x3aa   : > { %7208 = vmatmul.mubr.bf16.vlgmr.msra.gmra.mrb[0].mxu0 %v9987_v18  ;;  %7767 = vmatmul.mubr.bf16.vlgmr.msra.gmra.mrb[0].mxu1 %v9987_v18  ;;  %v10080_v18 = vld [vmem:[%s12428_s6 + $0xfe0] ss:$16 sps:$4 sm:$0xff]  }
 0x3ab   : > { %7219 = vmatpush1.bf16.msra.mxu0 %v9990_v21  ;;  %7778 = vmatpush1.bf16.msra.mxu1 %v9993_v22  ;;  %v10094_v21 = vld [vmem:[%s12428_s6 + $0x100c] ss:$16 sps:$4 sm:$0xff]  }
 0x3ac   : > { %7220 = vmatprep.subr.bf16.mxu0 %v9998_v23  ;;  %7779 = vmatprep.subr.bf16.mxu1 %v10001_v24  ;;  %v10086_v22 = vld [vmem:[%s12426_s4 + $0x38] ss:$100 sps:$4 sm:$0xff]  }
 0x3ad   : > { %7250 = vmatprep.mubr.bf16.mxu0 %v10088_v25  ;;  %7809 = vmatprep.mubr.bf16.mxu1 %v10088_v25  ;;  %v10089_v23 = vld [vmem:[%s12428_s6 + $0x1000] ss:$16 sps:$4 sm:$0xff]   ;;  %v10092_v24 = vld [vmem:[%s12428_s6 + $0x1008] ss:$16 sps:$4 sm:$0xff]   ;;  %v10097_v25 = vld [vmem:[%s12428_s6 + $0x1024] ss:$16 sps:$4 sm:$0xff]  }
 0x3af   : > { %7221 = vmatpush1.bf16.msra.mxu0 %v9996_v26  ;;  %7780 = vmatpush1.bf16.msra.mxu1 %v9999_v27  ;;  %v10100_v26 = vld [vmem:[%s12428_s6 + $0x102c] ss:$16 sps:$4 sm:$0xff]  }
 0x3b0   : > { %7222 = vmatprep.subr.bf16.mxu0 %v10004_v28  ;;  %7781 = vmatprep.subr.bf16.mxu1 %v10007_v29  ;;  %v10187_v27 = vld [vmem:[%s12426_s4 + $0x44] ss:$100 sps:$4 sm:$0xff]  }
 0x3b1   : > { %v10095_v28 = vld [vmem:[%s12428_s6 + $0x1020] ss:$16 sps:$4 sm:$0xff]   ;;  %v10098_v29 = vld [vmem:[%s12428_s6 + $0x1028] ss:$16 sps:$4 sm:$0xff]  }
 0x3b3   : > { %7223 = vmatpush1.bf16.msra.mxu0 %v10002_v30  ;;  %7782 = vmatpush1.bf16.msra.mxu1 %v10005_v31  ;;  %v10103_v30 = vld [vmem:[%s12428_s6 + $0x1044] ss:$16 sps:$4 sm:$0xff]   ;;  %v10106_v31 = vld [vmem:[%s12428_s6 + $0x104c] ss:$16 sps:$4 sm:$0xff]  }
 0x3b4   : > { %7224 = vmatprep.subr.bf16.mxu0 %v10010_v32  ;;  %7783 = vmatprep.subr.bf16.mxu1 %v10013_v33  ;;  %v10101_v32 = vld [vmem:[%s12428_s6 + $0x1040] ss:$16 sps:$4 sm:$0xff]   ;;  %v10104_v33 = vld [vmem:[%s12428_s6 + $0x1048] ss:$16 sps:$4 sm:$0xff]  }
 0x3b7   : > { %7225 = vmatpush1.bf16.msra.mxu0 %v10008_v34  ;;  %7784 = vmatpush1.bf16.msra.mxu1 %v10011_v35  ;;  %v10109_v34 = vld [vmem:[%s12428_s6 + $0x1064] ss:$16 sps:$4 sm:$0xff]   ;;  %v10112_v35 = vld [vmem:[%s12428_s6 + $0x106c] ss:$16 sps:$4 sm:$0xff]  }
 0x3b8   : > { %7226 = vmatprep.subr.bf16.mxu0 %v10016_v36  ;;  %7785 = vmatprep.subr.bf16.mxu1 %v10019_v37  ;;  %v10107_v36 = vld [vmem:[%s12428_s6 + $0x1060] ss:$16 sps:$4 sm:$0xff]   ;;  %v10110_v37 = vld [vmem:[%s12428_s6 + $0x1068] ss:$16 sps:$4 sm:$0xff]  }
 0x3bb   : > { %7227 = vmatpush1.bf16.msra.mxu0 %v10014_v38  ;;  %7786 = vmatpush1.bf16.msra.mxu1 %v10017_v39  ;;  %v10115_v38 = vld [vmem:[%s12428_s6 + $0x1084] ss:$16 sps:$4 sm:$0xff]   ;;  %v10118_v39 = vld [vmem:[%s12428_s6 + $0x108c] ss:$16 sps:$4 sm:$0xff]  }
 0x3bc   : > { %7228 = vmatprep.subr.bf16.mxu0 %v10022_v40  ;;  %7787 = vmatprep.subr.bf16.mxu1 %v10025_v41  ;;  %v10113_v40 = vld [vmem:[%s12428_s6 + $0x1080] ss:$16 sps:$4 sm:$0xff]   ;;  %v10116_v41 = vld [vmem:[%s12428_s6 + $0x1088] ss:$16 sps:$4 sm:$0xff]  }
 0x3bf   : > { %7229 = vmatpush1.bf16.msra.mxu0 %v10020_v42  ;;  %7788 = vmatpush1.bf16.msra.mxu1 %v10023_v43  ;;  %v10121_v42 = vld [vmem:[%s12428_s6 + $0x10a4] ss:$16 sps:$4 sm:$0xff]   ;;  %v10124_v43 = vld [vmem:[%s12428_s6 + $0x10ac] ss:$16 sps:$4 sm:$0xff]  }
 0x3c0   : > { %7230 = vmatprep.subr.bf16.mxu0 %v10028_v44  ;;  %7789 = vmatprep.subr.bf16.mxu1 %v10031_v45  ;;  %v10119_v44 = vld [vmem:[%s12428_s6 + $0x10a0] ss:$16 sps:$4 sm:$0xff]   ;;  %v10122_v45 = vld [vmem:[%s12428_s6 + $0x10a8] ss:$16 sps:$4 sm:$0xff]  }
 0x3c3   : > { %7231 = vmatpush1.bf16.msra.mxu0 %v10026_v46  ;;  %7790 = vmatpush1.bf16.msra.mxu1 %v10029_v47  ;;  %v10127_v46 = vld [vmem:[%s12428_s6 + $0x10c4] ss:$16 sps:$4 sm:$0xff]   ;;  %v10130_v47 = vld [vmem:[%s12428_s6 + $0x10cc] ss:$16 sps:$4 sm:$0xff]  }
 0x3c4   : > { %7232 = vmatprep.subr.bf16.mxu0 %v10034_v48  ;;  %7791 = vmatprep.subr.bf16.mxu1 %v10037_v49  ;;  %v10125_v48 = vld [vmem:[%s12428_s6 + $0x10c0] ss:$16 sps:$4 sm:$0xff]   ;;  %v10128_v49 = vld [vmem:[%s12428_s6 + $0x10c8] ss:$16 sps:$4 sm:$0xff]  }
 0x3c7   : > { %7233 = vmatpush1.bf16.msra.mxu0 %v10032_v50  ;;  %7792 = vmatpush1.bf16.msra.mxu1 %v10035_v51  ;;  %v10133_v50 = vld [vmem:[%s12428_s6 + $0x10e4] ss:$16 sps:$4 sm:$0xff]   ;;  %v10136_v51 = vld [vmem:[%s12428_s6 + $0x10ec] ss:$16 sps:$4 sm:$0xff]  }
 0x3c8   : > { %7234 = vmatprep.subr.bf16.mxu0 %v10040_v52  ;;  %7793 = vmatprep.subr.bf16.mxu1 %v10043_v53  ;;  %v10131_v52 = vld [vmem:[%s12428_s6 + $0x10e0] ss:$16 sps:$4 sm:$0xff]   ;;  %v10134_v53 = vld [vmem:[%s12428_s6 + $0x10e8] ss:$16 sps:$4 sm:$0xff]  }
 0x3cb   : > { %7235 = vmatpush1.bf16.msra.mxu0 %v10038_v54  ;;  %7794 = vmatpush1.bf16.msra.mxu1 %v10041_v55  ;;  %v10139_v54 = vld [vmem:[%s12428_s6 + $0x1104] ss:$16 sps:$4 sm:$0xff]   ;;  %v10142_v55 = vld [vmem:[%s12428_s6 + $0x110c] ss:$16 sps:$4 sm:$0xff]  }
 0x3cc   : > { %7236 = vmatprep.subr.bf16.mxu0 %v10046_v56  ;;  %7795 = vmatprep.subr.bf16.mxu1 %v10049_v57  ;;  %v10137_v56 = vld [vmem:[%s12428_s6 + $0x1100] ss:$16 sps:$4 sm:$0xff]   ;;  %v10140_v57 = vld [vmem:[%s12428_s6 + $0x1108] ss:$16 sps:$4 sm:$0xff]  }
 0x3cf   : > { %7237 = vmatpush1.bf16.msra.mxu0 %v10044_v58  ;;  %7796 = vmatpush1.bf16.msra.mxu1 %v10047_v59  ;;  %v10145_v58 = vld [vmem:[%s12428_s6 + $0x1124] ss:$16 sps:$4 sm:$0xff]   ;;  %v10148_v59 = vld [vmem:[%s12428_s6 + $0x112c] ss:$16 sps:$4 sm:$0xff]  }
 0x3d0   : > { %7238 = vmatprep.subr.bf16.mxu0 %v10052_v60  ;;  %7797 = vmatprep.subr.bf16.mxu1 %v10055_v61  ;;  %v10143_v60 = vld [vmem:[%s12428_s6 + $0x1120] ss:$16 sps:$4 sm:$0xff]   ;;  %v10146_v61 = vld [vmem:[%s12428_s6 + $0x1128] ss:$16 sps:$4 sm:$0xff]  }
 0x3d3   : > { %7239 = vmatpush1.bf16.msra.mxu0 %v10050_v62  ;;  %7798 = vmatpush1.bf16.msra.mxu1 %v10053_v63  ;;  %v10151_v62 = vld [vmem:[%s12428_s6 + $0x1144] ss:$16 sps:$4 sm:$0xff]   ;;  %v10154_v63 = vld [vmem:[%s12428_s6 + $0x114c] ss:$16 sps:$4 sm:$0xff]  }
 0x3d4   : > { %7240 = vmatprep.subr.bf16.mxu0 %v10058_v0  ;;  %7799 = vmatprep.subr.bf16.mxu1 %v10061_v1  ;;  %v10149_v0 = vld [vmem:[%s12428_s6 + $0x1140] ss:$16 sps:$4 sm:$0xff]   ;;  %v10152_v1 = vld [vmem:[%s12428_s6 + $0x1148] ss:$16 sps:$4 sm:$0xff]  }
 0x3d7   : > { %7241 = vmatpush1.bf16.msra.mxu0 %v10056_v2  ;;  %7800 = vmatpush1.bf16.msra.mxu1 %v10059_v3  ;;  %v10157_v2 = vld [vmem:[%s12428_s6 + $0x1164] ss:$16 sps:$4 sm:$0xff]   ;;  %v10160_v3 = vld [vmem:[%s12428_s6 + $0x116c] ss:$16 sps:$4 sm:$0xff]  }
 0x3d8   : > { %7242 = vmatprep.subr.bf16.mxu0 %v10064_v4  ;;  %7801 = vmatprep.subr.bf16.mxu1 %v10067_v5  ;;  %v10155_v4 = vld [vmem:[%s12428_s6 + $0x1160] ss:$16 sps:$4 sm:$0xff]   ;;  %v10158_v5 = vld [vmem:[%s12428_s6 + $0x1168] ss:$16 sps:$4 sm:$0xff]  }
 0x3db   : > { %7243 = vmatpush1.bf16.msra.mxu0 %v10062_v6  ;;  %7802 = vmatpush1.bf16.msra.mxu1 %v10065_v7  ;;  %v10163_v6 = vld [vmem:[%s12428_s6 + $0x1184] ss:$16 sps:$4 sm:$0xff]   ;;  %v10166_v7 = vld [vmem:[%s12428_s6 + $0x118c] ss:$16 sps:$4 sm:$0xff]  }
 0x3dc   : > { %7244 = vmatprep.subr.bf16.mxu0 %v10070_v8  ;;  %7803 = vmatprep.subr.bf16.mxu1 %v10073_v9  ;;  %v10161_v8 = vld [vmem:[%s12428_s6 + $0x1180] ss:$16 sps:$4 sm:$0xff]   ;;  %v10164_v9 = vld [vmem:[%s12428_s6 + $0x1188] ss:$16 sps:$4 sm:$0xff]  }
 0x3df   : > { %7245 = vmatpush1.bf16.msra.mxu0 %v10068_v10  ;;  %7804 = vmatpush1.bf16.msra.mxu1 %v10071_v11  ;;  %v10169_v10 = vld [vmem:[%s12428_s6 + $0x11a4] ss:$16 sps:$4 sm:$0xff]   ;;  %v10172_v11 = vld [vmem:[%s12428_s6 + $0x11ac] ss:$16 sps:$4 sm:$0xff]  }
 0x3e0   : > { %7246 = vmatprep.subr.bf16.mxu0 %v10076_v12  ;;  %7805 = vmatprep.subr.bf16.mxu1 %v10079_v13  ;;  %v10167_v12 = vld [vmem:[%s12428_s6 + $0x11a0] ss:$16 sps:$4 sm:$0xff]   ;;  %v10170_v13 = vld [vmem:[%s12428_s6 + $0x11a8] ss:$16 sps:$4 sm:$0xff]  }
 0x3e3   : > { %7247 = vmatpush1.bf16.msra.mxu0 %v10074_v14  ;;  %7806 = vmatpush1.bf16.msra.mxu1 %v10077_v15  ;;  %v10175_v14 = vld [vmem:[%s12428_s6 + $0x11c4] ss:$16 sps:$4 sm:$0xff]   ;;  %v10178_v15 = vld [vmem:[%s12428_s6 + $0x11cc] ss:$16 sps:$4 sm:$0xff]  }
 0x3e4   : > { %7248 = vmatprep.subr.bf16.mxu0 %v10082_v16  ;;  %7807 = vmatprep.subr.bf16.mxu1 %v10085_v17  ;;  %v10173_v16 = vld [vmem:[%s12428_s6 + $0x11c0] ss:$16 sps:$4 sm:$0xff]   ;;  %v10176_v17 = vld [vmem:[%s12428_s6 + $0x11c8] ss:$16 sps:$4 sm:$0xff]  }
 0x3e7   : > { %7249 = vmatpush1.bf16.msra.mxu0 %v10080_v18  ;;  %7808 = vmatpush1.bf16.msra.mxu1 %v10083_v19  ;;  %v10181_v18 = vld [vmem:[%s12428_s6 + $0x11e4] ss:$16 sps:$4 sm:$0xff]   ;;  %v10184_v19 = vld [vmem:[%s12428_s6 + $0x11ec] ss:$16 sps:$4 sm:$0xff]  }
 0x3e8   : > { %7261 = vmatprep.subr.bf16.mxu0 %v10091_v20  ;;  %7820 = vmatprep.subr.bf16.mxu1 %v10094_v21  ;;  %v10179_v20 = vld [vmem:[%s12428_s6 + $0x11e0] ss:$16 sps:$4 sm:$0xff]   ;;  %v10182_v21 = vld [vmem:[%s12428_s6 + $0x11e8] ss:$16 sps:$4 sm:$0xff]  }
 0x3ea   : > { %7251 = vmatmul.mubr.bf16.vlgmr.msra.gmra.mrb[0].mxu0 %v10086_v22  ;;  %7810 = vmatmul.mubr.bf16.vlgmr.msra.gmra.mrb[0].mxu1 %v10086_v22  ;;  %v10190_v22 = vld [vmem:[%s12428_s6 + $0x1204] ss:$16 sps:$4 sm:$0xff]  }
 0x3eb   : > { %7262 = vmatpush1.bf16.msra.mxu0 %v10089_v23  ;;  %7821 = vmatpush1.bf16.msra.mxu1 %v10092_v24  ;;  %v10193_v23 = vld [vmem:[%s12428_s6 + $0x120c] ss:$16 sps:$4 sm:$0xff]  }
 0x3ec   : > { %7263 = vmatprep.subr.bf16.mxu0 %v10097_v25  ;;  %7822 = vmatprep.subr.bf16.mxu1 %v10100_v26  ;;  %v10185_v24 = vld [vmem:[%s12426_s4 + $0x40] ss:$100 sps:$4 sm:$0xff]  }
 0x3ed   : > { %7293 = vmatprep.mubr.bf16.mxu0 %v10187_v27  ;;  %7852 = vmatprep.mubr.bf16.mxu1 %v10187_v27  ;;  %v10188_v25 = vld [vmem:[%s12428_s6 + $0x1200] ss:$16 sps:$4 sm:$0xff]   ;;  %v10191_v26 = vld [vmem:[%s12428_s6 + $0x1208] ss:$16 sps:$4 sm:$0xff]   ;;  %v10196_v27 = vld [vmem:[%s12428_s6 + $0x1224] ss:$16 sps:$4 sm:$0xff]  }
 0x3ef   : > { %7264 = vmatpush1.bf16.msra.mxu0 %v10095_v28  ;;  %7823 = vmatpush1.bf16.msra.mxu1 %v10098_v29  ;;  %v10199_v28 = vld [vmem:[%s12428_s6 + $0x122c] ss:$16 sps:$4 sm:$0xff]  }
 0x3f0   : > { %7265 = vmatprep.subr.bf16.mxu0 %v10103_v30  ;;  %7824 = vmatprep.subr.bf16.mxu1 %v10106_v31  ;;  %v10286_v29 = vld [vmem:[%s12426_s4 + $0x4c] ss:$100 sps:$4 sm:$0xff]  }
 0x3f1   : > { %v10194_v30 = vld [vmem:[%s12428_s6 + $0x1220] ss:$16 sps:$4 sm:$0xff]   ;;  %v10197_v31 = vld [vmem:[%s12428_s6 + $0x1228] ss:$16 sps:$4 sm:$0xff]  }
 0x3f3   : > { %7266 = vmatpush1.bf16.msra.mxu0 %v10101_v32  ;;  %7825 = vmatpush1.bf16.msra.mxu1 %v10104_v33  ;;  %v10202_v32 = vld [vmem:[%s12428_s6 + $0x1244] ss:$16 sps:$4 sm:$0xff]   ;;  %v10205_v33 = vld [vmem:[%s12428_s6 + $0x124c] ss:$16 sps:$4 sm:$0xff]  }
 0x3f4   : > { %7267 = vmatprep.subr.bf16.mxu0 %v10109_v34  ;;  %7826 = vmatprep.subr.bf16.mxu1 %v10112_v35  ;;  %v10200_v34 = vld [vmem:[%s12428_s6 + $0x1240] ss:$16 sps:$4 sm:$0xff]   ;;  %v10203_v35 = vld [vmem:[%s12428_s6 + $0x1248] ss:$16 sps:$4 sm:$0xff]  }
 0x3f7   : > { %7268 = vmatpush1.bf16.msra.mxu0 %v10107_v36  ;;  %7827 = vmatpush1.bf16.msra.mxu1 %v10110_v37  ;;  %v10208_v36 = vld [vmem:[%s12428_s6 + $0x1264] ss:$16 sps:$4 sm:$0xff]   ;;  %v10211_v37 = vld [vmem:[%s12428_s6 + $0x126c] ss:$16 sps:$4 sm:$0xff]  }
 0x3f8   : > { %7269 = vmatprep.subr.bf16.mxu0 %v10115_v38  ;;  %7828 = vmatprep.subr.bf16.mxu1 %v10118_v39  ;;  %v10206_v38 = vld [vmem:[%s12428_s6 + $0x1260] ss:$16 sps:$4 sm:$0xff]   ;;  %v10209_v39 = vld [vmem:[%s12428_s6 + $0x1268] ss:$16 sps:$4 sm:$0xff]  }
 0x3fb   : > { %7270 = vmatpush1.bf16.msra.mxu0 %v10113_v40  ;;  %7829 = vmatpush1.bf16.msra.mxu1 %v10116_v41  ;;  %v10214_v40 = vld [vmem:[%s12428_s6 + $0x1284] ss:$16 sps:$4 sm:$0xff]   ;;  %v10217_v41 = vld [vmem:[%s12428_s6 + $0x128c] ss:$16 sps:$4 sm:$0xff]  }
 0x3fc   : > { %7271 = vmatprep.subr.bf16.mxu0 %v10121_v42  ;;  %7830 = vmatprep.subr.bf16.mxu1 %v10124_v43  ;;  %v10212_v42 = vld [vmem:[%s12428_s6 + $0x1280] ss:$16 sps:$4 sm:$0xff]   ;;  %v10215_v43 = vld [vmem:[%s12428_s6 + $0x1288] ss:$16 sps:$4 sm:$0xff]  }
 0x3ff   : > { %7272 = vmatpush1.bf16.msra.mxu0 %v10119_v44  ;;  %7831 = vmatpush1.bf16.msra.mxu1 %v10122_v45  ;;  %v10220_v44 = vld [vmem:[%s12428_s6 + $0x12a4] ss:$16 sps:$4 sm:$0xff]   ;;  %v10223_v45 = vld [vmem:[%s12428_s6 + $0x12ac] ss:$16 sps:$4 sm:$0xff]  }
 0x400   : > { %7273 = vmatprep.subr.bf16.mxu0 %v10127_v46  ;;  %7832 = vmatprep.subr.bf16.mxu1 %v10130_v47  ;;  %v10218_v46 = vld [vmem:[%s12428_s6 + $0x12a0] ss:$16 sps:$4 sm:$0xff]   ;;  %v10221_v47 = vld [vmem:[%s12428_s6 + $0x12a8] ss:$16 sps:$4 sm:$0xff]  }
 0x403   : > { %7274 = vmatpush1.bf16.msra.mxu0 %v10125_v48  ;;  %7833 = vmatpush1.bf16.msra.mxu1 %v10128_v49  ;;  %v10226_v48 = vld [vmem:[%s12428_s6 + $0x12c4] ss:$16 sps:$4 sm:$0xff]   ;;  %v10229_v49 = vld [vmem:[%s12428_s6 + $0x12cc] ss:$16 sps:$4 sm:$0xff]  }
 0x404   : > { %7275 = vmatprep.subr.bf16.mxu0 %v10133_v50  ;;  %7834 = vmatprep.subr.bf16.mxu1 %v10136_v51  ;;  %v10224_v50 = vld [vmem:[%s12428_s6 + $0x12c0] ss:$16 sps:$4 sm:$0xff]   ;;  %v10227_v51 = vld [vmem:[%s12428_s6 + $0x12c8] ss:$16 sps:$4 sm:$0xff]  }
 0x407   : > { %7276 = vmatpush1.bf16.msra.mxu0 %v10131_v52  ;;  %7835 = vmatpush1.bf16.msra.mxu1 %v10134_v53  ;;  %v10232_v52 = vld [vmem:[%s12428_s6 + $0x12e4] ss:$16 sps:$4 sm:$0xff]   ;;  %v10235_v53 = vld [vmem:[%s12428_s6 + $0x12ec] ss:$16 sps:$4 sm:$0xff]  }
 0x408   : > { %7277 = vmatprep.subr.bf16.mxu0 %v10139_v54  ;;  %7836 = vmatprep.subr.bf16.mxu1 %v10142_v55  ;;  %v10230_v54 = vld [vmem:[%s12428_s6 + $0x12e0] ss:$16 sps:$4 sm:$0xff]   ;;  %v10233_v55 = vld [vmem:[%s12428_s6 + $0x12e8] ss:$16 sps:$4 sm:$0xff]  }
 0x40b   : > { %7278 = vmatpush1.bf16.msra.mxu0 %v10137_v56  ;;  %7837 = vmatpush1.bf16.msra.mxu1 %v10140_v57  ;;  %v10238_v56 = vld [vmem:[%s12428_s6 + $0x1304] ss:$16 sps:$4 sm:$0xff]   ;;  %v10241_v57 = vld [vmem:[%s12428_s6 + $0x130c] ss:$16 sps:$4 sm:$0xff]  }
 0x40c   : > { %7279 = vmatprep.subr.bf16.mxu0 %v10145_v58  ;;  %7838 = vmatprep.subr.bf16.mxu1 %v10148_v59  ;;  %v10236_v58 = vld [vmem:[%s12428_s6 + $0x1300] ss:$16 sps:$4 sm:$0xff]   ;;  %v10239_v59 = vld [vmem:[%s12428_s6 + $0x1308] ss:$16 sps:$4 sm:$0xff]  }
 0x40f   : > { %7280 = vmatpush1.bf16.msra.mxu0 %v10143_v60  ;;  %7839 = vmatpush1.bf16.msra.mxu1 %v10146_v61  ;;  %v10244_v60 = vld [vmem:[%s12428_s6 + $0x1324] ss:$16 sps:$4 sm:$0xff]   ;;  %v10247_v61 = vld [vmem:[%s12428_s6 + $0x132c] ss:$16 sps:$4 sm:$0xff]  }
 0x410   : > { %7281 = vmatprep.subr.bf16.mxu0 %v10151_v62  ;;  %7840 = vmatprep.subr.bf16.mxu1 %v10154_v63  ;;  %v10242_v62 = vld [vmem:[%s12428_s6 + $0x1320] ss:$16 sps:$4 sm:$0xff]   ;;  %v10245_v63 = vld [vmem:[%s12428_s6 + $0x1328] ss:$16 sps:$4 sm:$0xff]  }
 0x413   : > { %7282 = vmatpush1.bf16.msra.mxu0 %v10149_v0  ;;  %7841 = vmatpush1.bf16.msra.mxu1 %v10152_v1  ;;  %v10250_v0 = vld [vmem:[%s12428_s6 + $0x1344] ss:$16 sps:$4 sm:$0xff]   ;;  %v10253_v1 = vld [vmem:[%s12428_s6 + $0x134c] ss:$16 sps:$4 sm:$0xff]  }
 0x414   : > { %7283 = vmatprep.subr.bf16.mxu0 %v10157_v2  ;;  %7842 = vmatprep.subr.bf16.mxu1 %v10160_v3  ;;  %v10248_v2 = vld [vmem:[%s12428_s6 + $0x1340] ss:$16 sps:$4 sm:$0xff]   ;;  %v10251_v3 = vld [vmem:[%s12428_s6 + $0x1348] ss:$16 sps:$4 sm:$0xff]  }
 0x417   : > { %7284 = vmatpush1.bf16.msra.mxu0 %v10155_v4  ;;  %7843 = vmatpush1.bf16.msra.mxu1 %v10158_v5  ;;  %v10256_v4 = vld [vmem:[%s12428_s6 + $0x1364] ss:$16 sps:$4 sm:$0xff]   ;;  %v10259_v5 = vld [vmem:[%s12428_s6 + $0x136c] ss:$16 sps:$4 sm:$0xff]  }
 0x418   : > { %7285 = vmatprep.subr.bf16.mxu0 %v10163_v6  ;;  %7844 = vmatprep.subr.bf16.mxu1 %v10166_v7  ;;  %v10254_v6 = vld [vmem:[%s12428_s6 + $0x1360] ss:$16 sps:$4 sm:$0xff]   ;;  %v10257_v7 = vld [vmem:[%s12428_s6 + $0x1368] ss:$16 sps:$4 sm:$0xff]  }
 0x41b   : > { %7286 = vmatpush1.bf16.msra.mxu0 %v10161_v8  ;;  %7845 = vmatpush1.bf16.msra.mxu1 %v10164_v9  ;;  %v10262_v8 = vld [vmem:[%s12428_s6 + $0x1384] ss:$16 sps:$4 sm:$0xff]   ;;  %v10265_v9 = vld [vmem:[%s12428_s6 + $0x138c] ss:$16 sps:$4 sm:$0xff]  }
 0x41c   : > { %7287 = vmatprep.subr.bf16.mxu0 %v10169_v10  ;;  %7846 = vmatprep.subr.bf16.mxu1 %v10172_v11  ;;  %v10260_v10 = vld [vmem:[%s12428_s6 + $0x1380] ss:$16 sps:$4 sm:$0xff]   ;;  %v10263_v11 = vld [vmem:[%s12428_s6 + $0x1388] ss:$16 sps:$4 sm:$0xff]  }
 0x41f   : > { %7288 = vmatpush1.bf16.msra.mxu0 %v10167_v12  ;;  %7847 = vmatpush1.bf16.msra.mxu1 %v10170_v13  ;;  %v10268_v12 = vld [vmem:[%s12428_s6 + $0x13a4] ss:$16 sps:$4 sm:$0xff]   ;;  %v10271_v13 = vld [vmem:[%s12428_s6 + $0x13ac] ss:$16 sps:$4 sm:$0xff]  }
 0x420   : > { %7289 = vmatprep.subr.bf16.mxu0 %v10175_v14  ;;  %7848 = vmatprep.subr.bf16.mxu1 %v10178_v15  ;;  %v10266_v14 = vld [vmem:[%s12428_s6 + $0x13a0] ss:$16 sps:$4 sm:$0xff]   ;;  %v10269_v15 = vld [vmem:[%s12428_s6 + $0x13a8] ss:$16 sps:$4 sm:$0xff]  }
 0x423   : > { %7290 = vmatpush1.bf16.msra.mxu0 %v10173_v16  ;;  %7849 = vmatpush1.bf16.msra.mxu1 %v10176_v17  ;;  %v10274_v16 = vld [vmem:[%s12428_s6 + $0x13c4] ss:$16 sps:$4 sm:$0xff]   ;;  %v10277_v17 = vld [vmem:[%s12428_s6 + $0x13cc] ss:$16 sps:$4 sm:$0xff]  }
 0x424   : > { %7291 = vmatprep.subr.bf16.mxu0 %v10181_v18  ;;  %7850 = vmatprep.subr.bf16.mxu1 %v10184_v19  ;;  %v10272_v18 = vld [vmem:[%s12428_s6 + $0x13c0] ss:$16 sps:$4 sm:$0xff]   ;;  %v10275_v19 = vld [vmem:[%s12428_s6 + $0x13c8] ss:$16 sps:$4 sm:$0xff]  }
 0x427   : > { %7292 = vmatpush1.bf16.msra.mxu0 %v10179_v20  ;;  %7851 = vmatpush1.bf16.msra.mxu1 %v10182_v21  ;;  %v10280_v20 = vld [vmem:[%s12428_s6 + $0x13e4] ss:$16 sps:$4 sm:$0xff]   ;;  %v10283_v21 = vld [vmem:[%s12428_s6 + $0x13ec] ss:$16 sps:$4 sm:$0xff]  }
 0x428   : > { %7304 = vmatprep.subr.bf16.mxu0 %v10190_v22  ;;  %7863 = vmatprep.subr.bf16.mxu1 %v10193_v23  ;;  %v10278_v22 = vld [vmem:[%s12428_s6 + $0x13e0] ss:$16 sps:$4 sm:$0xff]   ;;  %v10281_v23 = vld [vmem:[%s12428_s6 + $0x13e8] ss:$16 sps:$4 sm:$0xff]  }
 0x42a   : > { %7294 = vmatmul.mubr.bf16.vlgmr.msra.gmra.mrb[0].mxu0 %v10185_v24  ;;  %7853 = vmatmul.mubr.bf16.vlgmr.msra.gmra.mrb[0].mxu1 %v10185_v24  ;;  %v10289_v24 = vld [vmem:[%s12428_s6 + $0x1404] ss:$16 sps:$4 sm:$0xff]  }
 0x42b   : > { %7305 = vmatpush1.bf16.msra.mxu0 %v10188_v25  ;;  %7864 = vmatpush1.bf16.msra.mxu1 %v10191_v26  ;;  %v10292_v25 = vld [vmem:[%s12428_s6 + $0x140c] ss:$16 sps:$4 sm:$0xff]  }
 0x42c   : > { %7306 = vmatprep.subr.bf16.mxu0 %v10196_v27  ;;  %7865 = vmatprep.subr.bf16.mxu1 %v10199_v28  ;;  %v10284_v26 = vld [vmem:[%s12426_s4 + $0x48] ss:$100 sps:$4 sm:$0xff]  }
 0x42d   : > { %7336 = vmatprep.mubr.bf16.mxu0 %v10286_v29  ;;  %7895 = vmatprep.mubr.bf16.mxu1 %v10286_v29  ;;  %v10287_v27 = vld [vmem:[%s12428_s6 + $0x1400] ss:$16 sps:$4 sm:$0xff]   ;;  %v10290_v28 = vld [vmem:[%s12428_s6 + $0x1408] ss:$16 sps:$4 sm:$0xff]   ;;  %v10295_v29 = vld [vmem:[%s12428_s6 + $0x1424] ss:$16 sps:$4 sm:$0xff]  }
 0x42f   : > { %7307 = vmatpush1.bf16.msra.mxu0 %v10194_v30  ;;  %7866 = vmatpush1.bf16.msra.mxu1 %v10197_v31  ;;  %v10298_v30 = vld [vmem:[%s12428_s6 + $0x142c] ss:$16 sps:$4 sm:$0xff]  }
 0x430   : > { %7308 = vmatprep.subr.bf16.mxu0 %v10202_v32  ;;  %7867 = vmatprep.subr.bf16.mxu1 %v10205_v33  ;;  %v10385_v31 = vld [vmem:[%s12426_s4 + $0x54] ss:$100 sps:$4 sm:$0xff]  }
 0x431   : > { %v10293_v32 = vld [vmem:[%s12428_s6 + $0x1420] ss:$16 sps:$4 sm:$0xff]   ;;  %v10296_v33 = vld [vmem:[%s12428_s6 + $0x1428] ss:$16 sps:$4 sm:$0xff]  }
 0x433   : > { %7309 = vmatpush1.bf16.msra.mxu0 %v10200_v34  ;;  %7868 = vmatpush1.bf16.msra.mxu1 %v10203_v35  ;;  %v10301_v34 = vld [vmem:[%s12428_s6 + $0x1444] ss:$16 sps:$4 sm:$0xff]   ;;  %v10304_v35 = vld [vmem:[%s12428_s6 + $0x144c] ss:$16 sps:$4 sm:$0xff]  }
 0x434   : > { %7310 = vmatprep.subr.bf16.mxu0 %v10208_v36  ;;  %7869 = vmatprep.subr.bf16.mxu1 %v10211_v37  ;;  %v10299_v36 = vld [vmem:[%s12428_s6 + $0x1440] ss:$16 sps:$4 sm:$0xff]   ;;  %v10302_v37 = vld [vmem:[%s12428_s6 + $0x1448] ss:$16 sps:$4 sm:$0xff]  }
 0x437   : > { %7311 = vmatpush1.bf16.msra.mxu0 %v10206_v38  ;;  %7870 = vmatpush1.bf16.msra.mxu1 %v10209_v39  ;;  %v10307_v38 = vld [vmem:[%s12428_s6 + $0x1464] ss:$16 sps:$4 sm:$0xff]   ;;  %v10310_v39 = vld [vmem:[%s12428_s6 + $0x146c] ss:$16 sps:$4 sm:$0xff]  }
 0x438   : > { %7312 = vmatprep.subr.bf16.mxu0 %v10214_v40  ;;  %7871 = vmatprep.subr.bf16.mxu1 %v10217_v41  ;;  %v10305_v40 = vld [vmem:[%s12428_s6 + $0x1460] ss:$16 sps:$4 sm:$0xff]   ;;  %v10308_v41 = vld [vmem:[%s12428_s6 + $0x1468] ss:$16 sps:$4 sm:$0xff]  }
 0x43b   : > { %7313 = vmatpush1.bf16.msra.mxu0 %v10212_v42  ;;  %7872 = vmatpush1.bf16.msra.mxu1 %v10215_v43  ;;  %v10313_v42 = vld [vmem:[%s12428_s6 + $0x1484] ss:$16 sps:$4 sm:$0xff]   ;;  %v10316_v43 = vld [vmem:[%s12428_s6 + $0x148c] ss:$16 sps:$4 sm:$0xff]  }
 0x43c   : > { %7314 = vmatprep.subr.bf16.mxu0 %v10220_v44  ;;  %7873 = vmatprep.subr.bf16.mxu1 %v10223_v45  ;;  %v10311_v44 = vld [vmem:[%s12428_s6 + $0x1480] ss:$16 sps:$4 sm:$0xff]   ;;  %v10314_v45 = vld [vmem:[%s12428_s6 + $0x1488] ss:$16 sps:$4 sm:$0xff]  }
 0x43f   : > { %7315 = vmatpush1.bf16.msra.mxu0 %v10218_v46  ;;  %7874 = vmatpush1.bf16.msra.mxu1 %v10221_v47  ;;  %v10319_v46 = vld [vmem:[%s12428_s6 + $0x14a4] ss:$16 sps:$4 sm:$0xff]   ;;  %v10322_v47 = vld [vmem:[%s12428_s6 + $0x14ac] ss:$16 sps:$4 sm:$0xff]  }
 0x440   : > { %7316 = vmatprep.subr.bf16.mxu0 %v10226_v48  ;;  %7875 = vmatprep.subr.bf16.mxu1 %v10229_v49  ;;  %v10317_v48 = vld [vmem:[%s12428_s6 + $0x14a0] ss:$16 sps:$4 sm:$0xff]   ;;  %v10320_v49 = vld [vmem:[%s12428_s6 + $0x14a8] ss:$16 sps:$4 sm:$0xff]  }
 0x443   : > { %7317 = vmatpush1.bf16.msra.mxu0 %v10224_v50  ;;  %7876 = vmatpush1.bf16.msra.mxu1 %v10227_v51  ;;  %v10325_v50 = vld [vmem:[%s12428_s6 + $0x14c4] ss:$16 sps:$4 sm:$0xff]   ;;  %v10328_v51 = vld [vmem:[%s12428_s6 + $0x14cc] ss:$16 sps:$4 sm:$0xff]  }
 0x444   : > { %7318 = vmatprep.subr.bf16.mxu0 %v10232_v52  ;;  %7877 = vmatprep.subr.bf16.mxu1 %v10235_v53  ;;  %v10323_v52 = vld [vmem:[%s12428_s6 + $0x14c0] ss:$16 sps:$4 sm:$0xff]   ;;  %v10326_v53 = vld [vmem:[%s12428_s6 + $0x14c8] ss:$16 sps:$4 sm:$0xff]  }
 0x447   : > { %7319 = vmatpush1.bf16.msra.mxu0 %v10230_v54  ;;  %7878 = vmatpush1.bf16.msra.mxu1 %v10233_v55  ;;  %v10331_v54 = vld [vmem:[%s12428_s6 + $0x14e4] ss:$16 sps:$4 sm:$0xff]   ;;  %v10334_v55 = vld [vmem:[%s12428_s6 + $0x14ec] ss:$16 sps:$4 sm:$0xff]  }
 0x448   : > { %7320 = vmatprep.subr.bf16.mxu0 %v10238_v56  ;;  %7879 = vmatprep.subr.bf16.mxu1 %v10241_v57  ;;  %v10329_v56 = vld [vmem:[%s12428_s6 + $0x14e0] ss:$16 sps:$4 sm:$0xff]   ;;  %v10332_v57 = vld [vmem:[%s12428_s6 + $0x14e8] ss:$16 sps:$4 sm:$0xff]  }
 0x44b   : > { %7321 = vmatpush1.bf16.msra.mxu0 %v10236_v58  ;;  %7880 = vmatpush1.bf16.msra.mxu1 %v10239_v59  ;;  %v10337_v58 = vld [vmem:[%s12428_s6 + $0x1504] ss:$16 sps:$4 sm:$0xff]   ;;  %v10340_v59 = vld [vmem:[%s12428_s6 + $0x150c] ss:$16 sps:$4 sm:$0xff]  }
 0x44c   : > { %7322 = vmatprep.subr.bf16.mxu0 %v10244_v60  ;;  %7881 = vmatprep.subr.bf16.mxu1 %v10247_v61  ;;  %v10335_v60 = vld [vmem:[%s12428_s6 + $0x1500] ss:$16 sps:$4 sm:$0xff]   ;;  %v10338_v61 = vld [vmem:[%s12428_s6 + $0x1508] ss:$16 sps:$4 sm:$0xff]  }
 0x44f   : > { %7323 = vmatpush1.bf16.msra.mxu0 %v10242_v62  ;;  %7882 = vmatpush1.bf16.msra.mxu1 %v10245_v63  ;;  %v10343_v62 = vld [vmem:[%s12428_s6 + $0x1524] ss:$16 sps:$4 sm:$0xff]   ;;  %v10346_v63 = vld [vmem:[%s12428_s6 + $0x152c] ss:$16 sps:$4 sm:$0xff]  }
 0x450   : > { %7324 = vmatprep.subr.bf16.mxu0 %v10250_v0  ;;  %7883 = vmatprep.subr.bf16.mxu1 %v10253_v1  ;;  %v10341_v0 = vld [vmem:[%s12428_s6 + $0x1520] ss:$16 sps:$4 sm:$0xff]   ;;  %v10344_v1 = vld [vmem:[%s12428_s6 + $0x1528] ss:$16 sps:$4 sm:$0xff]  }
 0x453   : > { %7325 = vmatpush1.bf16.msra.mxu0 %v10248_v2  ;;  %7884 = vmatpush1.bf16.msra.mxu1 %v10251_v3  ;;  %v10349_v2 = vld [vmem:[%s12428_s6 + $0x1544] ss:$16 sps:$4 sm:$0xff]   ;;  %v10352_v3 = vld [vmem:[%s12428_s6 + $0x154c] ss:$16 sps:$4 sm:$0xff]  }
 0x454   : > { %7326 = vmatprep.subr.bf16.mxu0 %v10256_v4  ;;  %7885 = vmatprep.subr.bf16.mxu1 %v10259_v5  ;;  %v10347_v4 = vld [vmem:[%s12428_s6 + $0x1540] ss:$16 sps:$4 sm:$0xff]   ;;  %v10350_v5 = vld [vmem:[%s12428_s6 + $0x1548] ss:$16 sps:$4 sm:$0xff]  }
 0x457   : > { %7327 = vmatpush1.bf16.msra.mxu0 %v10254_v6  ;;  %7886 = vmatpush1.bf16.msra.mxu1 %v10257_v7  ;;  %v10355_v6 = vld [vmem:[%s12428_s6 + $0x1564] ss:$16 sps:$4 sm:$0xff]   ;;  %v10358_v7 = vld [vmem:[%s12428_s6 + $0x156c] ss:$16 sps:$4 sm:$0xff]  }
 0x458   : > { %7328 = vmatprep.subr.bf16.mxu0 %v10262_v8  ;;  %7887 = vmatprep.subr.bf16.mxu1 %v10265_v9  ;;  %v10353_v8 = vld [vmem:[%s12428_s6 + $0x1560] ss:$16 sps:$4 sm:$0xff]   ;;  %v10356_v9 = vld [vmem:[%s12428_s6 + $0x1568] ss:$16 sps:$4 sm:$0xff]  }
 0x45b   : > { %7329 = vmatpush1.bf16.msra.mxu0 %v10260_v10  ;;  %7888 = vmatpush1.bf16.msra.mxu1 %v10263_v11  ;;  %v10361_v10 = vld [vmem:[%s12428_s6 + $0x1584] ss:$16 sps:$4 sm:$0xff]   ;;  %v10364_v11 = vld [vmem:[%s12428_s6 + $0x158c] ss:$16 sps:$4 sm:$0xff]  }
 0x45c   : > { %7330 = vmatprep.subr.bf16.mxu0 %v10268_v12  ;;  %7889 = vmatprep.subr.bf16.mxu1 %v10271_v13  ;;  %v10359_v12 = vld [vmem:[%s12428_s6 + $0x1580] ss:$16 sps:$4 sm:$0xff]   ;;  %v10362_v13 = vld [vmem:[%s12428_s6 + $0x1588] ss:$16 sps:$4 sm:$0xff]  }
 0x45f   : > { %7331 = vmatpush1.bf16.msra.mxu0 %v10266_v14  ;;  %7890 = vmatpush1.bf16.msra.mxu1 %v10269_v15  ;;  %v10367_v14 = vld [vmem:[%s12428_s6 + $0x15a4] ss:$16 sps:$4 sm:$0xff]   ;;  %v10370_v15 = vld [vmem:[%s12428_s6 + $0x15ac] ss:$16 sps:$4 sm:$0xff]  }
 0x460   : > { %7332 = vmatprep.subr.bf16.mxu0 %v10274_v16  ;;  %7891 = vmatprep.subr.bf16.mxu1 %v10277_v17  ;;  %v10365_v16 = vld [vmem:[%s12428_s6 + $0x15a0] ss:$16 sps:$4 sm:$0xff]   ;;  %v10368_v17 = vld [vmem:[%s12428_s6 + $0x15a8] ss:$16 sps:$4 sm:$0xff]  }
 0x463   : > { %7333 = vmatpush1.bf16.msra.mxu0 %v10272_v18  ;;  %7892 = vmatpush1.bf16.msra.mxu1 %v10275_v19  ;;  %v10373_v18 = vld [vmem:[%s12428_s6 + $0x15c4] ss:$16 sps:$4 sm:$0xff]   ;;  %v10376_v19 = vld [vmem:[%s12428_s6 + $0x15cc] ss:$16 sps:$4 sm:$0xff]  }
 0x464   : > { %7334 = vmatprep.subr.bf16.mxu0 %v10280_v20  ;;  %7893 = vmatprep.subr.bf16.mxu1 %v10283_v21  ;;  %v10371_v20 = vld [vmem:[%s12428_s6 + $0x15c0] ss:$16 sps:$4 sm:$0xff]   ;;  %v10374_v21 = vld [vmem:[%s12428_s6 + $0x15c8] ss:$16 sps:$4 sm:$0xff]  }
 0x467   : > { %7335 = vmatpush1.bf16.msra.mxu0 %v10278_v22  ;;  %7894 = vmatpush1.bf16.msra.mxu1 %v10281_v23  ;;  %v10379_v22 = vld [vmem:[%s12428_s6 + $0x15e4] ss:$16 sps:$4 sm:$0xff]   ;;  %v10382_v23 = vld [vmem:[%s12428_s6 + $0x15ec] ss:$16 sps:$4 sm:$0xff]  }
 0x468   : > { %7347 = vmatprep.subr.bf16.mxu0 %v10289_v24  ;;  %7906 = vmatprep.subr.bf16.mxu1 %v10292_v25  ;;  %v10377_v24 = vld [vmem:[%s12428_s6 + $0x15e0] ss:$16 sps:$4 sm:$0xff]   ;;  %v10380_v25 = vld [vmem:[%s12428_s6 + $0x15e8] ss:$16 sps:$4 sm:$0xff]  }
 0x46a   : > { %7337 = vmatmul.mubr.bf16.vlgmr.msra.gmra.mrb[0].mxu0 %v10284_v26  ;;  %7896 = vmatmul.mubr.bf16.vlgmr.msra.gmra.mrb[0].mxu1 %v10284_v26  ;;  %v10388_v26 = vld [vmem:[%s12428_s6 + $0x1604] ss:$16 sps:$4 sm:$0xff]  }
 0x46b   : > { %7348 = vmatpush1.bf16.msra.mxu0 %v10287_v27  ;;  %7907 = vmatpush1.bf16.msra.mxu1 %v10290_v28  ;;  %v10391_v27 = vld [vmem:[%s12428_s6 + $0x160c] ss:$16 sps:$4 sm:$0xff]  }
 0x46c   : > { %7349 = vmatprep.subr.bf16.mxu0 %v10295_v29  ;;  %7908 = vmatprep.subr.bf16.mxu1 %v10298_v30  ;;  %v10383_v28 = vld [vmem:[%s12426_s4 + $0x50] ss:$100 sps:$4 sm:$0xff]  }
 0x46d   : > { %7379 = vmatprep.mubr.bf16.mxu0 %v10385_v31  ;;  %7938 = vmatprep.mubr.bf16.mxu1 %v10385_v31  ;;  %v10386_v29 = vld [vmem:[%s12428_s6 + $0x1600] ss:$16 sps:$4 sm:$0xff]   ;;  %v10389_v30 = vld [vmem:[%s12428_s6 + $0x1608] ss:$16 sps:$4 sm:$0xff]   ;;  %v10394_v31 = vld [vmem:[%s12428_s6 + $0x1624] ss:$16 sps:$4 sm:$0xff]  }
 0x46f   : > { %7350 = vmatpush1.bf16.msra.mxu0 %v10293_v32  ;;  %7909 = vmatpush1.bf16.msra.mxu1 %v10296_v33  ;;  %v10397_v32 = vld [vmem:[%s12428_s6 + $0x162c] ss:$16 sps:$4 sm:$0xff]  }
 0x470   : > { %7351 = vmatprep.subr.bf16.mxu0 %v10301_v34  ;;  %7910 = vmatprep.subr.bf16.mxu1 %v10304_v35  ;;  %v10484_v33 = vld [vmem:[%s12426_s4 + $0x5c] ss:$100 sps:$4 sm:$0xff]  }
 0x471   : > { %v10392_v34 = vld [vmem:[%s12428_s6 + $0x1620] ss:$16 sps:$4 sm:$0xff]   ;;  %v10395_v35 = vld [vmem:[%s12428_s6 + $0x1628] ss:$16 sps:$4 sm:$0xff]  }
 0x473   : > { %7352 = vmatpush1.bf16.msra.mxu0 %v10299_v36  ;;  %7911 = vmatpush1.bf16.msra.mxu1 %v10302_v37  ;;  %v10400_v36 = vld [vmem:[%s12428_s6 + $0x1644] ss:$16 sps:$4 sm:$0xff]   ;;  %v10403_v37 = vld [vmem:[%s12428_s6 + $0x164c] ss:$16 sps:$4 sm:$0xff]  }
 0x474   : > { %7353 = vmatprep.subr.bf16.mxu0 %v10307_v38  ;;  %7912 = vmatprep.subr.bf16.mxu1 %v10310_v39  ;;  %v10398_v38 = vld [vmem:[%s12428_s6 + $0x1640] ss:$16 sps:$4 sm:$0xff]   ;;  %v10401_v39 = vld [vmem:[%s12428_s6 + $0x1648] ss:$16 sps:$4 sm:$0xff]  }
 0x477   : > { %7354 = vmatpush1.bf16.msra.mxu0 %v10305_v40  ;;  %7913 = vmatpush1.bf16.msra.mxu1 %v10308_v41  ;;  %v10406_v40 = vld [vmem:[%s12428_s6 + $0x1664] ss:$16 sps:$4 sm:$0xff]   ;;  %v10409_v41 = vld [vmem:[%s12428_s6 + $0x166c] ss:$16 sps:$4 sm:$0xff]  }
 0x478   : > { %7355 = vmatprep.subr.bf16.mxu0 %v10313_v42  ;;  %7914 = vmatprep.subr.bf16.mxu1 %v10316_v43  ;;  %v10404_v42 = vld [vmem:[%s12428_s6 + $0x1660] ss:$16 sps:$4 sm:$0xff]   ;;  %v10407_v43 = vld [vmem:[%s12428_s6 + $0x1668] ss:$16 sps:$4 sm:$0xff]  }
 0x47b   : > { %7356 = vmatpush1.bf16.msra.mxu0 %v10311_v44  ;;  %7915 = vmatpush1.bf16.msra.mxu1 %v10314_v45  ;;  %v10412_v44 = vld [vmem:[%s12428_s6 + $0x1684] ss:$16 sps:$4 sm:$0xff]   ;;  %v10415_v45 = vld [vmem:[%s12428_s6 + $0x168c] ss:$16 sps:$4 sm:$0xff]  }
 0x47c   : > { %7357 = vmatprep.subr.bf16.mxu0 %v10319_v46  ;;  %7916 = vmatprep.subr.bf16.mxu1 %v10322_v47  ;;  %v10410_v46 = vld [vmem:[%s12428_s6 + $0x1680] ss:$16 sps:$4 sm:$0xff]   ;;  %v10413_v47 = vld [vmem:[%s12428_s6 + $0x1688] ss:$16 sps:$4 sm:$0xff]  }
 0x47f   : > { %7358 = vmatpush1.bf16.msra.mxu0 %v10317_v48  ;;  %7917 = vmatpush1.bf16.msra.mxu1 %v10320_v49  ;;  %v10418_v48 = vld [vmem:[%s12428_s6 + $0x16a4] ss:$16 sps:$4 sm:$0xff]   ;;  %v10421_v49 = vld [vmem:[%s12428_s6 + $0x16ac] ss:$16 sps:$4 sm:$0xff]  }
 0x480   : > { %7359 = vmatprep.subr.bf16.mxu0 %v10325_v50  ;;  %7918 = vmatprep.subr.bf16.mxu1 %v10328_v51  ;;  %v10416_v50 = vld [vmem:[%s12428_s6 + $0x16a0] ss:$16 sps:$4 sm:$0xff]   ;;  %v10419_v51 = vld [vmem:[%s12428_s6 + $0x16a8] ss:$16 sps:$4 sm:$0xff]  }
 0x483   : > { %7360 = vmatpush1.bf16.msra.mxu0 %v10323_v52  ;;  %7919 = vmatpush1.bf16.msra.mxu1 %v10326_v53  ;;  %v10424_v52 = vld [vmem:[%s12428_s6 + $0x16c4] ss:$16 sps:$4 sm:$0xff]   ;;  %v10427_v53 = vld [vmem:[%s12428_s6 + $0x16cc] ss:$16 sps:$4 sm:$0xff]  }
 0x484   : > { %7361 = vmatprep.subr.bf16.mxu0 %v10331_v54  ;;  %7920 = vmatprep.subr.bf16.mxu1 %v10334_v55  ;;  %v10422_v54 = vld [vmem:[%s12428_s6 + $0x16c0] ss:$16 sps:$4 sm:$0xff]   ;;  %v10425_v55 = vld [vmem:[%s12428_s6 + $0x16c8] ss:$16 sps:$4 sm:$0xff]  }
 0x487   : > { %7362 = vmatpush1.bf16.msra.mxu0 %v10329_v56  ;;  %7921 = vmatpush1.bf16.msra.mxu1 %v10332_v57  ;;  %v10430_v56 = vld [vmem:[%s12428_s6 + $0x16e4] ss:$16 sps:$4 sm:$0xff]   ;;  %v10433_v57 = vld [vmem:[%s12428_s6 + $0x16ec] ss:$16 sps:$4 sm:$0xff]  }
 0x488   : > { %7363 = vmatprep.subr.bf16.mxu0 %v10337_v58  ;;  %7922 = vmatprep.subr.bf16.mxu1 %v10340_v59  ;;  %v10428_v58 = vld [vmem:[%s12428_s6 + $0x16e0] ss:$16 sps:$4 sm:$0xff]   ;;  %v10431_v59 = vld [vmem:[%s12428_s6 + $0x16e8] ss:$16 sps:$4 sm:$0xff]  }
 0x48b   : > { %7364 = vmatpush1.bf16.msra.mxu0 %v10335_v60  ;;  %7923 = vmatpush1.bf16.msra.mxu1 %v10338_v61  ;;  %v10436_v60 = vld [vmem:[%s12428_s6 + $0x1704] ss:$16 sps:$4 sm:$0xff]   ;;  %v10439_v61 = vld [vmem:[%s12428_s6 + $0x170c] ss:$16 sps:$4 sm:$0xff]  }
 0x48c   : > { %7365 = vmatprep.subr.bf16.mxu0 %v10343_v62  ;;  %7924 = vmatprep.subr.bf16.mxu1 %v10346_v63  ;;  %v10434_v62 = vld [vmem:[%s12428_s6 + $0x1700] ss:$16 sps:$4 sm:$0xff]   ;;  %v10437_v63 = vld [vmem:[%s12428_s6 + $0x1708] ss:$16 sps:$4 sm:$0xff]  }
 0x48f   : > { %7366 = vmatpush1.bf16.msra.mxu0 %v10341_v0  ;;  %7925 = vmatpush1.bf16.msra.mxu1 %v10344_v1  ;;  %v10442_v0 = vld [vmem:[%s12428_s6 + $0x1724] ss:$16 sps:$4 sm:$0xff]   ;;  %v10445_v1 = vld [vmem:[%s12428_s6 + $0x172c] ss:$16 sps:$4 sm:$0xff]  }
 0x490   : > { %7367 = vmatprep.subr.bf16.mxu0 %v10349_v2  ;;  %7926 = vmatprep.subr.bf16.mxu1 %v10352_v3  ;;  %v10440_v2 = vld [vmem:[%s12428_s6 + $0x1720] ss:$16 sps:$4 sm:$0xff]   ;;  %v10443_v3 = vld [vmem:[%s12428_s6 + $0x1728] ss:$16 sps:$4 sm:$0xff]  }
 0x493   : > { %7368 = vmatpush1.bf16.msra.mxu0 %v10347_v4  ;;  %7927 = vmatpush1.bf16.msra.mxu1 %v10350_v5  ;;  %v10448_v4 = vld [vmem:[%s12428_s6 + $0x1744] ss:$16 sps:$4 sm:$0xff]   ;;  %v10451_v5 = vld [vmem:[%s12428_s6 + $0x174c] ss:$16 sps:$4 sm:$0xff]  }
 0x494   : > { %7369 = vmatprep.subr.bf16.mxu0 %v10355_v6  ;;  %7928 = vmatprep.subr.bf16.mxu1 %v10358_v7  ;;  %v10446_v6 = vld [vmem:[%s12428_s6 + $0x1740] ss:$16 sps:$4 sm:$0xff]   ;;  %v10449_v7 = vld [vmem:[%s12428_s6 + $0x1748] ss:$16 sps:$4 sm:$0xff]  }
 0x497   : > { %7370 = vmatpush1.bf16.msra.mxu0 %v10353_v8  ;;  %7929 = vmatpush1.bf16.msra.mxu1 %v10356_v9  ;;  %v10454_v8 = vld [vmem:[%s12428_s6 + $0x1764] ss:$16 sps:$4 sm:$0xff]   ;;  %v10457_v9 = vld [vmem:[%s12428_s6 + $0x176c] ss:$16 sps:$4 sm:$0xff]  }
 0x498   : > { %7371 = vmatprep.subr.bf16.mxu0 %v10361_v10  ;;  %7930 = vmatprep.subr.bf16.mxu1 %v10364_v11  ;;  %v10452_v10 = vld [vmem:[%s12428_s6 + $0x1760] ss:$16 sps:$4 sm:$0xff]   ;;  %v10455_v11 = vld [vmem:[%s12428_s6 + $0x1768] ss:$16 sps:$4 sm:$0xff]  }
 0x49b   : > { %7372 = vmatpush1.bf16.msra.mxu0 %v10359_v12  ;;  %7931 = vmatpush1.bf16.msra.mxu1 %v10362_v13  ;;  %v10460_v12 = vld [vmem:[%s12428_s6 + $0x1784] ss:$16 sps:$4 sm:$0xff]   ;;  %v10463_v13 = vld [vmem:[%s12428_s6 + $0x178c] ss:$16 sps:$4 sm:$0xff]  }
 0x49c   : > { %7373 = vmatprep.subr.bf16.mxu0 %v10367_v14  ;;  %7932 = vmatprep.subr.bf16.mxu1 %v10370_v15  ;;  %v10458_v14 = vld [vmem:[%s12428_s6 + $0x1780] ss:$16 sps:$4 sm:$0xff]   ;;  %v10461_v15 = vld [vmem:[%s12428_s6 + $0x1788] ss:$16 sps:$4 sm:$0xff]  }
 0x49f   : > { %7374 = vmatpush1.bf16.msra.mxu0 %v10365_v16  ;;  %7933 = vmatpush1.bf16.msra.mxu1 %v10368_v17  ;;  %v10466_v16 = vld [vmem:[%s12428_s6 + $0x17a4] ss:$16 sps:$4 sm:$0xff]   ;;  %v10469_v17 = vld [vmem:[%s12428_s6 + $0x17ac] ss:$16 sps:$4 sm:$0xff]  }
 0x4a0   : > { %7375 = vmatprep.subr.bf16.mxu0 %v10373_v18  ;;  %7934 = vmatprep.subr.bf16.mxu1 %v10376_v19  ;;  %v10464_v18 = vld [vmem:[%s12428_s6 + $0x17a0] ss:$16 sps:$4 sm:$0xff]   ;;  %v10467_v19 = vld [vmem:[%s12428_s6 + $0x17a8] ss:$16 sps:$4 sm:$0xff]  }
 0x4a3   : > { %7376 = vmatpush1.bf16.msra.mxu0 %v10371_v20  ;;  %7935 = vmatpush1.bf16.msra.mxu1 %v10374_v21  ;;  %v10472_v20 = vld [vmem:[%s12428_s6 + $0x17c4] ss:$16 sps:$4 sm:$0xff]   ;;  %v10475_v21 = vld [vmem:[%s12428_s6 + $0x17cc] ss:$16 sps:$4 sm:$0xff]  }
 0x4a4   : > { %7377 = vmatprep.subr.bf16.mxu0 %v10379_v22  ;;  %7936 = vmatprep.subr.bf16.mxu1 %v10382_v23  ;;  %v10470_v22 = vld [vmem:[%s12428_s6 + $0x17c0] ss:$16 sps:$4 sm:$0xff]   ;;  %v10473_v23 = vld [vmem:[%s12428_s6 + $0x17c8] ss:$16 sps:$4 sm:$0xff]  }
 0x4a7   : > { %7378 = vmatpush1.bf16.msra.mxu0 %v10377_v24  ;;  %7937 = vmatpush1.bf16.msra.mxu1 %v10380_v25  ;;  %v10478_v24 = vld [vmem:[%s12428_s6 + $0x17e4] ss:$16 sps:$4 sm:$0xff]   ;;  %v10481_v25 = vld [vmem:[%s12428_s6 + $0x17ec] ss:$16 sps:$4 sm:$0xff]  }
 0x4a8   : > { %7390 = vmatprep.subr.bf16.mxu0 %v10388_v26  ;;  %7949 = vmatprep.subr.bf16.mxu1 %v10391_v27  ;;  %v10476_v26 = vld [vmem:[%s12428_s6 + $0x17e0] ss:$16 sps:$4 sm:$0xff]   ;;  %v10479_v27 = vld [vmem:[%s12428_s6 + $0x17e8] ss:$16 sps:$4 sm:$0xff]  }
 0x4aa   : > { %7380 = vmatmul.mubr.bf16.vlgmr.msra.gmra.mrb[0].mxu0 %v10383_v28  ;;  %7939 = vmatmul.mubr.bf16.vlgmr.msra.gmra.mrb[0].mxu1 %v10383_v28  ;;  %v10487_v28 = vld [vmem:[%s12428_s6 + $0x1804] ss:$16 sps:$4 sm:$0xff]  }
 0x4ab   : > { %7391 = vmatpush1.bf16.msra.mxu0 %v10386_v29  ;;  %7950 = vmatpush1.bf16.msra.mxu1 %v10389_v30  ;;  %v10490_v29 = vld [vmem:[%s12428_s6 + $0x180c] ss:$16 sps:$4 sm:$0xff]  }
 0x4ac   : > { %7392 = vmatprep.subr.bf16.mxu0 %v10394_v31  ;;  %7951 = vmatprep.subr.bf16.mxu1 %v10397_v32  ;;  %v10482_v30 = vld [vmem:[%s12426_s4 + $0x58] ss:$100 sps:$4 sm:$0xff]  }
 0x4ad   : > { %7422 = vmatprep.mubr.bf16.mxu0 %v10484_v33  ;;  %7981 = vmatprep.mubr.bf16.mxu1 %v10484_v33  ;;  %v10485_v31 = vld [vmem:[%s12428_s6 + $0x1800] ss:$16 sps:$4 sm:$0xff]   ;;  %v10488_v32 = vld [vmem:[%s12428_s6 + $0x1808] ss:$16 sps:$4 sm:$0xff]   ;;  %v10493_v33 = vld [vmem:[%s12428_s6 + $0x1824] ss:$16 sps:$4 sm:$0xff]  }
 0x4af   : > { %7393 = vmatpush1.bf16.msra.mxu0 %v10392_v34  ;;  %7952 = vmatpush1.bf16.msra.mxu1 %v10395_v35  ;;  %v10496_v34 = vld [vmem:[%s12428_s6 + $0x182c] ss:$16 sps:$4 sm:$0xff]   ;;  %v10491_v35 = vld [vmem:[%s12428_s6 + $0x1820] ss:$16 sps:$4 sm:$0xff]  }
 0x4b0   : > { %7394 = vmatprep.subr.bf16.mxu0 %v10400_v36  ;;  %7953 = vmatprep.subr.bf16.mxu1 %v10403_v37  ;;  %v10494_v36 = vld [vmem:[%s12428_s6 + $0x1828] ss:$16 sps:$4 sm:$0xff]   ;;  %v10499_v37 = vld [vmem:[%s12428_s6 + $0x1844] ss:$16 sps:$4 sm:$0xff]  }
 0x4b3   : > { %7395 = vmatpush1.bf16.msra.mxu0 %v10398_v38  ;;  %7954 = vmatpush1.bf16.msra.mxu1 %v10401_v39  ;;  %v10502_v38 = vld [vmem:[%s12428_s6 + $0x184c] ss:$16 sps:$4 sm:$0xff]   ;;  %v10622_v39 = vmov 0  }
 0x4b4   : > { %7396 = vmatprep.subr.bf16.mxu0 %v10406_v40  ;;  %7955 = vmatprep.subr.bf16.mxu1 %v10409_v41  ;;  %v10497_v40 = vld [vmem:[%s12428_s6 + $0x1840] ss:$16 sps:$4 sm:$0xff]   ;;  %v10500_v41 = vld [vmem:[%s12428_s6 + $0x1848] ss:$16 sps:$4 sm:$0xff]  }
 0x4b7   : > { %7397 = vmatpush1.bf16.msra.mxu0 %v10404_v42  ;;  %7956 = vmatpush1.bf16.msra.mxu1 %v10407_v43  ;;  %v10505_v42 = vld [vmem:[%s12428_s6 + $0x1864] ss:$16 sps:$4 sm:$0xff]   ;;  %v10508_v43 = vld [vmem:[%s12428_s6 + $0x186c] ss:$16 sps:$4 sm:$0xff]  }
 0x4b8   : > { %7398 = vmatprep.subr.bf16.mxu0 %v10412_v44  ;;  %7957 = vmatprep.subr.bf16.mxu1 %v10415_v45  ;;  %v10503_v44 = vld [vmem:[%s12428_s6 + $0x1860] ss:$16 sps:$4 sm:$0xff]   ;;  %v10506_v45 = vld [vmem:[%s12428_s6 + $0x1868] ss:$16 sps:$4 sm:$0xff]  }
 0x4bb   : > { %7399 = vmatpush1.bf16.msra.mxu0 %v10410_v46  ;;  %7958 = vmatpush1.bf16.msra.mxu1 %v10413_v47  ;;  %v10511_v46 = vld [vmem:[%s12428_s6 + $0x1884] ss:$16 sps:$4 sm:$0xff]   ;;  %v10514_v47 = vld [vmem:[%s12428_s6 + $0x188c] ss:$16 sps:$4 sm:$0xff]  }
 0x4bc   : > { %7400 = vmatprep.subr.bf16.mxu0 %v10418_v48  ;;  %7959 = vmatprep.subr.bf16.mxu1 %v10421_v49  ;;  %v10509_v48 = vld [vmem:[%s12428_s6 + $0x1880] ss:$16 sps:$4 sm:$0xff]   ;;  %v10512_v49 = vld [vmem:[%s12428_s6 + $0x1888] ss:$16 sps:$4 sm:$0xff]  }
 0x4bf   : > { %7401 = vmatpush1.bf16.msra.mxu0 %v10416_v50  ;;  %7960 = vmatpush1.bf16.msra.mxu1 %v10419_v51  ;;  %v10517_v50 = vld [vmem:[%s12428_s6 + $0x18a4] ss:$16 sps:$4 sm:$0xff]   ;;  %v10520_v51 = vld [vmem:[%s12428_s6 + $0x18ac] ss:$16 sps:$4 sm:$0xff]  }
 0x4c0   : > { %7402 = vmatprep.subr.bf16.mxu0 %v10424_v52  ;;  %7961 = vmatprep.subr.bf16.mxu1 %v10427_v53  ;;  %v10515_v52 = vld [vmem:[%s12428_s6 + $0x18a0] ss:$16 sps:$4 sm:$0xff]   ;;  %v10518_v53 = vld [vmem:[%s12428_s6 + $0x18a8] ss:$16 sps:$4 sm:$0xff]  }
 0x4c3   : > { %7403 = vmatpush1.bf16.msra.mxu0 %v10422_v54  ;;  %7962 = vmatpush1.bf16.msra.mxu1 %v10425_v55  ;;  %v10523_v54 = vld [vmem:[%s12428_s6 + $0x18c4] ss:$16 sps:$4 sm:$0xff]   ;;  %v10526_v55 = vld [vmem:[%s12428_s6 + $0x18cc] ss:$16 sps:$4 sm:$0xff]  }
 0x4c4   : > { %7404 = vmatprep.subr.bf16.mxu0 %v10430_v56  ;;  %7963 = vmatprep.subr.bf16.mxu1 %v10433_v57  ;;  %v10521_v56 = vld [vmem:[%s12428_s6 + $0x18c0] ss:$16 sps:$4 sm:$0xff]   ;;  %v10524_v57 = vld [vmem:[%s12428_s6 + $0x18c8] ss:$16 sps:$4 sm:$0xff]  }
 0x4c7   : > { %7405 = vmatpush1.bf16.msra.mxu0 %v10428_v58  ;;  %7964 = vmatpush1.bf16.msra.mxu1 %v10431_v59  ;;  %v10529_v58 = vld [vmem:[%s12428_s6 + $0x18e4] ss:$16 sps:$4 sm:$0xff]   ;;  %v10532_v59 = vld [vmem:[%s12428_s6 + $0x18ec] ss:$16 sps:$4 sm:$0xff]  }
 0x4c8   : > { %7406 = vmatprep.subr.bf16.mxu0 %v10436_v60  ;;  %7965 = vmatprep.subr.bf16.mxu1 %v10439_v61  ;;  %v10527_v60 = vld [vmem:[%s12428_s6 + $0x18e0] ss:$16 sps:$4 sm:$0xff]   ;;  %v10530_v61 = vld [vmem:[%s12428_s6 + $0x18e8] ss:$16 sps:$4 sm:$0xff]  }
 0x4cb   : > { %7407 = vmatpush1.bf16.msra.mxu0 %v10434_v62  ;;  %7966 = vmatpush1.bf16.msra.mxu1 %v10437_v63  ;;  %v10533_v62 = vld [vmem:[%s12426_s4 + $0x60] ss:$100 sps:$4 sm:$0xff]  }
 0x4cc   : > { %7408 = vmatprep.subr.bf16.mxu0 %v10442_v0  ;;  %7967 = vmatprep.subr.bf16.mxu1 %v10445_v1  ;;  %v1957_v63 = vld [vmem:[#allocation2] sm:$0xff]  ;;  %v1959_v0 = vld [vmem:[#allocation2 + $0x10] sm:$0xff]  ;;  %v1958_v1 = vld [vmem:[#allocation2 + $0x8] sm:$0xff] }
 0x4cf   : > { %7409 = vmatpush1.bf16.msra.mxu0 %v10440_v2  ;;  %7968 = vmatpush1.bf16.msra.mxu1 %v10443_v3  ;;  %v1960_v2 = vld [vmem:[#allocation2 + $0x18] sm:$0xff] }
 0x4d0   : > { %7410 = vmatprep.subr.bf16.mxu0 %v10448_v4  ;;  %7969 = vmatprep.subr.bf16.mxu1 %v10451_v5  ;;  %v1961_v5 = vld [vmem:[#allocation2 + $0x20] sm:$0xff] }
 0x4d3   : > { %7411 = vmatpush1.bf16.msra.mxu0 %v10446_v6  ;;  %7970 = vmatpush1.bf16.msra.mxu1 %v10449_v7  ;;  %v1963_v6 = vld [vmem:[#allocation2 + $0x30] sm:$0xff] }
 0x4d4   : > { %7412 = vmatprep.subr.bf16.mxu0 %v10454_v8  ;;  %7971 = vmatprep.subr.bf16.mxu1 %v10457_v9 }
 0x4d7   : > { %7413 = vmatpush1.bf16.msra.mxu0 %v10452_v10  ;;  %7972 = vmatpush1.bf16.msra.mxu1 %v10455_v11  ;;  %v1962_v11 = vld [vmem:[#allocation2 + $0x28] sm:$0xff] }
 0x4d8   : > { %7414 = vmatprep.subr.bf16.mxu0 %v10460_v12  ;;  %7973 = vmatprep.subr.bf16.mxu1 %v10463_v13  ;;  %v1964_v12 = vld [vmem:[#allocation2 + $0x38] sm:$0xff] }
 0x4db   : > { %7415 = vmatpush1.bf16.msra.mxu0 %v10458_v14  ;;  %7974 = vmatpush1.bf16.msra.mxu1 %v10461_v15 }
 0x4dc   : > { %7416 = vmatprep.subr.bf16.mxu0 %v10466_v16  ;;  %7975 = vmatprep.subr.bf16.mxu1 %v10469_v17 }
 0x4df   : > { %7417 = vmatpush1.bf16.msra.mxu0 %v10464_v18  ;;  %7976 = vmatpush1.bf16.msra.mxu1 %v10467_v19 }
 0x4e0   : > { %7418 = vmatprep.subr.bf16.mxu0 %v10472_v20  ;;  %7977 = vmatprep.subr.bf16.mxu1 %v10475_v21 }
 0x4e3   : > { %7419 = vmatpush1.bf16.msra.mxu0 %v10470_v22  ;;  %7978 = vmatpush1.bf16.msra.mxu1 %v10473_v23 }
 0x4e4   : > { %7420 = vmatprep.subr.bf16.mxu0 %v10478_v24  ;;  %7979 = vmatprep.subr.bf16.mxu1 %v10481_v25 }
 0x4e7   : > { %7421 = vmatpush1.bf16.msra.mxu0 %v10476_v26  ;;  %7980 = vmatpush1.bf16.msra.mxu1 %v10479_v27 }
 0x4e8   : > { %7433 = vmatprep.subr.bf16.mxu0 %v10487_v28  ;;  %7992 = vmatprep.subr.bf16.mxu1 %v10490_v29 }
 0x4ea   : > { %7423 = vmatmul.mubr.bf16.vlgmr.msra.gmra.mrb[0].mxu0 %v10482_v30  ;;  %7982 = vmatmul.mubr.bf16.vlgmr.msra.gmra.mrb[0].mxu1 %v10482_v30 }
 0x4eb   : > { %7434 = vmatpush1.bf16.msra.mxu0 %v10485_v31  ;;  %7993 = vmatpush1.bf16.msra.mxu1 %v10488_v32 }
 0x4ec   : > { %7435 = vmatprep.subr.bf16.mxu0 %v10493_v33  ;;  %7994 = vmatprep.subr.bf16.mxu1 %v10496_v34 }
 0x4ed   : > { %7465 = vmatprep.mubr.bf16.mxu0 %v10622_v39  ;;  %8024 = vmatprep.mubr.bf16.mxu1 %v10622_v39 }
 0x4ef   : > { %7436 = vmatpush1.bf16.msra.mxu0 %v10491_v35  ;;  %7995 = vmatpush1.bf16.msra.mxu1 %v10494_v36 }
 0x4f0   : > { %7437 = vmatprep.subr.bf16.mxu0 %v10499_v37  ;;  %7996 = vmatprep.subr.bf16.mxu1 %v10502_v38 }
 0x4f3   : > { %7438 = vmatpush1.bf16.msra.mxu0 %v10497_v40  ;;  %7997 = vmatpush1.bf16.msra.mxu1 %v10500_v41 }
 0x4f4   : > { %7439 = vmatprep.subr.bf16.mxu0 %v10505_v42  ;;  %7998 = vmatprep.subr.bf16.mxu1 %v10508_v43 }
 0x4f7   : > { %7440 = vmatpush1.bf16.msra.mxu0 %v10503_v44  ;;  %7999 = vmatpush1.bf16.msra.mxu1 %v10506_v45 }
 0x4f8   : > { %7441 = vmatprep.subr.bf16.mxu0 %v10511_v46  ;;  %8000 = vmatprep.subr.bf16.mxu1 %v10514_v47 }
 0x4fb   : > { %7442 = vmatpush1.bf16.msra.mxu0 %v10509_v48  ;;  %8001 = vmatpush1.bf16.msra.mxu1 %v10512_v49 }
 0x4fc   : > { %7443 = vmatprep.subr.bf16.mxu0 %v10517_v50  ;;  %8002 = vmatprep.subr.bf16.mxu1 %v10520_v51 }
 0x4ff   : > { %7444 = vmatpush1.bf16.msra.mxu0 %v10515_v52  ;;  %8003 = vmatpush1.bf16.msra.mxu1 %v10518_v53 }
 0x500   : > { %7445 = vmatprep.subr.bf16.mxu0 %v10523_v54  ;;  %8004 = vmatprep.subr.bf16.mxu1 %v10526_v55 }
 0x503   : > { %7446 = vmatpush1.bf16.msra.mxu0 %v10521_v56  ;;  %8005 = vmatpush1.bf16.msra.mxu1 %v10524_v57 }
 0x504   : > { %7447 = vmatprep.subr.bf16.mxu0 %v10529_v58  ;;  %8006 = vmatprep.subr.bf16.mxu1 %v10532_v59 }
 0x507   : > { %7448 = vmatpush1.bf16.msra.mxu0 %v10527_v60  ;;  %8007 = vmatpush1.bf16.msra.mxu1 %v10530_v61 }
 0x50a   : > { %7466 = vmatmul.mubr.bf16.vlgmr.msra.gmra.mrb[0].mxu0 %v10533_v62  ;;  %8025 = vmatmul.mubr.bf16.vlgmr.msra.gmra.mrb[0].mxu1 %v10533_v62 }
 0x5dd   : > { %v7467_v3 = vpop.f32.mrb[0].mxu0  ;;  %v8026_v4 = vpop.f32.mrb[0].mxu1  ;;  %8054 = sbr.rel (%p9091_p5) target bundleno = 1524 (0x5f4), region = 89 }
 0x5de   : > { %v8035_v7 = vadd.f32 %v7467_v3, %v1957_v63  ;;  %v8037_v8 = vadd.f32 %v8026_v4, %v1959_v0  ;;  %v7469_v9 = vpop.f32.mrb[1].mxu0  ;;  %v8028_v10 = vpop.f32.mrb[1].mxu1 }
 0x5df   : > { %v8036_v13 = vadd.f32 %v7469_v9, %v1958_v1  ;;  %v8038_v14 = vadd.f32 %v8028_v10, %v1960_v2  ;;  %v7471_v15 = vpop.f32.mrb[2].mxu0  ;;  %v8030_v16 = vpop.f32.mrb[2].mxu1 }
 0x5e0   : > { %8043 = vst [vmem:[#allocation2] sm:$0xff] %v8035_v7  ;;  %8045 = vst [vmem:[#allocation2 + $0x10] sm:$0xff] %v8037_v8  ;;  %v8039_v17 = vadd.f32 %v7471_v15, %v1961_v5  ;;  %v8041_v18 = vadd.f32 %v8030_v16, %v1963_v6  ;;  %v7473_v19 = vpop.f32.mrb[3].mxu0  ;;  %v8032_v20 = vpop.f32.mrb[3].mxu1 }
 0x5e1   : > { %8044 = vst [vmem:[#allocation2 + $0x8] sm:$0xff] %v8036_v13  ;;  %8046 = vst [vmem:[#allocation2 + $0x18] sm:$0xff] %v8038_v14  ;;  %v8040_v21 = vadd.f32 %v7473_v19, %v1962_v11  ;;  %v8042_v22 = vadd.f32 %v8032_v20, %v1964_v12 }
 0x5e2   : > { %8047 = vst [vmem:[#allocation2 + $0x20] sm:$0xff] %v8039_v17  ;;  %8049 = vst [vmem:[#allocation2 + $0x30] sm:$0xff] %v8041_v18 }
 0x5e3   : > { %8048 = vst [vmem:[#allocation2 + $0x28] sm:$0xff] %v8040_v21  ;;  %8050 = vst [vmem:[#allocation2 + $0x38] sm:$0xff] %v8042_v22 }
 0x5e7   : > { %v8055_v23 = vld [vmem:[#allocation2] sm:$0xff]  ;;  %v8057_v25 = vld [vmem:[#allocation2 + $0x10] sm:$0xff] }
 0x5e8   : > { %v8056_v24 = vld [vmem:[#allocation2 + $0x8] sm:$0xff]  ;;  %vm8063_vm0 = vcmp.gt.f32.partialorder %v8055_v23, 0.0  ;;  %v8071_v26 = vmul.f32 0.01, %v8055_v23  ;;  %v8058_v28 = vld [vmem:[#allocation2 + $0x18] sm:$0xff]  ;;  %vm8065_vm2 = vcmp.gt.f32.partialorder %v8057_v25, 0.0 }
 0x5e9   : > { %vm8064_vm1 = vcmp.gt.f32.partialorder %v8056_v24, 0.0  ;;  %v8072_v27 = vmul.f32 0.01, %v8056_v24  ;;  %v8073_v29 = vmul.f32 0.01, %v8057_v25  ;;  %v8059_v30 = vld [vmem:[#allocation2 + $0x20] sm:$0xff] }
 0x5ea   : > { %v8060_v31 = vld [vmem:[#allocation2 + $0x28] sm:$0xff]  ;;  %v8079_v32 = vsel %vm8063_vm0, %v8055_v23, %v8071_v26  ;;  %vm8066_vm3 = vcmp.gt.f32.partialorder %v8058_v28, 0.0  ;;  %v8074_v34 = vmul.f32 0.01, %v8058_v28  ;;  %v8061_v35 = vld [vmem:[#allocation2 + $0x30] sm:$0xff]  ;;  %v8062_v36 = vld [vmem:[#allocation2 + $0x38] sm:$0xff] }
 0x5eb   : > { %v8080_v33 = vsel %vm8064_vm1, %v8056_v24, %v8072_v27  ;;  %v8081_v38 = vsel %vm8065_vm2, %v8057_v25, %v8073_v29  ;;  %vm8067_vm4 = vcmp.gt.f32.partialorder %v8059_v30, 0.0  ;;  %vm8068_vm5 = vcmp.gt.f32.partialorder %v8060_v31, 0.0 }
 0x5ec   : > { %v9103_v37 = vpack.c.bf16 %v8080_v33, %v8079_v32  ;;  %v8082_v39 = vsel %vm8066_vm3, %v8058_v28, %v8074_v34  ;;  %v8075_v40 = vmul.f32 0.01, %v8059_v30  ;;  %v8076_v41 = vmul.f32 0.01, %v8060_v31 }
 0x5ed   : > { %vm8069_vm6 = vcmp.gt.f32.partialorder %v8061_v35, 0.0  ;;  %v9104_v42 = vpack.c.bf16 %v8082_v39, %v8081_v38  ;;  %vm8070_vm7 = vcmp.gt.f32.partialorder %v8062_v36, 0.0  ;;  %v8077_v43 = vmul.f32 0.01, %v8061_v35 }
 0x5ee   : > { %8111 = vst [vmem:[%s12430_s1] sm:$0xff] %v9103_v37  ;;  %v8078_v44 = vmul.f32 0.01, %v8062_v36  ;;  %v8083_v45 = vsel %vm8067_vm4, %v8059_v30, %v8075_v40  ;;  %v8084_v46 = vsel %vm8068_vm5, %v8060_v31, %v8076_v41 }
 0x5ef   : > { %8112 = vst [vmem:[%s12430_s1 + $0x8] sm:$0xff] %v9104_v42  ;;  %v9105_v47 = vpack.c.bf16 %v8084_v46, %v8083_v45  ;;  %v8085_v48 = vsel %vm8069_vm6, %v8061_v35, %v8077_v43 }
 0x5f0   : > { %v8086_v49 = vsel %vm8070_vm7, %v8062_v36, %v8078_v44 }
 0x5f1   : > { %v9106_v50 = vpack.c.bf16 %v8086_v49, %v8085_v48  ;;  %8113 = vst [vmem:[%s12430_s1 + $0x10] sm:$0xff] %v9105_v47 }
 0x5f3   : > { %8114 = vst [vmem:[%s12430_s1 + $0x18] sm:$0xff] %v9106_v50 }
 0x5f4 PF: > { %8121 = sbr.rel (!%p10737_p12) target bundleno = 1532 (0x5fc), region = 93  ;;  %s9107_s12 = sshll.u32 (%p10737_p12), %s10608_s19, 4 }
 0x5f5   : > { %v8137_v51 = vld [vmem:[%s12430_s1] sm:$0xff] (%p10737_p12)  ;;  %s8124_s18 = scalar_lea.vmem (%p10737_p12), %s13309_s3, %s9107_s12 }
 0x5f6   : > { %v8139_v52 = vld [vmem:[%s12430_s1 + $0x8] sm:$0xff] (%p10737_p12)  ;;  %8138 = vst [vmem:[%s8124_s18] sm:$0xff] (%p10737_p12), %v8137_v51 }
 0x5f7   : > { %8140 = vst [vmem:[%s8124_s18 + $0x8] sm:$0xff] (%p10737_p12), %v8139_v52 }
 0x5f8   : > { %v8141_v53 = vld [vmem:[%s12430_s1 + $0x10] sm:$0xff] (%p10737_p12) }
 0x5f9   : > { %8142 = vst [vmem:[%s8124_s18 + $0x20] sm:$0xff] (%p10737_p12), %v8141_v53 }
 0x5fa   : > { %v8143_v54 = vld [vmem:[%s12430_s1 + $0x18] sm:$0xff] (%p10737_p12) }
 0x5fb   : > { %8144 = vst [vmem:[%s8124_s18 + $0x28] sm:$0xff] %v8143_v54 }
 0x5fc PF: > { %s13_s22 = sadd.s32 1, %s10620_s22   ;;  %s13319_s10 = sld [smem:[#allocation6_spill]] }
 0x5fd   : > { %p10_p6 = scmp.ge.s32.totalorder %s13_s22, 6   ;;  %s13320_s12 = smov %s10584_s13 }
 0x5fe   : > { %s13321_s13 = smov %s10735_s9  ;;  %s13322_s14 = smov %s10592_s15 }
 0x5ff   : > { %s13323_s15 = smov %s10732_s8  ;;  %s13324_s16 = smov %s10600_s17 }
 0x600   : > { %s13325_s17 = smov %s10718_s30  ;;  %s13326_s18 = smov %s10612_s20 }
 0x601   : > { %s13327_s19 = smov %s10616_s21  ;;  %s13328_s20 = smov %s13331_s24 }
 0x602   : > { %s13329_s21 = smov %s13319_s10  ;;  %12 = sbr.rel (!%p10_p6) target bundleno = 9 (0x9), region = 164 }

</bundles_post_ra>
